<compile_context>
chip_gen: v7x
topology: tpu7x:2x2x1
jax: 0.10.0
libtpu: 0.0.40
codegen_flags: <defaults>
</compile_context>

<pallas_src>
import math

import jax
import jax.numpy as jnp
from jax.experimental import pallas as pl
from jax.experimental.pallas import tpu as pltpu

# Small, module-consistent shapes.
B, HW, NF, E = 2, 8, 16, 32          # batch, history window, local feats, hidden
NUM_HEADS = 4
HEAD_DIM = E // NUM_HEADS
MLP_DIM = 64
LN_EPS = 1e-6


# ----------------------------- shared math ---------------------------------
def _layernorm(x, w, b, eps=LN_EPS):
    mu = jnp.mean(x, axis=-1, keepdims=True)
    var = jnp.mean((x - mu) ** 2, axis=-1, keepdims=True)
    return (x - mu) * jax.lax.rsqrt(var + eps) * w + b


def _gelu_exact(x):
    # nn.GELU default: exact (erf) formulation.
    return 0.5 * x * (1.0 + jax.lax.erf(x * (1.0 / math.sqrt(2.0))))


# ----------------------- fused forward kernel (per batch) -------------------
def _fused_kernel(x_ref,
                  lnq_w, lnq_b, lnkv_w, lnkv_b,
                  wq_h, bq_h, wkT_h, bkT_h, wv_h, bv_h, wo_h, b_out,
                  ln2_w, ln2_b, w1, b1, w2, b2,
                  out_ref):
    # x_ref / out_ref: (HW, NF, E) slab for one batch element. All math in f32.
    query = x_ref[0].astype(jnp.float32)          # (NF, E)
    queries = [query]

    # HW is tiny and the recurrence is sequential in `query`; fully unrolled.
    for i in range(1, HW):
        kv = x_ref[i].astype(jnp.float32)         # (NF, E)
        q_ln = _layernorm(query, lnq_w[...], lnq_b[...])
        kv_ln = _layernorm(kv, lnkv_w[...], lnkv_b[...])
        kv_ln_T = kv_ln.T                         # single XLU transpose per step

        acc = jnp.zeros((NF, E), jnp.float32)
        for h in range(NUM_HEADS):                # static loop, per-head weights
            # (NF, HD); 1/sqrt(HD) already folded into wq_h / bq_h.
            qh = jnp.dot(q_ln, wq_h[h], preferred_element_type=jnp.float32) + bq_h[h]
            # (HD, NF) = k_h^T, built from pre-transposed per-head weights.
            kTh = jnp.dot(wkT_h[h], kv_ln_T, preferred_element_type=jnp.float32) + bkT_h[h]
            # (NF, HD)
            vh = jnp.dot(kv_ln, wv_h[h], preferred_element_type=jnp.float32) + bv_h[h]

            s = jnp.dot(qh, kTh, preferred_element_type=jnp.float32)   # (NF, NF)
            s = s - jnp.max(s, axis=-1, keepdims=True)
            p = jnp.exp(s)
            p = p / jnp.sum(p, axis=-1, keepdims=True)                 # exact softmax

            ov = jnp.dot(p, vh, preferred_element_type=jnp.float32)    # (NF, HD)
            # Per-head slice of the output projection (folded, same sum as concat).
            acc = acc + jnp.dot(ov, wo_h[h], preferred_element_type=jnp.float32)

        attended = acc + b_out[...]
        query = kv + attended
        queries.append(query)

    # ln_2 + MLPBlock over all Hw queries at once (sublane-aligned concat).
    slab = jnp.concatenate(queries, axis=0)                            # (HW*NF, E)
    h0 = _layernorm(slab, ln2_w[...], ln2_b[...])
    h1 = _gelu_exact(jnp.dot(h0, w1[...], preferred_element_type=jnp.float32) + b1[...])
    h2 = jnp.dot(h1, w2[...], preferred_element_type=jnp.float32) + b2[...]

    # Store per timestep with tile-aligned (multiple-of-16 sublane) slices.
    for i in range(HW):
        out_ref[i] = h2[i * NF:(i + 1) * NF, :].astype(out_ref.dtype)


# ------------------------------- wrapper ------------------------------------
def local_forward_temporal_attention(x, kp):
    """reduce=False, need_weights=False, mask=None, dropout=0."""
    v2 = lambda r, c: pl.BlockSpec((r, c), lambda b: (0, 0))
    v3 = lambda a, r, c: pl.BlockSpec((a, r, c), lambda b: (0, 0, 0))

    out = pl.pallas_call(
        _fused_kernel,
        out_shape=jax.ShapeDtypeStruct((B, HW, NF, E), x.dtype),
        grid=(B,),
        in_specs=[
            pl.BlockSpec((None, HW, NF, E), lambda b: (b, 0, 0, 0)),   # x slab
            v2(1, E), v2(1, E),                                        # ln_q w, b
            v2(1, E), v2(1, E),                                        # ln_kv w, b
            v3(NUM_HEADS, E, HEAD_DIM), v3(NUM_HEADS, 1, HEAD_DIM),    # w_q, b_q (scaled)
            v3(NUM_HEADS, HEAD_DIM, E), v3(NUM_HEADS, HEAD_DIM, NF),   # w_k^T, b_k^T
            v3(NUM_HEADS, E, HEAD_DIM), v3(NUM_HEADS, 1, HEAD_DIM),    # w_v, b_v
            v3(NUM_HEADS, HEAD_DIM, E), v2(1, E),                      # w_out rows, b_out
            v2(1, E), v2(1, E),                                        # ln_2 w, b
            v2(E, MLP_DIM), v2(1, MLP_DIM),                            # mlp fc1
            v2(MLP_DIM, E), v2(1, E),                                  # mlp fc2
        ],
        out_specs=pl.BlockSpec((None, HW, NF, E), lambda b: (b, 0, 0, 0)),
        compiler_params=pltpu.CompilerParams(
            dimension_semantics=("parallel",)),   # both TCs on v7x; no-op v5e/v6e
    )(x,
      kp["lnq_w"], kp["lnq_b"], kp["lnkv_w"], kp["lnkv_b"],
      kp["wq_h"], kp["bq_h"], kp["wkT_h"], kp["bkT_h"],
      kp["wv_h"], kp["bv_h"], kp["wo_h"], kp["b_out"],
      kp["ln2_w"], kp["ln2_b"], kp["w1"], kp["b1"], kp["w2"], kp["b2"])
    return out, None                              # attention_weights = None


# -------------------- params, wrapper-side weight re-layout ------------------
def init_params(key):
    ks = jax.random.split(key, 14)
    s = 0.1
    return {
        "lnq_w": 1.0 + s * jax.random.normal(ks[0], (1, E), jnp.float32),
        "lnq_b": s * jax.random.normal(ks[1], (1, E), jnp.float32),
        "lnkv_w": 1.0 + s * jax.random.normal(ks[2], (1, E), jnp.float32),
        "lnkv_b": s * jax.random.normal(ks[3], (1, E), jnp.float32),
        "w_qkv": s * jax.random.normal(ks[4], (E, 3 * E), jnp.float32),
        "b_qkv": s * jax.random.normal(ks[5], (1, 3 * E), jnp.float32),
        "w_out": s * jax.random.normal(ks[6], (E, E), jnp.float32),
        "b_out": s * jax.random.normal(ks[7], (1, E), jnp.float32),
        "ln2_w": 1.0 + s * jax.random.normal(ks[8], (1, E), jnp.float32),
        "ln2_b": s * jax.random.normal(ks[9], (1, E), jnp.float32),
        "w1": s * jax.random.normal(ks[10], (E, MLP_DIM), jnp.float32),
        "b1": s * jax.random.normal(ks[11], (1, MLP_DIM), jnp.float32),
        "w2": s * jax.random.normal(ks[12], (MLP_DIM, E), jnp.float32),
        "b2": s * jax.random.normal(ks[13], (1, E), jnp.float32),
    }


def prepare_params(p):
    """One-time, wrapper-side re-layout: split qkv/out-proj per head, pre-transpose
    w_k, fold the 1/sqrt(head_dim) scale into w_q/b_q. Identical math."""
    scale = 1.0 / math.sqrt(HEAD_DIM)
    w_q = p["w_qkv"][:, :E] * scale
    b_q = p["b_qkv"][:, :E] * scale
    w_k = p["w_qkv"][:, E:2 * E]
    b_k = p["b_qkv"][:, E:2 * E]
    w_v = p["w_qkv"][:, 2 * E:]
    b_v = p["b_qkv"][:, 2 * E:]

    split_w = lambda w: w.reshape(E, NUM_HEADS, HEAD_DIM).transpose(1, 0, 2)   # (H, E, HD)
    split_b = lambda b: b.reshape(1, NUM_HEADS, HEAD_DIM).transpose(1, 0, 2)   # (H, 1, HD)

    kp = {
        "lnq_w": p["lnq_w"], "lnq_b": p["lnq_b"],
        "lnkv_w": p["lnkv_w"], "lnkv_b": p["lnkv_b"],
        "wq_h": split_w(w_q), "bq_h": split_b(b_q),
        "wkT_h": w_k.reshape(E, NUM_HEADS, HEAD_DIM).transpose(1, 2, 0),       # (H, HD, E)
        "bkT_h": jnp.broadcast_to(
            b_k.reshape(1, NUM_HEADS, HEAD_DIM).transpose(1, 2, 0),            # (H, HD, 1)
            (NUM_HEADS, HEAD_DIM, NF)),
        "wv_h": split_w(w_v), "bv_h": split_b(b_v),
        "wo_h": p["w_out"].reshape(NUM_HEADS, HEAD_DIM, E),                    # (H, HD, E)
        "b_out": p["b_out"],
        "ln2_w": p["ln2_w"], "ln2_b": p["ln2_b"],
        "w1": p["w1"], "b1": p["b1"], "w2": p["w2"], "b2": p["b2"],
    }
    return {k: jnp.asarray(v) for k, v in kp.items()}


# ------------------------------ pure-JAX reference ---------------------------
def reference(x, p):
    query = x[:, 0]
    outs = [query[:, None]]
    for i in range(1, HW):
        kv = x[:, i]
        q_ln = _layernorm(query, p["lnq_w"][0], p["lnq_b"][0])
        kv_ln = _layernorm(kv, p["lnkv_w"][0], p["lnkv_b"][0])
        q = q_ln @ p["w_qkv"][:, :E] + p["b_qkv"][0, :E]
        k = kv_ln @ p["w_qkv"][:, E:2 * E] + p["b_qkv"][0, E:2 * E]
        v = kv_ln @ p["w_qkv"][:, 2 * E:] + p["b_qkv"][0, 2 * E:]
        qh = q.reshape(B, NF, NUM_HEADS, HEAD_DIM).transpose(0, 2, 1, 3)
        kh = k.reshape(B, NF, NUM_HEADS, HEAD_DIM).transpose(0, 2, 1, 3)
        vh = v.reshape(B, NF, NUM_HEADS, HEAD_DIM).transpose(0, 2, 1, 3)
        s = jnp.einsum("bhqd,bhkd->bhqk", qh, kh) / math.sqrt(HEAD_DIM)
        pw = jax.nn.softmax(s, axis=-1)
        o = jnp.einsum("bhqk,bhkd->bhqd", pw, vh).transpose(0, 2, 1, 3).reshape(B, NF, E)
        attended = o @ p["w_out"] + p["b_out"][0]
        query = kv + attended
        outs.append(query[:, None])
    res = jnp.concatenate(outs, axis=1)
    res = _layernorm(res, p["ln2_w"][0], p["ln2_b"][0])
    h1 = _gelu_exact(res @ p["w1"] + p["b1"][0])
    return h1 @ p["w2"] + p["b2"][0]


if __name__ == "__main__":
    key = jax.random.PRNGKey(0)
    kx, kparam = jax.random.split(key)
    x = jax.random.normal(kx, (B, HW, NF, E), jnp.float32)
    params = init_params(kparam)
    kparams = prepare_params(params)          # one-time weight re-layout (outside jit)

    fwd = jax.jit(local_forward_temporal_attention)
    out, attn_w = fwd(x, kparams)
    out = jax.block_until_ready(out)
    assert attn_w is None
    assert out.shape == (B, HW, NF, E) and out.dtype == jnp.float32

    ref = jax.block_until_ready(reference(x, params))
    if not jnp.allclose(out, ref, rtol=1e-4, atol=1e-4):
        raise AssertionError(
            f"mismatch: max abs diff = {float(jnp.max(jnp.abs(out - ref)))}")
    print("KERNEL_OK")
</pallas_src>

<mosaic_0001>
module attributes {stable_mosaic.version = 11 : i64} {
  func.func @_fused_kernel(%arg0: i32, %arg1: memref<1x8x16x32xf32, #tpu.memory_space<vmem>>, %arg2: memref<1x32xf32, #tpu.memory_space<vmem>>, %arg3: memref<1x32xf32, #tpu.memory_space<vmem>>, %arg4: memref<1x32xf32, #tpu.memory_space<vmem>>, %arg5: memref<1x32xf32, #tpu.memory_space<vmem>>, %arg6: memref<4x32x8xf32, #tpu.memory_space<vmem>>, %arg7: memref<4x1x8xf32, #tpu.memory_space<vmem>>, %arg8: memref<4x8x32xf32, #tpu.memory_space<vmem>>, %arg9: memref<4x8x16xf32, #tpu.memory_space<vmem>>, %arg10: memref<4x32x8xf32, #tpu.memory_space<vmem>>, %arg11: memref<4x1x8xf32, #tpu.memory_space<vmem>>, %arg12: memref<4x8x32xf32, #tpu.memory_space<vmem>>, %arg13: memref<1x32xf32, #tpu.memory_space<vmem>>, %arg14: memref<1x32xf32, #tpu.memory_space<vmem>>, %arg15: memref<1x32xf32, #tpu.memory_space<vmem>>, %arg16: memref<32x64xf32, #tpu.memory_space<vmem>>, %arg17: memref<1x64xf32, #tpu.memory_space<vmem>>, %arg18: memref<64x32xf32, #tpu.memory_space<vmem>>, %arg19: memref<1x32xf32, #tpu.memory_space<vmem>>, %arg20: memref<1x8x16x32xf32, #tpu.memory_space<vmem>>) attributes {dimension_semantics = [#tpu.dimension_semantics<parallel>], iteration_bounds = array<i64: 2>, scalar_prefetch = 0 : i64, scratch_operands = 0 : i64, tpu.core_type = #tpu.core_type<tc>, window_params = [{transform_indices = @transform_0, window_bounds = array<i64: 1, 8, 16, 32>}, {pipeline_mode = #tpu.pipeline_mode<synchronous>, transform_indices = @transform_1, window_bounds = array<i64: 1, 32>}, {pipeline_mode = #tpu.pipeline_mode<synchronous>, transform_indices = @transform_2, window_bounds = array<i64: 1, 32>}, {pipeline_mode = #tpu.pipeline_mode<synchronous>, transform_indices = @transform_3, window_bounds = array<i64: 1, 32>}, {pipeline_mode = #tpu.pipeline_mode<synchronous>, transform_indices = @transform_4, window_bounds = array<i64: 1, 32>}, {pipeline_mode = #tpu.pipeline_mode<synchronous>, transform_indices = @transform_5, window_bounds = array<i64: 4, 32, 8>}, {pipeline_mode = #tpu.pipeline_mode<synchronous>, transform_indices = @transform_6, window_bounds = array<i64: 4, 1, 8>}, {pipeline_mode = #tpu.pipeline_mode<synchronous>, transform_indices = @transform_7, window_bounds = array<i64: 4, 8, 32>}, {pipeline_mode = #tpu.pipeline_mode<synchronous>, transform_indices = @transform_8, window_bounds = array<i64: 4, 8, 16>}, {pipeline_mode = #tpu.pipeline_mode<synchronous>, transform_indices = @transform_9, window_bounds = array<i64: 4, 32, 8>}, {pipeline_mode = #tpu.pipeline_mode<synchronous>, transform_indices = @transform_10, window_bounds = array<i64: 4, 1, 8>}, {pipeline_mode = #tpu.pipeline_mode<synchronous>, transform_indices = @transform_11, window_bounds = array<i64: 4, 8, 32>}, {pipeline_mode = #tpu.pipeline_mode<synchronous>, transform_indices = @transform_12, window_bounds = array<i64: 1, 32>}, {pipeline_mode = #tpu.pipeline_mode<synchronous>, transform_indices = @transform_13, window_bounds = array<i64: 1, 32>}, {pipeline_mode = #tpu.pipeline_mode<synchronous>, transform_indices = @transform_14, window_bounds = array<i64: 1, 32>}, {pipeline_mode = #tpu.pipeline_mode<synchronous>, transform_indices = @transform_15, window_bounds = array<i64: 32, 64>}, {pipeline_mode = #tpu.pipeline_mode<synchronous>, transform_indices = @transform_16, window_bounds = array<i64: 1, 64>}, {pipeline_mode = #tpu.pipeline_mode<synchronous>, transform_indices = @transform_17, window_bounds = array<i64: 64, 32>}, {pipeline_mode = #tpu.pipeline_mode<synchronous>, transform_indices = @transform_18, window_bounds = array<i64: 1, 32>}, {transform_indices = @transform_19, window_bounds = array<i64: 1, 8, 16, 32>}]} {
    %c0 = arith.constant 0 : index
    %c0_0 = arith.constant 0 : index
    %c0_1 = arith.constant 0 : index
    %c0_2 = arith.constant 0 : index
    %0 = vector.load %arg1[%c0, %c0_0, %c0_1, %c0_2] : memref<1x8x16x32xf32, #tpu.memory_space<vmem>>, vector<1x1x16x32xf32>
    %1 = vector.shape_cast %0 : vector<1x1x16x32xf32> to vector<16x32xf32>
    %c0_3 = arith.constant 0 : index
    %c1 = arith.constant 1 : index
    %c0_4 = arith.constant 0 : index
    %c0_5 = arith.constant 0 : index
    %2 = vector.load %arg1[%c0_3, %c1, %c0_4, %c0_5] : memref<1x8x16x32xf32, #tpu.memory_space<vmem>>, vector<1x1x16x32xf32>
    %3 = vector.shape_cast %2 : vector<1x1x16x32xf32> to vector<16x32xf32>
    %c0_6 = arith.constant 0 : index
    %c0_7 = arith.constant 0 : index
    %4 = vector.load %arg2[%c0_6, %c0_7] : memref<1x32xf32, #tpu.memory_space<vmem>>, vector<1x32xf32>
    %c0_8 = arith.constant 0 : index
    %c0_9 = arith.constant 0 : index
    %5 = vector.load %arg3[%c0_8, %c0_9] : memref<1x32xf32, #tpu.memory_space<vmem>>, vector<1x32xf32>
    %cst = arith.constant dense<0.000000e+00> : vector<16xf32>
    %6 = vector.multi_reduction <add>, %1, %cst [1] : vector<16x32xf32> to vector<16xf32>
    %7 = vector.shape_cast %6 : vector<16xf32> to vector<16x1xf32>
    %cst_10 = arith.constant 3.200000e+01 : f32
    %8 = vector.broadcast %cst_10 : f32 to vector<16x1xf32>
    %9 = arith.divf %7, %8 : vector<16x1xf32>
    %10 = vector.broadcast %9 : vector<16x1xf32> to vector<16x32xf32>
    %11 = arith.subf %1, %10 : vector<16x32xf32>
    %12 = arith.mulf %11, %11 : vector<16x32xf32>
    %cst_11 = arith.constant dense<0.000000e+00> : vector<16xf32>
    %13 = vector.multi_reduction <add>, %12, %cst_11 [1] : vector<16x32xf32> to vector<16xf32>
    %14 = vector.shape_cast %13 : vector<16xf32> to vector<16x1xf32>
    %cst_12 = arith.constant 3.200000e+01 : f32
    %15 = vector.broadcast %cst_12 : f32 to vector<16x1xf32>
    %16 = arith.divf %14, %15 : vector<16x1xf32>
    %17 = vector.broadcast %9 : vector<16x1xf32> to vector<16x32xf32>
    %18 = arith.subf %1, %17 : vector<16x32xf32>
    %cst_13 = arith.constant 9.99999997E-7 : f32
    %19 = vector.broadcast %cst_13 : f32 to vector<16x1xf32>
    %20 = arith.addf %16, %19 : vector<16x1xf32>
    %21 = math.rsqrt %20 : vector<16x1xf32>
    %22 = vector.broadcast %21 : vector<16x1xf32> to vector<16x32xf32>
    %23 = arith.mulf %18, %22 : vector<16x32xf32>
    %24 = vector.broadcast %4 : vector<1x32xf32> to vector<16x32xf32>
    %25 = arith.mulf %23, %24 : vector<16x32xf32>
    %26 = vector.broadcast %5 : vector<1x32xf32> to vector<16x32xf32>
    %27 = arith.addf %25, %26 : vector<16x32xf32>
    %c0_14 = arith.constant 0 : index
    %c0_15 = arith.constant 0 : index
    %28 = vector.load %arg4[%c0_14, %c0_15] : memref<1x32xf32, #tpu.memory_space<vmem>>, vector<1x32xf32>
    %c0_16 = arith.constant 0 : index
    %c0_17 = arith.constant 0 : index
    %29 = vector.load %arg5[%c0_16, %c0_17] : memref<1x32xf32, #tpu.memory_space<vmem>>, vector<1x32xf32>
    %cst_18 = arith.constant dense<0.000000e+00> : vector<16xf32>
    %30 = vector.multi_reduction <add>, %3, %cst_18 [1] : vector<16x32xf32> to vector<16xf32>
    %31 = vector.shape_cast %30 : vector<16xf32> to vector<16x1xf32>
    %cst_19 = arith.constant 3.200000e+01 : f32
    %32 = vector.broadcast %cst_19 : f32 to vector<16x1xf32>
    %33 = arith.divf %31, %32 : vector<16x1xf32>
    %34 = vector.broadcast %33 : vector<16x1xf32> to vector<16x32xf32>
    %35 = arith.subf %3, %34 : vector<16x32xf32>
    %36 = arith.mulf %35, %35 : vector<16x32xf32>
    %cst_20 = arith.constant dense<0.000000e+00> : vector<16xf32>
    %37 = vector.multi_reduction <add>, %36, %cst_20 [1] : vector<16x32xf32> to vector<16xf32>
    %38 = vector.shape_cast %37 : vector<16xf32> to vector<16x1xf32>
    %cst_21 = arith.constant 3.200000e+01 : f32
    %39 = vector.broadcast %cst_21 : f32 to vector<16x1xf32>
    %40 = arith.divf %38, %39 : vector<16x1xf32>
    %41 = vector.broadcast %33 : vector<16x1xf32> to vector<16x32xf32>
    %42 = arith.subf %3, %41 : vector<16x32xf32>
    %cst_22 = arith.constant 9.99999997E-7 : f32
    %43 = vector.broadcast %cst_22 : f32 to vector<16x1xf32>
    %44 = arith.addf %40, %43 : vector<16x1xf32>
    %45 = math.rsqrt %44 : vector<16x1xf32>
    %46 = vector.broadcast %45 : vector<16x1xf32> to vector<16x32xf32>
    %47 = arith.mulf %42, %46 : vector<16x32xf32>
    %48 = vector.broadcast %28 : vector<1x32xf32> to vector<16x32xf32>
    %49 = arith.mulf %47, %48 : vector<16x32xf32>
    %50 = vector.broadcast %29 : vector<1x32xf32> to vector<16x32xf32>
    %51 = arith.addf %49, %50 : vector<16x32xf32>
    %52 = tpu.transpose %51, [1, 0] : vector<16x32xf32> -> vector<32x16xf32>
    %cst_23 = arith.constant 0.000000e+00 : f32
    %53 = vector.broadcast %cst_23 : f32 to vector<16x32xf32>
    %c0_24 = arith.constant 0 : index
    %c0_25 = arith.constant 0 : index
    %c0_26 = arith.constant 0 : index
    %54 = vector.load %arg6[%c0_24, %c0_25, %c0_26] : memref<4x32x8xf32, #tpu.memory_space<vmem>>, vector<1x32x8xf32>
    %55 = vector.shape_cast %54 : vector<1x32x8xf32> to vector<32x8xf32>
    %cst_27 = arith.constant dense<0.000000e+00> : vector<16x8xf32>
    %56 = tpu.matmul %27, %55, %cst_27 {dimension_numbers = #tpu.dot_dimension_numbers<[1], [0], [0], [1], [0, 0, 1, 1], [], []>} : vector<16x32xf32>, vector<32x8xf32>, vector<16x8xf32> -> vector<16x8xf32>
    %c0_28 = arith.constant 0 : index
    %c0_29 = arith.constant 0 : index
    %c0_30 = arith.constant 0 : index
    %57 = vector.load %arg7[%c0_28, %c0_29, %c0_30] : memref<4x1x8xf32, #tpu.memory_space<vmem>>, vector<1x1x8xf32>
    %58 = vector.shape_cast %57 : vector<1x1x8xf32> to vector<1x8xf32>
    %59 = vector.broadcast %58 : vector<1x8xf32> to vector<16x8xf32>
    %60 = arith.addf %56, %59 : vector<16x8xf32>
    %c0_31 = arith.constant 0 : index
    %c0_32 = arith.constant 0 : index
    %c0_33 = arith.constant 0 : index
    %61 = vector.load %arg8[%c0_31, %c0_32, %c0_33] : memref<4x8x32xf32, #tpu.memory_space<vmem>>, vector<1x8x32xf32>
    %62 = vector.shape_cast %61 : vector<1x8x32xf32> to vector<8x32xf32>
    %cst_34 = arith.constant dense<0.000000e+00> : vector<8x16xf32>
    %63 = tpu.matmul %62, %52, %cst_34 {dimension_numbers = #tpu.dot_dimension_numbers<[1], [0], [0], [1], [0, 0, 1, 1], [], []>} : vector<8x32xf32>, vector<32x16xf32>, vector<8x16xf32> -> vector<8x16xf32>
    %c0_35 = arith.constant 0 : index
    %c0_36 = arith.constant 0 : index
    %c0_37 = arith.constant 0 : index
    %64 = vector.load %arg9[%c0_35, %c0_36, %c0_37] : memref<4x8x16xf32, #tpu.memory_space<vmem>>, vector<1x8x16xf32>
    %65 = vector.shape_cast %64 : vector<1x8x16xf32> to vector<8x16xf32>
    %66 = arith.addf %63, %65 : vector<8x16xf32>
    %c0_38 = arith.constant 0 : index
    %c0_39 = arith.constant 0 : index
    %c0_40 = arith.constant 0 : index
    %67 = vector.load %arg10[%c0_38, %c0_39, %c0_40] : memref<4x32x8xf32, #tpu.memory_space<vmem>>, vector<1x32x8xf32>
    %68 = vector.shape_cast %67 : vector<1x32x8xf32> to vector<32x8xf32>
    %cst_41 = arith.constant dense<0.000000e+00> : vector<16x8xf32>
    %69 = tpu.matmul %51, %68, %cst_41 {dimension_numbers = #tpu.dot_dimension_numbers<[1], [0], [0], [1], [0, 0, 1, 1], [], []>} : vector<16x32xf32>, vector<32x8xf32>, vector<16x8xf32> -> vector<16x8xf32>
    %c0_42 = arith.constant 0 : index
    %c0_43 = arith.constant 0 : index
    %c0_44 = arith.constant 0 : index
    %70 = vector.load %arg11[%c0_42, %c0_43, %c0_44] : memref<4x1x8xf32, #tpu.memory_space<vmem>>, vector<1x1x8xf32>
    %71 = vector.shape_cast %70 : vector<1x1x8xf32> to vector<1x8xf32>
    %72 = vector.broadcast %71 : vector<1x8xf32> to vector<16x8xf32>
    %73 = arith.addf %69, %72 : vector<16x8xf32>
    %cst_45 = arith.constant dense<0.000000e+00> : vector<16x16xf32>
    %74 = tpu.matmul %60, %66, %cst_45 {dimension_numbers = #tpu.dot_dimension_numbers<[1], [0], [0], [1], [0, 0, 1, 1], [], []>} : vector<16x8xf32>, vector<8x16xf32>, vector<16x16xf32> -> vector<16x16xf32>
    %cst_46 = arith.constant dense<0xFF800000> : vector<16xf32>
    %75 = vector.multi_reduction <maximumf>, %74, %cst_46 [1] : vector<16x16xf32> to vector<16xf32>
    %76 = vector.shape_cast %75 : vector<16xf32> to vector<16x1xf32>
    %77 = vector.broadcast %76 : vector<16x1xf32> to vector<16x16xf32>
    %78 = arith.subf %74, %77 : vector<16x16xf32>
    %79 = math.exp %78 : vector<16x16xf32>
    %cst_47 = arith.constant dense<0.000000e+00> : vector<16xf32>
    %80 = vector.multi_reduction <add>, %79, %cst_47 [1] : vector<16x16xf32> to vector<16xf32>
    %81 = vector.shape_cast %80 : vector<16xf32> to vector<16x1xf32>
    %82 = vector.broadcast %81 : vector<16x1xf32> to vector<16x16xf32>
    %83 = arith.divf %79, %82 : vector<16x16xf32>
    %cst_48 = arith.constant dense<0.000000e+00> : vector<16x8xf32>
    %84 = tpu.matmul %83, %73, %cst_48 {dimension_numbers = #tpu.dot_dimension_numbers<[1], [0], [0], [1], [0, 0, 1, 1], [], []>} : vector<16x16xf32>, vector<16x8xf32>, vector<16x8xf32> -> vector<16x8xf32>
    %c0_49 = arith.constant 0 : index
    %c0_50 = arith.constant 0 : index
    %c0_51 = arith.constant 0 : index
    %85 = vector.load %arg12[%c0_49, %c0_50, %c0_51] : memref<4x8x32xf32, #tpu.memory_space<vmem>>, vector<1x8x32xf32>
    %86 = vector.shape_cast %85 : vector<1x8x32xf32> to vector<8x32xf32>
    %cst_52 = arith.constant dense<0.000000e+00> : vector<16x32xf32>
    %87 = tpu.matmul %84, %86, %cst_52 {dimension_numbers = #tpu.dot_dimension_numbers<[1], [0], [0], [1], [0, 0, 1, 1], [], []>} : vector<16x8xf32>, vector<8x32xf32>, vector<16x32xf32> -> vector<16x32xf32>
    %88 = arith.addf %53, %87 : vector<16x32xf32>
    %c1_53 = arith.constant 1 : index
    %c0_54 = arith.constant 0 : index
    %c0_55 = arith.constant 0 : index
    %89 = vector.load %arg6[%c1_53, %c0_54, %c0_55] : memref<4x32x8xf32, #tpu.memory_space<vmem>>, vector<1x32x8xf32>
    %90 = vector.shape_cast %89 : vector<1x32x8xf32> to vector<32x8xf32>
    %cst_56 = arith.constant dense<0.000000e+00> : vector<16x8xf32>
    %91 = tpu.matmul %27, %90, %cst_56 {dimension_numbers = #tpu.dot_dimension_numbers<[1], [0], [0], [1], [0, 0, 1, 1], [], []>} : vector<16x32xf32>, vector<32x8xf32>, vector<16x8xf32> -> vector<16x8xf32>
    %c1_57 = arith.constant 1 : index
    %c0_58 = arith.constant 0 : index
    %c0_59 = arith.constant 0 : index
    %92 = vector.load %arg7[%c1_57, %c0_58, %c0_59] : memref<4x1x8xf32, #tpu.memory_space<vmem>>, vector<1x1x8xf32>
    %93 = vector.shape_cast %92 : vector<1x1x8xf32> to vector<1x8xf32>
    %94 = vector.broadcast %93 : vector<1x8xf32> to vector<16x8xf32>
    %95 = arith.addf %91, %94 : vector<16x8xf32>
    %c1_60 = arith.constant 1 : index
    %c0_61 = arith.constant 0 : index
    %c0_62 = arith.constant 0 : index
    %96 = vector.load %arg8[%c1_60, %c0_61, %c0_62] : memref<4x8x32xf32, #tpu.memory_space<vmem>>, vector<1x8x32xf32>
    %97 = vector.shape_cast %96 : vector<1x8x32xf32> to vector<8x32xf32>
    %cst_63 = arith.constant dense<0.000000e+00> : vector<8x16xf32>
    %98 = tpu.matmul %97, %52, %cst_63 {dimension_numbers = #tpu.dot_dimension_numbers<[1], [0], [0], [1], [0, 0, 1, 1], [], []>} : vector<8x32xf32>, vector<32x16xf32>, vector<8x16xf32> -> vector<8x16xf32>
    %c1_64 = arith.constant 1 : index
    %c0_65 = arith.constant 0 : index
    %c0_66 = arith.constant 0 : index
    %99 = vector.load %arg9[%c1_64, %c0_65, %c0_66] : memref<4x8x16xf32, #tpu.memory_space<vmem>>, vector<1x8x16xf32>
    %100 = vector.shape_cast %99 : vector<1x8x16xf32> to vector<8x16xf32>
    %101 = arith.addf %98, %100 : vector<8x16xf32>
    %c1_67 = arith.constant 1 : index
    %c0_68 = arith.constant 0 : index
    %c0_69 = arith.constant 0 : index
    %102 = vector.load %arg10[%c1_67, %c0_68, %c0_69] : memref<4x32x8xf32, #tpu.memory_space<vmem>>, vector<1x32x8xf32>
    %103 = vector.shape_cast %102 : vector<1x32x8xf32> to vector<32x8xf32>
    %cst_70 = arith.constant dense<0.000000e+00> : vector<16x8xf32>
    %104 = tpu.matmul %51, %103, %cst_70 {dimension_numbers = #tpu.dot_dimension_numbers<[1], [0], [0], [1], [0, 0, 1, 1], [], []>} : vector<16x32xf32>, vector<32x8xf32>, vector<16x8xf32> -> vector<16x8xf32>
    %c1_71 = arith.constant 1 : index
    %c0_72 = arith.constant 0 : index
    %c0_73 = arith.constant 0 : index
    %105 = vector.load %arg11[%c1_71, %c0_72, %c0_73] : memref<4x1x8xf32, #tpu.memory_space<vmem>>, vector<1x1x8xf32>
    %106 = vector.shape_cast %105 : vector<1x1x8xf32> to vector<1x8xf32>
    %107 = vector.broadcast %106 : vector<1x8xf32> to vector<16x8xf32>
    %108 = arith.addf %104, %107 : vector<16x8xf32>
    %cst_74 = arith.constant dense<0.000000e+00> : vector<16x16xf32>
    %109 = tpu.matmul %95, %101, %cst_74 {dimension_numbers = #tpu.dot_dimension_numbers<[1], [0], [0], [1], [0, 0, 1, 1], [], []>} : vector<16x8xf32>, vector<8x16xf32>, vector<16x16xf32> -> vector<16x16xf32>
    %cst_75 = arith.constant dense<0xFF800000> : vector<16xf32>
    %110 = vector.multi_reduction <maximumf>, %109, %cst_75 [1] : vector<16x16xf32> to vector<16xf32>
    %111 = vector.shape_cast %110 : vector<16xf32> to vector<16x1xf32>
    %112 = vector.broadcast %111 : vector<16x1xf32> to vector<16x16xf32>
    %113 = arith.subf %109, %112 : vector<16x16xf32>
    %114 = math.exp %113 : vector<16x16xf32>
    %cst_76 = arith.constant dense<0.000000e+00> : vector<16xf32>
    %115 = vector.multi_reduction <add>, %114, %cst_76 [1] : vector<16x16xf32> to vector<16xf32>
    %116 = vector.shape_cast %115 : vector<16xf32> to vector<16x1xf32>
    %117 = vector.broadcast %116 : vector<16x1xf32> to vector<16x16xf32>
    %118 = arith.divf %114, %117 : vector<16x16xf32>
    %cst_77 = arith.constant dense<0.000000e+00> : vector<16x8xf32>
    %119 = tpu.matmul %118, %108, %cst_77 {dimension_numbers = #tpu.dot_dimension_numbers<[1], [0], [0], [1], [0, 0, 1, 1], [], []>} : vector<16x16xf32>, vector<16x8xf32>, vector<16x8xf32> -> vector<16x8xf32>
    %c1_78 = arith.constant 1 : index
    %c0_79 = arith.constant 0 : index
    %c0_80 = arith.constant 0 : index
    %120 = vector.load %arg12[%c1_78, %c0_79, %c0_80] : memref<4x8x32xf32, #tpu.memory_space<vmem>>, vector<1x8x32xf32>
    %121 = vector.shape_cast %120 : vector<1x8x32xf32> to vector<8x32xf32>
    %cst_81 = arith.constant dense<0.000000e+00> : vector<16x32xf32>
    %122 = tpu.matmul %119, %121, %cst_81 {dimension_numbers = #tpu.dot_dimension_numbers<[1], [0], [0], [1], [0, 0, 1, 1], [], []>} : vector<16x8xf32>, vector<8x32xf32>, vector<16x32xf32> -> vector<16x32xf32>
    %123 = arith.addf %88, %122 : vector<16x32xf32>
    %c2 = arith.constant 2 : index
    %c0_82 = arith.constant 0 : index
    %c0_83 = arith.constant 0 : index
    %124 = vector.load %arg6[%c2, %c0_82, %c0_83] : memref<4x32x8xf32, #tpu.memory_space<vmem>>, vector<1x32x8xf32>
    %125 = vector.shape_cast %124 : vector<1x32x8xf32> to vector<32x8xf32>
    %cst_84 = arith.constant dense<0.000000e+00> : vector<16x8xf32>
    %126 = tpu.matmul %27, %125, %cst_84 {dimension_numbers = #tpu.dot_dimension_numbers<[1], [0], [0], [1], [0, 0, 1, 1], [], []>} : vector<16x32xf32>, vector<32x8xf32>, vector<16x8xf32> -> vector<16x8xf32>
    %c2_85 = arith.constant 2 : index
    %c0_86 = arith.constant 0 : index
    %c0_87 = arith.constant 0 : index
    %127 = vector.load %arg7[%c2_85, %c0_86, %c0_87] : memref<4x1x8xf32, #tpu.memory_space<vmem>>, vector<1x1x8xf32>
    %128 = vector.shape_cast %127 : vector<1x1x8xf32> to vector<1x8xf32>
    %129 = vector.broadcast %128 : vector<1x8xf32> to vector<16x8xf32>
    %130 = arith.addf %126, %129 : vector<16x8xf32>
    %c2_88 = arith.constant 2 : index
    %c0_89 = arith.constant 0 : index
    %c0_90 = arith.constant 0 : index
    %131 = vector.load %arg8[%c2_88, %c0_89, %c0_90] : memref<4x8x32xf32, #tpu.memory_space<vmem>>, vector<1x8x32xf32>
    %132 = vector.shape_cast %131 : vector<1x8x32xf32> to vector<8x32xf32>
    %cst_91 = arith.constant dense<0.000000e+00> : vector<8x16xf32>
    %133 = tpu.matmul %132, %52, %cst_91 {dimension_numbers = #tpu.dot_dimension_numbers<[1], [0], [0], [1], [0, 0, 1, 1], [], []>} : vector<8x32xf32>, vector<32x16xf32>, vector<8x16xf32> -> vector<8x16xf32>
    %c2_92 = arith.constant 2 : index
    %c0_93 = arith.constant 0 : index
    %c0_94 = arith.constant 0 : index
    %134 = vector.load %arg9[%c2_92, %c0_93, %c0_94] : memref<4x8x16xf32, #tpu.memory_space<vmem>>, vector<1x8x16xf32>
    %135 = vector.shape_cast %134 : vector<1x8x16xf32> to vector<8x16xf32>
    %136 = arith.addf %133, %135 : vector<8x16xf32>
    %c2_95 = arith.constant 2 : index
    %c0_96 = arith.constant 0 : index
    %c0_97 = arith.constant 0 : index
    %137 = vector.load %arg10[%c2_95, %c0_96, %c0_97] : memref<4x32x8xf32, #tpu.memory_space<vmem>>, vector<1x32x8xf32>
    %138 = vector.shape_cast %137 : vector<1x32x8xf32> to vector<32x8xf32>
    %cst_98 = arith.constant dense<0.000000e+00> : vector<16x8xf32>
    %139 = tpu.matmul %51, %138, %cst_98 {dimension_numbers = #tpu.dot_dimension_numbers<[1], [0], [0], [1], [0, 0, 1, 1], [], []>} : vector<16x32xf32>, vector<32x8xf32>, vector<16x8xf32> -> vector<16x8xf32>
    %c2_99 = arith.constant 2 : index
    %c0_100 = arith.constant 0 : index
    %c0_101 = arith.constant 0 : index
    %140 = vector.load %arg11[%c2_99, %c0_100, %c0_101] : memref<4x1x8xf32, #tpu.memory_space<vmem>>, vector<1x1x8xf32>
    %141 = vector.shape_cast %140 : vector<1x1x8xf32> to vector<1x8xf32>
    %142 = vector.broadcast %141 : vector<1x8xf32> to vector<16x8xf32>
    %143 = arith.addf %139, %142 : vector<16x8xf32>
    %cst_102 = arith.constant dense<0.000000e+00> : vector<16x16xf32>
    %144 = tpu.matmul %130, %136, %cst_102 {dimension_numbers = #tpu.dot_dimension_numbers<[1], [0], [0], [1], [0, 0, 1, 1], [], []>} : vector<16x8xf32>, vector<8x16xf32>, vector<16x16xf32> -> vector<16x16xf32>
    %cst_103 = arith.constant dense<0xFF800000> : vector<16xf32>
    %145 = vector.multi_reduction <maximumf>, %144, %cst_103 [1] : vector<16x16xf32> to vector<16xf32>
    %146 = vector.shape_cast %145 : vector<16xf32> to vector<16x1xf32>
    %147 = vector.broadcast %146 : vector<16x1xf32> to vector<16x16xf32>
    %148 = arith.subf %144, %147 : vector<16x16xf32>
    %149 = math.exp %148 : vector<16x16xf32>
    %cst_104 = arith.constant dense<0.000000e+00> : vector<16xf32>
    %150 = vector.multi_reduction <add>, %149, %cst_104 [1] : vector<16x16xf32> to vector<16xf32>
    %151 = vector.shape_cast %150 : vector<16xf32> to vector<16x1xf32>
    %152 = vector.broadcast %151 : vector<16x1xf32> to vector<16x16xf32>
    %153 = arith.divf %149, %152 : vector<16x16xf32>
    %cst_105 = arith.constant dense<0.000000e+00> : vector<16x8xf32>
    %154 = tpu.matmul %153, %143, %cst_105 {dimension_numbers = #tpu.dot_dimension_numbers<[1], [0], [0], [1], [0, 0, 1, 1], [], []>} : vector<16x16xf32>, vector<16x8xf32>, vector<16x8xf32> -> vector<16x8xf32>
    %c2_106 = arith.constant 2 : index
    %c0_107 = arith.constant 0 : index
    %c0_108 = arith.constant 0 : index
    %155 = vector.load %arg12[%c2_106, %c0_107, %c0_108] : memref<4x8x32xf32, #tpu.memory_space<vmem>>, vector<1x8x32xf32>
    %156 = vector.shape_cast %155 : vector<1x8x32xf32> to vector<8x32xf32>
    %cst_109 = arith.constant dense<0.000000e+00> : vector<16x32xf32>
    %157 = tpu.matmul %154, %156, %cst_109 {dimension_numbers = #tpu.dot_dimension_numbers<[1], [0], [0], [1], [0, 0, 1, 1], [], []>} : vector<16x8xf32>, vector<8x32xf32>, vector<16x32xf32> -> vector<16x32xf32>
    %158 = arith.addf %123, %157 : vector<16x32xf32>
    %c3 = arith.constant 3 : index
    %c0_110 = arith.constant 0 : index
    %c0_111 = arith.constant 0 : index
    %159 = vector.load %arg6[%c3, %c0_110, %c0_111] : memref<4x32x8xf32, #tpu.memory_space<vmem>>, vector<1x32x8xf32>
    %160 = vector.shape_cast %159 : vector<1x32x8xf32> to vector<32x8xf32>
    %cst_112 = arith.constant dense<0.000000e+00> : vector<16x8xf32>
    %161 = tpu.matmul %27, %160, %cst_112 {dimension_numbers = #tpu.dot_dimension_numbers<[1], [0], [0], [1], [0, 0, 1, 1], [], []>} : vector<16x32xf32>, vector<32x8xf32>, vector<16x8xf32> -> vector<16x8xf32>
    %c3_113 = arith.constant 3 : index
    %c0_114 = arith.constant 0 : index
    %c0_115 = arith.constant 0 : index
    %162 = vector.load %arg7[%c3_113, %c0_114, %c0_115] : memref<4x1x8xf32, #tpu.memory_space<vmem>>, vector<1x1x8xf32>
    %163 = vector.shape_cast %162 : vector<1x1x8xf32> to vector<1x8xf32>
    %164 = vector.broadcast %163 : vector<1x8xf32> to vector<16x8xf32>
    %165 = arith.addf %161, %164 : vector<16x8xf32>
    %c3_116 = arith.constant 3 : index
    %c0_117 = arith.constant 0 : index
    %c0_118 = arith.constant 0 : index
    %166 = vector.load %arg8[%c3_116, %c0_117, %c0_118] : memref<4x8x32xf32, #tpu.memory_space<vmem>>, vector<1x8x32xf32>
    %167 = vector.shape_cast %166 : vector<1x8x32xf32> to vector<8x32xf32>
    %cst_119 = arith.constant dense<0.000000e+00> : vector<8x16xf32>
    %168 = tpu.matmul %167, %52, %cst_119 {dimension_numbers = #tpu.dot_dimension_numbers<[1], [0], [0], [1], [0, 0, 1, 1], [], []>} : vector<8x32xf32>, vector<32x16xf32>, vector<8x16xf32> -> vector<8x16xf32>
    %c3_120 = arith.constant 3 : index
    %c0_121 = arith.constant 0 : index
    %c0_122 = arith.constant 0 : index
    %169 = vector.load %arg9[%c3_120, %c0_121, %c0_122] : memref<4x8x16xf32, #tpu.memory_space<vmem>>, vector<1x8x16xf32>
    %170 = vector.shape_cast %169 : vector<1x8x16xf32> to vector<8x16xf32>
    %171 = arith.addf %168, %170 : vector<8x16xf32>
    %c3_123 = arith.constant 3 : index
    %c0_124 = arith.constant 0 : index
    %c0_125 = arith.constant 0 : index
    %172 = vector.load %arg10[%c3_123, %c0_124, %c0_125] : memref<4x32x8xf32, #tpu.memory_space<vmem>>, vector<1x32x8xf32>
    %173 = vector.shape_cast %172 : vector<1x32x8xf32> to vector<32x8xf32>
    %cst_126 = arith.constant dense<0.000000e+00> : vector<16x8xf32>
    %174 = tpu.matmul %51, %173, %cst_126 {dimension_numbers = #tpu.dot_dimension_numbers<[1], [0], [0], [1], [0, 0, 1, 1], [], []>} : vector<16x32xf32>, vector<32x8xf32>, vector<16x8xf32> -> vector<16x8xf32>
    %c3_127 = arith.constant 3 : index
    %c0_128 = arith.constant 0 : index
    %c0_129 = arith.constant 0 : index
    %175 = vector.load %arg11[%c3_127, %c0_128, %c0_129] : memref<4x1x8xf32, #tpu.memory_space<vmem>>, vector<1x1x8xf32>
    %176 = vector.shape_cast %175 : vector<1x1x8xf32> to vector<1x8xf32>
    %177 = vector.broadcast %176 : vector<1x8xf32> to vector<16x8xf32>
    %178 = arith.addf %174, %177 : vector<16x8xf32>
    %cst_130 = arith.constant dense<0.000000e+00> : vector<16x16xf32>
    %179 = tpu.matmul %165, %171, %cst_130 {dimension_numbers = #tpu.dot_dimension_numbers<[1], [0], [0], [1], [0, 0, 1, 1], [], []>} : vector<16x8xf32>, vector<8x16xf32>, vector<16x16xf32> -> vector<16x16xf32>
    %cst_131 = arith.constant dense<0xFF800000> : vector<16xf32>
    %180 = vector.multi_reduction <maximumf>, %179, %cst_131 [1] : vector<16x16xf32> to vector<16xf32>
    %181 = vector.shape_cast %180 : vector<16xf32> to vector<16x1xf32>
    %182 = vector.broadcast %181 : vector<16x1xf32> to vector<16x16xf32>
    %183 = arith.subf %179, %182 : vector<16x16xf32>
    %184 = math.exp %183 : vector<16x16xf32>
    %cst_132 = arith.constant dense<0.000000e+00> : vector<16xf32>
    %185 = vector.multi_reduction <add>, %184, %cst_132 [1] : vector<16x16xf32> to vector<16xf32>
    %186 = vector.shape_cast %185 : vector<16xf32> to vector<16x1xf32>
    %187 = vector.broadcast %186 : vector<16x1xf32> to vector<16x16xf32>
    %188 = arith.divf %184, %187 : vector<16x16xf32>
    %cst_133 = arith.constant dense<0.000000e+00> : vector<16x8xf32>
    %189 = tpu.matmul %188, %178, %cst_133 {dimension_numbers = #tpu.dot_dimension_numbers<[1], [0], [0], [1], [0, 0, 1, 1], [], []>} : vector<16x16xf32>, vector<16x8xf32>, vector<16x8xf32> -> vector<16x8xf32>
    %c3_134 = arith.constant 3 : index
    %c0_135 = arith.constant 0 : index
    %c0_136 = arith.constant 0 : index
    %190 = vector.load %arg12[%c3_134, %c0_135, %c0_136] : memref<4x8x32xf32, #tpu.memory_space<vmem>>, vector<1x8x32xf32>
    %191 = vector.shape_cast %190 : vector<1x8x32xf32> to vector<8x32xf32>
    %cst_137 = arith.constant dense<0.000000e+00> : vector<16x32xf32>
    %192 = tpu.matmul %189, %191, %cst_137 {dimension_numbers = #tpu.dot_dimension_numbers<[1], [0], [0], [1], [0, 0, 1, 1], [], []>} : vector<16x8xf32>, vector<8x32xf32>, vector<16x32xf32> -> vector<16x32xf32>
    %193 = arith.addf %158, %192 : vector<16x32xf32>
    %c0_138 = arith.constant 0 : index
    %c0_139 = arith.constant 0 : index
    %194 = vector.load %arg13[%c0_138, %c0_139] : memref<1x32xf32, #tpu.memory_space<vmem>>, vector<1x32xf32>
    %195 = vector.broadcast %194 : vector<1x32xf32> to vector<16x32xf32>
    %196 = arith.addf %193, %195 : vector<16x32xf32>
    %197 = arith.addf %3, %196 : vector<16x32xf32>
    %c0_140 = arith.constant 0 : index
    %c2_141 = arith.constant 2 : index
    %c0_142 = arith.constant 0 : index
    %c0_143 = arith.constant 0 : index
    %198 = vector.load %arg1[%c0_140, %c2_141, %c0_142, %c0_143] : memref<1x8x16x32xf32, #tpu.memory_space<vmem>>, vector<1x1x16x32xf32>
    %199 = vector.shape_cast %198 : vector<1x1x16x32xf32> to vector<16x32xf32>
    %c0_144 = arith.constant 0 : index
    %c0_145 = arith.constant 0 : index
    %200 = vector.load %arg2[%c0_144, %c0_145] : memref<1x32xf32, #tpu.memory_space<vmem>>, vector<1x32xf32>
    %c0_146 = arith.constant 0 : index
    %c0_147 = arith.constant 0 : index
    %201 = vector.load %arg3[%c0_146, %c0_147] : memref<1x32xf32, #tpu.memory_space<vmem>>, vector<1x32xf32>
    %cst_148 = arith.constant dense<0.000000e+00> : vector<16xf32>
    %202 = vector.multi_reduction <add>, %197, %cst_148 [1] : vector<16x32xf32> to vector<16xf32>
    %203 = vector.shape_cast %202 : vector<16xf32> to vector<16x1xf32>
    %cst_149 = arith.constant 3.200000e+01 : f32
    %204 = vector.broadcast %cst_149 : f32 to vector<16x1xf32>
    %205 = arith.divf %203, %204 : vector<16x1xf32>
    %206 = vector.broadcast %205 : vector<16x1xf32> to vector<16x32xf32>
    %207 = arith.subf %197, %206 : vector<16x32xf32>
    %208 = arith.mulf %207, %207 : vector<16x32xf32>
    %cst_150 = arith.constant dense<0.000000e+00> : vector<16xf32>
    %209 = vector.multi_reduction <add>, %208, %cst_150 [1] : vector<16x32xf32> to vector<16xf32>
    %210 = vector.shape_cast %209 : vector<16xf32> to vector<16x1xf32>
    %cst_151 = arith.constant 3.200000e+01 : f32
    %211 = vector.broadcast %cst_151 : f32 to vector<16x1xf32>
    %212 = arith.divf %210, %211 : vector<16x1xf32>
    %213 = vector.broadcast %205 : vector<16x1xf32> to vector<16x32xf32>
    %214 = arith.subf %197, %213 : vector<16x32xf32>
    %cst_152 = arith.constant 9.99999997E-7 : f32
    %215 = vector.broadcast %cst_152 : f32 to vector<16x1xf32>
    %216 = arith.addf %212, %215 : vector<16x1xf32>
    %217 = math.rsqrt %216 : vector<16x1xf32>
    %218 = vector.broadcast %217 : vector<16x1xf32> to vector<16x32xf32>
    %219 = arith.mulf %214, %218 : vector<16x32xf32>
    %220 = vector.broadcast %200 : vector<1x32xf32> to vector<16x32xf32>
    %221 = arith.mulf %219, %220 : vector<16x32xf32>
    %222 = vector.broadcast %201 : vector<1x32xf32> to vector<16x32xf32>
    %223 = arith.addf %221, %222 : vector<16x32xf32>
    %c0_153 = arith.constant 0 : index
    %c0_154 = arith.constant 0 : index
    %224 = vector.load %arg4[%c0_153, %c0_154] : memref<1x32xf32, #tpu.memory_space<vmem>>, vector<1x32xf32>
    %c0_155 = arith.constant 0 : index
    %c0_156 = arith.constant 0 : index
    %225 = vector.load %arg5[%c0_155, %c0_156] : memref<1x32xf32, #tpu.memory_space<vmem>>, vector<1x32xf32>
    %cst_157 = arith.constant dense<0.000000e+00> : vector<16xf32>
    %226 = vector.multi_reduction <add>, %199, %cst_157 [1] : vector<16x32xf32> to vector<16xf32>
    %227 = vector.shape_cast %226 : vector<16xf32> to vector<16x1xf32>
    %cst_158 = arith.constant 3.200000e+01 : f32
    %228 = vector.broadcast %cst_158 : f32 to vector<16x1xf32>
    %229 = arith.divf %227, %228 : vector<16x1xf32>
    %230 = vector.broadcast %229 : vector<16x1xf32> to vector<16x32xf32>
    %231 = arith.subf %199, %230 : vector<16x32xf32>
    %232 = arith.mulf %231, %231 : vector<16x32xf32>
    %cst_159 = arith.constant dense<0.000000e+00> : vector<16xf32>
    %233 = vector.multi_reduction <add>, %232, %cst_159 [1] : vector<16x32xf32> to vector<16xf32>
    %234 = vector.shape_cast %233 : vector<16xf32> to vector<16x1xf32>
    %cst_160 = arith.constant 3.200000e+01 : f32
    %235 = vector.broadcast %cst_160 : f32 to vector<16x1xf32>
    %236 = arith.divf %234, %235 : vector<16x1xf32>
    %237 = vector.broadcast %229 : vector<16x1xf32> to vector<16x32xf32>
    %238 = arith.subf %199, %237 : vector<16x32xf32>
    %cst_161 = arith.constant 9.99999997E-7 : f32
    %239 = vector.broadcast %cst_161 : f32 to vector<16x1xf32>
    %240 = arith.addf %236, %239 : vector<16x1xf32>
    %241 = math.rsqrt %240 : vector<16x1xf32>
    %242 = vector.broadcast %241 : vector<16x1xf32> to vector<16x32xf32>
    %243 = arith.mulf %238, %242 : vector<16x32xf32>
    %244 = vector.broadcast %224 : vector<1x32xf32> to vector<16x32xf32>
    %245 = arith.mulf %243, %244 : vector<16x32xf32>
    %246 = vector.broadcast %225 : vector<1x32xf32> to vector<16x32xf32>
    %247 = arith.addf %245, %246 : vector<16x32xf32>
    %248 = tpu.transpose %247, [1, 0] : vector<16x32xf32> -> vector<32x16xf32>
    %cst_162 = arith.constant 0.000000e+00 : f32
    %249 = vector.broadcast %cst_162 : f32 to vector<16x32xf32>
    %c0_163 = arith.constant 0 : index
    %c0_164 = arith.constant 0 : index
    %c0_165 = arith.constant 0 : index
    %250 = vector.load %arg6[%c0_163, %c0_164, %c0_165] : memref<4x32x8xf32, #tpu.memory_space<vmem>>, vector<1x32x8xf32>
    %251 = vector.shape_cast %250 : vector<1x32x8xf32> to vector<32x8xf32>
    %cst_166 = arith.constant dense<0.000000e+00> : vector<16x8xf32>
    %252 = tpu.matmul %223, %251, %cst_166 {dimension_numbers = #tpu.dot_dimension_numbers<[1], [0], [0], [1], [0, 0, 1, 1], [], []>} : vector<16x32xf32>, vector<32x8xf32>, vector<16x8xf32> -> vector<16x8xf32>
    %c0_167 = arith.constant 0 : index
    %c0_168 = arith.constant 0 : index
    %c0_169 = arith.constant 0 : index
    %253 = vector.load %arg7[%c0_167, %c0_168, %c0_169] : memref<4x1x8xf32, #tpu.memory_space<vmem>>, vector<1x1x8xf32>
    %254 = vector.shape_cast %253 : vector<1x1x8xf32> to vector<1x8xf32>
    %255 = vector.broadcast %254 : vector<1x8xf32> to vector<16x8xf32>
    %256 = arith.addf %252, %255 : vector<16x8xf32>
    %c0_170 = arith.constant 0 : index
    %c0_171 = arith.constant 0 : index
    %c0_172 = arith.constant 0 : index
    %257 = vector.load %arg8[%c0_170, %c0_171, %c0_172] : memref<4x8x32xf32, #tpu.memory_space<vmem>>, vector<1x8x32xf32>
    %258 = vector.shape_cast %257 : vector<1x8x32xf32> to vector<8x32xf32>
    %cst_173 = arith.constant dense<0.000000e+00> : vector<8x16xf32>
    %259 = tpu.matmul %258, %248, %cst_173 {dimension_numbers = #tpu.dot_dimension_numbers<[1], [0], [0], [1], [0, 0, 1, 1], [], []>} : vector<8x32xf32>, vector<32x16xf32>, vector<8x16xf32> -> vector<8x16xf32>
    %c0_174 = arith.constant 0 : index
    %c0_175 = arith.constant 0 : index
    %c0_176 = arith.constant 0 : index
    %260 = vector.load %arg9[%c0_174, %c0_175, %c0_176] : memref<4x8x16xf32, #tpu.memory_space<vmem>>, vector<1x8x16xf32>
    %261 = vector.shape_cast %260 : vector<1x8x16xf32> to vector<8x16xf32>
    %262 = arith.addf %259, %261 : vector<8x16xf32>
    %c0_177 = arith.constant 0 : index
    %c0_178 = arith.constant 0 : index
    %c0_179 = arith.constant 0 : index
    %263 = vector.load %arg10[%c0_177, %c0_178, %c0_179] : memref<4x32x8xf32, #tpu.memory_space<vmem>>, vector<1x32x8xf32>
    %264 = vector.shape_cast %263 : vector<1x32x8xf32> to vector<32x8xf32>
    %cst_180 = arith.constant dense<0.000000e+00> : vector<16x8xf32>
    %265 = tpu.matmul %247, %264, %cst_180 {dimension_numbers = #tpu.dot_dimension_numbers<[1], [0], [0], [1], [0, 0, 1, 1], [], []>} : vector<16x32xf32>, vector<32x8xf32>, vector<16x8xf32> -> vector<16x8xf32>
    %c0_181 = arith.constant 0 : index
    %c0_182 = arith.constant 0 : index
    %c0_183 = arith.constant 0 : index
    %266 = vector.load %arg11[%c0_181, %c0_182, %c0_183] : memref<4x1x8xf32, #tpu.memory_space<vmem>>, vector<1x1x8xf32>
    %267 = vector.shape_cast %266 : vector<1x1x8xf32> to vector<1x8xf32>
    %268 = vector.broadcast %267 : vector<1x8xf32> to vector<16x8xf32>
    %269 = arith.addf %265, %268 : vector<16x8xf32>
    %cst_184 = arith.constant dense<0.000000e+00> : vector<16x16xf32>
    %270 = tpu.matmul %256, %262, %cst_184 {dimension_numbers = #tpu.dot_dimension_numbers<[1], [0], [0], [1], [0, 0, 1, 1], [], []>} : vector<16x8xf32>, vector<8x16xf32>, vector<16x16xf32> -> vector<16x16xf32>
    %cst_185 = arith.constant dense<0xFF800000> : vector<16xf32>
    %271 = vector.multi_reduction <maximumf>, %270, %cst_185 [1] : vector<16x16xf32> to vector<16xf32>
    %272 = vector.shape_cast %271 : vector<16xf32> to vector<16x1xf32>
    %273 = vector.broadcast %272 : vector<16x1xf32> to vector<16x16xf32>
    %274 = arith.subf %270, %273 : vector<16x16xf32>
    %275 = math.exp %274 : vector<16x16xf32>
    %cst_186 = arith.constant dense<0.000000e+00> : vector<16xf32>
    %276 = vector.multi_reduction <add>, %275, %cst_186 [1] : vector<16x16xf32> to vector<16xf32>
    %277 = vector.shape_cast %276 : vector<16xf32> to vector<16x1xf32>
    %278 = vector.broadcast %277 : vector<16x1xf32> to vector<16x16xf32>
    %279 = arith.divf %275, %278 : vector<16x16xf32>
    %cst_187 = arith.constant dense<0.000000e+00> : vector<16x8xf32>
    %280 = tpu.matmul %279, %269, %cst_187 {dimension_numbers = #tpu.dot_dimension_numbers<[1], [0], [0], [1], [0, 0, 1, 1], [], []>} : vector<16x16xf32>, vector<16x8xf32>, vector<16x8xf32> -> vector<16x8xf32>
    %c0_188 = arith.constant 0 : index
    %c0_189 = arith.constant 0 : index
    %c0_190 = arith.constant 0 : index
    %281 = vector.load %arg12[%c0_188, %c0_189, %c0_190] : memref<4x8x32xf32, #tpu.memory_space<vmem>>, vector<1x8x32xf32>
    %282 = vector.shape_cast %281 : vector<1x8x32xf32> to vector<8x32xf32>
    %cst_191 = arith.constant dense<0.000000e+00> : vector<16x32xf32>
    %283 = tpu.matmul %280, %282, %cst_191 {dimension_numbers = #tpu.dot_dimension_numbers<[1], [0], [0], [1], [0, 0, 1, 1], [], []>} : vector<16x8xf32>, vector<8x32xf32>, vector<16x32xf32> -> vector<16x32xf32>
    %284 = arith.addf %249, %283 : vector<16x32xf32>
    %c1_192 = arith.constant 1 : index
    %c0_193 = arith.constant 0 : index
    %c0_194 = arith.constant 0 : index
    %285 = vector.load %arg6[%c1_192, %c0_193, %c0_194] : memref<4x32x8xf32, #tpu.memory_space<vmem>>, vector<1x32x8xf32>
    %286 = vector.shape_cast %285 : vector<1x32x8xf32> to vector<32x8xf32>
    %cst_195 = arith.constant dense<0.000000e+00> : vector<16x8xf32>
    %287 = tpu.matmul %223, %286, %cst_195 {dimension_numbers = #tpu.dot_dimension_numbers<[1], [0], [0], [1], [0, 0, 1, 1], [], []>} : vector<16x32xf32>, vector<32x8xf32>, vector<16x8xf32> -> vector<16x8xf32>
    %c1_196 = arith.constant 1 : index
    %c0_197 = arith.constant 0 : index
    %c0_198 = arith.constant 0 : index
    %288 = vector.load %arg7[%c1_196, %c0_197, %c0_198] : memref<4x1x8xf32, #tpu.memory_space<vmem>>, vector<1x1x8xf32>
    %289 = vector.shape_cast %288 : vector<1x1x8xf32> to vector<1x8xf32>
    %290 = vector.broadcast %289 : vector<1x8xf32> to vector<16x8xf32>
    %291 = arith.addf %287, %290 : vector<16x8xf32>
    %c1_199 = arith.constant 1 : index
    %c0_200 = arith.constant 0 : index
    %c0_201 = arith.constant 0 : index
    %292 = vector.load %arg8[%c1_199, %c0_200, %c0_201] : memref<4x8x32xf32, #tpu.memory_space<vmem>>, vector<1x8x32xf32>
    %293 = vector.shape_cast %292 : vector<1x8x32xf32> to vector<8x32xf32>
    %cst_202 = arith.constant dense<0.000000e+00> : vector<8x16xf32>
    %294 = tpu.matmul %293, %248, %cst_202 {dimension_numbers = #tpu.dot_dimension_numbers<[1], [0], [0], [1], [0, 0, 1, 1], [], []>} : vector<8x32xf32>, vector<32x16xf32>, vector<8x16xf32> -> vector<8x16xf32>
    %c1_203 = arith.constant 1 : index
    %c0_204 = arith.constant 0 : index
    %c0_205 = arith.constant 0 : index
    %295 = vector.load %arg9[%c1_203, %c0_204, %c0_205] : memref<4x8x16xf32, #tpu.memory_space<vmem>>, vector<1x8x16xf32>
    %296 = vector.shape_cast %295 : vector<1x8x16xf32> to vector<8x16xf32>
    %297 = arith.addf %294, %296 : vector<8x16xf32>
    %c1_206 = arith.constant 1 : index
    %c0_207 = arith.constant 0 : index
    %c0_208 = arith.constant 0 : index
    %298 = vector.load %arg10[%c1_206, %c0_207, %c0_208] : memref<4x32x8xf32, #tpu.memory_space<vmem>>, vector<1x32x8xf32>
    %299 = vector.shape_cast %298 : vector<1x32x8xf32> to vector<32x8xf32>
    %cst_209 = arith.constant dense<0.000000e+00> : vector<16x8xf32>
    %300 = tpu.matmul %247, %299, %cst_209 {dimension_numbers = #tpu.dot_dimension_numbers<[1], [0], [0], [1], [0, 0, 1, 1], [], []>} : vector<16x32xf32>, vector<32x8xf32>, vector<16x8xf32> -> vector<16x8xf32>
    %c1_210 = arith.constant 1 : index
    %c0_211 = arith.constant 0 : index
    %c0_212 = arith.constant 0 : index
    %301 = vector.load %arg11[%c1_210, %c0_211, %c0_212] : memref<4x1x8xf32, #tpu.memory_space<vmem>>, vector<1x1x8xf32>
    %302 = vector.shape_cast %301 : vector<1x1x8xf32> to vector<1x8xf32>
    %303 = vector.broadcast %302 : vector<1x8xf32> to vector<16x8xf32>
    %304 = arith.addf %300, %303 : vector<16x8xf32>
    %cst_213 = arith.constant dense<0.000000e+00> : vector<16x16xf32>
    %305 = tpu.matmul %291, %297, %cst_213 {dimension_numbers = #tpu.dot_dimension_numbers<[1], [0], [0], [1], [0, 0, 1, 1], [], []>} : vector<16x8xf32>, vector<8x16xf32>, vector<16x16xf32> -> vector<16x16xf32>
    %cst_214 = arith.constant dense<0xFF800000> : vector<16xf32>
    %306 = vector.multi_reduction <maximumf>, %305, %cst_214 [1] : vector<16x16xf32> to vector<16xf32>
    %307 = vector.shape_cast %306 : vector<16xf32> to vector<16x1xf32>
    %308 = vector.broadcast %307 : vector<16x1xf32> to vector<16x16xf32>
    %309 = arith.subf %305, %308 : vector<16x16xf32>
    %310 = math.exp %309 : vector<16x16xf32>
    %cst_215 = arith.constant dense<0.000000e+00> : vector<16xf32>
    %311 = vector.multi_reduction <add>, %310, %cst_215 [1] : vector<16x16xf32> to vector<16xf32>
    %312 = vector.shape_cast %311 : vector<16xf32> to vector<16x1xf32>
    %313 = vector.broadcast %312 : vector<16x1xf32> to vector<16x16xf32>
    %314 = arith.divf %310, %313 : vector<16x16xf32>
    %cst_216 = arith.constant dense<0.000000e+00> : vector<16x8xf32>
    %315 = tpu.matmul %314, %304, %cst_216 {dimension_numbers = #tpu.dot_dimension_numbers<[1], [0], [0], [1], [0, 0, 1, 1], [], []>} : vector<16x16xf32>, vector<16x8xf32>, vector<16x8xf32> -> vector<16x8xf32>
    %c1_217 = arith.constant 1 : index
    %c0_218 = arith.constant 0 : index
    %c0_219 = arith.constant 0 : index
    %316 = vector.load %arg12[%c1_217, %c0_218, %c0_219] : memref<4x8x32xf32, #tpu.memory_space<vmem>>, vector<1x8x32xf32>
    %317 = vector.shape_cast %316 : vector<1x8x32xf32> to vector<8x32xf32>
    %cst_220 = arith.constant dense<0.000000e+00> : vector<16x32xf32>
    %318 = tpu.matmul %315, %317, %cst_220 {dimension_numbers = #tpu.dot_dimension_numbers<[1], [0], [0], [1], [0, 0, 1, 1], [], []>} : vector<16x8xf32>, vector<8x32xf32>, vector<16x32xf32> -> vector<16x32xf32>
    %319 = arith.addf %284, %318 : vector<16x32xf32>
    %c2_221 = arith.constant 2 : index
    %c0_222 = arith.constant 0 : index
    %c0_223 = arith.constant 0 : index
    %320 = vector.load %arg6[%c2_221, %c0_222, %c0_223] : memref<4x32x8xf32, #tpu.memory_space<vmem>>, vector<1x32x8xf32>
    %321 = vector.shape_cast %320 : vector<1x32x8xf32> to vector<32x8xf32>
    %cst_224 = arith.constant dense<0.000000e+00> : vector<16x8xf32>
    %322 = tpu.matmul %223, %321, %cst_224 {dimension_numbers = #tpu.dot_dimension_numbers<[1], [0], [0], [1], [0, 0, 1, 1], [], []>} : vector<16x32xf32>, vector<32x8xf32>, vector<16x8xf32> -> vector<16x8xf32>
    %c2_225 = arith.constant 2 : index
    %c0_226 = arith.constant 0 : index
    %c0_227 = arith.constant 0 : index
    %323 = vector.load %arg7[%c2_225, %c0_226, %c0_227] : memref<4x1x8xf32, #tpu.memory_space<vmem>>, vector<1x1x8xf32>
    %324 = vector.shape_cast %323 : vector<1x1x8xf32> to vector<1x8xf32>
    %325 = vector.broadcast %324 : vector<1x8xf32> to vector<16x8xf32>
    %326 = arith.addf %322, %325 : vector<16x8xf32>
    %c2_228 = arith.constant 2 : index
    %c0_229 = arith.constant 0 : index
    %c0_230 = arith.constant 0 : index
    %327 = vector.load %arg8[%c2_228, %c0_229, %c0_230] : memref<4x8x32xf32, #tpu.memory_space<vmem>>, vector<1x8x32xf32>
    %328 = vector.shape_cast %327 : vector<1x8x32xf32> to vector<8x32xf32>
    %cst_231 = arith.constant dense<0.000000e+00> : vector<8x16xf32>
    %329 = tpu.matmul %328, %248, %cst_231 {dimension_numbers = #tpu.dot_dimension_numbers<[1], [0], [0], [1], [0, 0, 1, 1], [], []>} : vector<8x32xf32>, vector<32x16xf32>, vector<8x16xf32> -> vector<8x16xf32>
    %c2_232 = arith.constant 2 : index
    %c0_233 = arith.constant 0 : index
    %c0_234 = arith.constant 0 : index
    %330 = vector.load %arg9[%c2_232, %c0_233, %c0_234] : memref<4x8x16xf32, #tpu.memory_space<vmem>>, vector<1x8x16xf32>
    %331 = vector.shape_cast %330 : vector<1x8x16xf32> to vector<8x16xf32>
    %332 = arith.addf %329, %331 : vector<8x16xf32>
    %c2_235 = arith.constant 2 : index
    %c0_236 = arith.constant 0 : index
    %c0_237 = arith.constant 0 : index
    %333 = vector.load %arg10[%c2_235, %c0_236, %c0_237] : memref<4x32x8xf32, #tpu.memory_space<vmem>>, vector<1x32x8xf32>
    %334 = vector.shape_cast %333 : vector<1x32x8xf32> to vector<32x8xf32>
    %cst_238 = arith.constant dense<0.000000e+00> : vector<16x8xf32>
    %335 = tpu.matmul %247, %334, %cst_238 {dimension_numbers = #tpu.dot_dimension_numbers<[1], [0], [0], [1], [0, 0, 1, 1], [], []>} : vector<16x32xf32>, vector<32x8xf32>, vector<16x8xf32> -> vector<16x8xf32>
    %c2_239 = arith.constant 2 : index
    %c0_240 = arith.constant 0 : index
    %c0_241 = arith.constant 0 : index
    %336 = vector.load %arg11[%c2_239, %c0_240, %c0_241] : memref<4x1x8xf32, #tpu.memory_space<vmem>>, vector<1x1x8xf32>
    %337 = vector.shape_cast %336 : vector<1x1x8xf32> to vector<1x8xf32>
    %338 = vector.broadcast %337 : vector<1x8xf32> to vector<16x8xf32>
    %339 = arith.addf %335, %338 : vector<16x8xf32>
    %cst_242 = arith.constant dense<0.000000e+00> : vector<16x16xf32>
    %340 = tpu.matmul %326, %332, %cst_242 {dimension_numbers = #tpu.dot_dimension_numbers<[1], [0], [0], [1], [0, 0, 1, 1], [], []>} : vector<16x8xf32>, vector<8x16xf32>, vector<16x16xf32> -> vector<16x16xf32>
    %cst_243 = arith.constant dense<0xFF800000> : vector<16xf32>
    %341 = vector.multi_reduction <maximumf>, %340, %cst_243 [1] : vector<16x16xf32> to vector<16xf32>
    %342 = vector.shape_cast %341 : vector<16xf32> to vector<16x1xf32>
    %343 = vector.broadcast %342 : vector<16x1xf32> to vector<16x16xf32>
    %344 = arith.subf %340, %343 : vector<16x16xf32>
    %345 = math.exp %344 : vector<16x16xf32>
    %cst_244 = arith.constant dense<0.000000e+00> : vector<16xf32>
    %346 = vector.multi_reduction <add>, %345, %cst_244 [1] : vector<16x16xf32> to vector<16xf32>
    %347 = vector.shape_cast %346 : vector<16xf32> to vector<16x1xf32>
    %348 = vector.broadcast %347 : vector<16x1xf32> to vector<16x16xf32>
    %349 = arith.divf %345, %348 : vector<16x16xf32>
    %cst_245 = arith.constant dense<0.000000e+00> : vector<16x8xf32>
    %350 = tpu.matmul %349, %339, %cst_245 {dimension_numbers = #tpu.dot_dimension_numbers<[1], [0], [0], [1], [0, 0, 1, 1], [], []>} : vector<16x16xf32>, vector<16x8xf32>, vector<16x8xf32> -> vector<16x8xf32>
    %c2_246 = arith.constant 2 : index
    %c0_247 = arith.constant 0 : index
    %c0_248 = arith.constant 0 : index
    %351 = vector.load %arg12[%c2_246, %c0_247, %c0_248] : memref<4x8x32xf32, #tpu.memory_space<vmem>>, vector<1x8x32xf32>
    %352 = vector.shape_cast %351 : vector<1x8x32xf32> to vector<8x32xf32>
    %cst_249 = arith.constant dense<0.000000e+00> : vector<16x32xf32>
    %353 = tpu.matmul %350, %352, %cst_249 {dimension_numbers = #tpu.dot_dimension_numbers<[1], [0], [0], [1], [0, 0, 1, 1], [], []>} : vector<16x8xf32>, vector<8x32xf32>, vector<16x32xf32> -> vector<16x32xf32>
    %354 = arith.addf %319, %353 : vector<16x32xf32>
    %c3_250 = arith.constant 3 : index
    %c0_251 = arith.constant 0 : index
    %c0_252 = arith.constant 0 : index
    %355 = vector.load %arg6[%c3_250, %c0_251, %c0_252] : memref<4x32x8xf32, #tpu.memory_space<vmem>>, vector<1x32x8xf32>
    %356 = vector.shape_cast %355 : vector<1x32x8xf32> to vector<32x8xf32>
    %cst_253 = arith.constant dense<0.000000e+00> : vector<16x8xf32>
    %357 = tpu.matmul %223, %356, %cst_253 {dimension_numbers = #tpu.dot_dimension_numbers<[1], [0], [0], [1], [0, 0, 1, 1], [], []>} : vector<16x32xf32>, vector<32x8xf32>, vector<16x8xf32> -> vector<16x8xf32>
    %c3_254 = arith.constant 3 : index
    %c0_255 = arith.constant 0 : index
    %c0_256 = arith.constant 0 : index
    %358 = vector.load %arg7[%c3_254, %c0_255, %c0_256] : memref<4x1x8xf32, #tpu.memory_space<vmem>>, vector<1x1x8xf32>
    %359 = vector.shape_cast %358 : vector<1x1x8xf32> to vector<1x8xf32>
    %360 = vector.broadcast %359 : vector<1x8xf32> to vector<16x8xf32>
    %361 = arith.addf %357, %360 : vector<16x8xf32>
    %c3_257 = arith.constant 3 : index
    %c0_258 = arith.constant 0 : index
    %c0_259 = arith.constant 0 : index
    %362 = vector.load %arg8[%c3_257, %c0_258, %c0_259] : memref<4x8x32xf32, #tpu.memory_space<vmem>>, vector<1x8x32xf32>
    %363 = vector.shape_cast %362 : vector<1x8x32xf32> to vector<8x32xf32>
    %cst_260 = arith.constant dense<0.000000e+00> : vector<8x16xf32>
    %364 = tpu.matmul %363, %248, %cst_260 {dimension_numbers = #tpu.dot_dimension_numbers<[1], [0], [0], [1], [0, 0, 1, 1], [], []>} : vector<8x32xf32>, vector<32x16xf32>, vector<8x16xf32> -> vector<8x16xf32>
    %c3_261 = arith.constant 3 : index
    %c0_262 = arith.constant 0 : index
    %c0_263 = arith.constant 0 : index
    %365 = vector.load %arg9[%c3_261, %c0_262, %c0_263] : memref<4x8x16xf32, #tpu.memory_space<vmem>>, vector<1x8x16xf32>
    %366 = vector.shape_cast %365 : vector<1x8x16xf32> to vector<8x16xf32>
    %367 = arith.addf %364, %366 : vector<8x16xf32>
    %c3_264 = arith.constant 3 : index
    %c0_265 = arith.constant 0 : index
    %c0_266 = arith.constant 0 : index
    %368 = vector.load %arg10[%c3_264, %c0_265, %c0_266] : memref<4x32x8xf32, #tpu.memory_space<vmem>>, vector<1x32x8xf32>
    %369 = vector.shape_cast %368 : vector<1x32x8xf32> to vector<32x8xf32>
    %cst_267 = arith.constant dense<0.000000e+00> : vector<16x8xf32>
    %370 = tpu.matmul %247, %369, %cst_267 {dimension_numbers = #tpu.dot_dimension_numbers<[1], [0], [0], [1], [0, 0, 1, 1], [], []>} : vector<16x32xf32>, vector<32x8xf32>, vector<16x8xf32> -> vector<16x8xf32>
    %c3_268 = arith.constant 3 : index
    %c0_269 = arith.constant 0 : index
    %c0_270 = arith.constant 0 : index
    %371 = vector.load %arg11[%c3_268, %c0_269, %c0_270] : memref<4x1x8xf32, #tpu.memory_space<vmem>>, vector<1x1x8xf32>
    %372 = vector.shape_cast %371 : vector<1x1x8xf32> to vector<1x8xf32>
    %373 = vector.broadcast %372 : vector<1x8xf32> to vector<16x8xf32>
    %374 = arith.addf %370, %373 : vector<16x8xf32>
    %cst_271 = arith.constant dense<0.000000e+00> : vector<16x16xf32>
    %375 = tpu.matmul %361, %367, %cst_271 {dimension_numbers = #tpu.dot_dimension_numbers<[1], [0], [0], [1], [0, 0, 1, 1], [], []>} : vector<16x8xf32>, vector<8x16xf32>, vector<16x16xf32> -> vector<16x16xf32>
    %cst_272 = arith.constant dense<0xFF800000> : vector<16xf32>
    %376 = vector.multi_reduction <maximumf>, %375, %cst_272 [1] : vector<16x16xf32> to vector<16xf32>
    %377 = vector.shape_cast %376 : vector<16xf32> to vector<16x1xf32>
    %378 = vector.broadcast %377 : vector<16x1xf32> to vector<16x16xf32>
    %379 = arith.subf %375, %378 : vector<16x16xf32>
    %380 = math.exp %379 : vector<16x16xf32>
    %cst_273 = arith.constant dense<0.000000e+00> : vector<16xf32>
    %381 = vector.multi_reduction <add>, %380, %cst_273 [1] : vector<16x16xf32> to vector<16xf32>
    %382 = vector.shape_cast %381 : vector<16xf32> to vector<16x1xf32>
    %383 = vector.broadcast %382 : vector<16x1xf32> to vector<16x16xf32>
    %384 = arith.divf %380, %383 : vector<16x16xf32>
    %cst_274 = arith.constant dense<0.000000e+00> : vector<16x8xf32>
    %385 = tpu.matmul %384, %374, %cst_274 {dimension_numbers = #tpu.dot_dimension_numbers<[1], [0], [0], [1], [0, 0, 1, 1], [], []>} : vector<16x16xf32>, vector<16x8xf32>, vector<16x8xf32> -> vector<16x8xf32>
    %c3_275 = arith.constant 3 : index
    %c0_276 = arith.constant 0 : index
    %c0_277 = arith.constant 0 : index
    %386 = vector.load %arg12[%c3_275, %c0_276, %c0_277] : memref<4x8x32xf32, #tpu.memory_space<vmem>>, vector<1x8x32xf32>
    %387 = vector.shape_cast %386 : vector<1x8x32xf32> to vector<8x32xf32>
    %cst_278 = arith.constant dense<0.000000e+00> : vector<16x32xf32>
    %388 = tpu.matmul %385, %387, %cst_278 {dimension_numbers = #tpu.dot_dimension_numbers<[1], [0], [0], [1], [0, 0, 1, 1], [], []>} : vector<16x8xf32>, vector<8x32xf32>, vector<16x32xf32> -> vector<16x32xf32>
    %389 = arith.addf %354, %388 : vector<16x32xf32>
    %c0_279 = arith.constant 0 : index
    %c0_280 = arith.constant 0 : index
    %390 = vector.load %arg13[%c0_279, %c0_280] : memref<1x32xf32, #tpu.memory_space<vmem>>, vector<1x32xf32>
    %391 = vector.broadcast %390 : vector<1x32xf32> to vector<16x32xf32>
    %392 = arith.addf %389, %391 : vector<16x32xf32>
    %393 = arith.addf %199, %392 : vector<16x32xf32>
    %c0_281 = arith.constant 0 : index
    %c3_282 = arith.constant 3 : index
    %c0_283 = arith.constant 0 : index
    %c0_284 = arith.constant 0 : index
    %394 = vector.load %arg1[%c0_281, %c3_282, %c0_283, %c0_284] : memref<1x8x16x32xf32, #tpu.memory_space<vmem>>, vector<1x1x16x32xf32>
    %395 = vector.shape_cast %394 : vector<1x1x16x32xf32> to vector<16x32xf32>
    %c0_285 = arith.constant 0 : index
    %c0_286 = arith.constant 0 : index
    %396 = vector.load %arg2[%c0_285, %c0_286] : memref<1x32xf32, #tpu.memory_space<vmem>>, vector<1x32xf32>
    %c0_287 = arith.constant 0 : index
    %c0_288 = arith.constant 0 : index
    %397 = vector.load %arg3[%c0_287, %c0_288] : memref<1x32xf32, #tpu.memory_space<vmem>>, vector<1x32xf32>
    %cst_289 = arith.constant dense<0.000000e+00> : vector<16xf32>
    %398 = vector.multi_reduction <add>, %393, %cst_289 [1] : vector<16x32xf32> to vector<16xf32>
    %399 = vector.shape_cast %398 : vector<16xf32> to vector<16x1xf32>
    %cst_290 = arith.constant 3.200000e+01 : f32
    %400 = vector.broadcast %cst_290 : f32 to vector<16x1xf32>
    %401 = arith.divf %399, %400 : vector<16x1xf32>
    %402 = vector.broadcast %401 : vector<16x1xf32> to vector<16x32xf32>
    %403 = arith.subf %393, %402 : vector<16x32xf32>
    %404 = arith.mulf %403, %403 : vector<16x32xf32>
    %cst_291 = arith.constant dense<0.000000e+00> : vector<16xf32>
    %405 = vector.multi_reduction <add>, %404, %cst_291 [1] : vector<16x32xf32> to vector<16xf32>
    %406 = vector.shape_cast %405 : vector<16xf32> to vector<16x1xf32>
    %cst_292 = arith.constant 3.200000e+01 : f32
    %407 = vector.broadcast %cst_292 : f32 to vector<16x1xf32>
    %408 = arith.divf %406, %407 : vector<16x1xf32>
    %409 = vector.broadcast %401 : vector<16x1xf32> to vector<16x32xf32>
    %410 = arith.subf %393, %409 : vector<16x32xf32>
    %cst_293 = arith.constant 9.99999997E-7 : f32
    %411 = vector.broadcast %cst_293 : f32 to vector<16x1xf32>
    %412 = arith.addf %408, %411 : vector<16x1xf32>
    %413 = math.rsqrt %412 : vector<16x1xf32>
    %414 = vector.broadcast %413 : vector<16x1xf32> to vector<16x32xf32>
    %415 = arith.mulf %410, %414 : vector<16x32xf32>
    %416 = vector.broadcast %396 : vector<1x32xf32> to vector<16x32xf32>
    %417 = arith.mulf %415, %416 : vector<16x32xf32>
    %418 = vector.broadcast %397 : vector<1x32xf32> to vector<16x32xf32>
    %419 = arith.addf %417, %418 : vector<16x32xf32>
    %c0_294 = arith.constant 0 : index
    %c0_295 = arith.constant 0 : index
    %420 = vector.load %arg4[%c0_294, %c0_295] : memref<1x32xf32, #tpu.memory_space<vmem>>, vector<1x32xf32>
    %c0_296 = arith.constant 0 : index
    %c0_297 = arith.constant 0 : index
    %421 = vector.load %arg5[%c0_296, %c0_297] : memref<1x32xf32, #tpu.memory_space<vmem>>, vector<1x32xf32>
    %cst_298 = arith.constant dense<0.000000e+00> : vector<16xf32>
    %422 = vector.multi_reduction <add>, %395, %cst_298 [1] : vector<16x32xf32> to vector<16xf32>
    %423 = vector.shape_cast %422 : vector<16xf32> to vector<16x1xf32>
    %cst_299 = arith.constant 3.200000e+01 : f32
    %424 = vector.broadcast %cst_299 : f32 to vector<16x1xf32>
    %425 = arith.divf %423, %424 : vector<16x1xf32>
    %426 = vector.broadcast %425 : vector<16x1xf32> to vector<16x32xf32>
    %427 = arith.subf %395, %426 : vector<16x32xf32>
    %428 = arith.mulf %427, %427 : vector<16x32xf32>
    %cst_300 = arith.constant dense<0.000000e+00> : vector<16xf32>
    %429 = vector.multi_reduction <add>, %428, %cst_300 [1] : vector<16x32xf32> to vector<16xf32>
    %430 = vector.shape_cast %429 : vector<16xf32> to vector<16x1xf32>
    %cst_301 = arith.constant 3.200000e+01 : f32
    %431 = vector.broadcast %cst_301 : f32 to vector<16x1xf32>
    %432 = arith.divf %430, %431 : vector<16x1xf32>
    %433 = vector.broadcast %425 : vector<16x1xf32> to vector<16x32xf32>
    %434 = arith.subf %395, %433 : vector<16x32xf32>
    %cst_302 = arith.constant 9.99999997E-7 : f32
    %435 = vector.broadcast %cst_302 : f32 to vector<16x1xf32>
    %436 = arith.addf %432, %435 : vector<16x1xf32>
    %437 = math.rsqrt %436 : vector<16x1xf32>
    %438 = vector.broadcast %437 : vector<16x1xf32> to vector<16x32xf32>
    %439 = arith.mulf %434, %438 : vector<16x32xf32>
    %440 = vector.broadcast %420 : vector<1x32xf32> to vector<16x32xf32>
    %441 = arith.mulf %439, %440 : vector<16x32xf32>
    %442 = vector.broadcast %421 : vector<1x32xf32> to vector<16x32xf32>
    %443 = arith.addf %441, %442 : vector<16x32xf32>
    %444 = tpu.transpose %443, [1, 0] : vector<16x32xf32> -> vector<32x16xf32>
    %cst_303 = arith.constant 0.000000e+00 : f32
    %445 = vector.broadcast %cst_303 : f32 to vector<16x32xf32>
    %c0_304 = arith.constant 0 : index
    %c0_305 = arith.constant 0 : index
    %c0_306 = arith.constant 0 : index
    %446 = vector.load %arg6[%c0_304, %c0_305, %c0_306] : memref<4x32x8xf32, #tpu.memory_space<vmem>>, vector<1x32x8xf32>
    %447 = vector.shape_cast %446 : vector<1x32x8xf32> to vector<32x8xf32>
    %cst_307 = arith.constant dense<0.000000e+00> : vector<16x8xf32>
    %448 = tpu.matmul %419, %447, %cst_307 {dimension_numbers = #tpu.dot_dimension_numbers<[1], [0], [0], [1], [0, 0, 1, 1], [], []>} : vector<16x32xf32>, vector<32x8xf32>, vector<16x8xf32> -> vector<16x8xf32>
    %c0_308 = arith.constant 0 : index
    %c0_309 = arith.constant 0 : index
    %c0_310 = arith.constant 0 : index
    %449 = vector.load %arg7[%c0_308, %c0_309, %c0_310] : memref<4x1x8xf32, #tpu.memory_space<vmem>>, vector<1x1x8xf32>
    %450 = vector.shape_cast %449 : vector<1x1x8xf32> to vector<1x8xf32>
    %451 = vector.broadcast %450 : vector<1x8xf32> to vector<16x8xf32>
    %452 = arith.addf %448, %451 : vector<16x8xf32>
    %c0_311 = arith.constant 0 : index
    %c0_312 = arith.constant 0 : index
    %c0_313 = arith.constant 0 : index
    %453 = vector.load %arg8[%c0_311, %c0_312, %c0_313] : memref<4x8x32xf32, #tpu.memory_space<vmem>>, vector<1x8x32xf32>
    %454 = vector.shape_cast %453 : vector<1x8x32xf32> to vector<8x32xf32>
    %cst_314 = arith.constant dense<0.000000e+00> : vector<8x16xf32>
    %455 = tpu.matmul %454, %444, %cst_314 {dimension_numbers = #tpu.dot_dimension_numbers<[1], [0], [0], [1], [0, 0, 1, 1], [], []>} : vector<8x32xf32>, vector<32x16xf32>, vector<8x16xf32> -> vector<8x16xf32>
    %c0_315 = arith.constant 0 : index
    %c0_316 = arith.constant 0 : index
    %c0_317 = arith.constant 0 : index
    %456 = vector.load %arg9[%c0_315, %c0_316, %c0_317] : memref<4x8x16xf32, #tpu.memory_space<vmem>>, vector<1x8x16xf32>
    %457 = vector.shape_cast %456 : vector<1x8x16xf32> to vector<8x16xf32>
    %458 = arith.addf %455, %457 : vector<8x16xf32>
    %c0_318 = arith.constant 0 : index
    %c0_319 = arith.constant 0 : index
    %c0_320 = arith.constant 0 : index
    %459 = vector.load %arg10[%c0_318, %c0_319, %c0_320] : memref<4x32x8xf32, #tpu.memory_space<vmem>>, vector<1x32x8xf32>
    %460 = vector.shape_cast %459 : vector<1x32x8xf32> to vector<32x8xf32>
    %cst_321 = arith.constant dense<0.000000e+00> : vector<16x8xf32>
    %461 = tpu.matmul %443, %460, %cst_321 {dimension_numbers = #tpu.dot_dimension_numbers<[1], [0], [0], [1], [0, 0, 1, 1], [], []>} : vector<16x32xf32>, vector<32x8xf32>, vector<16x8xf32> -> vector<16x8xf32>
    %c0_322 = arith.constant 0 : index
    %c0_323 = arith.constant 0 : index
    %c0_324 = arith.constant 0 : index
    %462 = vector.load %arg11[%c0_322, %c0_323, %c0_324] : memref<4x1x8xf32, #tpu.memory_space<vmem>>, vector<1x1x8xf32>
    %463 = vector.shape_cast %462 : vector<1x1x8xf32> to vector<1x8xf32>
    %464 = vector.broadcast %463 : vector<1x8xf32> to vector<16x8xf32>
    %465 = arith.addf %461, %464 : vector<16x8xf32>
    %cst_325 = arith.constant dense<0.000000e+00> : vector<16x16xf32>
    %466 = tpu.matmul %452, %458, %cst_325 {dimension_numbers = #tpu.dot_dimension_numbers<[1], [0], [0], [1], [0, 0, 1, 1], [], []>} : vector<16x8xf32>, vector<8x16xf32>, vector<16x16xf32> -> vector<16x16xf32>
    %cst_326 = arith.constant dense<0xFF800000> : vector<16xf32>
    %467 = vector.multi_reduction <maximumf>, %466, %cst_326 [1] : vector<16x16xf32> to vector<16xf32>
    %468 = vector.shape_cast %467 : vector<16xf32> to vector<16x1xf32>
    %469 = vector.broadcast %468 : vector<16x1xf32> to vector<16x16xf32>
    %470 = arith.subf %466, %469 : vector<16x16xf32>
    %471 = math.exp %470 : vector<16x16xf32>
    %cst_327 = arith.constant dense<0.000000e+00> : vector<16xf32>
    %472 = vector.multi_reduction <add>, %471, %cst_327 [1] : vector<16x16xf32> to vector<16xf32>
    %473 = vector.shape_cast %472 : vector<16xf32> to vector<16x1xf32>
    %474 = vector.broadcast %473 : vector<16x1xf32> to vector<16x16xf32>
    %475 = arith.divf %471, %474 : vector<16x16xf32>
    %cst_328 = arith.constant dense<0.000000e+00> : vector<16x8xf32>
    %476 = tpu.matmul %475, %465, %cst_328 {dimension_numbers = #tpu.dot_dimension_numbers<[1], [0], [0], [1], [0, 0, 1, 1], [], []>} : vector<16x16xf32>, vector<16x8xf32>, vector<16x8xf32> -> vector<16x8xf32>
    %c0_329 = arith.constant 0 : index
    %c0_330 = arith.constant 0 : index
    %c0_331 = arith.constant 0 : index
    %477 = vector.load %arg12[%c0_329, %c0_330, %c0_331] : memref<4x8x32xf32, #tpu.memory_space<vmem>>, vector<1x8x32xf32>
    %478 = vector.shape_cast %477 : vector<1x8x32xf32> to vector<8x32xf32>
    %cst_332 = arith.constant dense<0.000000e+00> : vector<16x32xf32>
    %479 = tpu.matmul %476, %478, %cst_332 {dimension_numbers = #tpu.dot_dimension_numbers<[1], [0], [0], [1], [0, 0, 1, 1], [], []>} : vector<16x8xf32>, vector<8x32xf32>, vector<16x32xf32> -> vector<16x32xf32>
    %480 = arith.addf %445, %479 : vector<16x32xf32>
    %c1_333 = arith.constant 1 : index
    %c0_334 = arith.constant 0 : index
    %c0_335 = arith.constant 0 : index
    %481 = vector.load %arg6[%c1_333, %c0_334, %c0_335] : memref<4x32x8xf32, #tpu.memory_space<vmem>>, vector<1x32x8xf32>
    %482 = vector.shape_cast %481 : vector<1x32x8xf32> to vector<32x8xf32>
    %cst_336 = arith.constant dense<0.000000e+00> : vector<16x8xf32>
    %483 = tpu.matmul %419, %482, %cst_336 {dimension_numbers = #tpu.dot_dimension_numbers<[1], [0], [0], [1], [0, 0, 1, 1], [], []>} : vector<16x32xf32>, vector<32x8xf32>, vector<16x8xf32> -> vector<16x8xf32>
    %c1_337 = arith.constant 1 : index
    %c0_338 = arith.constant 0 : index
    %c0_339 = arith.constant 0 : index
    %484 = vector.load %arg7[%c1_337, %c0_338, %c0_339] : memref<4x1x8xf32, #tpu.memory_space<vmem>>, vector<1x1x8xf32>
    %485 = vector.shape_cast %484 : vector<1x1x8xf32> to vector<1x8xf32>
    %486 = vector.broadcast %485 : vector<1x8xf32> to vector<16x8xf32>
    %487 = arith.addf %483, %486 : vector<16x8xf32>
    %c1_340 = arith.constant 1 : index
    %c0_341 = arith.constant 0 : index
    %c0_342 = arith.constant 0 : index
    %488 = vector.load %arg8[%c1_340, %c0_341, %c0_342] : memref<4x8x32xf32, #tpu.memory_space<vmem>>, vector<1x8x32xf32>
    %489 = vector.shape_cast %488 : vector<1x8x32xf32> to vector<8x32xf32>
    %cst_343 = arith.constant dense<0.000000e+00> : vector<8x16xf32>
    %490 = tpu.matmul %489, %444, %cst_343 {dimension_numbers = #tpu.dot_dimension_numbers<[1], [0], [0], [1], [0, 0, 1, 1], [], []>} : vector<8x32xf32>, vector<32x16xf32>, vector<8x16xf32> -> vector<8x16xf32>
    %c1_344 = arith.constant 1 : index
    %c0_345 = arith.constant 0 : index
    %c0_346 = arith.constant 0 : index
    %491 = vector.load %arg9[%c1_344, %c0_345, %c0_346] : memref<4x8x16xf32, #tpu.memory_space<vmem>>, vector<1x8x16xf32>
    %492 = vector.shape_cast %491 : vector<1x8x16xf32> to vector<8x16xf32>
    %493 = arith.addf %490, %492 : vector<8x16xf32>
    %c1_347 = arith.constant 1 : index
    %c0_348 = arith.constant 0 : index
    %c0_349 = arith.constant 0 : index
    %494 = vector.load %arg10[%c1_347, %c0_348, %c0_349] : memref<4x32x8xf32, #tpu.memory_space<vmem>>, vector<1x32x8xf32>
    %495 = vector.shape_cast %494 : vector<1x32x8xf32> to vector<32x8xf32>
    %cst_350 = arith.constant dense<0.000000e+00> : vector<16x8xf32>
    %496 = tpu.matmul %443, %495, %cst_350 {dimension_numbers = #tpu.dot_dimension_numbers<[1], [0], [0], [1], [0, 0, 1, 1], [], []>} : vector<16x32xf32>, vector<32x8xf32>, vector<16x8xf32> -> vector<16x8xf32>
    %c1_351 = arith.constant 1 : index
    %c0_352 = arith.constant 0 : index
    %c0_353 = arith.constant 0 : index
    %497 = vector.load %arg11[%c1_351, %c0_352, %c0_353] : memref<4x1x8xf32, #tpu.memory_space<vmem>>, vector<1x1x8xf32>
    %498 = vector.shape_cast %497 : vector<1x1x8xf32> to vector<1x8xf32>
    %499 = vector.broadcast %498 : vector<1x8xf32> to vector<16x8xf32>
    %500 = arith.addf %496, %499 : vector<16x8xf32>
    %cst_354 = arith.constant dense<0.000000e+00> : vector<16x16xf32>
    %501 = tpu.matmul %487, %493, %cst_354 {dimension_numbers = #tpu.dot_dimension_numbers<[1], [0], [0], [1], [0, 0, 1, 1], [], []>} : vector<16x8xf32>, vector<8x16xf32>, vector<16x16xf32> -> vector<16x16xf32>
    %cst_355 = arith.constant dense<0xFF800000> : vector<16xf32>
    %502 = vector.multi_reduction <maximumf>, %501, %cst_355 [1] : vector<16x16xf32> to vector<16xf32>
    %503 = vector.shape_cast %502 : vector<16xf32> to vector<16x1xf32>
    %504 = vector.broadcast %503 : vector<16x1xf32> to vector<16x16xf32>
    %505 = arith.subf %501, %504 : vector<16x16xf32>
    %506 = math.exp %505 : vector<16x16xf32>
    %cst_356 = arith.constant dense<0.000000e+00> : vector<16xf32>
    %507 = vector.multi_reduction <add>, %506, %cst_356 [1] : vector<16x16xf32> to vector<16xf32>
    %508 = vector.shape_cast %507 : vector<16xf32> to vector<16x1xf32>
    %509 = vector.broadcast %508 : vector<16x1xf32> to vector<16x16xf32>
    %510 = arith.divf %506, %509 : vector<16x16xf32>
    %cst_357 = arith.constant dense<0.000000e+00> : vector<16x8xf32>
    %511 = tpu.matmul %510, %500, %cst_357 {dimension_numbers = #tpu.dot_dimension_numbers<[1], [0], [0], [1], [0, 0, 1, 1], [], []>} : vector<16x16xf32>, vector<16x8xf32>, vector<16x8xf32> -> vector<16x8xf32>
    %c1_358 = arith.constant 1 : index
    %c0_359 = arith.constant 0 : index
    %c0_360 = arith.constant 0 : index
    %512 = vector.load %arg12[%c1_358, %c0_359, %c0_360] : memref<4x8x32xf32, #tpu.memory_space<vmem>>, vector<1x8x32xf32>
    %513 = vector.shape_cast %512 : vector<1x8x32xf32> to vector<8x32xf32>
    %cst_361 = arith.constant dense<0.000000e+00> : vector<16x32xf32>
    %514 = tpu.matmul %511, %513, %cst_361 {dimension_numbers = #tpu.dot_dimension_numbers<[1], [0], [0], [1], [0, 0, 1, 1], [], []>} : vector<16x8xf32>, vector<8x32xf32>, vector<16x32xf32> -> vector<16x32xf32>
    %515 = arith.addf %480, %514 : vector<16x32xf32>
    %c2_362 = arith.constant 2 : index
    %c0_363 = arith.constant 0 : index
    %c0_364 = arith.constant 0 : index
    %516 = vector.load %arg6[%c2_362, %c0_363, %c0_364] : memref<4x32x8xf32, #tpu.memory_space<vmem>>, vector<1x32x8xf32>
    %517 = vector.shape_cast %516 : vector<1x32x8xf32> to vector<32x8xf32>
    %cst_365 = arith.constant dense<0.000000e+00> : vector<16x8xf32>
    %518 = tpu.matmul %419, %517, %cst_365 {dimension_numbers = #tpu.dot_dimension_numbers<[1], [0], [0], [1], [0, 0, 1, 1], [], []>} : vector<16x32xf32>, vector<32x8xf32>, vector<16x8xf32> -> vector<16x8xf32>
    %c2_366 = arith.constant 2 : index
    %c0_367 = arith.constant 0 : index
    %c0_368 = arith.constant 0 : index
    %519 = vector.load %arg7[%c2_366, %c0_367, %c0_368] : memref<4x1x8xf32, #tpu.memory_space<vmem>>, vector<1x1x8xf32>
    %520 = vector.shape_cast %519 : vector<1x1x8xf32> to vector<1x8xf32>
    %521 = vector.broadcast %520 : vector<1x8xf32> to vector<16x8xf32>
    %522 = arith.addf %518, %521 : vector<16x8xf32>
    %c2_369 = arith.constant 2 : index
    %c0_370 = arith.constant 0 : index
    %c0_371 = arith.constant 0 : index
    %523 = vector.load %arg8[%c2_369, %c0_370, %c0_371] : memref<4x8x32xf32, #tpu.memory_space<vmem>>, vector<1x8x32xf32>
    %524 = vector.shape_cast %523 : vector<1x8x32xf32> to vector<8x32xf32>
    %cst_372 = arith.constant dense<0.000000e+00> : vector<8x16xf32>
    %525 = tpu.matmul %524, %444, %cst_372 {dimension_numbers = #tpu.dot_dimension_numbers<[1], [0], [0], [1], [0, 0, 1, 1], [], []>} : vector<8x32xf32>, vector<32x16xf32>, vector<8x16xf32> -> vector<8x16xf32>
    %c2_373 = arith.constant 2 : index
    %c0_374 = arith.constant 0 : index
    %c0_375 = arith.constant 0 : index
    %526 = vector.load %arg9[%c2_373, %c0_374, %c0_375] : memref<4x8x16xf32, #tpu.memory_space<vmem>>, vector<1x8x16xf32>
    %527 = vector.shape_cast %526 : vector<1x8x16xf32> to vector<8x16xf32>
    %528 = arith.addf %525, %527 : vector<8x16xf32>
    %c2_376 = arith.constant 2 : index
    %c0_377 = arith.constant 0 : index
    %c0_378 = arith.constant 0 : index
    %529 = vector.load %arg10[%c2_376, %c0_377, %c0_378] : memref<4x32x8xf32, #tpu.memory_space<vmem>>, vector<1x32x8xf32>
    %530 = vector.shape_cast %529 : vector<1x32x8xf32> to vector<32x8xf32>
    %cst_379 = arith.constant dense<0.000000e+00> : vector<16x8xf32>
    %531 = tpu.matmul %443, %530, %cst_379 {dimension_numbers = #tpu.dot_dimension_numbers<[1], [0], [0], [1], [0, 0, 1, 1], [], []>} : vector<16x32xf32>, vector<32x8xf32>, vector<16x8xf32> -> vector<16x8xf32>
    %c2_380 = arith.constant 2 : index
    %c0_381 = arith.constant 0 : index
    %c0_382 = arith.constant 0 : index
    %532 = vector.load %arg11[%c2_380, %c0_381, %c0_382] : memref<4x1x8xf32, #tpu.memory_space<vmem>>, vector<1x1x8xf32>
    %533 = vector.shape_cast %532 : vector<1x1x8xf32> to vector<1x8xf32>
    %534 = vector.broadcast %533 : vector<1x8xf32> to vector<16x8xf32>
    %535 = arith.addf %531, %534 : vector<16x8xf32>
    %cst_383 = arith.constant dense<0.000000e+00> : vector<16x16xf32>
    %536 = tpu.matmul %522, %528, %cst_383 {dimension_numbers = #tpu.dot_dimension_numbers<[1], [0], [0], [1], [0, 0, 1, 1], [], []>} : vector<16x8xf32>, vector<8x16xf32>, vector<16x16xf32> -> vector<16x16xf32>
    %cst_384 = arith.constant dense<0xFF800000> : vector<16xf32>
    %537 = vector.multi_reduction <maximumf>, %536, %cst_384 [1] : vector<16x16xf32> to vector<16xf32>
    %538 = vector.shape_cast %537 : vector<16xf32> to vector<16x1xf32>
    %539 = vector.broadcast %538 : vector<16x1xf32> to vector<16x16xf32>
    %540 = arith.subf %536, %539 : vector<16x16xf32>
    %541 = math.exp %540 : vector<16x16xf32>
    %cst_385 = arith.constant dense<0.000000e+00> : vector<16xf32>
    %542 = vector.multi_reduction <add>, %541, %cst_385 [1] : vector<16x16xf32> to vector<16xf32>
    %543 = vector.shape_cast %542 : vector<16xf32> to vector<16x1xf32>
    %544 = vector.broadcast %543 : vector<16x1xf32> to vector<16x16xf32>
    %545 = arith.divf %541, %544 : vector<16x16xf32>
    %cst_386 = arith.constant dense<0.000000e+00> : vector<16x8xf32>
    %546 = tpu.matmul %545, %535, %cst_386 {dimension_numbers = #tpu.dot_dimension_numbers<[1], [0], [0], [1], [0, 0, 1, 1], [], []>} : vector<16x16xf32>, vector<16x8xf32>, vector<16x8xf32> -> vector<16x8xf32>
    %c2_387 = arith.constant 2 : index
    %c0_388 = arith.constant 0 : index
    %c0_389 = arith.constant 0 : index
    %547 = vector.load %arg12[%c2_387, %c0_388, %c0_389] : memref<4x8x32xf32, #tpu.memory_space<vmem>>, vector<1x8x32xf32>
    %548 = vector.shape_cast %547 : vector<1x8x32xf32> to vector<8x32xf32>
    %cst_390 = arith.constant dense<0.000000e+00> : vector<16x32xf32>
    %549 = tpu.matmul %546, %548, %cst_390 {dimension_numbers = #tpu.dot_dimension_numbers<[1], [0], [0], [1], [0, 0, 1, 1], [], []>} : vector<16x8xf32>, vector<8x32xf32>, vector<16x32xf32> -> vector<16x32xf32>
    %550 = arith.addf %515, %549 : vector<16x32xf32>
    %c3_391 = arith.constant 3 : index
    %c0_392 = arith.constant 0 : index
    %c0_393 = arith.constant 0 : index
    %551 = vector.load %arg6[%c3_391, %c0_392, %c0_393] : memref<4x32x8xf32, #tpu.memory_space<vmem>>, vector<1x32x8xf32>
    %552 = vector.shape_cast %551 : vector<1x32x8xf32> to vector<32x8xf32>
    %cst_394 = arith.constant dense<0.000000e+00> : vector<16x8xf32>
    %553 = tpu.matmul %419, %552, %cst_394 {dimension_numbers = #tpu.dot_dimension_numbers<[1], [0], [0], [1], [0, 0, 1, 1], [], []>} : vector<16x32xf32>, vector<32x8xf32>, vector<16x8xf32> -> vector<16x8xf32>
    %c3_395 = arith.constant 3 : index
    %c0_396 = arith.constant 0 : index
    %c0_397 = arith.constant 0 : index
    %554 = vector.load %arg7[%c3_395, %c0_396, %c0_397] : memref<4x1x8xf32, #tpu.memory_space<vmem>>, vector<1x1x8xf32>
    %555 = vector.shape_cast %554 : vector<1x1x8xf32> to vector<1x8xf32>
    %556 = vector.broadcast %555 : vector<1x8xf32> to vector<16x8xf32>
    %557 = arith.addf %553, %556 : vector<16x8xf32>
    %c3_398 = arith.constant 3 : index
    %c0_399 = arith.constant 0 : index
    %c0_400 = arith.constant 0 : index
    %558 = vector.load %arg8[%c3_398, %c0_399, %c0_400] : memref<4x8x32xf32, #tpu.memory_space<vmem>>, vector<1x8x32xf32>
    %559 = vector.shape_cast %558 : vector<1x8x32xf32> to vector<8x32xf32>
    %cst_401 = arith.constant dense<0.000000e+00> : vector<8x16xf32>
    %560 = tpu.matmul %559, %444, %cst_401 {dimension_numbers = #tpu.dot_dimension_numbers<[1], [0], [0], [1], [0, 0, 1, 1], [], []>} : vector<8x32xf32>, vector<32x16xf32>, vector<8x16xf32> -> vector<8x16xf32>
    %c3_402 = arith.constant 3 : index
    %c0_403 = arith.constant 0 : index
    %c0_404 = arith.constant 0 : index
    %561 = vector.load %arg9[%c3_402, %c0_403, %c0_404] : memref<4x8x16xf32, #tpu.memory_space<vmem>>, vector<1x8x16xf32>
    %562 = vector.shape_cast %561 : vector<1x8x16xf32> to vector<8x16xf32>
    %563 = arith.addf %560, %562 : vector<8x16xf32>
    %c3_405 = arith.constant 3 : index
    %c0_406 = arith.constant 0 : index
    %c0_407 = arith.constant 0 : index
    %564 = vector.load %arg10[%c3_405, %c0_406, %c0_407] : memref<4x32x8xf32, #tpu.memory_space<vmem>>, vector<1x32x8xf32>
    %565 = vector.shape_cast %564 : vector<1x32x8xf32> to vector<32x8xf32>
    %cst_408 = arith.constant dense<0.000000e+00> : vector<16x8xf32>
    %566 = tpu.matmul %443, %565, %cst_408 {dimension_numbers = #tpu.dot_dimension_numbers<[1], [0], [0], [1], [0, 0, 1, 1], [], []>} : vector<16x32xf32>, vector<32x8xf32>, vector<16x8xf32> -> vector<16x8xf32>
    %c3_409 = arith.constant 3 : index
    %c0_410 = arith.constant 0 : index
    %c0_411 = arith.constant 0 : index
    %567 = vector.load %arg11[%c3_409, %c0_410, %c0_411] : memref<4x1x8xf32, #tpu.memory_space<vmem>>, vector<1x1x8xf32>
    %568 = vector.shape_cast %567 : vector<1x1x8xf32> to vector<1x8xf32>
    %569 = vector.broadcast %568 : vector<1x8xf32> to vector<16x8xf32>
    %570 = arith.addf %566, %569 : vector<16x8xf32>
    %cst_412 = arith.constant dense<0.000000e+00> : vector<16x16xf32>
    %571 = tpu.matmul %557, %563, %cst_412 {dimension_numbers = #tpu.dot_dimension_numbers<[1], [0], [0], [1], [0, 0, 1, 1], [], []>} : vector<16x8xf32>, vector<8x16xf32>, vector<16x16xf32> -> vector<16x16xf32>
    %cst_413 = arith.constant dense<0xFF800000> : vector<16xf32>
    %572 = vector.multi_reduction <maximumf>, %571, %cst_413 [1] : vector<16x16xf32> to vector<16xf32>
    %573 = vector.shape_cast %572 : vector<16xf32> to vector<16x1xf32>
    %574 = vector.broadcast %573 : vector<16x1xf32> to vector<16x16xf32>
    %575 = arith.subf %571, %574 : vector<16x16xf32>
    %576 = math.exp %575 : vector<16x16xf32>
    %cst_414 = arith.constant dense<0.000000e+00> : vector<16xf32>
    %577 = vector.multi_reduction <add>, %576, %cst_414 [1] : vector<16x16xf32> to vector<16xf32>
    %578 = vector.shape_cast %577 : vector<16xf32> to vector<16x1xf32>
    %579 = vector.broadcast %578 : vector<16x1xf32> to vector<16x16xf32>
    %580 = arith.divf %576, %579 : vector<16x16xf32>
    %cst_415 = arith.constant dense<0.000000e+00> : vector<16x8xf32>
    %581 = tpu.matmul %580, %570, %cst_415 {dimension_numbers = #tpu.dot_dimension_numbers<[1], [0], [0], [1], [0, 0, 1, 1], [], []>} : vector<16x16xf32>, vector<16x8xf32>, vector<16x8xf32> -> vector<16x8xf32>
    %c3_416 = arith.constant 3 : index
    %c0_417 = arith.constant 0 : index
    %c0_418 = arith.constant 0 : index
    %582 = vector.load %arg12[%c3_416, %c0_417, %c0_418] : memref<4x8x32xf32, #tpu.memory_space<vmem>>, vector<1x8x32xf32>
    %583 = vector.shape_cast %582 : vector<1x8x32xf32> to vector<8x32xf32>
    %cst_419 = arith.constant dense<0.000000e+00> : vector<16x32xf32>
    %584 = tpu.matmul %581, %583, %cst_419 {dimension_numbers = #tpu.dot_dimension_numbers<[1], [0], [0], [1], [0, 0, 1, 1], [], []>} : vector<16x8xf32>, vector<8x32xf32>, vector<16x32xf32> -> vector<16x32xf32>
    %585 = arith.addf %550, %584 : vector<16x32xf32>
    %c0_420 = arith.constant 0 : index
    %c0_421 = arith.constant 0 : index
    %586 = vector.load %arg13[%c0_420, %c0_421] : memref<1x32xf32, #tpu.memory_space<vmem>>, vector<1x32xf32>
    %587 = vector.broadcast %586 : vector<1x32xf32> to vector<16x32xf32>
    %588 = arith.addf %585, %587 : vector<16x32xf32>
    %589 = arith.addf %395, %588 : vector<16x32xf32>
    %c0_422 = arith.constant 0 : index
    %c4 = arith.constant 4 : index
    %c0_423 = arith.constant 0 : index
    %c0_424 = arith.constant 0 : index
    %590 = vector.load %arg1[%c0_422, %c4, %c0_423, %c0_424] : memref<1x8x16x32xf32, #tpu.memory_space<vmem>>, vector<1x1x16x32xf32>
    %591 = vector.shape_cast %590 : vector<1x1x16x32xf32> to vector<16x32xf32>
    %c0_425 = arith.constant 0 : index
    %c0_426 = arith.constant 0 : index
    %592 = vector.load %arg2[%c0_425, %c0_426] : memref<1x32xf32, #tpu.memory_space<vmem>>, vector<1x32xf32>
    %c0_427 = arith.constant 0 : index
    %c0_428 = arith.constant 0 : index
    %593 = vector.load %arg3[%c0_427, %c0_428] : memref<1x32xf32, #tpu.memory_space<vmem>>, vector<1x32xf32>
    %cst_429 = arith.constant dense<0.000000e+00> : vector<16xf32>
    %594 = vector.multi_reduction <add>, %589, %cst_429 [1] : vector<16x32xf32> to vector<16xf32>
    %595 = vector.shape_cast %594 : vector<16xf32> to vector<16x1xf32>
    %cst_430 = arith.constant 3.200000e+01 : f32
    %596 = vector.broadcast %cst_430 : f32 to vector<16x1xf32>
    %597 = arith.divf %595, %596 : vector<16x1xf32>
    %598 = vector.broadcast %597 : vector<16x1xf32> to vector<16x32xf32>
    %599 = arith.subf %589, %598 : vector<16x32xf32>
    %600 = arith.mulf %599, %599 : vector<16x32xf32>
    %cst_431 = arith.constant dense<0.000000e+00> : vector<16xf32>
    %601 = vector.multi_reduction <add>, %600, %cst_431 [1] : vector<16x32xf32> to vector<16xf32>
    %602 = vector.shape_cast %601 : vector<16xf32> to vector<16x1xf32>
    %cst_432 = arith.constant 3.200000e+01 : f32
    %603 = vector.broadcast %cst_432 : f32 to vector<16x1xf32>
    %604 = arith.divf %602, %603 : vector<16x1xf32>
    %605 = vector.broadcast %597 : vector<16x1xf32> to vector<16x32xf32>
    %606 = arith.subf %589, %605 : vector<16x32xf32>
    %cst_433 = arith.constant 9.99999997E-7 : f32
    %607 = vector.broadcast %cst_433 : f32 to vector<16x1xf32>
    %608 = arith.addf %604, %607 : vector<16x1xf32>
    %609 = math.rsqrt %608 : vector<16x1xf32>
    %610 = vector.broadcast %609 : vector<16x1xf32> to vector<16x32xf32>
    %611 = arith.mulf %606, %610 : vector<16x32xf32>
    %612 = vector.broadcast %592 : vector<1x32xf32> to vector<16x32xf32>
    %613 = arith.mulf %611, %612 : vector<16x32xf32>
    %614 = vector.broadcast %593 : vector<1x32xf32> to vector<16x32xf32>
    %615 = arith.addf %613, %614 : vector<16x32xf32>
    %c0_434 = arith.constant 0 : index
    %c0_435 = arith.constant 0 : index
    %616 = vector.load %arg4[%c0_434, %c0_435] : memref<1x32xf32, #tpu.memory_space<vmem>>, vector<1x32xf32>
    %c0_436 = arith.constant 0 : index
    %c0_437 = arith.constant 0 : index
    %617 = vector.load %arg5[%c0_436, %c0_437] : memref<1x32xf32, #tpu.memory_space<vmem>>, vector<1x32xf32>
    %cst_438 = arith.constant dense<0.000000e+00> : vector<16xf32>
    %618 = vector.multi_reduction <add>, %591, %cst_438 [1] : vector<16x32xf32> to vector<16xf32>
    %619 = vector.shape_cast %618 : vector<16xf32> to vector<16x1xf32>
    %cst_439 = arith.constant 3.200000e+01 : f32
    %620 = vector.broadcast %cst_439 : f32 to vector<16x1xf32>
    %621 = arith.divf %619, %620 : vector<16x1xf32>
    %622 = vector.broadcast %621 : vector<16x1xf32> to vector<16x32xf32>
    %623 = arith.subf %591, %622 : vector<16x32xf32>
    %624 = arith.mulf %623, %623 : vector<16x32xf32>
    %cst_440 = arith.constant dense<0.000000e+00> : vector<16xf32>
    %625 = vector.multi_reduction <add>, %624, %cst_440 [1] : vector<16x32xf32> to vector<16xf32>
    %626 = vector.shape_cast %625 : vector<16xf32> to vector<16x1xf32>
    %cst_441 = arith.constant 3.200000e+01 : f32
    %627 = vector.broadcast %cst_441 : f32 to vector<16x1xf32>
    %628 = arith.divf %626, %627 : vector<16x1xf32>
    %629 = vector.broadcast %621 : vector<16x1xf32> to vector<16x32xf32>
    %630 = arith.subf %591, %629 : vector<16x32xf32>
    %cst_442 = arith.constant 9.99999997E-7 : f32
    %631 = vector.broadcast %cst_442 : f32 to vector<16x1xf32>
    %632 = arith.addf %628, %631 : vector<16x1xf32>
    %633 = math.rsqrt %632 : vector<16x1xf32>
    %634 = vector.broadcast %633 : vector<16x1xf32> to vector<16x32xf32>
    %635 = arith.mulf %630, %634 : vector<16x32xf32>
    %636 = vector.broadcast %616 : vector<1x32xf32> to vector<16x32xf32>
    %637 = arith.mulf %635, %636 : vector<16x32xf32>
    %638 = vector.broadcast %617 : vector<1x32xf32> to vector<16x32xf32>
    %639 = arith.addf %637, %638 : vector<16x32xf32>
    %640 = tpu.transpose %639, [1, 0] : vector<16x32xf32> -> vector<32x16xf32>
    %cst_443 = arith.constant 0.000000e+00 : f32
    %641 = vector.broadcast %cst_443 : f32 to vector<16x32xf32>
    %c0_444 = arith.constant 0 : index
    %c0_445 = arith.constant 0 : index
    %c0_446 = arith.constant 0 : index
    %642 = vector.load %arg6[%c0_444, %c0_445, %c0_446] : memref<4x32x8xf32, #tpu.memory_space<vmem>>, vector<1x32x8xf32>
    %643 = vector.shape_cast %642 : vector<1x32x8xf32> to vector<32x8xf32>
    %cst_447 = arith.constant dense<0.000000e+00> : vector<16x8xf32>
    %644 = tpu.matmul %615, %643, %cst_447 {dimension_numbers = #tpu.dot_dimension_numbers<[1], [0], [0], [1], [0, 0, 1, 1], [], []>} : vector<16x32xf32>, vector<32x8xf32>, vector<16x8xf32> -> vector<16x8xf32>
    %c0_448 = arith.constant 0 : index
    %c0_449 = arith.constant 0 : index
    %c0_450 = arith.constant 0 : index
    %645 = vector.load %arg7[%c0_448, %c0_449, %c0_450] : memref<4x1x8xf32, #tpu.memory_space<vmem>>, vector<1x1x8xf32>
    %646 = vector.shape_cast %645 : vector<1x1x8xf32> to vector<1x8xf32>
    %647 = vector.broadcast %646 : vector<1x8xf32> to vector<16x8xf32>
    %648 = arith.addf %644, %647 : vector<16x8xf32>
    %c0_451 = arith.constant 0 : index
    %c0_452 = arith.constant 0 : index
    %c0_453 = arith.constant 0 : index
    %649 = vector.load %arg8[%c0_451, %c0_452, %c0_453] : memref<4x8x32xf32, #tpu.memory_space<vmem>>, vector<1x8x32xf32>
    %650 = vector.shape_cast %649 : vector<1x8x32xf32> to vector<8x32xf32>
    %cst_454 = arith.constant dense<0.000000e+00> : vector<8x16xf32>
    %651 = tpu.matmul %650, %640, %cst_454 {dimension_numbers = #tpu.dot_dimension_numbers<[1], [0], [0], [1], [0, 0, 1, 1], [], []>} : vector<8x32xf32>, vector<32x16xf32>, vector<8x16xf32> -> vector<8x16xf32>
    %c0_455 = arith.constant 0 : index
    %c0_456 = arith.constant 0 : index
    %c0_457 = arith.constant 0 : index
    %652 = vector.load %arg9[%c0_455, %c0_456, %c0_457] : memref<4x8x16xf32, #tpu.memory_space<vmem>>, vector<1x8x16xf32>
    %653 = vector.shape_cast %652 : vector<1x8x16xf32> to vector<8x16xf32>
    %654 = arith.addf %651, %653 : vector<8x16xf32>
    %c0_458 = arith.constant 0 : index
    %c0_459 = arith.constant 0 : index
    %c0_460 = arith.constant 0 : index
    %655 = vector.load %arg10[%c0_458, %c0_459, %c0_460] : memref<4x32x8xf32, #tpu.memory_space<vmem>>, vector<1x32x8xf32>
    %656 = vector.shape_cast %655 : vector<1x32x8xf32> to vector<32x8xf32>
    %cst_461 = arith.constant dense<0.000000e+00> : vector<16x8xf32>
    %657 = tpu.matmul %639, %656, %cst_461 {dimension_numbers = #tpu.dot_dimension_numbers<[1], [0], [0], [1], [0, 0, 1, 1], [], []>} : vector<16x32xf32>, vector<32x8xf32>, vector<16x8xf32> -> vector<16x8xf32>
    %c0_462 = arith.constant 0 : index
    %c0_463 = arith.constant 0 : index
    %c0_464 = arith.constant 0 : index
    %658 = vector.load %arg11[%c0_462, %c0_463, %c0_464] : memref<4x1x8xf32, #tpu.memory_space<vmem>>, vector<1x1x8xf32>
    %659 = vector.shape_cast %658 : vector<1x1x8xf32> to vector<1x8xf32>
    %660 = vector.broadcast %659 : vector<1x8xf32> to vector<16x8xf32>
    %661 = arith.addf %657, %660 : vector<16x8xf32>
    %cst_465 = arith.constant dense<0.000000e+00> : vector<16x16xf32>
    %662 = tpu.matmul %648, %654, %cst_465 {dimension_numbers = #tpu.dot_dimension_numbers<[1], [0], [0], [1], [0, 0, 1, 1], [], []>} : vector<16x8xf32>, vector<8x16xf32>, vector<16x16xf32> -> vector<16x16xf32>
    %cst_466 = arith.constant dense<0xFF800000> : vector<16xf32>
    %663 = vector.multi_reduction <maximumf>, %662, %cst_466 [1] : vector<16x16xf32> to vector<16xf32>
    %664 = vector.shape_cast %663 : vector<16xf32> to vector<16x1xf32>
    %665 = vector.broadcast %664 : vector<16x1xf32> to vector<16x16xf32>
    %666 = arith.subf %662, %665 : vector<16x16xf32>
    %667 = math.exp %666 : vector<16x16xf32>
    %cst_467 = arith.constant dense<0.000000e+00> : vector<16xf32>
    %668 = vector.multi_reduction <add>, %667, %cst_467 [1] : vector<16x16xf32> to vector<16xf32>
    %669 = vector.shape_cast %668 : vector<16xf32> to vector<16x1xf32>
    %670 = vector.broadcast %669 : vector<16x1xf32> to vector<16x16xf32>
    %671 = arith.divf %667, %670 : vector<16x16xf32>
    %cst_468 = arith.constant dense<0.000000e+00> : vector<16x8xf32>
    %672 = tpu.matmul %671, %661, %cst_468 {dimension_numbers = #tpu.dot_dimension_numbers<[1], [0], [0], [1], [0, 0, 1, 1], [], []>} : vector<16x16xf32>, vector<16x8xf32>, vector<16x8xf32> -> vector<16x8xf32>
    %c0_469 = arith.constant 0 : index
    %c0_470 = arith.constant 0 : index
    %c0_471 = arith.constant 0 : index
    %673 = vector.load %arg12[%c0_469, %c0_470, %c0_471] : memref<4x8x32xf32, #tpu.memory_space<vmem>>, vector<1x8x32xf32>
    %674 = vector.shape_cast %673 : vector<1x8x32xf32> to vector<8x32xf32>
    %cst_472 = arith.constant dense<0.000000e+00> : vector<16x32xf32>
    %675 = tpu.matmul %672, %674, %cst_472 {dimension_numbers = #tpu.dot_dimension_numbers<[1], [0], [0], [1], [0, 0, 1, 1], [], []>} : vector<16x8xf32>, vector<8x32xf32>, vector<16x32xf32> -> vector<16x32xf32>
    %676 = arith.addf %641, %675 : vector<16x32xf32>
    %c1_473 = arith.constant 1 : index
    %c0_474 = arith.constant 0 : index
    %c0_475 = arith.constant 0 : index
    %677 = vector.load %arg6[%c1_473, %c0_474, %c0_475] : memref<4x32x8xf32, #tpu.memory_space<vmem>>, vector<1x32x8xf32>
    %678 = vector.shape_cast %677 : vector<1x32x8xf32> to vector<32x8xf32>
    %cst_476 = arith.constant dense<0.000000e+00> : vector<16x8xf32>
    %679 = tpu.matmul %615, %678, %cst_476 {dimension_numbers = #tpu.dot_dimension_numbers<[1], [0], [0], [1], [0, 0, 1, 1], [], []>} : vector<16x32xf32>, vector<32x8xf32>, vector<16x8xf32> -> vector<16x8xf32>
    %c1_477 = arith.constant 1 : index
    %c0_478 = arith.constant 0 : index
    %c0_479 = arith.constant 0 : index
    %680 = vector.load %arg7[%c1_477, %c0_478, %c0_479] : memref<4x1x8xf32, #tpu.memory_space<vmem>>, vector<1x1x8xf32>
    %681 = vector.shape_cast %680 : vector<1x1x8xf32> to vector<1x8xf32>
    %682 = vector.broadcast %681 : vector<1x8xf32> to vector<16x8xf32>
    %683 = arith.addf %679, %682 : vector<16x8xf32>
    %c1_480 = arith.constant 1 : index
    %c0_481 = arith.constant 0 : index
    %c0_482 = arith.constant 0 : index
    %684 = vector.load %arg8[%c1_480, %c0_481, %c0_482] : memref<4x8x32xf32, #tpu.memory_space<vmem>>, vector<1x8x32xf32>
    %685 = vector.shape_cast %684 : vector<1x8x32xf32> to vector<8x32xf32>
    %cst_483 = arith.constant dense<0.000000e+00> : vector<8x16xf32>
    %686 = tpu.matmul %685, %640, %cst_483 {dimension_numbers = #tpu.dot_dimension_numbers<[1], [0], [0], [1], [0, 0, 1, 1], [], []>} : vector<8x32xf32>, vector<32x16xf32>, vector<8x16xf32> -> vector<8x16xf32>
    %c1_484 = arith.constant 1 : index
    %c0_485 = arith.constant 0 : index
    %c0_486 = arith.constant 0 : index
    %687 = vector.load %arg9[%c1_484, %c0_485, %c0_486] : memref<4x8x16xf32, #tpu.memory_space<vmem>>, vector<1x8x16xf32>
    %688 = vector.shape_cast %687 : vector<1x8x16xf32> to vector<8x16xf32>
    %689 = arith.addf %686, %688 : vector<8x16xf32>
    %c1_487 = arith.constant 1 : index
    %c0_488 = arith.constant 0 : index
    %c0_489 = arith.constant 0 : index
    %690 = vector.load %arg10[%c1_487, %c0_488, %c0_489] : memref<4x32x8xf32, #tpu.memory_space<vmem>>, vector<1x32x8xf32>
    %691 = vector.shape_cast %690 : vector<1x32x8xf32> to vector<32x8xf32>
    %cst_490 = arith.constant dense<0.000000e+00> : vector<16x8xf32>
    %692 = tpu.matmul %639, %691, %cst_490 {dimension_numbers = #tpu.dot_dimension_numbers<[1], [0], [0], [1], [0, 0, 1, 1], [], []>} : vector<16x32xf32>, vector<32x8xf32>, vector<16x8xf32> -> vector<16x8xf32>
    %c1_491 = arith.constant 1 : index
    %c0_492 = arith.constant 0 : index
    %c0_493 = arith.constant 0 : index
    %693 = vector.load %arg11[%c1_491, %c0_492, %c0_493] : memref<4x1x8xf32, #tpu.memory_space<vmem>>, vector<1x1x8xf32>
    %694 = vector.shape_cast %693 : vector<1x1x8xf32> to vector<1x8xf32>
    %695 = vector.broadcast %694 : vector<1x8xf32> to vector<16x8xf32>
    %696 = arith.addf %692, %695 : vector<16x8xf32>
    %cst_494 = arith.constant dense<0.000000e+00> : vector<16x16xf32>
    %697 = tpu.matmul %683, %689, %cst_494 {dimension_numbers = #tpu.dot_dimension_numbers<[1], [0], [0], [1], [0, 0, 1, 1], [], []>} : vector<16x8xf32>, vector<8x16xf32>, vector<16x16xf32> -> vector<16x16xf32>
    %cst_495 = arith.constant dense<0xFF800000> : vector<16xf32>
    %698 = vector.multi_reduction <maximumf>, %697, %cst_495 [1] : vector<16x16xf32> to vector<16xf32>
    %699 = vector.shape_cast %698 : vector<16xf32> to vector<16x1xf32>
    %700 = vector.broadcast %699 : vector<16x1xf32> to vector<16x16xf32>
    %701 = arith.subf %697, %700 : vector<16x16xf32>
    %702 = math.exp %701 : vector<16x16xf32>
    %cst_496 = arith.constant dense<0.000000e+00> : vector<16xf32>
    %703 = vector.multi_reduction <add>, %702, %cst_496 [1] : vector<16x16xf32> to vector<16xf32>
    %704 = vector.shape_cast %703 : vector<16xf32> to vector<16x1xf32>
    %705 = vector.broadcast %704 : vector<16x1xf32> to vector<16x16xf32>
    %706 = arith.divf %702, %705 : vector<16x16xf32>
    %cst_497 = arith.constant dense<0.000000e+00> : vector<16x8xf32>
    %707 = tpu.matmul %706, %696, %cst_497 {dimension_numbers = #tpu.dot_dimension_numbers<[1], [0], [0], [1], [0, 0, 1, 1], [], []>} : vector<16x16xf32>, vector<16x8xf32>, vector<16x8xf32> -> vector<16x8xf32>
    %c1_498 = arith.constant 1 : index
    %c0_499 = arith.constant 0 : index
    %c0_500 = arith.constant 0 : index
    %708 = vector.load %arg12[%c1_498, %c0_499, %c0_500] : memref<4x8x32xf32, #tpu.memory_space<vmem>>, vector<1x8x32xf32>
    %709 = vector.shape_cast %708 : vector<1x8x32xf32> to vector<8x32xf32>
    %cst_501 = arith.constant dense<0.000000e+00> : vector<16x32xf32>
    %710 = tpu.matmul %707, %709, %cst_501 {dimension_numbers = #tpu.dot_dimension_numbers<[1], [0], [0], [1], [0, 0, 1, 1], [], []>} : vector<16x8xf32>, vector<8x32xf32>, vector<16x32xf32> -> vector<16x32xf32>
    %711 = arith.addf %676, %710 : vector<16x32xf32>
    %c2_502 = arith.constant 2 : index
    %c0_503 = arith.constant 0 : index
    %c0_504 = arith.constant 0 : index
    %712 = vector.load %arg6[%c2_502, %c0_503, %c0_504] : memref<4x32x8xf32, #tpu.memory_space<vmem>>, vector<1x32x8xf32>
    %713 = vector.shape_cast %712 : vector<1x32x8xf32> to vector<32x8xf32>
    %cst_505 = arith.constant dense<0.000000e+00> : vector<16x8xf32>
    %714 = tpu.matmul %615, %713, %cst_505 {dimension_numbers = #tpu.dot_dimension_numbers<[1], [0], [0], [1], [0, 0, 1, 1], [], []>} : vector<16x32xf32>, vector<32x8xf32>, vector<16x8xf32> -> vector<16x8xf32>
    %c2_506 = arith.constant 2 : index
    %c0_507 = arith.constant 0 : index
    %c0_508 = arith.constant 0 : index
    %715 = vector.load %arg7[%c2_506, %c0_507, %c0_508] : memref<4x1x8xf32, #tpu.memory_space<vmem>>, vector<1x1x8xf32>
    %716 = vector.shape_cast %715 : vector<1x1x8xf32> to vector<1x8xf32>
    %717 = vector.broadcast %716 : vector<1x8xf32> to vector<16x8xf32>
    %718 = arith.addf %714, %717 : vector<16x8xf32>
    %c2_509 = arith.constant 2 : index
    %c0_510 = arith.constant 0 : index
    %c0_511 = arith.constant 0 : index
    %719 = vector.load %arg8[%c2_509, %c0_510, %c0_511] : memref<4x8x32xf32, #tpu.memory_space<vmem>>, vector<1x8x32xf32>
    %720 = vector.shape_cast %719 : vector<1x8x32xf32> to vector<8x32xf32>
    %cst_512 = arith.constant dense<0.000000e+00> : vector<8x16xf32>
    %721 = tpu.matmul %720, %640, %cst_512 {dimension_numbers = #tpu.dot_dimension_numbers<[1], [0], [0], [1], [0, 0, 1, 1], [], []>} : vector<8x32xf32>, vector<32x16xf32>, vector<8x16xf32> -> vector<8x16xf32>
    %c2_513 = arith.constant 2 : index
    %c0_514 = arith.constant 0 : index
    %c0_515 = arith.constant 0 : index
    %722 = vector.load %arg9[%c2_513, %c0_514, %c0_515] : memref<4x8x16xf32, #tpu.memory_space<vmem>>, vector<1x8x16xf32>
    %723 = vector.shape_cast %722 : vector<1x8x16xf32> to vector<8x16xf32>
    %724 = arith.addf %721, %723 : vector<8x16xf32>
    %c2_516 = arith.constant 2 : index
    %c0_517 = arith.constant 0 : index
    %c0_518 = arith.constant 0 : index
    %725 = vector.load %arg10[%c2_516, %c0_517, %c0_518] : memref<4x32x8xf32, #tpu.memory_space<vmem>>, vector<1x32x8xf32>
    %726 = vector.shape_cast %725 : vector<1x32x8xf32> to vector<32x8xf32>
    %cst_519 = arith.constant dense<0.000000e+00> : vector<16x8xf32>
    %727 = tpu.matmul %639, %726, %cst_519 {dimension_numbers = #tpu.dot_dimension_numbers<[1], [0], [0], [1], [0, 0, 1, 1], [], []>} : vector<16x32xf32>, vector<32x8xf32>, vector<16x8xf32> -> vector<16x8xf32>
    %c2_520 = arith.constant 2 : index
    %c0_521 = arith.constant 0 : index
    %c0_522 = arith.constant 0 : index
    %728 = vector.load %arg11[%c2_520, %c0_521, %c0_522] : memref<4x1x8xf32, #tpu.memory_space<vmem>>, vector<1x1x8xf32>
    %729 = vector.shape_cast %728 : vector<1x1x8xf32> to vector<1x8xf32>
    %730 = vector.broadcast %729 : vector<1x8xf32> to vector<16x8xf32>
    %731 = arith.addf %727, %730 : vector<16x8xf32>
    %cst_523 = arith.constant dense<0.000000e+00> : vector<16x16xf32>
    %732 = tpu.matmul %718, %724, %cst_523 {dimension_numbers = #tpu.dot_dimension_numbers<[1], [0], [0], [1], [0, 0, 1, 1], [], []>} : vector<16x8xf32>, vector<8x16xf32>, vector<16x16xf32> -> vector<16x16xf32>
    %cst_524 = arith.constant dense<0xFF800000> : vector<16xf32>
    %733 = vector.multi_reduction <maximumf>, %732, %cst_524 [1] : vector<16x16xf32> to vector<16xf32>
    %734 = vector.shape_cast %733 : vector<16xf32> to vector<16x1xf32>
    %735 = vector.broadcast %734 : vector<16x1xf32> to vector<16x16xf32>
    %736 = arith.subf %732, %735 : vector<16x16xf32>
    %737 = math.exp %736 : vector<16x16xf32>
    %cst_525 = arith.constant dense<0.000000e+00> : vector<16xf32>
    %738 = vector.multi_reduction <add>, %737, %cst_525 [1] : vector<16x16xf32> to vector<16xf32>
    %739 = vector.shape_cast %738 : vector<16xf32> to vector<16x1xf32>
    %740 = vector.broadcast %739 : vector<16x1xf32> to vector<16x16xf32>
    %741 = arith.divf %737, %740 : vector<16x16xf32>
    %cst_526 = arith.constant dense<0.000000e+00> : vector<16x8xf32>
    %742 = tpu.matmul %741, %731, %cst_526 {dimension_numbers = #tpu.dot_dimension_numbers<[1], [0], [0], [1], [0, 0, 1, 1], [], []>} : vector<16x16xf32>, vector<16x8xf32>, vector<16x8xf32> -> vector<16x8xf32>
    %c2_527 = arith.constant 2 : index
    %c0_528 = arith.constant 0 : index
    %c0_529 = arith.constant 0 : index
    %743 = vector.load %arg12[%c2_527, %c0_528, %c0_529] : memref<4x8x32xf32, #tpu.memory_space<vmem>>, vector<1x8x32xf32>
    %744 = vector.shape_cast %743 : vector<1x8x32xf32> to vector<8x32xf32>
    %cst_530 = arith.constant dense<0.000000e+00> : vector<16x32xf32>
    %745 = tpu.matmul %742, %744, %cst_530 {dimension_numbers = #tpu.dot_dimension_numbers<[1], [0], [0], [1], [0, 0, 1, 1], [], []>} : vector<16x8xf32>, vector<8x32xf32>, vector<16x32xf32> -> vector<16x32xf32>
    %746 = arith.addf %711, %745 : vector<16x32xf32>
    %c3_531 = arith.constant 3 : index
    %c0_532 = arith.constant 0 : index
    %c0_533 = arith.constant 0 : index
    %747 = vector.load %arg6[%c3_531, %c0_532, %c0_533] : memref<4x32x8xf32, #tpu.memory_space<vmem>>, vector<1x32x8xf32>
    %748 = vector.shape_cast %747 : vector<1x32x8xf32> to vector<32x8xf32>
    %cst_534 = arith.constant dense<0.000000e+00> : vector<16x8xf32>
    %749 = tpu.matmul %615, %748, %cst_534 {dimension_numbers = #tpu.dot_dimension_numbers<[1], [0], [0], [1], [0, 0, 1, 1], [], []>} : vector<16x32xf32>, vector<32x8xf32>, vector<16x8xf32> -> vector<16x8xf32>
    %c3_535 = arith.constant 3 : index
    %c0_536 = arith.constant 0 : index
    %c0_537 = arith.constant 0 : index
    %750 = vector.load %arg7[%c3_535, %c0_536, %c0_537] : memref<4x1x8xf32, #tpu.memory_space<vmem>>, vector<1x1x8xf32>
    %751 = vector.shape_cast %750 : vector<1x1x8xf32> to vector<1x8xf32>
    %752 = vector.broadcast %751 : vector<1x8xf32> to vector<16x8xf32>
    %753 = arith.addf %749, %752 : vector<16x8xf32>
    %c3_538 = arith.constant 3 : index
    %c0_539 = arith.constant 0 : index
    %c0_540 = arith.constant 0 : index
    %754 = vector.load %arg8[%c3_538, %c0_539, %c0_540] : memref<4x8x32xf32, #tpu.memory_space<vmem>>, vector<1x8x32xf32>
    %755 = vector.shape_cast %754 : vector<1x8x32xf32> to vector<8x32xf32>
    %cst_541 = arith.constant dense<0.000000e+00> : vector<8x16xf32>
    %756 = tpu.matmul %755, %640, %cst_541 {dimension_numbers = #tpu.dot_dimension_numbers<[1], [0], [0], [1], [0, 0, 1, 1], [], []>} : vector<8x32xf32>, vector<32x16xf32>, vector<8x16xf32> -> vector<8x16xf32>
    %c3_542 = arith.constant 3 : index
    %c0_543 = arith.constant 0 : index
    %c0_544 = arith.constant 0 : index
    %757 = vector.load %arg9[%c3_542, %c0_543, %c0_544] : memref<4x8x16xf32, #tpu.memory_space<vmem>>, vector<1x8x16xf32>
    %758 = vector.shape_cast %757 : vector<1x8x16xf32> to vector<8x16xf32>
    %759 = arith.addf %756, %758 : vector<8x16xf32>
    %c3_545 = arith.constant 3 : index
    %c0_546 = arith.constant 0 : index
    %c0_547 = arith.constant 0 : index
    %760 = vector.load %arg10[%c3_545, %c0_546, %c0_547] : memref<4x32x8xf32, #tpu.memory_space<vmem>>, vector<1x32x8xf32>
    %761 = vector.shape_cast %760 : vector<1x32x8xf32> to vector<32x8xf32>
    %cst_548 = arith.constant dense<0.000000e+00> : vector<16x8xf32>
    %762 = tpu.matmul %639, %761, %cst_548 {dimension_numbers = #tpu.dot_dimension_numbers<[1], [0], [0], [1], [0, 0, 1, 1], [], []>} : vector<16x32xf32>, vector<32x8xf32>, vector<16x8xf32> -> vector<16x8xf32>
    %c3_549 = arith.constant 3 : index
    %c0_550 = arith.constant 0 : index
    %c0_551 = arith.constant 0 : index
    %763 = vector.load %arg11[%c3_549, %c0_550, %c0_551] : memref<4x1x8xf32, #tpu.memory_space<vmem>>, vector<1x1x8xf32>
    %764 = vector.shape_cast %763 : vector<1x1x8xf32> to vector<1x8xf32>
    %765 = vector.broadcast %764 : vector<1x8xf32> to vector<16x8xf32>
    %766 = arith.addf %762, %765 : vector<16x8xf32>
    %cst_552 = arith.constant dense<0.000000e+00> : vector<16x16xf32>
    %767 = tpu.matmul %753, %759, %cst_552 {dimension_numbers = #tpu.dot_dimension_numbers<[1], [0], [0], [1], [0, 0, 1, 1], [], []>} : vector<16x8xf32>, vector<8x16xf32>, vector<16x16xf32> -> vector<16x16xf32>
    %cst_553 = arith.constant dense<0xFF800000> : vector<16xf32>
    %768 = vector.multi_reduction <maximumf>, %767, %cst_553 [1] : vector<16x16xf32> to vector<16xf32>
    %769 = vector.shape_cast %768 : vector<16xf32> to vector<16x1xf32>
    %770 = vector.broadcast %769 : vector<16x1xf32> to vector<16x16xf32>
    %771 = arith.subf %767, %770 : vector<16x16xf32>
    %772 = math.exp %771 : vector<16x16xf32>
    %cst_554 = arith.constant dense<0.000000e+00> : vector<16xf32>
    %773 = vector.multi_reduction <add>, %772, %cst_554 [1] : vector<16x16xf32> to vector<16xf32>
    %774 = vector.shape_cast %773 : vector<16xf32> to vector<16x1xf32>
    %775 = vector.broadcast %774 : vector<16x1xf32> to vector<16x16xf32>
    %776 = arith.divf %772, %775 : vector<16x16xf32>
    %cst_555 = arith.constant dense<0.000000e+00> : vector<16x8xf32>
    %777 = tpu.matmul %776, %766, %cst_555 {dimension_numbers = #tpu.dot_dimension_numbers<[1], [0], [0], [1], [0, 0, 1, 1], [], []>} : vector<16x16xf32>, vector<16x8xf32>, vector<16x8xf32> -> vector<16x8xf32>
    %c3_556 = arith.constant 3 : index
    %c0_557 = arith.constant 0 : index
    %c0_558 = arith.constant 0 : index
    %778 = vector.load %arg12[%c3_556, %c0_557, %c0_558] : memref<4x8x32xf32, #tpu.memory_space<vmem>>, vector<1x8x32xf32>
    %779 = vector.shape_cast %778 : vector<1x8x32xf32> to vector<8x32xf32>
    %cst_559 = arith.constant dense<0.000000e+00> : vector<16x32xf32>
    %780 = tpu.matmul %777, %779, %cst_559 {dimension_numbers = #tpu.dot_dimension_numbers<[1], [0], [0], [1], [0, 0, 1, 1], [], []>} : vector<16x8xf32>, vector<8x32xf32>, vector<16x32xf32> -> vector<16x32xf32>
    %781 = arith.addf %746, %780 : vector<16x32xf32>
    %c0_560 = arith.constant 0 : index
    %c0_561 = arith.constant 0 : index
    %782 = vector.load %arg13[%c0_560, %c0_561] : memref<1x32xf32, #tpu.memory_space<vmem>>, vector<1x32xf32>
    %783 = vector.broadcast %782 : vector<1x32xf32> to vector<16x32xf32>
    %784 = arith.addf %781, %783 : vector<16x32xf32>
    %785 = arith.addf %591, %784 : vector<16x32xf32>
    %c0_562 = arith.constant 0 : index
    %c5 = arith.constant 5 : index
    %c0_563 = arith.constant 0 : index
    %c0_564 = arith.constant 0 : index
    %786 = vector.load %arg1[%c0_562, %c5, %c0_563, %c0_564] : memref<1x8x16x32xf32, #tpu.memory_space<vmem>>, vector<1x1x16x32xf32>
    %787 = vector.shape_cast %786 : vector<1x1x16x32xf32> to vector<16x32xf32>
    %c0_565 = arith.constant 0 : index
    %c0_566 = arith.constant 0 : index
    %788 = vector.load %arg2[%c0_565, %c0_566] : memref<1x32xf32, #tpu.memory_space<vmem>>, vector<1x32xf32>
    %c0_567 = arith.constant 0 : index
    %c0_568 = arith.constant 0 : index
    %789 = vector.load %arg3[%c0_567, %c0_568] : memref<1x32xf32, #tpu.memory_space<vmem>>, vector<1x32xf32>
    %cst_569 = arith.constant dense<0.000000e+00> : vector<16xf32>
    %790 = vector.multi_reduction <add>, %785, %cst_569 [1] : vector<16x32xf32> to vector<16xf32>
    %791 = vector.shape_cast %790 : vector<16xf32> to vector<16x1xf32>
    %cst_570 = arith.constant 3.200000e+01 : f32
    %792 = vector.broadcast %cst_570 : f32 to vector<16x1xf32>
    %793 = arith.divf %791, %792 : vector<16x1xf32>
    %794 = vector.broadcast %793 : vector<16x1xf32> to vector<16x32xf32>
    %795 = arith.subf %785, %794 : vector<16x32xf32>
    %796 = arith.mulf %795, %795 : vector<16x32xf32>
    %cst_571 = arith.constant dense<0.000000e+00> : vector<16xf32>
    %797 = vector.multi_reduction <add>, %796, %cst_571 [1] : vector<16x32xf32> to vector<16xf32>
    %798 = vector.shape_cast %797 : vector<16xf32> to vector<16x1xf32>
    %cst_572 = arith.constant 3.200000e+01 : f32
    %799 = vector.broadcast %cst_572 : f32 to vector<16x1xf32>
    %800 = arith.divf %798, %799 : vector<16x1xf32>
    %801 = vector.broadcast %793 : vector<16x1xf32> to vector<16x32xf32>
    %802 = arith.subf %785, %801 : vector<16x32xf32>
    %cst_573 = arith.constant 9.99999997E-7 : f32
    %803 = vector.broadcast %cst_573 : f32 to vector<16x1xf32>
    %804 = arith.addf %800, %803 : vector<16x1xf32>
    %805 = math.rsqrt %804 : vector<16x1xf32>
    %806 = vector.broadcast %805 : vector<16x1xf32> to vector<16x32xf32>
    %807 = arith.mulf %802, %806 : vector<16x32xf32>
    %808 = vector.broadcast %788 : vector<1x32xf32> to vector<16x32xf32>
    %809 = arith.mulf %807, %808 : vector<16x32xf32>
    %810 = vector.broadcast %789 : vector<1x32xf32> to vector<16x32xf32>
    %811 = arith.addf %809, %810 : vector<16x32xf32>
    %c0_574 = arith.constant 0 : index
    %c0_575 = arith.constant 0 : index
    %812 = vector.load %arg4[%c0_574, %c0_575] : memref<1x32xf32, #tpu.memory_space<vmem>>, vector<1x32xf32>
    %c0_576 = arith.constant 0 : index
    %c0_577 = arith.constant 0 : index
    %813 = vector.load %arg5[%c0_576, %c0_577] : memref<1x32xf32, #tpu.memory_space<vmem>>, vector<1x32xf32>
    %cst_578 = arith.constant dense<0.000000e+00> : vector<16xf32>
    %814 = vector.multi_reduction <add>, %787, %cst_578 [1] : vector<16x32xf32> to vector<16xf32>
    %815 = vector.shape_cast %814 : vector<16xf32> to vector<16x1xf32>
    %cst_579 = arith.constant 3.200000e+01 : f32
    %816 = vector.broadcast %cst_579 : f32 to vector<16x1xf32>
    %817 = arith.divf %815, %816 : vector<16x1xf32>
    %818 = vector.broadcast %817 : vector<16x1xf32> to vector<16x32xf32>
    %819 = arith.subf %787, %818 : vector<16x32xf32>
    %820 = arith.mulf %819, %819 : vector<16x32xf32>
    %cst_580 = arith.constant dense<0.000000e+00> : vector<16xf32>
    %821 = vector.multi_reduction <add>, %820, %cst_580 [1] : vector<16x32xf32> to vector<16xf32>
    %822 = vector.shape_cast %821 : vector<16xf32> to vector<16x1xf32>
    %cst_581 = arith.constant 3.200000e+01 : f32
    %823 = vector.broadcast %cst_581 : f32 to vector<16x1xf32>
    %824 = arith.divf %822, %823 : vector<16x1xf32>
    %825 = vector.broadcast %817 : vector<16x1xf32> to vector<16x32xf32>
    %826 = arith.subf %787, %825 : vector<16x32xf32>
    %cst_582 = arith.constant 9.99999997E-7 : f32
    %827 = vector.broadcast %cst_582 : f32 to vector<16x1xf32>
    %828 = arith.addf %824, %827 : vector<16x1xf32>
    %829 = math.rsqrt %828 : vector<16x1xf32>
    %830 = vector.broadcast %829 : vector<16x1xf32> to vector<16x32xf32>
    %831 = arith.mulf %826, %830 : vector<16x32xf32>
    %832 = vector.broadcast %812 : vector<1x32xf32> to vector<16x32xf32>
    %833 = arith.mulf %831, %832 : vector<16x32xf32>
    %834 = vector.broadcast %813 : vector<1x32xf32> to vector<16x32xf32>
    %835 = arith.addf %833, %834 : vector<16x32xf32>
    %836 = tpu.transpose %835, [1, 0] : vector<16x32xf32> -> vector<32x16xf32>
    %cst_583 = arith.constant 0.000000e+00 : f32
    %837 = vector.broadcast %cst_583 : f32 to vector<16x32xf32>
    %c0_584 = arith.constant 0 : index
    %c0_585 = arith.constant 0 : index
    %c0_586 = arith.constant 0 : index
    %838 = vector.load %arg6[%c0_584, %c0_585, %c0_586] : memref<4x32x8xf32, #tpu.memory_space<vmem>>, vector<1x32x8xf32>
    %839 = vector.shape_cast %838 : vector<1x32x8xf32> to vector<32x8xf32>
    %cst_587 = arith.constant dense<0.000000e+00> : vector<16x8xf32>
    %840 = tpu.matmul %811, %839, %cst_587 {dimension_numbers = #tpu.dot_dimension_numbers<[1], [0], [0], [1], [0, 0, 1, 1], [], []>} : vector<16x32xf32>, vector<32x8xf32>, vector<16x8xf32> -> vector<16x8xf32>
    %c0_588 = arith.constant 0 : index
    %c0_589 = arith.constant 0 : index
    %c0_590 = arith.constant 0 : index
    %841 = vector.load %arg7[%c0_588, %c0_589, %c0_590] : memref<4x1x8xf32, #tpu.memory_space<vmem>>, vector<1x1x8xf32>
    %842 = vector.shape_cast %841 : vector<1x1x8xf32> to vector<1x8xf32>
    %843 = vector.broadcast %842 : vector<1x8xf32> to vector<16x8xf32>
    %844 = arith.addf %840, %843 : vector<16x8xf32>
    %c0_591 = arith.constant 0 : index
    %c0_592 = arith.constant 0 : index
    %c0_593 = arith.constant 0 : index
    %845 = vector.load %arg8[%c0_591, %c0_592, %c0_593] : memref<4x8x32xf32, #tpu.memory_space<vmem>>, vector<1x8x32xf32>
    %846 = vector.shape_cast %845 : vector<1x8x32xf32> to vector<8x32xf32>
    %cst_594 = arith.constant dense<0.000000e+00> : vector<8x16xf32>
    %847 = tpu.matmul %846, %836, %cst_594 {dimension_numbers = #tpu.dot_dimension_numbers<[1], [0], [0], [1], [0, 0, 1, 1], [], []>} : vector<8x32xf32>, vector<32x16xf32>, vector<8x16xf32> -> vector<8x16xf32>
    %c0_595 = arith.constant 0 : index
    %c0_596 = arith.constant 0 : index
    %c0_597 = arith.constant 0 : index
    %848 = vector.load %arg9[%c0_595, %c0_596, %c0_597] : memref<4x8x16xf32, #tpu.memory_space<vmem>>, vector<1x8x16xf32>
    %849 = vector.shape_cast %848 : vector<1x8x16xf32> to vector<8x16xf32>
    %850 = arith.addf %847, %849 : vector<8x16xf32>
    %c0_598 = arith.constant 0 : index
    %c0_599 = arith.constant 0 : index
    %c0_600 = arith.constant 0 : index
    %851 = vector.load %arg10[%c0_598, %c0_599, %c0_600] : memref<4x32x8xf32, #tpu.memory_space<vmem>>, vector<1x32x8xf32>
    %852 = vector.shape_cast %851 : vector<1x32x8xf32> to vector<32x8xf32>
    %cst_601 = arith.constant dense<0.000000e+00> : vector<16x8xf32>
    %853 = tpu.matmul %835, %852, %cst_601 {dimension_numbers = #tpu.dot_dimension_numbers<[1], [0], [0], [1], [0, 0, 1, 1], [], []>} : vector<16x32xf32>, vector<32x8xf32>, vector<16x8xf32> -> vector<16x8xf32>
    %c0_602 = arith.constant 0 : index
    %c0_603 = arith.constant 0 : index
    %c0_604 = arith.constant 0 : index
    %854 = vector.load %arg11[%c0_602, %c0_603, %c0_604] : memref<4x1x8xf32, #tpu.memory_space<vmem>>, vector<1x1x8xf32>
    %855 = vector.shape_cast %854 : vector<1x1x8xf32> to vector<1x8xf32>
    %856 = vector.broadcast %855 : vector<1x8xf32> to vector<16x8xf32>
    %857 = arith.addf %853, %856 : vector<16x8xf32>
    %cst_605 = arith.constant dense<0.000000e+00> : vector<16x16xf32>
    %858 = tpu.matmul %844, %850, %cst_605 {dimension_numbers = #tpu.dot_dimension_numbers<[1], [0], [0], [1], [0, 0, 1, 1], [], []>} : vector<16x8xf32>, vector<8x16xf32>, vector<16x16xf32> -> vector<16x16xf32>
    %cst_606 = arith.constant dense<0xFF800000> : vector<16xf32>
    %859 = vector.multi_reduction <maximumf>, %858, %cst_606 [1] : vector<16x16xf32> to vector<16xf32>
    %860 = vector.shape_cast %859 : vector<16xf32> to vector<16x1xf32>
    %861 = vector.broadcast %860 : vector<16x1xf32> to vector<16x16xf32>
    %862 = arith.subf %858, %861 : vector<16x16xf32>
    %863 = math.exp %862 : vector<16x16xf32>
    %cst_607 = arith.constant dense<0.000000e+00> : vector<16xf32>
    %864 = vector.multi_reduction <add>, %863, %cst_607 [1] : vector<16x16xf32> to vector<16xf32>
    %865 = vector.shape_cast %864 : vector<16xf32> to vector<16x1xf32>
    %866 = vector.broadcast %865 : vector<16x1xf32> to vector<16x16xf32>
    %867 = arith.divf %863, %866 : vector<16x16xf32>
    %cst_608 = arith.constant dense<0.000000e+00> : vector<16x8xf32>
    %868 = tpu.matmul %867, %857, %cst_608 {dimension_numbers = #tpu.dot_dimension_numbers<[1], [0], [0], [1], [0, 0, 1, 1], [], []>} : vector<16x16xf32>, vector<16x8xf32>, vector<16x8xf32> -> vector<16x8xf32>
    %c0_609 = arith.constant 0 : index
    %c0_610 = arith.constant 0 : index
    %c0_611 = arith.constant 0 : index
    %869 = vector.load %arg12[%c0_609, %c0_610, %c0_611] : memref<4x8x32xf32, #tpu.memory_space<vmem>>, vector<1x8x32xf32>
    %870 = vector.shape_cast %869 : vector<1x8x32xf32> to vector<8x32xf32>
    %cst_612 = arith.constant dense<0.000000e+00> : vector<16x32xf32>
    %871 = tpu.matmul %868, %870, %cst_612 {dimension_numbers = #tpu.dot_dimension_numbers<[1], [0], [0], [1], [0, 0, 1, 1], [], []>} : vector<16x8xf32>, vector<8x32xf32>, vector<16x32xf32> -> vector<16x32xf32>
    %872 = arith.addf %837, %871 : vector<16x32xf32>
    %c1_613 = arith.constant 1 : index
    %c0_614 = arith.constant 0 : index
    %c0_615 = arith.constant 0 : index
    %873 = vector.load %arg6[%c1_613, %c0_614, %c0_615] : memref<4x32x8xf32, #tpu.memory_space<vmem>>, vector<1x32x8xf32>
    %874 = vector.shape_cast %873 : vector<1x32x8xf32> to vector<32x8xf32>
    %cst_616 = arith.constant dense<0.000000e+00> : vector<16x8xf32>
    %875 = tpu.matmul %811, %874, %cst_616 {dimension_numbers = #tpu.dot_dimension_numbers<[1], [0], [0], [1], [0, 0, 1, 1], [], []>} : vector<16x32xf32>, vector<32x8xf32>, vector<16x8xf32> -> vector<16x8xf32>
    %c1_617 = arith.constant 1 : index
    %c0_618 = arith.constant 0 : index
    %c0_619 = arith.constant 0 : index
    %876 = vector.load %arg7[%c1_617, %c0_618, %c0_619] : memref<4x1x8xf32, #tpu.memory_space<vmem>>, vector<1x1x8xf32>
    %877 = vector.shape_cast %876 : vector<1x1x8xf32> to vector<1x8xf32>
    %878 = vector.broadcast %877 : vector<1x8xf32> to vector<16x8xf32>
    %879 = arith.addf %875, %878 : vector<16x8xf32>
    %c1_620 = arith.constant 1 : index
    %c0_621 = arith.constant 0 : index
    %c0_622 = arith.constant 0 : index
    %880 = vector.load %arg8[%c1_620, %c0_621, %c0_622] : memref<4x8x32xf32, #tpu.memory_space<vmem>>, vector<1x8x32xf32>
    %881 = vector.shape_cast %880 : vector<1x8x32xf32> to vector<8x32xf32>
    %cst_623 = arith.constant dense<0.000000e+00> : vector<8x16xf32>
    %882 = tpu.matmul %881, %836, %cst_623 {dimension_numbers = #tpu.dot_dimension_numbers<[1], [0], [0], [1], [0, 0, 1, 1], [], []>} : vector<8x32xf32>, vector<32x16xf32>, vector<8x16xf32> -> vector<8x16xf32>
    %c1_624 = arith.constant 1 : index
    %c0_625 = arith.constant 0 : index
    %c0_626 = arith.constant 0 : index
    %883 = vector.load %arg9[%c1_624, %c0_625, %c0_626] : memref<4x8x16xf32, #tpu.memory_space<vmem>>, vector<1x8x16xf32>
    %884 = vector.shape_cast %883 : vector<1x8x16xf32> to vector<8x16xf32>
    %885 = arith.addf %882, %884 : vector<8x16xf32>
    %c1_627 = arith.constant 1 : index
    %c0_628 = arith.constant 0 : index
    %c0_629 = arith.constant 0 : index
    %886 = vector.load %arg10[%c1_627, %c0_628, %c0_629] : memref<4x32x8xf32, #tpu.memory_space<vmem>>, vector<1x32x8xf32>
    %887 = vector.shape_cast %886 : vector<1x32x8xf32> to vector<32x8xf32>
    %cst_630 = arith.constant dense<0.000000e+00> : vector<16x8xf32>
    %888 = tpu.matmul %835, %887, %cst_630 {dimension_numbers = #tpu.dot_dimension_numbers<[1], [0], [0], [1], [0, 0, 1, 1], [], []>} : vector<16x32xf32>, vector<32x8xf32>, vector<16x8xf32> -> vector<16x8xf32>
    %c1_631 = arith.constant 1 : index
    %c0_632 = arith.constant 0 : index
    %c0_633 = arith.constant 0 : index
    %889 = vector.load %arg11[%c1_631, %c0_632, %c0_633] : memref<4x1x8xf32, #tpu.memory_space<vmem>>, vector<1x1x8xf32>
    %890 = vector.shape_cast %889 : vector<1x1x8xf32> to vector<1x8xf32>
    %891 = vector.broadcast %890 : vector<1x8xf32> to vector<16x8xf32>
    %892 = arith.addf %888, %891 : vector<16x8xf32>
    %cst_634 = arith.constant dense<0.000000e+00> : vector<16x16xf32>
    %893 = tpu.matmul %879, %885, %cst_634 {dimension_numbers = #tpu.dot_dimension_numbers<[1], [0], [0], [1], [0, 0, 1, 1], [], []>} : vector<16x8xf32>, vector<8x16xf32>, vector<16x16xf32> -> vector<16x16xf32>
    %cst_635 = arith.constant dense<0xFF800000> : vector<16xf32>
    %894 = vector.multi_reduction <maximumf>, %893, %cst_635 [1] : vector<16x16xf32> to vector<16xf32>
    %895 = vector.shape_cast %894 : vector<16xf32> to vector<16x1xf32>
    %896 = vector.broadcast %895 : vector<16x1xf32> to vector<16x16xf32>
    %897 = arith.subf %893, %896 : vector<16x16xf32>
    %898 = math.exp %897 : vector<16x16xf32>
    %cst_636 = arith.constant dense<0.000000e+00> : vector<16xf32>
    %899 = vector.multi_reduction <add>, %898, %cst_636 [1] : vector<16x16xf32> to vector<16xf32>
    %900 = vector.shape_cast %899 : vector<16xf32> to vector<16x1xf32>
    %901 = vector.broadcast %900 : vector<16x1xf32> to vector<16x16xf32>
    %902 = arith.divf %898, %901 : vector<16x16xf32>
    %cst_637 = arith.constant dense<0.000000e+00> : vector<16x8xf32>
    %903 = tpu.matmul %902, %892, %cst_637 {dimension_numbers = #tpu.dot_dimension_numbers<[1], [0], [0], [1], [0, 0, 1, 1], [], []>} : vector<16x16xf32>, vector<16x8xf32>, vector<16x8xf32> -> vector<16x8xf32>
    %c1_638 = arith.constant 1 : index
    %c0_639 = arith.constant 0 : index
    %c0_640 = arith.constant 0 : index
    %904 = vector.load %arg12[%c1_638, %c0_639, %c0_640] : memref<4x8x32xf32, #tpu.memory_space<vmem>>, vector<1x8x32xf32>
    %905 = vector.shape_cast %904 : vector<1x8x32xf32> to vector<8x32xf32>
    %cst_641 = arith.constant dense<0.000000e+00> : vector<16x32xf32>
    %906 = tpu.matmul %903, %905, %cst_641 {dimension_numbers = #tpu.dot_dimension_numbers<[1], [0], [0], [1], [0, 0, 1, 1], [], []>} : vector<16x8xf32>, vector<8x32xf32>, vector<16x32xf32> -> vector<16x32xf32>
    %907 = arith.addf %872, %906 : vector<16x32xf32>
    %c2_642 = arith.constant 2 : index
    %c0_643 = arith.constant 0 : index
    %c0_644 = arith.constant 0 : index
    %908 = vector.load %arg6[%c2_642, %c0_643, %c0_644] : memref<4x32x8xf32, #tpu.memory_space<vmem>>, vector<1x32x8xf32>
    %909 = vector.shape_cast %908 : vector<1x32x8xf32> to vector<32x8xf32>
    %cst_645 = arith.constant dense<0.000000e+00> : vector<16x8xf32>
    %910 = tpu.matmul %811, %909, %cst_645 {dimension_numbers = #tpu.dot_dimension_numbers<[1], [0], [0], [1], [0, 0, 1, 1], [], []>} : vector<16x32xf32>, vector<32x8xf32>, vector<16x8xf32> -> vector<16x8xf32>
    %c2_646 = arith.constant 2 : index
    %c0_647 = arith.constant 0 : index
    %c0_648 = arith.constant 0 : index
    %911 = vector.load %arg7[%c2_646, %c0_647, %c0_648] : memref<4x1x8xf32, #tpu.memory_space<vmem>>, vector<1x1x8xf32>
    %912 = vector.shape_cast %911 : vector<1x1x8xf32> to vector<1x8xf32>
    %913 = vector.broadcast %912 : vector<1x8xf32> to vector<16x8xf32>
    %914 = arith.addf %910, %913 : vector<16x8xf32>
    %c2_649 = arith.constant 2 : index
    %c0_650 = arith.constant 0 : index
    %c0_651 = arith.constant 0 : index
    %915 = vector.load %arg8[%c2_649, %c0_650, %c0_651] : memref<4x8x32xf32, #tpu.memory_space<vmem>>, vector<1x8x32xf32>
    %916 = vector.shape_cast %915 : vector<1x8x32xf32> to vector<8x32xf32>
    %cst_652 = arith.constant dense<0.000000e+00> : vector<8x16xf32>
    %917 = tpu.matmul %916, %836, %cst_652 {dimension_numbers = #tpu.dot_dimension_numbers<[1], [0], [0], [1], [0, 0, 1, 1], [], []>} : vector<8x32xf32>, vector<32x16xf32>, vector<8x16xf32> -> vector<8x16xf32>
    %c2_653 = arith.constant 2 : index
    %c0_654 = arith.constant 0 : index
    %c0_655 = arith.constant 0 : index
    %918 = vector.load %arg9[%c2_653, %c0_654, %c0_655] : memref<4x8x16xf32, #tpu.memory_space<vmem>>, vector<1x8x16xf32>
    %919 = vector.shape_cast %918 : vector<1x8x16xf32> to vector<8x16xf32>
    %920 = arith.addf %917, %919 : vector<8x16xf32>
    %c2_656 = arith.constant 2 : index
    %c0_657 = arith.constant 0 : index
    %c0_658 = arith.constant 0 : index
    %921 = vector.load %arg10[%c2_656, %c0_657, %c0_658] : memref<4x32x8xf32, #tpu.memory_space<vmem>>, vector<1x32x8xf32>
    %922 = vector.shape_cast %921 : vector<1x32x8xf32> to vector<32x8xf32>
    %cst_659 = arith.constant dense<0.000000e+00> : vector<16x8xf32>
    %923 = tpu.matmul %835, %922, %cst_659 {dimension_numbers = #tpu.dot_dimension_numbers<[1], [0], [0], [1], [0, 0, 1, 1], [], []>} : vector<16x32xf32>, vector<32x8xf32>, vector<16x8xf32> -> vector<16x8xf32>
    %c2_660 = arith.constant 2 : index
    %c0_661 = arith.constant 0 : index
    %c0_662 = arith.constant 0 : index
    %924 = vector.load %arg11[%c2_660, %c0_661, %c0_662] : memref<4x1x8xf32, #tpu.memory_space<vmem>>, vector<1x1x8xf32>
    %925 = vector.shape_cast %924 : vector<1x1x8xf32> to vector<1x8xf32>
    %926 = vector.broadcast %925 : vector<1x8xf32> to vector<16x8xf32>
    %927 = arith.addf %923, %926 : vector<16x8xf32>
    %cst_663 = arith.constant dense<0.000000e+00> : vector<16x16xf32>
    %928 = tpu.matmul %914, %920, %cst_663 {dimension_numbers = #tpu.dot_dimension_numbers<[1], [0], [0], [1], [0, 0, 1, 1], [], []>} : vector<16x8xf32>, vector<8x16xf32>, vector<16x16xf32> -> vector<16x16xf32>
    %cst_664 = arith.constant dense<0xFF800000> : vector<16xf32>
    %929 = vector.multi_reduction <maximumf>, %928, %cst_664 [1] : vector<16x16xf32> to vector<16xf32>
    %930 = vector.shape_cast %929 : vector<16xf32> to vector<16x1xf32>
    %931 = vector.broadcast %930 : vector<16x1xf32> to vector<16x16xf32>
    %932 = arith.subf %928, %931 : vector<16x16xf32>
    %933 = math.exp %932 : vector<16x16xf32>
    %cst_665 = arith.constant dense<0.000000e+00> : vector<16xf32>
    %934 = vector.multi_reduction <add>, %933, %cst_665 [1] : vector<16x16xf32> to vector<16xf32>
    %935 = vector.shape_cast %934 : vector<16xf32> to vector<16x1xf32>
    %936 = vector.broadcast %935 : vector<16x1xf32> to vector<16x16xf32>
    %937 = arith.divf %933, %936 : vector<16x16xf32>
    %cst_666 = arith.constant dense<0.000000e+00> : vector<16x8xf32>
    %938 = tpu.matmul %937, %927, %cst_666 {dimension_numbers = #tpu.dot_dimension_numbers<[1], [0], [0], [1], [0, 0, 1, 1], [], []>} : vector<16x16xf32>, vector<16x8xf32>, vector<16x8xf32> -> vector<16x8xf32>
    %c2_667 = arith.constant 2 : index
    %c0_668 = arith.constant 0 : index
    %c0_669 = arith.constant 0 : index
    %939 = vector.load %arg12[%c2_667, %c0_668, %c0_669] : memref<4x8x32xf32, #tpu.memory_space<vmem>>, vector<1x8x32xf32>
    %940 = vector.shape_cast %939 : vector<1x8x32xf32> to vector<8x32xf32>
    %cst_670 = arith.constant dense<0.000000e+00> : vector<16x32xf32>
    %941 = tpu.matmul %938, %940, %cst_670 {dimension_numbers = #tpu.dot_dimension_numbers<[1], [0], [0], [1], [0, 0, 1, 1], [], []>} : vector<16x8xf32>, vector<8x32xf32>, vector<16x32xf32> -> vector<16x32xf32>
    %942 = arith.addf %907, %941 : vector<16x32xf32>
    %c3_671 = arith.constant 3 : index
    %c0_672 = arith.constant 0 : index
    %c0_673 = arith.constant 0 : index
    %943 = vector.load %arg6[%c3_671, %c0_672, %c0_673] : memref<4x32x8xf32, #tpu.memory_space<vmem>>, vector<1x32x8xf32>
    %944 = vector.shape_cast %943 : vector<1x32x8xf32> to vector<32x8xf32>
    %cst_674 = arith.constant dense<0.000000e+00> : vector<16x8xf32>
    %945 = tpu.matmul %811, %944, %cst_674 {dimension_numbers = #tpu.dot_dimension_numbers<[1], [0], [0], [1], [0, 0, 1, 1], [], []>} : vector<16x32xf32>, vector<32x8xf32>, vector<16x8xf32> -> vector<16x8xf32>
    %c3_675 = arith.constant 3 : index
    %c0_676 = arith.constant 0 : index
    %c0_677 = arith.constant 0 : index
    %946 = vector.load %arg7[%c3_675, %c0_676, %c0_677] : memref<4x1x8xf32, #tpu.memory_space<vmem>>, vector<1x1x8xf32>
    %947 = vector.shape_cast %946 : vector<1x1x8xf32> to vector<1x8xf32>
    %948 = vector.broadcast %947 : vector<1x8xf32> to vector<16x8xf32>
    %949 = arith.addf %945, %948 : vector<16x8xf32>
    %c3_678 = arith.constant 3 : index
    %c0_679 = arith.constant 0 : index
    %c0_680 = arith.constant 0 : index
    %950 = vector.load %arg8[%c3_678, %c0_679, %c0_680] : memref<4x8x32xf32, #tpu.memory_space<vmem>>, vector<1x8x32xf32>
    %951 = vector.shape_cast %950 : vector<1x8x32xf32> to vector<8x32xf32>
    %cst_681 = arith.constant dense<0.000000e+00> : vector<8x16xf32>
    %952 = tpu.matmul %951, %836, %cst_681 {dimension_numbers = #tpu.dot_dimension_numbers<[1], [0], [0], [1], [0, 0, 1, 1], [], []>} : vector<8x32xf32>, vector<32x16xf32>, vector<8x16xf32> -> vector<8x16xf32>
    %c3_682 = arith.constant 3 : index
    %c0_683 = arith.constant 0 : index
    %c0_684 = arith.constant 0 : index
    %953 = vector.load %arg9[%c3_682, %c0_683, %c0_684] : memref<4x8x16xf32, #tpu.memory_space<vmem>>, vector<1x8x16xf32>
    %954 = vector.shape_cast %953 : vector<1x8x16xf32> to vector<8x16xf32>
    %955 = arith.addf %952, %954 : vector<8x16xf32>
    %c3_685 = arith.constant 3 : index
    %c0_686 = arith.constant 0 : index
    %c0_687 = arith.constant 0 : index
    %956 = vector.load %arg10[%c3_685, %c0_686, %c0_687] : memref<4x32x8xf32, #tpu.memory_space<vmem>>, vector<1x32x8xf32>
    %957 = vector.shape_cast %956 : vector<1x32x8xf32> to vector<32x8xf32>
    %cst_688 = arith.constant dense<0.000000e+00> : vector<16x8xf32>
    %958 = tpu.matmul %835, %957, %cst_688 {dimension_numbers = #tpu.dot_dimension_numbers<[1], [0], [0], [1], [0, 0, 1, 1], [], []>} : vector<16x32xf32>, vector<32x8xf32>, vector<16x8xf32> -> vector<16x8xf32>
    %c3_689 = arith.constant 3 : index
    %c0_690 = arith.constant 0 : index
    %c0_691 = arith.constant 0 : index
    %959 = vector.load %arg11[%c3_689, %c0_690, %c0_691] : memref<4x1x8xf32, #tpu.memory_space<vmem>>, vector<1x1x8xf32>
    %960 = vector.shape_cast %959 : vector<1x1x8xf32> to vector<1x8xf32>
    %961 = vector.broadcast %960 : vector<1x8xf32> to vector<16x8xf32>
    %962 = arith.addf %958, %961 : vector<16x8xf32>
    %cst_692 = arith.constant dense<0.000000e+00> : vector<16x16xf32>
    %963 = tpu.matmul %949, %955, %cst_692 {dimension_numbers = #tpu.dot_dimension_numbers<[1], [0], [0], [1], [0, 0, 1, 1], [], []>} : vector<16x8xf32>, vector<8x16xf32>, vector<16x16xf32> -> vector<16x16xf32>
    %cst_693 = arith.constant dense<0xFF800000> : vector<16xf32>
    %964 = vector.multi_reduction <maximumf>, %963, %cst_693 [1] : vector<16x16xf32> to vector<16xf32>
    %965 = vector.shape_cast %964 : vector<16xf32> to vector<16x1xf32>
    %966 = vector.broadcast %965 : vector<16x1xf32> to vector<16x16xf32>
    %967 = arith.subf %963, %966 : vector<16x16xf32>
    %968 = math.exp %967 : vector<16x16xf32>
    %cst_694 = arith.constant dense<0.000000e+00> : vector<16xf32>
    %969 = vector.multi_reduction <add>, %968, %cst_694 [1] : vector<16x16xf32> to vector<16xf32>
    %970 = vector.shape_cast %969 : vector<16xf32> to vector<16x1xf32>
    %971 = vector.broadcast %970 : vector<16x1xf32> to vector<16x16xf32>
    %972 = arith.divf %968, %971 : vector<16x16xf32>
    %cst_695 = arith.constant dense<0.000000e+00> : vector<16x8xf32>
    %973 = tpu.matmul %972, %962, %cst_695 {dimension_numbers = #tpu.dot_dimension_numbers<[1], [0], [0], [1], [0, 0, 1, 1], [], []>} : vector<16x16xf32>, vector<16x8xf32>, vector<16x8xf32> -> vector<16x8xf32>
    %c3_696 = arith.constant 3 : index
    %c0_697 = arith.constant 0 : index
    %c0_698 = arith.constant 0 : index
    %974 = vector.load %arg12[%c3_696, %c0_697, %c0_698] : memref<4x8x32xf32, #tpu.memory_space<vmem>>, vector<1x8x32xf32>
    %975 = vector.shape_cast %974 : vector<1x8x32xf32> to vector<8x32xf32>
    %cst_699 = arith.constant dense<0.000000e+00> : vector<16x32xf32>
    %976 = tpu.matmul %973, %975, %cst_699 {dimension_numbers = #tpu.dot_dimension_numbers<[1], [0], [0], [1], [0, 0, 1, 1], [], []>} : vector<16x8xf32>, vector<8x32xf32>, vector<16x32xf32> -> vector<16x32xf32>
    %977 = arith.addf %942, %976 : vector<16x32xf32>
    %c0_700 = arith.constant 0 : index
    %c0_701 = arith.constant 0 : index
    %978 = vector.load %arg13[%c0_700, %c0_701] : memref<1x32xf32, #tpu.memory_space<vmem>>, vector<1x32xf32>
    %979 = vector.broadcast %978 : vector<1x32xf32> to vector<16x32xf32>
    %980 = arith.addf %977, %979 : vector<16x32xf32>
    %981 = arith.addf %787, %980 : vector<16x32xf32>
    %c0_702 = arith.constant 0 : index
    %c6 = arith.constant 6 : index
    %c0_703 = arith.constant 0 : index
    %c0_704 = arith.constant 0 : index
    %982 = vector.load %arg1[%c0_702, %c6, %c0_703, %c0_704] : memref<1x8x16x32xf32, #tpu.memory_space<vmem>>, vector<1x1x16x32xf32>
    %983 = vector.shape_cast %982 : vector<1x1x16x32xf32> to vector<16x32xf32>
    %c0_705 = arith.constant 0 : index
    %c0_706 = arith.constant 0 : index
    %984 = vector.load %arg2[%c0_705, %c0_706] : memref<1x32xf32, #tpu.memory_space<vmem>>, vector<1x32xf32>
    %c0_707 = arith.constant 0 : index
    %c0_708 = arith.constant 0 : index
    %985 = vector.load %arg3[%c0_707, %c0_708] : memref<1x32xf32, #tpu.memory_space<vmem>>, vector<1x32xf32>
    %cst_709 = arith.constant dense<0.000000e+00> : vector<16xf32>
    %986 = vector.multi_reduction <add>, %981, %cst_709 [1] : vector<16x32xf32> to vector<16xf32>
    %987 = vector.shape_cast %986 : vector<16xf32> to vector<16x1xf32>
    %cst_710 = arith.constant 3.200000e+01 : f32
    %988 = vector.broadcast %cst_710 : f32 to vector<16x1xf32>
    %989 = arith.divf %987, %988 : vector<16x1xf32>
    %990 = vector.broadcast %989 : vector<16x1xf32> to vector<16x32xf32>
    %991 = arith.subf %981, %990 : vector<16x32xf32>
    %992 = arith.mulf %991, %991 : vector<16x32xf32>
    %cst_711 = arith.constant dense<0.000000e+00> : vector<16xf32>
    %993 = vector.multi_reduction <add>, %992, %cst_711 [1] : vector<16x32xf32> to vector<16xf32>
    %994 = vector.shape_cast %993 : vector<16xf32> to vector<16x1xf32>
    %cst_712 = arith.constant 3.200000e+01 : f32
    %995 = vector.broadcast %cst_712 : f32 to vector<16x1xf32>
    %996 = arith.divf %994, %995 : vector<16x1xf32>
    %997 = vector.broadcast %989 : vector<16x1xf32> to vector<16x32xf32>
    %998 = arith.subf %981, %997 : vector<16x32xf32>
    %cst_713 = arith.constant 9.99999997E-7 : f32
    %999 = vector.broadcast %cst_713 : f32 to vector<16x1xf32>
    %1000 = arith.addf %996, %999 : vector<16x1xf32>
    %1001 = math.rsqrt %1000 : vector<16x1xf32>
    %1002 = vector.broadcast %1001 : vector<16x1xf32> to vector<16x32xf32>
    %1003 = arith.mulf %998, %1002 : vector<16x32xf32>
    %1004 = vector.broadcast %984 : vector<1x32xf32> to vector<16x32xf32>
    %1005 = arith.mulf %1003, %1004 : vector<16x32xf32>
    %1006 = vector.broadcast %985 : vector<1x32xf32> to vector<16x32xf32>
    %1007 = arith.addf %1005, %1006 : vector<16x32xf32>
    %c0_714 = arith.constant 0 : index
    %c0_715 = arith.constant 0 : index
    %1008 = vector.load %arg4[%c0_714, %c0_715] : memref<1x32xf32, #tpu.memory_space<vmem>>, vector<1x32xf32>
    %c0_716 = arith.constant 0 : index
    %c0_717 = arith.constant 0 : index
    %1009 = vector.load %arg5[%c0_716, %c0_717] : memref<1x32xf32, #tpu.memory_space<vmem>>, vector<1x32xf32>
    %cst_718 = arith.constant dense<0.000000e+00> : vector<16xf32>
    %1010 = vector.multi_reduction <add>, %983, %cst_718 [1] : vector<16x32xf32> to vector<16xf32>
    %1011 = vector.shape_cast %1010 : vector<16xf32> to vector<16x1xf32>
    %cst_719 = arith.constant 3.200000e+01 : f32
    %1012 = vector.broadcast %cst_719 : f32 to vector<16x1xf32>
    %1013 = arith.divf %1011, %1012 : vector<16x1xf32>
    %1014 = vector.broadcast %1013 : vector<16x1xf32> to vector<16x32xf32>
    %1015 = arith.subf %983, %1014 : vector<16x32xf32>
    %1016 = arith.mulf %1015, %1015 : vector<16x32xf32>
    %cst_720 = arith.constant dense<0.000000e+00> : vector<16xf32>
    %1017 = vector.multi_reduction <add>, %1016, %cst_720 [1] : vector<16x32xf32> to vector<16xf32>
    %1018 = vector.shape_cast %1017 : vector<16xf32> to vector<16x1xf32>
    %cst_721 = arith.constant 3.200000e+01 : f32
    %1019 = vector.broadcast %cst_721 : f32 to vector<16x1xf32>
    %1020 = arith.divf %1018, %1019 : vector<16x1xf32>
    %1021 = vector.broadcast %1013 : vector<16x1xf32> to vector<16x32xf32>
    %1022 = arith.subf %983, %1021 : vector<16x32xf32>
    %cst_722 = arith.constant 9.99999997E-7 : f32
    %1023 = vector.broadcast %cst_722 : f32 to vector<16x1xf32>
    %1024 = arith.addf %1020, %1023 : vector<16x1xf32>
    %1025 = math.rsqrt %1024 : vector<16x1xf32>
    %1026 = vector.broadcast %1025 : vector<16x1xf32> to vector<16x32xf32>
    %1027 = arith.mulf %1022, %1026 : vector<16x32xf32>
    %1028 = vector.broadcast %1008 : vector<1x32xf32> to vector<16x32xf32>
    %1029 = arith.mulf %1027, %1028 : vector<16x32xf32>
    %1030 = vector.broadcast %1009 : vector<1x32xf32> to vector<16x32xf32>
    %1031 = arith.addf %1029, %1030 : vector<16x32xf32>
    %1032 = tpu.transpose %1031, [1, 0] : vector<16x32xf32> -> vector<32x16xf32>
    %cst_723 = arith.constant 0.000000e+00 : f32
    %1033 = vector.broadcast %cst_723 : f32 to vector<16x32xf32>
    %c0_724 = arith.constant 0 : index
    %c0_725 = arith.constant 0 : index
    %c0_726 = arith.constant 0 : index
    %1034 = vector.load %arg6[%c0_724, %c0_725, %c0_726] : memref<4x32x8xf32, #tpu.memory_space<vmem>>, vector<1x32x8xf32>
    %1035 = vector.shape_cast %1034 : vector<1x32x8xf32> to vector<32x8xf32>
    %cst_727 = arith.constant dense<0.000000e+00> : vector<16x8xf32>
    %1036 = tpu.matmul %1007, %1035, %cst_727 {dimension_numbers = #tpu.dot_dimension_numbers<[1], [0], [0], [1], [0, 0, 1, 1], [], []>} : vector<16x32xf32>, vector<32x8xf32>, vector<16x8xf32> -> vector<16x8xf32>
    %c0_728 = arith.constant 0 : index
    %c0_729 = arith.constant 0 : index
    %c0_730 = arith.constant 0 : index
    %1037 = vector.load %arg7[%c0_728, %c0_729, %c0_730] : memref<4x1x8xf32, #tpu.memory_space<vmem>>, vector<1x1x8xf32>
    %1038 = vector.shape_cast %1037 : vector<1x1x8xf32> to vector<1x8xf32>
    %1039 = vector.broadcast %1038 : vector<1x8xf32> to vector<16x8xf32>
    %1040 = arith.addf %1036, %1039 : vector<16x8xf32>
    %c0_731 = arith.constant 0 : index
    %c0_732 = arith.constant 0 : index
    %c0_733 = arith.constant 0 : index
    %1041 = vector.load %arg8[%c0_731, %c0_732, %c0_733] : memref<4x8x32xf32, #tpu.memory_space<vmem>>, vector<1x8x32xf32>
    %1042 = vector.shape_cast %1041 : vector<1x8x32xf32> to vector<8x32xf32>
    %cst_734 = arith.constant dense<0.000000e+00> : vector<8x16xf32>
    %1043 = tpu.matmul %1042, %1032, %cst_734 {dimension_numbers = #tpu.dot_dimension_numbers<[1], [0], [0], [1], [0, 0, 1, 1], [], []>} : vector<8x32xf32>, vector<32x16xf32>, vector<8x16xf32> -> vector<8x16xf32>
    %c0_735 = arith.constant 0 : index
    %c0_736 = arith.constant 0 : index
    %c0_737 = arith.constant 0 : index
    %1044 = vector.load %arg9[%c0_735, %c0_736, %c0_737] : memref<4x8x16xf32, #tpu.memory_space<vmem>>, vector<1x8x16xf32>
    %1045 = vector.shape_cast %1044 : vector<1x8x16xf32> to vector<8x16xf32>
    %1046 = arith.addf %1043, %1045 : vector<8x16xf32>
    %c0_738 = arith.constant 0 : index
    %c0_739 = arith.constant 0 : index
    %c0_740 = arith.constant 0 : index
    %1047 = vector.load %arg10[%c0_738, %c0_739, %c0_740] : memref<4x32x8xf32, #tpu.memory_space<vmem>>, vector<1x32x8xf32>
    %1048 = vector.shape_cast %1047 : vector<1x32x8xf32> to vector<32x8xf32>
    %cst_741 = arith.constant dense<0.000000e+00> : vector<16x8xf32>
    %1049 = tpu.matmul %1031, %1048, %cst_741 {dimension_numbers = #tpu.dot_dimension_numbers<[1], [0], [0], [1], [0, 0, 1, 1], [], []>} : vector<16x32xf32>, vector<32x8xf32>, vector<16x8xf32> -> vector<16x8xf32>
    %c0_742 = arith.constant 0 : index
    %c0_743 = arith.constant 0 : index
    %c0_744 = arith.constant 0 : index
    %1050 = vector.load %arg11[%c0_742, %c0_743, %c0_744] : memref<4x1x8xf32, #tpu.memory_space<vmem>>, vector<1x1x8xf32>
    %1051 = vector.shape_cast %1050 : vector<1x1x8xf32> to vector<1x8xf32>
    %1052 = vector.broadcast %1051 : vector<1x8xf32> to vector<16x8xf32>
    %1053 = arith.addf %1049, %1052 : vector<16x8xf32>
    %cst_745 = arith.constant dense<0.000000e+00> : vector<16x16xf32>
    %1054 = tpu.matmul %1040, %1046, %cst_745 {dimension_numbers = #tpu.dot_dimension_numbers<[1], [0], [0], [1], [0, 0, 1, 1], [], []>} : vector<16x8xf32>, vector<8x16xf32>, vector<16x16xf32> -> vector<16x16xf32>
    %cst_746 = arith.constant dense<0xFF800000> : vector<16xf32>
    %1055 = vector.multi_reduction <maximumf>, %1054, %cst_746 [1] : vector<16x16xf32> to vector<16xf32>
    %1056 = vector.shape_cast %1055 : vector<16xf32> to vector<16x1xf32>
    %1057 = vector.broadcast %1056 : vector<16x1xf32> to vector<16x16xf32>
    %1058 = arith.subf %1054, %1057 : vector<16x16xf32>
    %1059 = math.exp %1058 : vector<16x16xf32>
    %cst_747 = arith.constant dense<0.000000e+00> : vector<16xf32>
    %1060 = vector.multi_reduction <add>, %1059, %cst_747 [1] : vector<16x16xf32> to vector<16xf32>
    %1061 = vector.shape_cast %1060 : vector<16xf32> to vector<16x1xf32>
    %1062 = vector.broadcast %1061 : vector<16x1xf32> to vector<16x16xf32>
    %1063 = arith.divf %1059, %1062 : vector<16x16xf32>
    %cst_748 = arith.constant dense<0.000000e+00> : vector<16x8xf32>
    %1064 = tpu.matmul %1063, %1053, %cst_748 {dimension_numbers = #tpu.dot_dimension_numbers<[1], [0], [0], [1], [0, 0, 1, 1], [], []>} : vector<16x16xf32>, vector<16x8xf32>, vector<16x8xf32> -> vector<16x8xf32>
    %c0_749 = arith.constant 0 : index
    %c0_750 = arith.constant 0 : index
    %c0_751 = arith.constant 0 : index
    %1065 = vector.load %arg12[%c0_749, %c0_750, %c0_751] : memref<4x8x32xf32, #tpu.memory_space<vmem>>, vector<1x8x32xf32>
    %1066 = vector.shape_cast %1065 : vector<1x8x32xf32> to vector<8x32xf32>
    %cst_752 = arith.constant dense<0.000000e+00> : vector<16x32xf32>
    %1067 = tpu.matmul %1064, %1066, %cst_752 {dimension_numbers = #tpu.dot_dimension_numbers<[1], [0], [0], [1], [0, 0, 1, 1], [], []>} : vector<16x8xf32>, vector<8x32xf32>, vector<16x32xf32> -> vector<16x32xf32>
    %1068 = arith.addf %1033, %1067 : vector<16x32xf32>
    %c1_753 = arith.constant 1 : index
    %c0_754 = arith.constant 0 : index
    %c0_755 = arith.constant 0 : index
    %1069 = vector.load %arg6[%c1_753, %c0_754, %c0_755] : memref<4x32x8xf32, #tpu.memory_space<vmem>>, vector<1x32x8xf32>
    %1070 = vector.shape_cast %1069 : vector<1x32x8xf32> to vector<32x8xf32>
    %cst_756 = arith.constant dense<0.000000e+00> : vector<16x8xf32>
    %1071 = tpu.matmul %1007, %1070, %cst_756 {dimension_numbers = #tpu.dot_dimension_numbers<[1], [0], [0], [1], [0, 0, 1, 1], [], []>} : vector<16x32xf32>, vector<32x8xf32>, vector<16x8xf32> -> vector<16x8xf32>
    %c1_757 = arith.constant 1 : index
    %c0_758 = arith.constant 0 : index
    %c0_759 = arith.constant 0 : index
    %1072 = vector.load %arg7[%c1_757, %c0_758, %c0_759] : memref<4x1x8xf32, #tpu.memory_space<vmem>>, vector<1x1x8xf32>
    %1073 = vector.shape_cast %1072 : vector<1x1x8xf32> to vector<1x8xf32>
    %1074 = vector.broadcast %1073 : vector<1x8xf32> to vector<16x8xf32>
    %1075 = arith.addf %1071, %1074 : vector<16x8xf32>
    %c1_760 = arith.constant 1 : index
    %c0_761 = arith.constant 0 : index
    %c0_762 = arith.constant 0 : index
    %1076 = vector.load %arg8[%c1_760, %c0_761, %c0_762] : memref<4x8x32xf32, #tpu.memory_space<vmem>>, vector<1x8x32xf32>
    %1077 = vector.shape_cast %1076 : vector<1x8x32xf32> to vector<8x32xf32>
    %cst_763 = arith.constant dense<0.000000e+00> : vector<8x16xf32>
    %1078 = tpu.matmul %1077, %1032, %cst_763 {dimension_numbers = #tpu.dot_dimension_numbers<[1], [0], [0], [1], [0, 0, 1, 1], [], []>} : vector<8x32xf32>, vector<32x16xf32>, vector<8x16xf32> -> vector<8x16xf32>
    %c1_764 = arith.constant 1 : index
    %c0_765 = arith.constant 0 : index
    %c0_766 = arith.constant 0 : index
    %1079 = vector.load %arg9[%c1_764, %c0_765, %c0_766] : memref<4x8x16xf32, #tpu.memory_space<vmem>>, vector<1x8x16xf32>
    %1080 = vector.shape_cast %1079 : vector<1x8x16xf32> to vector<8x16xf32>
    %1081 = arith.addf %1078, %1080 : vector<8x16xf32>
    %c1_767 = arith.constant 1 : index
    %c0_768 = arith.constant 0 : index
    %c0_769 = arith.constant 0 : index
    %1082 = vector.load %arg10[%c1_767, %c0_768, %c0_769] : memref<4x32x8xf32, #tpu.memory_space<vmem>>, vector<1x32x8xf32>
    %1083 = vector.shape_cast %1082 : vector<1x32x8xf32> to vector<32x8xf32>
    %cst_770 = arith.constant dense<0.000000e+00> : vector<16x8xf32>
    %1084 = tpu.matmul %1031, %1083, %cst_770 {dimension_numbers = #tpu.dot_dimension_numbers<[1], [0], [0], [1], [0, 0, 1, 1], [], []>} : vector<16x32xf32>, vector<32x8xf32>, vector<16x8xf32> -> vector<16x8xf32>
    %c1_771 = arith.constant 1 : index
    %c0_772 = arith.constant 0 : index
    %c0_773 = arith.constant 0 : index
    %1085 = vector.load %arg11[%c1_771, %c0_772, %c0_773] : memref<4x1x8xf32, #tpu.memory_space<vmem>>, vector<1x1x8xf32>
    %1086 = vector.shape_cast %1085 : vector<1x1x8xf32> to vector<1x8xf32>
    %1087 = vector.broadcast %1086 : vector<1x8xf32> to vector<16x8xf32>
    %1088 = arith.addf %1084, %1087 : vector<16x8xf32>
    %cst_774 = arith.constant dense<0.000000e+00> : vector<16x16xf32>
    %1089 = tpu.matmul %1075, %1081, %cst_774 {dimension_numbers = #tpu.dot_dimension_numbers<[1], [0], [0], [1], [0, 0, 1, 1], [], []>} : vector<16x8xf32>, vector<8x16xf32>, vector<16x16xf32> -> vector<16x16xf32>
    %cst_775 = arith.constant dense<0xFF800000> : vector<16xf32>
    %1090 = vector.multi_reduction <maximumf>, %1089, %cst_775 [1] : vector<16x16xf32> to vector<16xf32>
    %1091 = vector.shape_cast %1090 : vector<16xf32> to vector<16x1xf32>
    %1092 = vector.broadcast %1091 : vector<16x1xf32> to vector<16x16xf32>
    %1093 = arith.subf %1089, %1092 : vector<16x16xf32>
    %1094 = math.exp %1093 : vector<16x16xf32>
    %cst_776 = arith.constant dense<0.000000e+00> : vector<16xf32>
    %1095 = vector.multi_reduction <add>, %1094, %cst_776 [1] : vector<16x16xf32> to vector<16xf32>
    %1096 = vector.shape_cast %1095 : vector<16xf32> to vector<16x1xf32>
    %1097 = vector.broadcast %1096 : vector<16x1xf32> to vector<16x16xf32>
    %1098 = arith.divf %1094, %1097 : vector<16x16xf32>
    %cst_777 = arith.constant dense<0.000000e+00> : vector<16x8xf32>
    %1099 = tpu.matmul %1098, %1088, %cst_777 {dimension_numbers = #tpu.dot_dimension_numbers<[1], [0], [0], [1], [0, 0, 1, 1], [], []>} : vector<16x16xf32>, vector<16x8xf32>, vector<16x8xf32> -> vector<16x8xf32>
    %c1_778 = arith.constant 1 : index
    %c0_779 = arith.constant 0 : index
    %c0_780 = arith.constant 0 : index
    %1100 = vector.load %arg12[%c1_778, %c0_779, %c0_780] : memref<4x8x32xf32, #tpu.memory_space<vmem>>, vector<1x8x32xf32>
    %1101 = vector.shape_cast %1100 : vector<1x8x32xf32> to vector<8x32xf32>
    %cst_781 = arith.constant dense<0.000000e+00> : vector<16x32xf32>
    %1102 = tpu.matmul %1099, %1101, %cst_781 {dimension_numbers = #tpu.dot_dimension_numbers<[1], [0], [0], [1], [0, 0, 1, 1], [], []>} : vector<16x8xf32>, vector<8x32xf32>, vector<16x32xf32> -> vector<16x32xf32>
    %1103 = arith.addf %1068, %1102 : vector<16x32xf32>
    %c2_782 = arith.constant 2 : index
    %c0_783 = arith.constant 0 : index
    %c0_784 = arith.constant 0 : index
    %1104 = vector.load %arg6[%c2_782, %c0_783, %c0_784] : memref<4x32x8xf32, #tpu.memory_space<vmem>>, vector<1x32x8xf32>
    %1105 = vector.shape_cast %1104 : vector<1x32x8xf32> to vector<32x8xf32>
    %cst_785 = arith.constant dense<0.000000e+00> : vector<16x8xf32>
    %1106 = tpu.matmul %1007, %1105, %cst_785 {dimension_numbers = #tpu.dot_dimension_numbers<[1], [0], [0], [1], [0, 0, 1, 1], [], []>} : vector<16x32xf32>, vector<32x8xf32>, vector<16x8xf32> -> vector<16x8xf32>
    %c2_786 = arith.constant 2 : index
    %c0_787 = arith.constant 0 : index
    %c0_788 = arith.constant 0 : index
    %1107 = vector.load %arg7[%c2_786, %c0_787, %c0_788] : memref<4x1x8xf32, #tpu.memory_space<vmem>>, vector<1x1x8xf32>
    %1108 = vector.shape_cast %1107 : vector<1x1x8xf32> to vector<1x8xf32>
    %1109 = vector.broadcast %1108 : vector<1x8xf32> to vector<16x8xf32>
    %1110 = arith.addf %1106, %1109 : vector<16x8xf32>
    %c2_789 = arith.constant 2 : index
    %c0_790 = arith.constant 0 : index
    %c0_791 = arith.constant 0 : index
    %1111 = vector.load %arg8[%c2_789, %c0_790, %c0_791] : memref<4x8x32xf32, #tpu.memory_space<vmem>>, vector<1x8x32xf32>
    %1112 = vector.shape_cast %1111 : vector<1x8x32xf32> to vector<8x32xf32>
    %cst_792 = arith.constant dense<0.000000e+00> : vector<8x16xf32>
    %1113 = tpu.matmul %1112, %1032, %cst_792 {dimension_numbers = #tpu.dot_dimension_numbers<[1], [0], [0], [1], [0, 0, 1, 1], [], []>} : vector<8x32xf32>, vector<32x16xf32>, vector<8x16xf32> -> vector<8x16xf32>
    %c2_793 = arith.constant 2 : index
    %c0_794 = arith.constant 0 : index
    %c0_795 = arith.constant 0 : index
    %1114 = vector.load %arg9[%c2_793, %c0_794, %c0_795] : memref<4x8x16xf32, #tpu.memory_space<vmem>>, vector<1x8x16xf32>
    %1115 = vector.shape_cast %1114 : vector<1x8x16xf32> to vector<8x16xf32>
    %1116 = arith.addf %1113, %1115 : vector<8x16xf32>
    %c2_796 = arith.constant 2 : index
    %c0_797 = arith.constant 0 : index
    %c0_798 = arith.constant 0 : index
    %1117 = vector.load %arg10[%c2_796, %c0_797, %c0_798] : memref<4x32x8xf32, #tpu.memory_space<vmem>>, vector<1x32x8xf32>
    %1118 = vector.shape_cast %1117 : vector<1x32x8xf32> to vector<32x8xf32>
    %cst_799 = arith.constant dense<0.000000e+00> : vector<16x8xf32>
    %1119 = tpu.matmul %1031, %1118, %cst_799 {dimension_numbers = #tpu.dot_dimension_numbers<[1], [0], [0], [1], [0, 0, 1, 1], [], []>} : vector<16x32xf32>, vector<32x8xf32>, vector<16x8xf32> -> vector<16x8xf32>
    %c2_800 = arith.constant 2 : index
    %c0_801 = arith.constant 0 : index
    %c0_802 = arith.constant 0 : index
    %1120 = vector.load %arg11[%c2_800, %c0_801, %c0_802] : memref<4x1x8xf32, #tpu.memory_space<vmem>>, vector<1x1x8xf32>
    %1121 = vector.shape_cast %1120 : vector<1x1x8xf32> to vector<1x8xf32>
    %1122 = vector.broadcast %1121 : vector<1x8xf32> to vector<16x8xf32>
    %1123 = arith.addf %1119, %1122 : vector<16x8xf32>
    %cst_803 = arith.constant dense<0.000000e+00> : vector<16x16xf32>
    %1124 = tpu.matmul %1110, %1116, %cst_803 {dimension_numbers = #tpu.dot_dimension_numbers<[1], [0], [0], [1], [0, 0, 1, 1], [], []>} : vector<16x8xf32>, vector<8x16xf32>, vector<16x16xf32> -> vector<16x16xf32>
    %cst_804 = arith.constant dense<0xFF800000> : vector<16xf32>
    %1125 = vector.multi_reduction <maximumf>, %1124, %cst_804 [1] : vector<16x16xf32> to vector<16xf32>
    %1126 = vector.shape_cast %1125 : vector<16xf32> to vector<16x1xf32>
    %1127 = vector.broadcast %1126 : vector<16x1xf32> to vector<16x16xf32>
    %1128 = arith.subf %1124, %1127 : vector<16x16xf32>
    %1129 = math.exp %1128 : vector<16x16xf32>
    %cst_805 = arith.constant dense<0.000000e+00> : vector<16xf32>
    %1130 = vector.multi_reduction <add>, %1129, %cst_805 [1] : vector<16x16xf32> to vector<16xf32>
    %1131 = vector.shape_cast %1130 : vector<16xf32> to vector<16x1xf32>
    %1132 = vector.broadcast %1131 : vector<16x1xf32> to vector<16x16xf32>
    %1133 = arith.divf %1129, %1132 : vector<16x16xf32>
    %cst_806 = arith.constant dense<0.000000e+00> : vector<16x8xf32>
    %1134 = tpu.matmul %1133, %1123, %cst_806 {dimension_numbers = #tpu.dot_dimension_numbers<[1], [0], [0], [1], [0, 0, 1, 1], [], []>} : vector<16x16xf32>, vector<16x8xf32>, vector<16x8xf32> -> vector<16x8xf32>
    %c2_807 = arith.constant 2 : index
    %c0_808 = arith.constant 0 : index
    %c0_809 = arith.constant 0 : index
    %1135 = vector.load %arg12[%c2_807, %c0_808, %c0_809] : memref<4x8x32xf32, #tpu.memory_space<vmem>>, vector<1x8x32xf32>
    %1136 = vector.shape_cast %1135 : vector<1x8x32xf32> to vector<8x32xf32>
    %cst_810 = arith.constant dense<0.000000e+00> : vector<16x32xf32>
    %1137 = tpu.matmul %1134, %1136, %cst_810 {dimension_numbers = #tpu.dot_dimension_numbers<[1], [0], [0], [1], [0, 0, 1, 1], [], []>} : vector<16x8xf32>, vector<8x32xf32>, vector<16x32xf32> -> vector<16x32xf32>
    %1138 = arith.addf %1103, %1137 : vector<16x32xf32>
    %c3_811 = arith.constant 3 : index
    %c0_812 = arith.constant 0 : index
    %c0_813 = arith.constant 0 : index
    %1139 = vector.load %arg6[%c3_811, %c0_812, %c0_813] : memref<4x32x8xf32, #tpu.memory_space<vmem>>, vector<1x32x8xf32>
    %1140 = vector.shape_cast %1139 : vector<1x32x8xf32> to vector<32x8xf32>
    %cst_814 = arith.constant dense<0.000000e+00> : vector<16x8xf32>
    %1141 = tpu.matmul %1007, %1140, %cst_814 {dimension_numbers = #tpu.dot_dimension_numbers<[1], [0], [0], [1], [0, 0, 1, 1], [], []>} : vector<16x32xf32>, vector<32x8xf32>, vector<16x8xf32> -> vector<16x8xf32>
    %c3_815 = arith.constant 3 : index
    %c0_816 = arith.constant 0 : index
    %c0_817 = arith.constant 0 : index
    %1142 = vector.load %arg7[%c3_815, %c0_816, %c0_817] : memref<4x1x8xf32, #tpu.memory_space<vmem>>, vector<1x1x8xf32>
    %1143 = vector.shape_cast %1142 : vector<1x1x8xf32> to vector<1x8xf32>
    %1144 = vector.broadcast %1143 : vector<1x8xf32> to vector<16x8xf32>
    %1145 = arith.addf %1141, %1144 : vector<16x8xf32>
    %c3_818 = arith.constant 3 : index
    %c0_819 = arith.constant 0 : index
    %c0_820 = arith.constant 0 : index
    %1146 = vector.load %arg8[%c3_818, %c0_819, %c0_820] : memref<4x8x32xf32, #tpu.memory_space<vmem>>, vector<1x8x32xf32>
    %1147 = vector.shape_cast %1146 : vector<1x8x32xf32> to vector<8x32xf32>
    %cst_821 = arith.constant dense<0.000000e+00> : vector<8x16xf32>
    %1148 = tpu.matmul %1147, %1032, %cst_821 {dimension_numbers = #tpu.dot_dimension_numbers<[1], [0], [0], [1], [0, 0, 1, 1], [], []>} : vector<8x32xf32>, vector<32x16xf32>, vector<8x16xf32> -> vector<8x16xf32>
    %c3_822 = arith.constant 3 : index
    %c0_823 = arith.constant 0 : index
    %c0_824 = arith.constant 0 : index
    %1149 = vector.load %arg9[%c3_822, %c0_823, %c0_824] : memref<4x8x16xf32, #tpu.memory_space<vmem>>, vector<1x8x16xf32>
    %1150 = vector.shape_cast %1149 : vector<1x8x16xf32> to vector<8x16xf32>
    %1151 = arith.addf %1148, %1150 : vector<8x16xf32>
    %c3_825 = arith.constant 3 : index
    %c0_826 = arith.constant 0 : index
    %c0_827 = arith.constant 0 : index
    %1152 = vector.load %arg10[%c3_825, %c0_826, %c0_827] : memref<4x32x8xf32, #tpu.memory_space<vmem>>, vector<1x32x8xf32>
    %1153 = vector.shape_cast %1152 : vector<1x32x8xf32> to vector<32x8xf32>
    %cst_828 = arith.constant dense<0.000000e+00> : vector<16x8xf32>
    %1154 = tpu.matmul %1031, %1153, %cst_828 {dimension_numbers = #tpu.dot_dimension_numbers<[1], [0], [0], [1], [0, 0, 1, 1], [], []>} : vector<16x32xf32>, vector<32x8xf32>, vector<16x8xf32> -> vector<16x8xf32>
    %c3_829 = arith.constant 3 : index
    %c0_830 = arith.constant 0 : index
    %c0_831 = arith.constant 0 : index
    %1155 = vector.load %arg11[%c3_829, %c0_830, %c0_831] : memref<4x1x8xf32, #tpu.memory_space<vmem>>, vector<1x1x8xf32>
    %1156 = vector.shape_cast %1155 : vector<1x1x8xf32> to vector<1x8xf32>
    %1157 = vector.broadcast %1156 : vector<1x8xf32> to vector<16x8xf32>
    %1158 = arith.addf %1154, %1157 : vector<16x8xf32>
    %cst_832 = arith.constant dense<0.000000e+00> : vector<16x16xf32>
    %1159 = tpu.matmul %1145, %1151, %cst_832 {dimension_numbers = #tpu.dot_dimension_numbers<[1], [0], [0], [1], [0, 0, 1, 1], [], []>} : vector<16x8xf32>, vector<8x16xf32>, vector<16x16xf32> -> vector<16x16xf32>
    %cst_833 = arith.constant dense<0xFF800000> : vector<16xf32>
    %1160 = vector.multi_reduction <maximumf>, %1159, %cst_833 [1] : vector<16x16xf32> to vector<16xf32>
    %1161 = vector.shape_cast %1160 : vector<16xf32> to vector<16x1xf32>
    %1162 = vector.broadcast %1161 : vector<16x1xf32> to vector<16x16xf32>
    %1163 = arith.subf %1159, %1162 : vector<16x16xf32>
    %1164 = math.exp %1163 : vector<16x16xf32>
    %cst_834 = arith.constant dense<0.000000e+00> : vector<16xf32>
    %1165 = vector.multi_reduction <add>, %1164, %cst_834 [1] : vector<16x16xf32> to vector<16xf32>
    %1166 = vector.shape_cast %1165 : vector<16xf32> to vector<16x1xf32>
    %1167 = vector.broadcast %1166 : vector<16x1xf32> to vector<16x16xf32>
    %1168 = arith.divf %1164, %1167 : vector<16x16xf32>
    %cst_835 = arith.constant dense<0.000000e+00> : vector<16x8xf32>
    %1169 = tpu.matmul %1168, %1158, %cst_835 {dimension_numbers = #tpu.dot_dimension_numbers<[1], [0], [0], [1], [0, 0, 1, 1], [], []>} : vector<16x16xf32>, vector<16x8xf32>, vector<16x8xf32> -> vector<16x8xf32>
    %c3_836 = arith.constant 3 : index
    %c0_837 = arith.constant 0 : index
    %c0_838 = arith.constant 0 : index
    %1170 = vector.load %arg12[%c3_836, %c0_837, %c0_838] : memref<4x8x32xf32, #tpu.memory_space<vmem>>, vector<1x8x32xf32>
    %1171 = vector.shape_cast %1170 : vector<1x8x32xf32> to vector<8x32xf32>
    %cst_839 = arith.constant dense<0.000000e+00> : vector<16x32xf32>
    %1172 = tpu.matmul %1169, %1171, %cst_839 {dimension_numbers = #tpu.dot_dimension_numbers<[1], [0], [0], [1], [0, 0, 1, 1], [], []>} : vector<16x8xf32>, vector<8x32xf32>, vector<16x32xf32> -> vector<16x32xf32>
    %1173 = arith.addf %1138, %1172 : vector<16x32xf32>
    %c0_840 = arith.constant 0 : index
    %c0_841 = arith.constant 0 : index
    %1174 = vector.load %arg13[%c0_840, %c0_841] : memref<1x32xf32, #tpu.memory_space<vmem>>, vector<1x32xf32>
    %1175 = vector.broadcast %1174 : vector<1x32xf32> to vector<16x32xf32>
    %1176 = arith.addf %1173, %1175 : vector<16x32xf32>
    %1177 = arith.addf %983, %1176 : vector<16x32xf32>
    %c0_842 = arith.constant 0 : index
    %c7 = arith.constant 7 : index
    %c0_843 = arith.constant 0 : index
    %c0_844 = arith.constant 0 : index
    %1178 = vector.load %arg1[%c0_842, %c7, %c0_843, %c0_844] : memref<1x8x16x32xf32, #tpu.memory_space<vmem>>, vector<1x1x16x32xf32>
    %1179 = vector.shape_cast %1178 : vector<1x1x16x32xf32> to vector<16x32xf32>
    %c0_845 = arith.constant 0 : index
    %c0_846 = arith.constant 0 : index
    %1180 = vector.load %arg2[%c0_845, %c0_846] : memref<1x32xf32, #tpu.memory_space<vmem>>, vector<1x32xf32>
    %c0_847 = arith.constant 0 : index
    %c0_848 = arith.constant 0 : index
    %1181 = vector.load %arg3[%c0_847, %c0_848] : memref<1x32xf32, #tpu.memory_space<vmem>>, vector<1x32xf32>
    %cst_849 = arith.constant dense<0.000000e+00> : vector<16xf32>
    %1182 = vector.multi_reduction <add>, %1177, %cst_849 [1] : vector<16x32xf32> to vector<16xf32>
    %1183 = vector.shape_cast %1182 : vector<16xf32> to vector<16x1xf32>
    %cst_850 = arith.constant 3.200000e+01 : f32
    %1184 = vector.broadcast %cst_850 : f32 to vector<16x1xf32>
    %1185 = arith.divf %1183, %1184 : vector<16x1xf32>
    %1186 = vector.broadcast %1185 : vector<16x1xf32> to vector<16x32xf32>
    %1187 = arith.subf %1177, %1186 : vector<16x32xf32>
    %1188 = arith.mulf %1187, %1187 : vector<16x32xf32>
    %cst_851 = arith.constant dense<0.000000e+00> : vector<16xf32>
    %1189 = vector.multi_reduction <add>, %1188, %cst_851 [1] : vector<16x32xf32> to vector<16xf32>
    %1190 = vector.shape_cast %1189 : vector<16xf32> to vector<16x1xf32>
    %cst_852 = arith.constant 3.200000e+01 : f32
    %1191 = vector.broadcast %cst_852 : f32 to vector<16x1xf32>
    %1192 = arith.divf %1190, %1191 : vector<16x1xf32>
    %1193 = vector.broadcast %1185 : vector<16x1xf32> to vector<16x32xf32>
    %1194 = arith.subf %1177, %1193 : vector<16x32xf32>
    %cst_853 = arith.constant 9.99999997E-7 : f32
    %1195 = vector.broadcast %cst_853 : f32 to vector<16x1xf32>
    %1196 = arith.addf %1192, %1195 : vector<16x1xf32>
    %1197 = math.rsqrt %1196 : vector<16x1xf32>
    %1198 = vector.broadcast %1197 : vector<16x1xf32> to vector<16x32xf32>
    %1199 = arith.mulf %1194, %1198 : vector<16x32xf32>
    %1200 = vector.broadcast %1180 : vector<1x32xf32> to vector<16x32xf32>
    %1201 = arith.mulf %1199, %1200 : vector<16x32xf32>
    %1202 = vector.broadcast %1181 : vector<1x32xf32> to vector<16x32xf32>
    %1203 = arith.addf %1201, %1202 : vector<16x32xf32>
    %c0_854 = arith.constant 0 : index
    %c0_855 = arith.constant 0 : index
    %1204 = vector.load %arg4[%c0_854, %c0_855] : memref<1x32xf32, #tpu.memory_space<vmem>>, vector<1x32xf32>
    %c0_856 = arith.constant 0 : index
    %c0_857 = arith.constant 0 : index
    %1205 = vector.load %arg5[%c0_856, %c0_857] : memref<1x32xf32, #tpu.memory_space<vmem>>, vector<1x32xf32>
    %cst_858 = arith.constant dense<0.000000e+00> : vector<16xf32>
    %1206 = vector.multi_reduction <add>, %1179, %cst_858 [1] : vector<16x32xf32> to vector<16xf32>
    %1207 = vector.shape_cast %1206 : vector<16xf32> to vector<16x1xf32>
    %cst_859 = arith.constant 3.200000e+01 : f32
    %1208 = vector.broadcast %cst_859 : f32 to vector<16x1xf32>
    %1209 = arith.divf %1207, %1208 : vector<16x1xf32>
    %1210 = vector.broadcast %1209 : vector<16x1xf32> to vector<16x32xf32>
    %1211 = arith.subf %1179, %1210 : vector<16x32xf32>
    %1212 = arith.mulf %1211, %1211 : vector<16x32xf32>
    %cst_860 = arith.constant dense<0.000000e+00> : vector<16xf32>
    %1213 = vector.multi_reduction <add>, %1212, %cst_860 [1] : vector<16x32xf32> to vector<16xf32>
    %1214 = vector.shape_cast %1213 : vector<16xf32> to vector<16x1xf32>
    %cst_861 = arith.constant 3.200000e+01 : f32
    %1215 = vector.broadcast %cst_861 : f32 to vector<16x1xf32>
    %1216 = arith.divf %1214, %1215 : vector<16x1xf32>
    %1217 = vector.broadcast %1209 : vector<16x1xf32> to vector<16x32xf32>
    %1218 = arith.subf %1179, %1217 : vector<16x32xf32>
    %cst_862 = arith.constant 9.99999997E-7 : f32
    %1219 = vector.broadcast %cst_862 : f32 to vector<16x1xf32>
    %1220 = arith.addf %1216, %1219 : vector<16x1xf32>
    %1221 = math.rsqrt %1220 : vector<16x1xf32>
    %1222 = vector.broadcast %1221 : vector<16x1xf32> to vector<16x32xf32>
    %1223 = arith.mulf %1218, %1222 : vector<16x32xf32>
    %1224 = vector.broadcast %1204 : vector<1x32xf32> to vector<16x32xf32>
    %1225 = arith.mulf %1223, %1224 : vector<16x32xf32>
    %1226 = vector.broadcast %1205 : vector<1x32xf32> to vector<16x32xf32>
    %1227 = arith.addf %1225, %1226 : vector<16x32xf32>
    %1228 = tpu.transpose %1227, [1, 0] : vector<16x32xf32> -> vector<32x16xf32>
    %cst_863 = arith.constant 0.000000e+00 : f32
    %1229 = vector.broadcast %cst_863 : f32 to vector<16x32xf32>
    %c0_864 = arith.constant 0 : index
    %c0_865 = arith.constant 0 : index
    %c0_866 = arith.constant 0 : index
    %1230 = vector.load %arg6[%c0_864, %c0_865, %c0_866] : memref<4x32x8xf32, #tpu.memory_space<vmem>>, vector<1x32x8xf32>
    %1231 = vector.shape_cast %1230 : vector<1x32x8xf32> to vector<32x8xf32>
    %cst_867 = arith.constant dense<0.000000e+00> : vector<16x8xf32>
    %1232 = tpu.matmul %1203, %1231, %cst_867 {dimension_numbers = #tpu.dot_dimension_numbers<[1], [0], [0], [1], [0, 0, 1, 1], [], []>} : vector<16x32xf32>, vector<32x8xf32>, vector<16x8xf32> -> vector<16x8xf32>
    %c0_868 = arith.constant 0 : index
    %c0_869 = arith.constant 0 : index
    %c0_870 = arith.constant 0 : index
    %1233 = vector.load %arg7[%c0_868, %c0_869, %c0_870] : memref<4x1x8xf32, #tpu.memory_space<vmem>>, vector<1x1x8xf32>
    %1234 = vector.shape_cast %1233 : vector<1x1x8xf32> to vector<1x8xf32>
    %1235 = vector.broadcast %1234 : vector<1x8xf32> to vector<16x8xf32>
    %1236 = arith.addf %1232, %1235 : vector<16x8xf32>
    %c0_871 = arith.constant 0 : index
    %c0_872 = arith.constant 0 : index
    %c0_873 = arith.constant 0 : index
    %1237 = vector.load %arg8[%c0_871, %c0_872, %c0_873] : memref<4x8x32xf32, #tpu.memory_space<vmem>>, vector<1x8x32xf32>
    %1238 = vector.shape_cast %1237 : vector<1x8x32xf32> to vector<8x32xf32>
    %cst_874 = arith.constant dense<0.000000e+00> : vector<8x16xf32>
    %1239 = tpu.matmul %1238, %1228, %cst_874 {dimension_numbers = #tpu.dot_dimension_numbers<[1], [0], [0], [1], [0, 0, 1, 1], [], []>} : vector<8x32xf32>, vector<32x16xf32>, vector<8x16xf32> -> vector<8x16xf32>
    %c0_875 = arith.constant 0 : index
    %c0_876 = arith.constant 0 : index
    %c0_877 = arith.constant 0 : index
    %1240 = vector.load %arg9[%c0_875, %c0_876, %c0_877] : memref<4x8x16xf32, #tpu.memory_space<vmem>>, vector<1x8x16xf32>
    %1241 = vector.shape_cast %1240 : vector<1x8x16xf32> to vector<8x16xf32>
    %1242 = arith.addf %1239, %1241 : vector<8x16xf32>
    %c0_878 = arith.constant 0 : index
    %c0_879 = arith.constant 0 : index
    %c0_880 = arith.constant 0 : index
    %1243 = vector.load %arg10[%c0_878, %c0_879, %c0_880] : memref<4x32x8xf32, #tpu.memory_space<vmem>>, vector<1x32x8xf32>
    %1244 = vector.shape_cast %1243 : vector<1x32x8xf32> to vector<32x8xf32>
    %cst_881 = arith.constant dense<0.000000e+00> : vector<16x8xf32>
    %1245 = tpu.matmul %1227, %1244, %cst_881 {dimension_numbers = #tpu.dot_dimension_numbers<[1], [0], [0], [1], [0, 0, 1, 1], [], []>} : vector<16x32xf32>, vector<32x8xf32>, vector<16x8xf32> -> vector<16x8xf32>
    %c0_882 = arith.constant 0 : index
    %c0_883 = arith.constant 0 : index
    %c0_884 = arith.constant 0 : index
    %1246 = vector.load %arg11[%c0_882, %c0_883, %c0_884] : memref<4x1x8xf32, #tpu.memory_space<vmem>>, vector<1x1x8xf32>
    %1247 = vector.shape_cast %1246 : vector<1x1x8xf32> to vector<1x8xf32>
    %1248 = vector.broadcast %1247 : vector<1x8xf32> to vector<16x8xf32>
    %1249 = arith.addf %1245, %1248 : vector<16x8xf32>
    %cst_885 = arith.constant dense<0.000000e+00> : vector<16x16xf32>
    %1250 = tpu.matmul %1236, %1242, %cst_885 {dimension_numbers = #tpu.dot_dimension_numbers<[1], [0], [0], [1], [0, 0, 1, 1], [], []>} : vector<16x8xf32>, vector<8x16xf32>, vector<16x16xf32> -> vector<16x16xf32>
    %cst_886 = arith.constant dense<0xFF800000> : vector<16xf32>
    %1251 = vector.multi_reduction <maximumf>, %1250, %cst_886 [1] : vector<16x16xf32> to vector<16xf32>
    %1252 = vector.shape_cast %1251 : vector<16xf32> to vector<16x1xf32>
    %1253 = vector.broadcast %1252 : vector<16x1xf32> to vector<16x16xf32>
    %1254 = arith.subf %1250, %1253 : vector<16x16xf32>
    %1255 = math.exp %1254 : vector<16x16xf32>
    %cst_887 = arith.constant dense<0.000000e+00> : vector<16xf32>
    %1256 = vector.multi_reduction <add>, %1255, %cst_887 [1] : vector<16x16xf32> to vector<16xf32>
    %1257 = vector.shape_cast %1256 : vector<16xf32> to vector<16x1xf32>
    %1258 = vector.broadcast %1257 : vector<16x1xf32> to vector<16x16xf32>
    %1259 = arith.divf %1255, %1258 : vector<16x16xf32>
    %cst_888 = arith.constant dense<0.000000e+00> : vector<16x8xf32>
    %1260 = tpu.matmul %1259, %1249, %cst_888 {dimension_numbers = #tpu.dot_dimension_numbers<[1], [0], [0], [1], [0, 0, 1, 1], [], []>} : vector<16x16xf32>, vector<16x8xf32>, vector<16x8xf32> -> vector<16x8xf32>
    %c0_889 = arith.constant 0 : index
    %c0_890 = arith.constant 0 : index
    %c0_891 = arith.constant 0 : index
    %1261 = vector.load %arg12[%c0_889, %c0_890, %c0_891] : memref<4x8x32xf32, #tpu.memory_space<vmem>>, vector<1x8x32xf32>
    %1262 = vector.shape_cast %1261 : vector<1x8x32xf32> to vector<8x32xf32>
    %cst_892 = arith.constant dense<0.000000e+00> : vector<16x32xf32>
    %1263 = tpu.matmul %1260, %1262, %cst_892 {dimension_numbers = #tpu.dot_dimension_numbers<[1], [0], [0], [1], [0, 0, 1, 1], [], []>} : vector<16x8xf32>, vector<8x32xf32>, vector<16x32xf32> -> vector<16x32xf32>
    %1264 = arith.addf %1229, %1263 : vector<16x32xf32>
    %c1_893 = arith.constant 1 : index
    %c0_894 = arith.constant 0 : index
    %c0_895 = arith.constant 0 : index
    %1265 = vector.load %arg6[%c1_893, %c0_894, %c0_895] : memref<4x32x8xf32, #tpu.memory_space<vmem>>, vector<1x32x8xf32>
    %1266 = vector.shape_cast %1265 : vector<1x32x8xf32> to vector<32x8xf32>
    %cst_896 = arith.constant dense<0.000000e+00> : vector<16x8xf32>
    %1267 = tpu.matmul %1203, %1266, %cst_896 {dimension_numbers = #tpu.dot_dimension_numbers<[1], [0], [0], [1], [0, 0, 1, 1], [], []>} : vector<16x32xf32>, vector<32x8xf32>, vector<16x8xf32> -> vector<16x8xf32>
    %c1_897 = arith.constant 1 : index
    %c0_898 = arith.constant 0 : index
    %c0_899 = arith.constant 0 : index
    %1268 = vector.load %arg7[%c1_897, %c0_898, %c0_899] : memref<4x1x8xf32, #tpu.memory_space<vmem>>, vector<1x1x8xf32>
    %1269 = vector.shape_cast %1268 : vector<1x1x8xf32> to vector<1x8xf32>
    %1270 = vector.broadcast %1269 : vector<1x8xf32> to vector<16x8xf32>
    %1271 = arith.addf %1267, %1270 : vector<16x8xf32>
    %c1_900 = arith.constant 1 : index
    %c0_901 = arith.constant 0 : index
    %c0_902 = arith.constant 0 : index
    %1272 = vector.load %arg8[%c1_900, %c0_901, %c0_902] : memref<4x8x32xf32, #tpu.memory_space<vmem>>, vector<1x8x32xf32>
    %1273 = vector.shape_cast %1272 : vector<1x8x32xf32> to vector<8x32xf32>
    %cst_903 = arith.constant dense<0.000000e+00> : vector<8x16xf32>
    %1274 = tpu.matmul %1273, %1228, %cst_903 {dimension_numbers = #tpu.dot_dimension_numbers<[1], [0], [0], [1], [0, 0, 1, 1], [], []>} : vector<8x32xf32>, vector<32x16xf32>, vector<8x16xf32> -> vector<8x16xf32>
    %c1_904 = arith.constant 1 : index
    %c0_905 = arith.constant 0 : index
    %c0_906 = arith.constant 0 : index
    %1275 = vector.load %arg9[%c1_904, %c0_905, %c0_906] : memref<4x8x16xf32, #tpu.memory_space<vmem>>, vector<1x8x16xf32>
    %1276 = vector.shape_cast %1275 : vector<1x8x16xf32> to vector<8x16xf32>
    %1277 = arith.addf %1274, %1276 : vector<8x16xf32>
    %c1_907 = arith.constant 1 : index
    %c0_908 = arith.constant 0 : index
    %c0_909 = arith.constant 0 : index
    %1278 = vector.load %arg10[%c1_907, %c0_908, %c0_909] : memref<4x32x8xf32, #tpu.memory_space<vmem>>, vector<1x32x8xf32>
    %1279 = vector.shape_cast %1278 : vector<1x32x8xf32> to vector<32x8xf32>
    %cst_910 = arith.constant dense<0.000000e+00> : vector<16x8xf32>
    %1280 = tpu.matmul %1227, %1279, %cst_910 {dimension_numbers = #tpu.dot_dimension_numbers<[1], [0], [0], [1], [0, 0, 1, 1], [], []>} : vector<16x32xf32>, vector<32x8xf32>, vector<16x8xf32> -> vector<16x8xf32>
    %c1_911 = arith.constant 1 : index
    %c0_912 = arith.constant 0 : index
    %c0_913 = arith.constant 0 : index
    %1281 = vector.load %arg11[%c1_911, %c0_912, %c0_913] : memref<4x1x8xf32, #tpu.memory_space<vmem>>, vector<1x1x8xf32>
    %1282 = vector.shape_cast %1281 : vector<1x1x8xf32> to vector<1x8xf32>
    %1283 = vector.broadcast %1282 : vector<1x8xf32> to vector<16x8xf32>
    %1284 = arith.addf %1280, %1283 : vector<16x8xf32>
    %cst_914 = arith.constant dense<0.000000e+00> : vector<16x16xf32>
    %1285 = tpu.matmul %1271, %1277, %cst_914 {dimension_numbers = #tpu.dot_dimension_numbers<[1], [0], [0], [1], [0, 0, 1, 1], [], []>} : vector<16x8xf32>, vector<8x16xf32>, vector<16x16xf32> -> vector<16x16xf32>
    %cst_915 = arith.constant dense<0xFF800000> : vector<16xf32>
    %1286 = vector.multi_reduction <maximumf>, %1285, %cst_915 [1] : vector<16x16xf32> to vector<16xf32>
    %1287 = vector.shape_cast %1286 : vector<16xf32> to vector<16x1xf32>
    %1288 = vector.broadcast %1287 : vector<16x1xf32> to vector<16x16xf32>
    %1289 = arith.subf %1285, %1288 : vector<16x16xf32>
    %1290 = math.exp %1289 : vector<16x16xf32>
    %cst_916 = arith.constant dense<0.000000e+00> : vector<16xf32>
    %1291 = vector.multi_reduction <add>, %1290, %cst_916 [1] : vector<16x16xf32> to vector<16xf32>
    %1292 = vector.shape_cast %1291 : vector<16xf32> to vector<16x1xf32>
    %1293 = vector.broadcast %1292 : vector<16x1xf32> to vector<16x16xf32>
    %1294 = arith.divf %1290, %1293 : vector<16x16xf32>
    %cst_917 = arith.constant dense<0.000000e+00> : vector<16x8xf32>
    %1295 = tpu.matmul %1294, %1284, %cst_917 {dimension_numbers = #tpu.dot_dimension_numbers<[1], [0], [0], [1], [0, 0, 1, 1], [], []>} : vector<16x16xf32>, vector<16x8xf32>, vector<16x8xf32> -> vector<16x8xf32>
    %c1_918 = arith.constant 1 : index
    %c0_919 = arith.constant 0 : index
    %c0_920 = arith.constant 0 : index
    %1296 = vector.load %arg12[%c1_918, %c0_919, %c0_920] : memref<4x8x32xf32, #tpu.memory_space<vmem>>, vector<1x8x32xf32>
    %1297 = vector.shape_cast %1296 : vector<1x8x32xf32> to vector<8x32xf32>
    %cst_921 = arith.constant dense<0.000000e+00> : vector<16x32xf32>
    %1298 = tpu.matmul %1295, %1297, %cst_921 {dimension_numbers = #tpu.dot_dimension_numbers<[1], [0], [0], [1], [0, 0, 1, 1], [], []>} : vector<16x8xf32>, vector<8x32xf32>, vector<16x32xf32> -> vector<16x32xf32>
    %1299 = arith.addf %1264, %1298 : vector<16x32xf32>
    %c2_922 = arith.constant 2 : index
    %c0_923 = arith.constant 0 : index
    %c0_924 = arith.constant 0 : index
    %1300 = vector.load %arg6[%c2_922, %c0_923, %c0_924] : memref<4x32x8xf32, #tpu.memory_space<vmem>>, vector<1x32x8xf32>
    %1301 = vector.shape_cast %1300 : vector<1x32x8xf32> to vector<32x8xf32>
    %cst_925 = arith.constant dense<0.000000e+00> : vector<16x8xf32>
    %1302 = tpu.matmul %1203, %1301, %cst_925 {dimension_numbers = #tpu.dot_dimension_numbers<[1], [0], [0], [1], [0, 0, 1, 1], [], []>} : vector<16x32xf32>, vector<32x8xf32>, vector<16x8xf32> -> vector<16x8xf32>
    %c2_926 = arith.constant 2 : index
    %c0_927 = arith.constant 0 : index
    %c0_928 = arith.constant 0 : index
    %1303 = vector.load %arg7[%c2_926, %c0_927, %c0_928] : memref<4x1x8xf32, #tpu.memory_space<vmem>>, vector<1x1x8xf32>
    %1304 = vector.shape_cast %1303 : vector<1x1x8xf32> to vector<1x8xf32>
    %1305 = vector.broadcast %1304 : vector<1x8xf32> to vector<16x8xf32>
    %1306 = arith.addf %1302, %1305 : vector<16x8xf32>
    %c2_929 = arith.constant 2 : index
    %c0_930 = arith.constant 0 : index
    %c0_931 = arith.constant 0 : index
    %1307 = vector.load %arg8[%c2_929, %c0_930, %c0_931] : memref<4x8x32xf32, #tpu.memory_space<vmem>>, vector<1x8x32xf32>
    %1308 = vector.shape_cast %1307 : vector<1x8x32xf32> to vector<8x32xf32>
    %cst_932 = arith.constant dense<0.000000e+00> : vector<8x16xf32>
    %1309 = tpu.matmul %1308, %1228, %cst_932 {dimension_numbers = #tpu.dot_dimension_numbers<[1], [0], [0], [1], [0, 0, 1, 1], [], []>} : vector<8x32xf32>, vector<32x16xf32>, vector<8x16xf32> -> vector<8x16xf32>
    %c2_933 = arith.constant 2 : index
    %c0_934 = arith.constant 0 : index
    %c0_935 = arith.constant 0 : index
    %1310 = vector.load %arg9[%c2_933, %c0_934, %c0_935] : memref<4x8x16xf32, #tpu.memory_space<vmem>>, vector<1x8x16xf32>
    %1311 = vector.shape_cast %1310 : vector<1x8x16xf32> to vector<8x16xf32>
    %1312 = arith.addf %1309, %1311 : vector<8x16xf32>
    %c2_936 = arith.constant 2 : index
    %c0_937 = arith.constant 0 : index
    %c0_938 = arith.constant 0 : index
    %1313 = vector.load %arg10[%c2_936, %c0_937, %c0_938] : memref<4x32x8xf32, #tpu.memory_space<vmem>>, vector<1x32x8xf32>
    %1314 = vector.shape_cast %1313 : vector<1x32x8xf32> to vector<32x8xf32>
    %cst_939 = arith.constant dense<0.000000e+00> : vector<16x8xf32>
    %1315 = tpu.matmul %1227, %1314, %cst_939 {dimension_numbers = #tpu.dot_dimension_numbers<[1], [0], [0], [1], [0, 0, 1, 1], [], []>} : vector<16x32xf32>, vector<32x8xf32>, vector<16x8xf32> -> vector<16x8xf32>
    %c2_940 = arith.constant 2 : index
    %c0_941 = arith.constant 0 : index
    %c0_942 = arith.constant 0 : index
    %1316 = vector.load %arg11[%c2_940, %c0_941, %c0_942] : memref<4x1x8xf32, #tpu.memory_space<vmem>>, vector<1x1x8xf32>
    %1317 = vector.shape_cast %1316 : vector<1x1x8xf32> to vector<1x8xf32>
    %1318 = vector.broadcast %1317 : vector<1x8xf32> to vector<16x8xf32>
    %1319 = arith.addf %1315, %1318 : vector<16x8xf32>
    %cst_943 = arith.constant dense<0.000000e+00> : vector<16x16xf32>
    %1320 = tpu.matmul %1306, %1312, %cst_943 {dimension_numbers = #tpu.dot_dimension_numbers<[1], [0], [0], [1], [0, 0, 1, 1], [], []>} : vector<16x8xf32>, vector<8x16xf32>, vector<16x16xf32> -> vector<16x16xf32>
    %cst_944 = arith.constant dense<0xFF800000> : vector<16xf32>
    %1321 = vector.multi_reduction <maximumf>, %1320, %cst_944 [1] : vector<16x16xf32> to vector<16xf32>
    %1322 = vector.shape_cast %1321 : vector<16xf32> to vector<16x1xf32>
    %1323 = vector.broadcast %1322 : vector<16x1xf32> to vector<16x16xf32>
    %1324 = arith.subf %1320, %1323 : vector<16x16xf32>
    %1325 = math.exp %1324 : vector<16x16xf32>
    %cst_945 = arith.constant dense<0.000000e+00> : vector<16xf32>
    %1326 = vector.multi_reduction <add>, %1325, %cst_945 [1] : vector<16x16xf32> to vector<16xf32>
    %1327 = vector.shape_cast %1326 : vector<16xf32> to vector<16x1xf32>
    %1328 = vector.broadcast %1327 : vector<16x1xf32> to vector<16x16xf32>
    %1329 = arith.divf %1325, %1328 : vector<16x16xf32>
    %cst_946 = arith.constant dense<0.000000e+00> : vector<16x8xf32>
    %1330 = tpu.matmul %1329, %1319, %cst_946 {dimension_numbers = #tpu.dot_dimension_numbers<[1], [0], [0], [1], [0, 0, 1, 1], [], []>} : vector<16x16xf32>, vector<16x8xf32>, vector<16x8xf32> -> vector<16x8xf32>
    %c2_947 = arith.constant 2 : index
    %c0_948 = arith.constant 0 : index
    %c0_949 = arith.constant 0 : index
    %1331 = vector.load %arg12[%c2_947, %c0_948, %c0_949] : memref<4x8x32xf32, #tpu.memory_space<vmem>>, vector<1x8x32xf32>
    %1332 = vector.shape_cast %1331 : vector<1x8x32xf32> to vector<8x32xf32>
    %cst_950 = arith.constant dense<0.000000e+00> : vector<16x32xf32>
    %1333 = tpu.matmul %1330, %1332, %cst_950 {dimension_numbers = #tpu.dot_dimension_numbers<[1], [0], [0], [1], [0, 0, 1, 1], [], []>} : vector<16x8xf32>, vector<8x32xf32>, vector<16x32xf32> -> vector<16x32xf32>
    %1334 = arith.addf %1299, %1333 : vector<16x32xf32>
    %c3_951 = arith.constant 3 : index
    %c0_952 = arith.constant 0 : index
    %c0_953 = arith.constant 0 : index
    %1335 = vector.load %arg6[%c3_951, %c0_952, %c0_953] : memref<4x32x8xf32, #tpu.memory_space<vmem>>, vector<1x32x8xf32>
    %1336 = vector.shape_cast %1335 : vector<1x32x8xf32> to vector<32x8xf32>
    %cst_954 = arith.constant dense<0.000000e+00> : vector<16x8xf32>
    %1337 = tpu.matmul %1203, %1336, %cst_954 {dimension_numbers = #tpu.dot_dimension_numbers<[1], [0], [0], [1], [0, 0, 1, 1], [], []>} : vector<16x32xf32>, vector<32x8xf32>, vector<16x8xf32> -> vector<16x8xf32>
    %c3_955 = arith.constant 3 : index
    %c0_956 = arith.constant 0 : index
    %c0_957 = arith.constant 0 : index
    %1338 = vector.load %arg7[%c3_955, %c0_956, %c0_957] : memref<4x1x8xf32, #tpu.memory_space<vmem>>, vector<1x1x8xf32>
    %1339 = vector.shape_cast %1338 : vector<1x1x8xf32> to vector<1x8xf32>
    %1340 = vector.broadcast %1339 : vector<1x8xf32> to vector<16x8xf32>
    %1341 = arith.addf %1337, %1340 : vector<16x8xf32>
    %c3_958 = arith.constant 3 : index
    %c0_959 = arith.constant 0 : index
    %c0_960 = arith.constant 0 : index
    %1342 = vector.load %arg8[%c3_958, %c0_959, %c0_960] : memref<4x8x32xf32, #tpu.memory_space<vmem>>, vector<1x8x32xf32>
    %1343 = vector.shape_cast %1342 : vector<1x8x32xf32> to vector<8x32xf32>
    %cst_961 = arith.constant dense<0.000000e+00> : vector<8x16xf32>
    %1344 = tpu.matmul %1343, %1228, %cst_961 {dimension_numbers = #tpu.dot_dimension_numbers<[1], [0], [0], [1], [0, 0, 1, 1], [], []>} : vector<8x32xf32>, vector<32x16xf32>, vector<8x16xf32> -> vector<8x16xf32>
    %c3_962 = arith.constant 3 : index
    %c0_963 = arith.constant 0 : index
    %c0_964 = arith.constant 0 : index
    %1345 = vector.load %arg9[%c3_962, %c0_963, %c0_964] : memref<4x8x16xf32, #tpu.memory_space<vmem>>, vector<1x8x16xf32>
    %1346 = vector.shape_cast %1345 : vector<1x8x16xf32> to vector<8x16xf32>
    %1347 = arith.addf %1344, %1346 : vector<8x16xf32>
    %c3_965 = arith.constant 3 : index
    %c0_966 = arith.constant 0 : index
    %c0_967 = arith.constant 0 : index
    %1348 = vector.load %arg10[%c3_965, %c0_966, %c0_967] : memref<4x32x8xf32, #tpu.memory_space<vmem>>, vector<1x32x8xf32>
    %1349 = vector.shape_cast %1348 : vector<1x32x8xf32> to vector<32x8xf32>
    %cst_968 = arith.constant dense<0.000000e+00> : vector<16x8xf32>
    %1350 = tpu.matmul %1227, %1349, %cst_968 {dimension_numbers = #tpu.dot_dimension_numbers<[1], [0], [0], [1], [0, 0, 1, 1], [], []>} : vector<16x32xf32>, vector<32x8xf32>, vector<16x8xf32> -> vector<16x8xf32>
    %c3_969 = arith.constant 3 : index
    %c0_970 = arith.constant 0 : index
    %c0_971 = arith.constant 0 : index
    %1351 = vector.load %arg11[%c3_969, %c0_970, %c0_971] : memref<4x1x8xf32, #tpu.memory_space<vmem>>, vector<1x1x8xf32>
    %1352 = vector.shape_cast %1351 : vector<1x1x8xf32> to vector<1x8xf32>
    %1353 = vector.broadcast %1352 : vector<1x8xf32> to vector<16x8xf32>
    %1354 = arith.addf %1350, %1353 : vector<16x8xf32>
    %cst_972 = arith.constant dense<0.000000e+00> : vector<16x16xf32>
    %1355 = tpu.matmul %1341, %1347, %cst_972 {dimension_numbers = #tpu.dot_dimension_numbers<[1], [0], [0], [1], [0, 0, 1, 1], [], []>} : vector<16x8xf32>, vector<8x16xf32>, vector<16x16xf32> -> vector<16x16xf32>
    %cst_973 = arith.constant dense<0xFF800000> : vector<16xf32>
    %1356 = vector.multi_reduction <maximumf>, %1355, %cst_973 [1] : vector<16x16xf32> to vector<16xf32>
    %1357 = vector.shape_cast %1356 : vector<16xf32> to vector<16x1xf32>
    %1358 = vector.broadcast %1357 : vector<16x1xf32> to vector<16x16xf32>
    %1359 = arith.subf %1355, %1358 : vector<16x16xf32>
    %1360 = math.exp %1359 : vector<16x16xf32>
    %cst_974 = arith.constant dense<0.000000e+00> : vector<16xf32>
    %1361 = vector.multi_reduction <add>, %1360, %cst_974 [1] : vector<16x16xf32> to vector<16xf32>
    %1362 = vector.shape_cast %1361 : vector<16xf32> to vector<16x1xf32>
    %1363 = vector.broadcast %1362 : vector<16x1xf32> to vector<16x16xf32>
    %1364 = arith.divf %1360, %1363 : vector<16x16xf32>
    %cst_975 = arith.constant dense<0.000000e+00> : vector<16x8xf32>
    %1365 = tpu.matmul %1364, %1354, %cst_975 {dimension_numbers = #tpu.dot_dimension_numbers<[1], [0], [0], [1], [0, 0, 1, 1], [], []>} : vector<16x16xf32>, vector<16x8xf32>, vector<16x8xf32> -> vector<16x8xf32>
    %c3_976 = arith.constant 3 : index
    %c0_977 = arith.constant 0 : index
    %c0_978 = arith.constant 0 : index
    %1366 = vector.load %arg12[%c3_976, %c0_977, %c0_978] : memref<4x8x32xf32, #tpu.memory_space<vmem>>, vector<1x8x32xf32>
    %1367 = vector.shape_cast %1366 : vector<1x8x32xf32> to vector<8x32xf32>
    %cst_979 = arith.constant dense<0.000000e+00> : vector<16x32xf32>
    %1368 = tpu.matmul %1365, %1367, %cst_979 {dimension_numbers = #tpu.dot_dimension_numbers<[1], [0], [0], [1], [0, 0, 1, 1], [], []>} : vector<16x8xf32>, vector<8x32xf32>, vector<16x32xf32> -> vector<16x32xf32>
    %1369 = arith.addf %1334, %1368 : vector<16x32xf32>
    %c0_980 = arith.constant 0 : index
    %c0_981 = arith.constant 0 : index
    %1370 = vector.load %arg13[%c0_980, %c0_981] : memref<1x32xf32, #tpu.memory_space<vmem>>, vector<1x32xf32>
    %1371 = vector.broadcast %1370 : vector<1x32xf32> to vector<16x32xf32>
    %1372 = arith.addf %1369, %1371 : vector<16x32xf32>
    %1373 = arith.addf %1179, %1372 : vector<16x32xf32>
    %1374 = tpu.concatenate %1, %197, %393, %589, %785, %981, %1177, %1373 in 0 : vector<16x32xf32>, vector<16x32xf32>, vector<16x32xf32>, vector<16x32xf32>, vector<16x32xf32>, vector<16x32xf32>, vector<16x32xf32>, vector<16x32xf32> -> vector<128x32xf32>
    %c0_982 = arith.constant 0 : index
    %c0_983 = arith.constant 0 : index
    %1375 = vector.load %arg14[%c0_982, %c0_983] : memref<1x32xf32, #tpu.memory_space<vmem>>, vector<1x32xf32>
    %c0_984 = arith.constant 0 : index
    %c0_985 = arith.constant 0 : index
    %1376 = vector.load %arg15[%c0_984, %c0_985] : memref<1x32xf32, #tpu.memory_space<vmem>>, vector<1x32xf32>
    %cst_986 = arith.constant dense<0.000000e+00> : vector<128xf32>
    %1377 = vector.multi_reduction <add>, %1374, %cst_986 [1] : vector<128x32xf32> to vector<128xf32>
    %1378 = vector.shape_cast %1377 : vector<128xf32> to vector<128x1xf32>
    %cst_987 = arith.constant 3.200000e+01 : f32
    %1379 = vector.broadcast %cst_987 : f32 to vector<128x1xf32>
    %1380 = arith.divf %1378, %1379 : vector<128x1xf32>
    %1381 = vector.broadcast %1380 : vector<128x1xf32> to vector<128x32xf32>
    %1382 = arith.subf %1374, %1381 : vector<128x32xf32>
    %1383 = arith.mulf %1382, %1382 : vector<128x32xf32>
    %cst_988 = arith.constant dense<0.000000e+00> : vector<128xf32>
    %1384 = vector.multi_reduction <add>, %1383, %cst_988 [1] : vector<128x32xf32> to vector<128xf32>
    %1385 = vector.shape_cast %1384 : vector<128xf32> to vector<128x1xf32>
    %cst_989 = arith.constant 3.200000e+01 : f32
    %1386 = vector.broadcast %cst_989 : f32 to vector<128x1xf32>
    %1387 = arith.divf %1385, %1386 : vector<128x1xf32>
    %1388 = vector.broadcast %1380 : vector<128x1xf32> to vector<128x32xf32>
    %1389 = arith.subf %1374, %1388 : vector<128x32xf32>
    %cst_990 = arith.constant 9.99999997E-7 : f32
    %1390 = vector.broadcast %cst_990 : f32 to vector<128x1xf32>
    %1391 = arith.addf %1387, %1390 : vector<128x1xf32>
    %1392 = math.rsqrt %1391 : vector<128x1xf32>
    %1393 = vector.broadcast %1392 : vector<128x1xf32> to vector<128x32xf32>
    %1394 = arith.mulf %1389, %1393 : vector<128x32xf32>
    %1395 = vector.broadcast %1375 : vector<1x32xf32> to vector<128x32xf32>
    %1396 = arith.mulf %1394, %1395 : vector<128x32xf32>
    %1397 = vector.broadcast %1376 : vector<1x32xf32> to vector<128x32xf32>
    %1398 = arith.addf %1396, %1397 : vector<128x32xf32>
    %c0_991 = arith.constant 0 : index
    %c0_992 = arith.constant 0 : index
    %1399 = vector.load %arg16[%c0_991, %c0_992] : memref<32x64xf32, #tpu.memory_space<vmem>>, vector<32x64xf32>
    %cst_993 = arith.constant dense<0.000000e+00> : vector<128x64xf32>
    %1400 = tpu.matmul %1398, %1399, %cst_993 {dimension_numbers = #tpu.dot_dimension_numbers<[1], [0], [0], [1], [0, 0, 1, 1], [], []>} : vector<128x32xf32>, vector<32x64xf32>, vector<128x64xf32> -> vector<128x64xf32>
    %c0_994 = arith.constant 0 : index
    %c0_995 = arith.constant 0 : index
    %1401 = vector.load %arg17[%c0_994, %c0_995] : memref<1x64xf32, #tpu.memory_space<vmem>>, vector<1x64xf32>
    %1402 = vector.broadcast %1401 : vector<1x64xf32> to vector<128x64xf32>
    %1403 = arith.addf %1400, %1402 : vector<128x64xf32>
    %cst_996 = arith.constant 5.000000e-01 : f32
    %1404 = vector.broadcast %cst_996 : f32 to vector<128x64xf32>
    %1405 = arith.mulf %1404, %1403 : vector<128x64xf32>
    %cst_997 = arith.constant 0.707106769 : f32
    %1406 = vector.broadcast %cst_997 : f32 to vector<128x64xf32>
    %1407 = arith.mulf %1403, %1406 : vector<128x64xf32>
    %1408 = math.erf %1407 : vector<128x64xf32>
    %cst_998 = arith.constant 1.000000e+00 : f32
    %1409 = vector.broadcast %cst_998 : f32 to vector<128x64xf32>
    %1410 = arith.addf %1409, %1408 : vector<128x64xf32>
    %1411 = arith.mulf %1405, %1410 : vector<128x64xf32>
    %c0_999 = arith.constant 0 : index
    %c0_1000 = arith.constant 0 : index
    %1412 = vector.load %arg18[%c0_999, %c0_1000] : memref<64x32xf32, #tpu.memory_space<vmem>>, vector<64x32xf32>
    %cst_1001 = arith.constant dense<0.000000e+00> : vector<128x32xf32>
    %1413 = tpu.matmul %1411, %1412, %cst_1001 {dimension_numbers = #tpu.dot_dimension_numbers<[1], [0], [0], [1], [0, 0, 1, 1], [], []>} : vector<128x64xf32>, vector<64x32xf32>, vector<128x32xf32> -> vector<128x32xf32>
    %c0_1002 = arith.constant 0 : index
    %c0_1003 = arith.constant 0 : index
    %1414 = vector.load %arg19[%c0_1002, %c0_1003] : memref<1x32xf32, #tpu.memory_space<vmem>>, vector<1x32xf32>
    %1415 = vector.broadcast %1414 : vector<1x32xf32> to vector<128x32xf32>
    %1416 = arith.addf %1413, %1415 : vector<128x32xf32>
    %1417 = vector.extract_strided_slice %1416 {offsets = [0, 0], sizes = [16, 32], strides = [1, 1]} : vector<128x32xf32> to vector<16x32xf32>
    %c0_1004 = arith.constant 0 : index
    %c0_1005 = arith.constant 0 : index
    %c0_1006 = arith.constant 0 : index
    %c0_1007 = arith.constant 0 : index
    %1418 = vector.load %arg20[%c0_1004, %c0_1005, %c0_1006, %c0_1007] : memref<1x8x16x32xf32, #tpu.memory_space<vmem>>, vector<1x1x16x32xf32>
    %1419 = vector.shape_cast %1418 : vector<1x1x16x32xf32> to vector<16x32xf32>
    %1420 = vector.shape_cast %1417 : vector<16x32xf32> to vector<1x1x16x32xf32>
    tpu.vector_store %arg20[%c0_1004, %c0_1005, %c0_1006, %c0_1007], %1420 {strides = array<i32>} : memref<1x8x16x32xf32, #tpu.memory_space<vmem>>, vector<1x1x16x32xf32>,
    %1421 = vector.extract_strided_slice %1416 {offsets = [16, 0], sizes = [16, 32], strides = [1, 1]} : vector<128x32xf32> to vector<16x32xf32>
    %c0_1008 = arith.constant 0 : index
    %c1_1009 = arith.constant 1 : index
    %c0_1010 = arith.constant 0 : index
    %c0_1011 = arith.constant 0 : index
    %1422 = vector.load %arg20[%c0_1008, %c1_1009, %c0_1010, %c0_1011] : memref<1x8x16x32xf32, #tpu.memory_space<vmem>>, vector<1x1x16x32xf32>
    %1423 = vector.shape_cast %1422 : vector<1x1x16x32xf32> to vector<16x32xf32>
    %1424 = vector.shape_cast %1421 : vector<16x32xf32> to vector<1x1x16x32xf32>
    tpu.vector_store %arg20[%c0_1008, %c1_1009, %c0_1010, %c0_1011], %1424 {strides = array<i32>} : memref<1x8x16x32xf32, #tpu.memory_space<vmem>>, vector<1x1x16x32xf32>,
    %1425 = vector.extract_strided_slice %1416 {offsets = [32, 0], sizes = [16, 32], strides = [1, 1]} : vector<128x32xf32> to vector<16x32xf32>
    %c0_1012 = arith.constant 0 : index
    %c2_1013 = arith.constant 2 : index
    %c0_1014 = arith.constant 0 : index
    %c0_1015 = arith.constant 0 : index
    %1426 = vector.load %arg20[%c0_1012, %c2_1013, %c0_1014, %c0_1015] : memref<1x8x16x32xf32, #tpu.memory_space<vmem>>, vector<1x1x16x32xf32>
    %1427 = vector.shape_cast %1426 : vector<1x1x16x32xf32> to vector<16x32xf32>
    %1428 = vector.shape_cast %1425 : vector<16x32xf32> to vector<1x1x16x32xf32>
    tpu.vector_store %arg20[%c0_1012, %c2_1013, %c0_1014, %c0_1015], %1428 {strides = array<i32>} : memref<1x8x16x32xf32, #tpu.memory_space<vmem>>, vector<1x1x16x32xf32>,
    %1429 = vector.extract_strided_slice %1416 {offsets = [48, 0], sizes = [16, 32], strides = [1, 1]} : vector<128x32xf32> to vector<16x32xf32>
    %c0_1016 = arith.constant 0 : index
    %c3_1017 = arith.constant 3 : index
    %c0_1018 = arith.constant 0 : index
    %c0_1019 = arith.constant 0 : index
    %1430 = vector.load %arg20[%c0_1016, %c3_1017, %c0_1018, %c0_1019] : memref<1x8x16x32xf32, #tpu.memory_space<vmem>>, vector<1x1x16x32xf32>
    %1431 = vector.shape_cast %1430 : vector<1x1x16x32xf32> to vector<16x32xf32>
    %1432 = vector.shape_cast %1429 : vector<16x32xf32> to vector<1x1x16x32xf32>
    tpu.vector_store %arg20[%c0_1016, %c3_1017, %c0_1018, %c0_1019], %1432 {strides = array<i32>} : memref<1x8x16x32xf32, #tpu.memory_space<vmem>>, vector<1x1x16x32xf32>,
    %1433 = vector.extract_strided_slice %1416 {offsets = [64, 0], sizes = [16, 32], strides = [1, 1]} : vector<128x32xf32> to vector<16x32xf32>
    %c0_1020 = arith.constant 0 : index
    %c4_1021 = arith.constant 4 : index
    %c0_1022 = arith.constant 0 : index
    %c0_1023 = arith.constant 0 : index
    %1434 = vector.load %arg20[%c0_1020, %c4_1021, %c0_1022, %c0_1023] : memref<1x8x16x32xf32, #tpu.memory_space<vmem>>, vector<1x1x16x32xf32>
    %1435 = vector.shape_cast %1434 : vector<1x1x16x32xf32> to vector<16x32xf32>
    %1436 = vector.shape_cast %1433 : vector<16x32xf32> to vector<1x1x16x32xf32>
    tpu.vector_store %arg20[%c0_1020, %c4_1021, %c0_1022, %c0_1023], %1436 {strides = array<i32>} : memref<1x8x16x32xf32, #tpu.memory_space<vmem>>, vector<1x1x16x32xf32>,
    %1437 = vector.extract_strided_slice %1416 {offsets = [80, 0], sizes = [16, 32], strides = [1, 1]} : vector<128x32xf32> to vector<16x32xf32>
    %c0_1024 = arith.constant 0 : index
    %c5_1025 = arith.constant 5 : index
    %c0_1026 = arith.constant 0 : index
    %c0_1027 = arith.constant 0 : index
    %1438 = vector.load %arg20[%c0_1024, %c5_1025, %c0_1026, %c0_1027] : memref<1x8x16x32xf32, #tpu.memory_space<vmem>>, vector<1x1x16x32xf32>
    %1439 = vector.shape_cast %1438 : vector<1x1x16x32xf32> to vector<16x32xf32>
    %1440 = vector.shape_cast %1437 : vector<16x32xf32> to vector<1x1x16x32xf32>
    tpu.vector_store %arg20[%c0_1024, %c5_1025, %c0_1026, %c0_1027], %1440 {strides = array<i32>} : memref<1x8x16x32xf32, #tpu.memory_space<vmem>>, vector<1x1x16x32xf32>,
    %1441 = vector.extract_strided_slice %1416 {offsets = [96, 0], sizes = [16, 32], strides = [1, 1]} : vector<128x32xf32> to vector<16x32xf32>
    %c0_1028 = arith.constant 0 : index
    %c6_1029 = arith.constant 6 : index
    %c0_1030 = arith.constant 0 : index
    %c0_1031 = arith.constant 0 : index
    %1442 = vector.load %arg20[%c0_1028, %c6_1029, %c0_1030, %c0_1031] : memref<1x8x16x32xf32, #tpu.memory_space<vmem>>, vector<1x1x16x32xf32>
    %1443 = vector.shape_cast %1442 : vector<1x1x16x32xf32> to vector<16x32xf32>
    %1444 = vector.shape_cast %1441 : vector<16x32xf32> to vector<1x1x16x32xf32>
    tpu.vector_store %arg20[%c0_1028, %c6_1029, %c0_1030, %c0_1031], %1444 {strides = array<i32>} : memref<1x8x16x32xf32, #tpu.memory_space<vmem>>, vector<1x1x16x32xf32>,
    %1445 = vector.extract_strided_slice %1416 {offsets = [112, 0], sizes = [16, 32], strides = [1, 1]} : vector<128x32xf32> to vector<16x32xf32>
    %c0_1032 = arith.constant 0 : index
    %c7_1033 = arith.constant 7 : index
    %c0_1034 = arith.constant 0 : index
    %c0_1035 = arith.constant 0 : index
    %1446 = vector.load %arg20[%c0_1032, %c7_1033, %c0_1034, %c0_1035] : memref<1x8x16x32xf32, #tpu.memory_space<vmem>>, vector<1x1x16x32xf32>
    %1447 = vector.shape_cast %1446 : vector<1x1x16x32xf32> to vector<16x32xf32>
    %1448 = vector.shape_cast %1445 : vector<16x32xf32> to vector<1x1x16x32xf32>
    tpu.vector_store %arg20[%c0_1032, %c7_1033, %c0_1034, %c0_1035], %1448 {strides = array<i32>} : memref<1x8x16x32xf32, #tpu.memory_space<vmem>>, vector<1x1x16x32xf32>,
    return
  }
  func.func @transform_0(%arg0: i32) -> (i32, i32, i32, i32) {
    %c0_i32 = arith.constant 0 : i32
    %c0_i32_0 = arith.constant 0 : i32
    %c0_i32_1 = arith.constant 0 : i32
    %c0_i32_2 = arith.constant 0 : i32
    return %arg0, %c0_i32, %c0_i32_0, %c0_i32_1 : i32, i32, i32, i32
  }
  func.func @transform_1(%arg0: i32) -> (i32, i32) {
    %c0_i32 = arith.constant 0 : i32
    %c0_i32_0 = arith.constant 0 : i32
    %c0_i32_1 = arith.constant 0 : i32
    return %c0_i32, %c0_i32_0 : i32, i32
  }
  func.func @transform_2(%arg0: i32) -> (i32, i32) {
    %c0_i32 = arith.constant 0 : i32
    %c0_i32_0 = arith.constant 0 : i32
    %c0_i32_1 = arith.constant 0 : i32
    return %c0_i32, %c0_i32_0 : i32, i32
  }
  func.func @transform_3(%arg0: i32) -> (i32, i32) {
    %c0_i32 = arith.constant 0 : i32
    %c0_i32_0 = arith.constant 0 : i32
    %c0_i32_1 = arith.constant 0 : i32
    return %c0_i32, %c0_i32_0 : i32, i32
  }
  func.func @transform_4(%arg0: i32) -> (i32, i32) {
    %c0_i32 = arith.constant 0 : i32
    %c0_i32_0 = arith.constant 0 : i32
    %c0_i32_1 = arith.constant 0 : i32
    return %c0_i32, %c0_i32_0 : i32, i32
  }
  func.func @transform_5(%arg0: i32) -> (i32, i32, i32) {
    %c0_i32 = arith.constant 0 : i32
    %c0_i32_0 = arith.constant 0 : i32
    %c0_i32_1 = arith.constant 0 : i32
    %c0_i32_2 = arith.constant 0 : i32
    return %c0_i32, %c0_i32_0, %c0_i32_1 : i32, i32, i32
  }
  func.func @transform_6(%arg0: i32) -> (i32, i32, i32) {
    %c0_i32 = arith.constant 0 : i32
    %c0_i32_0 = arith.constant 0 : i32
    %c0_i32_1 = arith.constant 0 : i32
    %c0_i32_2 = arith.constant 0 : i32
    return %c0_i32, %c0_i32_0, %c0_i32_1 : i32, i32, i32
  }
  func.func @transform_7(%arg0: i32) -> (i32, i32, i32) {
    %c0_i32 = arith.constant 0 : i32
    %c0_i32_0 = arith.constant 0 : i32
    %c0_i32_1 = arith.constant 0 : i32
    %c0_i32_2 = arith.constant 0 : i32
    return %c0_i32, %c0_i32_0, %c0_i32_1 : i32, i32, i32
  }
  func.func @transform_8(%arg0: i32) -> (i32, i32, i32) {
    %c0_i32 = arith.constant 0 : i32
    %c0_i32_0 = arith.constant 0 : i32
    %c0_i32_1 = arith.constant 0 : i32
    %c0_i32_2 = arith.constant 0 : i32
    return %c0_i32, %c0_i32_0, %c0_i32_1 : i32, i32, i32
  }
  func.func @transform_9(%arg0: i32) -> (i32, i32, i32) {
    %c0_i32 = arith.constant 0 : i32
    %c0_i32_0 = arith.constant 0 : i32
    %c0_i32_1 = arith.constant 0 : i32
    %c0_i32_2 = arith.constant 0 : i32
    return %c0_i32, %c0_i32_0, %c0_i32_1 : i32, i32, i32
  }
  func.func @transform_10(%arg0: i32) -> (i32, i32, i32) {
    %c0_i32 = arith.constant 0 : i32
    %c0_i32_0 = arith.constant 0 : i32
    %c0_i32_1 = arith.constant 0 : i32
    %c0_i32_2 = arith.constant 0 : i32
    return %c0_i32, %c0_i32_0, %c0_i32_1 : i32, i32, i32
  }
  func.func @transform_11(%arg0: i32) -> (i32, i32, i32) {
    %c0_i32 = arith.constant 0 : i32
    %c0_i32_0 = arith.constant 0 : i32
    %c0_i32_1 = arith.constant 0 : i32
    %c0_i32_2 = arith.constant 0 : i32
    return %c0_i32, %c0_i32_0, %c0_i32_1 : i32, i32, i32
  }
  func.func @transform_12(%arg0: i32) -> (i32, i32) {
    %c0_i32 = arith.constant 0 : i32
    %c0_i32_0 = arith.constant 0 : i32
    %c0_i32_1 = arith.constant 0 : i32
    return %c0_i32, %c0_i32_0 : i32, i32
  }
  func.func @transform_13(%arg0: i32) -> (i32, i32) {
    %c0_i32 = arith.constant 0 : i32
    %c0_i32_0 = arith.constant 0 : i32
    %c0_i32_1 = arith.constant 0 : i32
    return %c0_i32, %c0_i32_0 : i32, i32
  }
  func.func @transform_14(%arg0: i32) -> (i32, i32) {
    %c0_i32 = arith.constant 0 : i32
    %c0_i32_0 = arith.constant 0 : i32
    %c0_i32_1 = arith.constant 0 : i32
    return %c0_i32, %c0_i32_0 : i32, i32
  }
  func.func @transform_15(%arg0: i32) -> (i32, i32) {
    %c0_i32 = arith.constant 0 : i32
    %c0_i32_0 = arith.constant 0 : i32
    %c0_i32_1 = arith.constant 0 : i32
    return %c0_i32, %c0_i32_0 : i32, i32
  }
  func.func @transform_16(%arg0: i32) -> (i32, i32) {
    %c0_i32 = arith.constant 0 : i32
    %c0_i32_0 = arith.constant 0 : i32
    %c0_i32_1 = arith.constant 0 : i32
    return %c0_i32, %c0_i32_0 : i32, i32
  }
  func.func @transform_17(%arg0: i32) -> (i32, i32) {
    %c0_i32 = arith.constant 0 : i32
    %c0_i32_0 = arith.constant 0 : i32
    %c0_i32_1 = arith.constant 0 : i32
    return %c0_i32, %c0_i32_0 : i32, i32
  }
  func.func @transform_18(%arg0: i32) -> (i32, i32) {
    %c0_i32 = arith.constant 0 : i32
    %c0_i32_0 = arith.constant 0 : i32
    %c0_i32_1 = arith.constant 0 : i32
    return %c0_i32, %c0_i32_0 : i32, i32
  }
  func.func @transform_19(%arg0: i32) -> (i32, i32, i32, i32) {
    %c0_i32 = arith.constant 0 : i32
    %c0_i32_0 = arith.constant 0 : i32
    %c0_i32_1 = arith.constant 0 : i32
    %c0_i32_2 = arith.constant 0 : i32
    return %arg0, %c0_i32, %c0_i32_0, %c0_i32_1 : i32, i32, i32, i32
  }
}

</mosaic_0001>

<bundles_post_ra>
// kernel: local_forward_temporal_attention.1
= control target key start
LH: loop header
LB: loop body
LE: loop exit
PB: predicated region body
PF: predicated region fallthrough
CT: control target
= control target key end

     0   :  { %s22366_s0 = inlined_call_operand.vmem [shape: f32[2,8,16,32], index: 0, kind: input, shape index: {}]   ;;  %s22367_s1 = inlined_call_operand.vmem [shape: f32[1,32], index: 1, kind: input, shape index: {}]   ;;  %s22368_s2 = inlined_call_operand.vmem [shape: f32[1,32], index: 2, kind: input, shape index: {}]   ;;  %s22369_s3 = inlined_call_operand.vmem [shape: f32[1,32], index: 3, kind: input, shape index: {}]   ;;  %s22370_s4 = inlined_call_operand.vmem [shape: f32[1,32], index: 4, kind: input, shape index: {}]   ;;  %s22371_s5 = inlined_call_operand.vmem [shape: f32[4,32,8], index: 5, kind: input, shape index: {}]   ;;  %s22372_s6 = inlined_call_operand.vmem [shape: f32[4,1,8], index: 6, kind: input, shape index: {}]   ;;  %s22373_s7 = inlined_call_operand.vmem [shape: f32[4,8,32], index: 7, kind: input, shape index: {}]   ;;  %s22374_s8 = inlined_call_operand.vmem [shape: f32[4,8,16], index: 8, kind: input, shape index: {}]   ;;  %s22375_s9 = inlined_call_operand.vmem [shape: f32[4,32,8], index: 9, kind: input, shape index: {}]   ;;  %s22376_s10 = inlined_call_operand.vmem [shape: f32[4,1,8], index: 10, kind: input, shape index: {}]   ;;  %s22377_s11 = inlined_call_operand.vmem [shape: f32[4,8,32], index: 11, kind: input, shape index: {}]   ;;  %s22378_s12 = inlined_call_operand.hbm [shape: f32[1,32], index: 12, kind: input, shape index: {}]   ;;  %s22379_s13 = inlined_call_operand.vmem [shape: f32[1,32], index: 13, kind: input, shape index: {}]   ;;  %s22380_s14 = inlined_call_operand.vmem [shape: f32[1,32], index: 14, kind: input, shape index: {}]   ;;  %s22381_s15 = inlined_call_operand.hbm [shape: f32[32,64], index: 15, kind: input, shape index: {}]   ;;  %s22382_s16 = inlined_call_operand.hbm [shape: f32[1,64], index: 16, kind: input, shape index: {}]   ;;  %s22383_s17 = inlined_call_operand.vmem [shape: f32[64,32], index: 17, kind: input, shape index: {}]   ;;  %s22384_s18 = inlined_call_operand.hbm [shape: f32[1,32], index: 18, kind: input, shape index: {}]   ;;  %s22385_s19 = inlined_call_operand.hbm [shape: f32[2,8,16,32], index: 19, kind: output, shape index: {}]  }
   0x1   :  { %22432 = sst [smem:[#allocation37_spill]] %s22366_s0 }
   0x2   :  { %22433 = sst [smem:[#allocation38_spill]] %s22367_s1 }
   0x3   :  { %22434 = sst [smem:[#allocation39_spill]] %s22368_s2 }
   0x4   :  { %22435 = sst [smem:[#allocation40_spill]] %s22369_s3 }
   0x5   :  { %22436 = sst [smem:[#allocation41_spill]] %s22380_s14 }
   0x6   :  { %22437 = sst [smem:[#allocation42_spill]] %s22383_s17 }
   0x7   :  { %22438 = sst [smem:[#allocation43_spill]] %s22385_s19 }
   0x8   :  { %24 = vsyncpa [#allocation3], 0 }
   0x9   :  { %25 = vsyncpa [#allocation6], 0 }
   0xa   :  { %26 = vsyncpa [#allocation9], 0 }
   0xb   :  { %27 = vsyncpa [#allocation4], 0 }
   0xc   :  { %29 = vsyncpa [#allocation4 + $0x1], 0  ;;  %s19818_s0 = smov 0   ;;  %s19820_s30 = smov 0  }
   0xd   :  { %s19822_s20 = smov 0   ;;  %s19824_s21 = smov 0  }
   0xe LB: > { %22439 = sst [smem:[#allocation15_spill]] %s19692_s0  ;;  %s19839_s1 = sadd.s32 4294967295, %s19704_s21   ;;  %s19704_s21 = sphi %s19824_s21, %s22517_s21   ;;  %s19700_s20 = sphi %s19822_s20, %s22520_s20   ;;  %s19696_s30 = sphi %s19820_s30, %s22519_s30   ;;  %s19692_s0 = sphi %s19818_s0, %s22518_s0  }
   0xf   : > { %22440 = sst [smem:[#allocation16_spill]] %s19696_s30  ;;  %s15694_s22 = sadd.s32 4294967294, %s19704_s21  }
  0x10   : > { %22441 = sst [smem:[#allocation17_spill]] %s19700_s20  ;;  %s19843_s2 = sadd.s32 1, %s19704_s21  }
  0x11   : > { %22442 = sst [smem:[#allocation18_spill]] %s19704_s21  ;;  %s446_s23 = sadd.s32 1, %s19700_s20 }
  0x12   : > { %22443 = sst [smem:[#allocation19_spill]] %s19843_s2  ;;  %s443_s24 = ssub.s32 %s19704_s21, %s19843_s2 }
  0x13   : > { %p456_p0 = scmp.ne.s32.totalorder %s19700_s20, %s19696_s30  ;;  %p444_p1 = scmp.eq.s32.totalorder %s443_s24, 0 }
  0x14   : > { %p457_p2 = scmp.eq.s32.totalorder %s19839_s1, 1  ;;  %p462_p3 = scmp.ne.s32.totalorder %s19696_s30, %s19692_s0 }
  0x15   : > { %p463_p4 = scmp.eq.s32.totalorder %s15694_s22, 1  ;;  %p15695_p7 = scmp.ge.s32.totalorder %s19704_s21, 1 }
  0x16   : > { %s19854_s25 = scalar_select %p444_p1, %s19700_s20, %s446_s23  }
  0x17   : > { %p19856_p5 = por %p457_p2, %p456_p0  ;;  %p19860_p6 = por %p463_p4, %p462_p3 }
  0x18   : > { %22444 = sst [smem:[#allocation20_spill]] %s19854_s25  ;;  %p470_p8 = scmp.lt.s32.totalorder %s19704_s21, 3 }
  0x19   : > { %s22445_s3 = scalar_select %p19856_p5, 1, 0 }
  0x1a   : > { %s22447_s26 = scalar_select %p19860_p6, 1, 0 }
  0x1b   : > { %22446 = sst [smem:[#allocation21_spill]] %s22445_s3  ;;  %p22396_p9 = scmp.eq.s32.totalorder %s19839_s1, 0 }
  0x1c   : > { %22448 = sst [smem:[#allocation22_spill]] %s22447_s26  ;;  %p19867_p10 = pnand %p15695_p7, %p470_p8 }
  0x1d   : > { %s19706_s28 = smov [#allocation5]   ;;  %s19707_s23 = smov [#allocation2]  }
  0x1e   : > { %s22449_s27 = scalar_select %p19867_p10, 1, 0 }
  0x1f   : > { %s532_s29 = sshll.u32 %s19706_s28, 4  ;;  %p19056_p11 = pneg %p19867_p10  ;;  %s19873_s29 = int_to_ptr.vmem [resolvable:$true] %s532_s29 }
  0x20   : > { %s516_s24 = sshll.u32 %s19707_s23, 4  ;;  %s19708_s25 = smov [#allocation7]   ;;  %s19881_s24 = int_to_ptr.vmem [resolvable:$true] %s516_s24 }
  0x21   : > { %p19877_p12 = pnand %p22396_p9, %p19056_p11  ;;  %s19883_s20 = sshll.u32 %s19708_s25, 4  ;;  %s547_s20 = int_to_ptr.vmem [resolvable:$true] %s19883_s20 }
  0x22   : > { %s19518_s28 = scalar_lea.hbm %s22381_s15, 512 }
  0x23   : > { %p19519_p13 = scmp.ne.s32.totalorder %s22381_s15, %s19518_s28  ;;  %p19893_p0 = pneg %p19877_p12 }
  0x24   : > { %p19525_p3 = scmp.lt.u32.totalorder %s19518_s28, %s22381_s15 }
  0x25   : > { %p19521_p1 = pnand %p19893_p0, %p19519_p13 }
  0x27   : > { %p19522_p2 = pneg %p19521_p1 }
  0x29   : > { %p19527_p4 = pnand %p19525_p3, %p19522_p2 }
  0x2b   : > { %19530 = shalt.err (!%p19527_p4)
}
  0x2c   : > { %s19531_s0 = scalar_lea.vmem %s19873_s29, 512  ;;  %p19539_p9 = scmp.lt.s32.totalorder %s19873_s29, %s19873_s29 }
  0x2d   : > { %p19532_p7 = scmp.ne.s32.totalorder %s19873_s29, %s19531_s0  ;;  %p19540_p6 = scmp.lt.s32.totalorder %s19531_s0, %s19531_s0 }
  0x2f   : > { %p19534_p8 = pnand %p19532_p7, %p19893_p0  ;;  %p19541_p13 = por %p19540_p6, %p19539_p9 }
  0x31   : > { %p19535_p11 = pneg %p19534_p8 }
  0x33   : > { %p19542_p1 = pnand %p19541_p13, %p19535_p11 }
  0x35   : > { %19545 = shalt.err (!%p19542_p1)
}
  0x36   : > { %s19709_s21 = smov 128   ;;  %s19710_s2 = smov 8  }
  0x37   : > { %19062 = dma.hbm_to_vmem [thread:$0]  (!%p19877_p12), %s22381_s15, 512, %s19873_s29, [#allocation6], %s19709_s21, %s19709_s21, %s19710_s2  }
  0x38   : > { %s19546_s3 = scalar_lea.hbm %s22378_s12, 16 }
  0x39   : > { %p19547_p6 = scmp.ne.s32.totalorder %s22378_s12, %s19546_s3  ;;  %p19553_p3 = scmp.lt.u32.totalorder %s19546_s3, %s22378_s12 }
  0x3b   : > { %p19549_p9 = pnand %p19547_p6, %p19893_p0 }
  0x3d   : > { %p19550_p2 = pneg %p19549_p9 }
  0x3f   : > { %p19555_p4 = pnand %p19553_p3, %p19550_p2 }
  0x41   : > { %19558 = shalt.err (!%p19555_p4)
}
  0x42   : > { %s19559_s29 = scalar_lea.vmem %s19881_s24, 16  ;;  %s19566_s17 = scalar_lea.vmem %s19881_s24, 32 }
  0x43   : > { %p19560_p7 = scmp.ne.s32.totalorder %s19881_s24, %s19559_s29  ;;  %p19567_p13 = scmp.lt.s32.totalorder %s19881_s24, %s19881_s24 }
  0x44   : > { %p19568_p1 = scmp.lt.s32.totalorder %s19566_s17, %s19559_s29 }
  0x45   : > { %p19562_p8 = pnand %p19560_p7, %p19893_p0 }
  0x46   : > { %p19569_p6 = por %p19568_p1, %p19567_p13 }
  0x47   : > { %p19563_p11 = pneg %p19562_p8 }
  0x49   : > { %p19570_p9 = pnand %p19569_p6, %p19563_p11 }
  0x4b   : > { %19573 = shalt.err (!%p19570_p9)
}
  0x4c   : > { %19059 = dma.hbm_to_vmem [thread:$0]  (!%p19877_p12), %s22378_s12, 16, %s19881_s24, [#allocation3]  }
  0x4d   : > { %s19574_s2 = scalar_lea.hbm %s22382_s16, 16 }
  0x4e   : > { %p19575_p2 = scmp.ne.s32.totalorder %s22382_s16, %s19574_s2  ;;  %p19581_p7 = scmp.lt.u32.totalorder %s19574_s2, %s22382_s16 }
  0x50   : > { %p19577_p3 = pnand %p19575_p2, %p19893_p0 }
  0x52   : > { %p19578_p4 = pneg %p19577_p3 }
  0x54   : > { %p19583_p8 = pnand %p19581_p7, %p19578_p4 }
  0x56   : > { %19586 = shalt.err (!%p19583_p8)
}
  0x57   : > { %s19587_s0 = scalar_lea.vmem %s547_s20, 16  ;;  %s19594_s24 = scalar_lea.vmem %s547_s20, 32 }
  0x58   : > { %p19588_p11 = scmp.ne.s32.totalorder %s547_s20, %s19587_s0  ;;  %p19595_p6 = scmp.lt.s32.totalorder %s547_s20, %s547_s20 }
  0x59   : > { %p19596_p9 = scmp.lt.s32.totalorder %s19594_s24, %s19587_s0 }
  0x5a   : > { %p19590_p13 = pnand %p19588_p11, %p19893_p0 }
  0x5b   : > { %p19597_p5 = por %p19596_p9, %p19595_p6 }
  0x5c   : > { %p19591_p1 = pneg %p19590_p13 }
  0x5e   : > { %p19598_p10 = pnand %p19597_p5, %p19591_p1 }
  0x60   : > { %19601 = shalt.err (!%p19598_p10)
}
  0x61   : > { %19065 = dma.hbm_to_vmem [thread:$0]  (!%p19877_p12), %s22382_s16, 16, %s547_s20, [#allocation6]  }
  0x62   : > { %s19711_s14 = smov [#allocation8]   ;;  %s19602_s2 = scalar_lea.hbm %s22384_s18, 16 }
  0x63   : > { %s560_s30 = sshll.u32 %s19711_s14, 4  ;;  %p19603_p2 = scmp.ne.s32.totalorder %s22384_s18, %s19602_s2  ;;  %s561_s30 = int_to_ptr.vmem [resolvable:$true] %s560_s30 }
  0x64   : > { %p19609_p3 = scmp.lt.u32.totalorder %s19602_s2, %s22384_s18 }
  0x65   : > { %p19605_p5 = pnand %p19603_p2, %p19893_p0 }
  0x67   : > { %p19606_p10 = pneg %p19605_p5 }
  0x69   : > { %p19611_p4 = pnand %p19609_p3, %p19606_p10 }
  0x6b   : > { %19614 = shalt.err (!%p19611_p4)
}
  0x6c   : > { %s19615_s20 = scalar_lea.vmem %s561_s30, 16  ;;  %s19622_s0 = scalar_lea.vmem %s561_s30, 32 }
  0x6d   : > { %p19616_p7 = scmp.ne.s32.totalorder %s561_s30, %s19615_s20  ;;  %p19623_p13 = scmp.lt.s32.totalorder %s561_s30, %s561_s30 }
  0x6e   : > { %p19624_p1 = scmp.lt.s32.totalorder %s19622_s0, %s19615_s20 }
  0x6f   : > { %p19618_p8 = pnand %p19616_p7, %p19893_p0 }
  0x70   : > { %p19625_p6 = por %p19624_p1, %p19623_p13 }
  0x71   : > { %p19619_p11 = pneg %p19618_p8 }
  0x73   : > { %p19626_p9 = pnand %p19625_p6, %p19619_p11 }
  0x75   : > { %19629 = shalt.err (!%p19626_p9)
}
  0x76   : > { %19068 = dma.hbm_to_vmem [thread:$0]  (!%p19877_p12), %s22384_s18, 16, %s561_s30, [#allocation9]  }
  0x77   : > { %p22452_p2 = scmp.ne.s32.totalorder %s22449_s27, 0 }
  0x79   : > { %581 = sbr.rel (%p22452_p2) target bundleno = 30205 (0x75fd), region = 96 }
  0x80   : > { %p22453_p5 = scmp.eq.s32.totalorder %s19839_s1, 0 }
  0x82   : > { %19675 = dma.done.wait (%p22453_p5), [#allocation3], 16   ;;  %p22454_p0 = pmov %p22453_p5 }
  0x84   : > { %19677 = vsyncadd (%p22454_p0), [#allocation3], 4294967280  ;;  %p22455_p10 = pmov %p22454_p0 }
  0x85   : > { %p22456_p3 = pmov %p22454_p0 }
  0x86   : > { %19679 = dma.done.wait (%p22455_p10), [#allocation6], 528  }
  0x87   : > { %19681 = vsyncadd (%p22456_p3), [#allocation6], 4294966768  ;;  %p22457_p4 = pmov %p22454_p0 }
  0x88   : > { %p22458_p12 = pmov %p22454_p0 }
  0x89   : > { %19683 = dma.done.wait (%p22457_p4), [#allocation9], 16  }
  0x8a   : > { %19685 = vsyncadd (%p22458_p12), [#allocation9], 4294967280  ;;  %p649_p7 = scmp.lt.s32.totalorder %s19839_s1, 1  ;;  %s22459_s14 = sld [smem:[#allocation37_spill]]  ;;  %vm661_vm0 = vcmask 261120   ;;  %v749_v28 = vld [vmem:[%s22371_s5] sm:$0xff] }
  0x8b   : > { %v750_v29 = vld [vmem:[%s22371_s5 + $0x8] sm:$0xff]  ;;  %v922_v31 = vld [vmem:[%s22375_s9] sm:$0xff]  ;;  %v751_v34 = vld [vmem:[%s22371_s5 + $0x10] sm:$0xff]  ;;  %v22406_v43 = vmov 0.0|0.0   ;;  %s22460_s25 = sld [smem:[#allocation40_spill]]  ;;  %s22463_s17 = sld [smem:[#allocation39_spill]] }
  0x8c   : > { %s650_s19 = scalar_select %p649_p7, %s19839_s1, 1  ;;  %v20038_v30 = vpack.c.bf16 %v750_v29, %v749_v28  ;;  %v923_v32 = vld [vmem:[%s22375_s9 + $0x8] sm:$0xff]  ;;  %v752_v35 = vld [vmem:[%s22371_s5 + $0x18] sm:$0xff]  ;;  %v924_v37 = vld [vmem:[%s22375_s9 + $0x10] sm:$0xff]  ;;  %vm19713_vm2 = vmmov 0   ;;  %vm1008_vm3 = vcmask 64512  }
  0x8d   : > { %v20046_v33 = vpack.c.bf16 %v923_v32, %v922_v31  ;;  %v20058_v36 = vpack.c.bf16 %v752_v35, %v751_v34  ;;  %v925_v38 = vld [vmem:[%s22375_s9 + $0x18] sm:$0xff]  ;;  %v15728_v40 = vld [vmem:[%s22371_s5 + $0x20] sm:$0xff]  ;;  %v15729_v41 = vld [vmem:[%s22371_s5 + $0x28] sm:$0xff]  ;;  %vm1090_vm4 = vcmask 130048   ;;  %s22498_s3 = sld [smem:[#allocation41_spill]]  ;;  %vm15360_vm5 = vcmask 523264  }
  0x8e   : > { %s16194_s27 = sshll.u32 %s650_s19, 7  ;;  %18301 = vmatprep.subr.bf16.mxu1 %v20038_v30  ;;  %v20066_v39 = vpack.c.bf16 %v925_v38, %v924_v37  ;;  %v20078_v42 = vpack.c.bf16 %v15729_v41, %v15728_v40  ;;  %v20091_v59 = vld [vmem:[%s22370_s4] ss:$0 sm:$0xff]  ;;  %s22461_s19 = sld [smem:[#allocation38_spill]]  ;;  %vm20153_vm1 = vmpackc.low %vm661_vm0, %vm661_vm0 }
  0x8f   : > { %18303 = vmatpush3.bf16.msra.mxu1 %v20038_v30  ;;  %18313 = vmatprep.subr.bf16.mxu0 %v20046_v33  ;;  %v20207_v34 = vld [vmem:[%s22372_s6] ss:$0 sm:$0xff]  ;;  %s22509_s26 = sld [smem:[#allocation16_spill]]  ;;  %s16195_s0 = sshll.u32 %s19839_s1, 11 }
  0x90   : > { %s19994_s30 = scalar_lea.vmem %s22459_s14, %s16194_s27  ;;  %18315 = vmatpush3.bf16.msra.mxu0 %v20046_v33  ;;  %18305 = vmatprep.subr.bf16.mxu1 %v20058_v36  ;;  %s22511_s22 = sld [smem:[#allocation43_spill]] }
  0x91   : > { %v19997_v0 = vld [vmem:[%s19994_s30 + $0x10] sm:$0xff]  ;;  %v20000_v1 = vld [vmem:[%s19994_s30 + $0x18] sm:$0xff]  ;;  %v654_v2 = vld [vmem:[%s19994_s30] sm:$0xff]  ;;  %18317 = vmatprep.subr.bf16.mxu0 %v20066_v39  ;;  %s19715_s2 = smov [#allocation10]  }
  0x92   : > { %v707_v3 = vsel %vm661_vm0, %v19997_v0, 0.0  ;;  %v662_v4 = vsel %vm661_vm0, %v654_v2, 0.0  ;;  %v655_v5 = vld [vmem:[%s19994_s30 + $0x8] sm:$0xff]  ;;  %v710_v6 = vsel %vm661_vm0, %v20000_v1, 0.0  ;;  %v20085_v57 = vld [vmem:[%s22460_s25] ss:$0 sm:$0xff] }
  0x93   : > { %708 = vadd.xlane.f32.xlu0 %v707_v3  ;;  %663 = vadd.xlane.f32.xlu1 %v662_v4  ;;  %v665_v7 = vsel %vm661_vm0, %v655_v5, 0.0 }
  0x94   : > { %18307 = vmatpush3.bf16.msra.mxu1 %v20058_v36  ;;  %18319 = vmatpush3.bf16.msra.mxu0 %v20066_v39  ;;  %v20097_v62 = vld [vmem:[%s22461_s19] ss:$0 sm:$0xff] }
  0x95   : > { %18325 = vmatprep.subr.bf16.mxu0 %v20078_v42  ;;  %18308 = vmatprep.subr.bf16.mxu1 %v22406_v43  ;;  %s646_s28 = sand.u32 1, %s22509_s26  }
  0x96   : > { %s15706_s23 = sshll.u32 %s646_s28, 7  ;;  %s22314_s14 = scalar_lea.hbm %s22511_s22, %s16195_s0 }
  0x97   : > { %711 = vadd.xlane.f32.xlu0 %v710_v6  ;;  %666 = vadd.xlane.f32.xlu1 %v665_v7  ;;  %v15730_v7 = vld [vmem:[%s22371_s5 + $0x30] sm:$0xff]  ;;  %s22254_s20 = scalar_lea.vmem [#allocation10], %s15706_s23  ;;  %s22325_s1 = scalar_lea.sflag [#allocation4], %s646_s28 }
  0x98   : > { %s15591_s24 = sshll.u32 %s22254_s20, 4  ;;  %s19634_s23 = sshll.u32 %s19715_s2, 4  ;;  %s22316_s24 = int_to_ptr.vmem [resolvable:$true] %s15591_s24  ;;  %s19635_s23 = int_to_ptr.vmem [resolvable:$false] %s19634_s23 }
  0x99   : > { %s19630_s21 = scalar_lea.vmem %s22316_s24, 2048  ;;  %s19636_s0 = scalar_lea.vmem %s19635_s23, 4096 }
  0x9a   : > { %p19631_p8 = scmp.ne.s32.totalorder %s22316_s24, %s19630_s21  ;;  %p19637_p6 = scmp.lt.s32.totalorder %s22316_s24, %s19635_s23 }
  0x9b   : > { %p19638_p9 = scmp.lt.s32.totalorder %s19636_s0, %s19630_s21 }
  0x9d   : > { %p19639_p2 = por %p19638_p9, %p19637_p6 }
 0x120   : > { %v709_v8 = vpop.xlane.xlu0 %708  ;;  %v664_v9 = vpop.xlane.xlu1 %663 }
 0x121   : > { %v713_v10 = vmul.f32 0.03125, %v709_v8  ;;  %v669_v11 = vmul.f32 0.03125, %v664_v9  ;;  %v15731_v8 = vld [vmem:[%s22371_s5 + $0x38] sm:$0xff] }
 0x123   : > { %v20011_v12 = vsub.f32 %v19997_v0, %v713_v10  ;;  %v20013_v13 = vsub.f32 %v654_v2, %v669_v11 }
 0x124   : > { %v712_v14 = vpop.xlane.xlu0 %711  ;;  %v667_v15 = vpop.xlane.xlu1 %666 }
 0x125   : > { %v714_v16 = vmul.f32 0.03125, %v712_v14  ;;  %v717_v17 = vmul.f32 %v20011_v12, %v20011_v12  ;;  %v670_v18 = vmul.f32 0.03125, %v667_v15  ;;  %v673_v19 = vmul.f32 %v20013_v13, %v20013_v13 }
 0x126   : > { %v20131_v14 = vpack.c.bf16 %v15731_v8, %v15730_v7 }
 0x127   : > { %v20020_v20 = vsub.f32 %v20000_v1, %v714_v16  ;;  %v719_v21 = vsel %vm661_vm0, %v717_v17, 0.0  ;;  %v20023_v22 = vsub.f32 %v655_v5, %v670_v18  ;;  %v675_v24 = vsel %vm661_vm0, %v673_v19, 0.0  ;;  %v20109_v5 = vld [vmem:[%s22463_s17] ss:$0 sm:$0xff]  ;;  %v15742_v17 = vld [vmem:[%s22375_s9 + $0x28] sm:$0xff] }
 0x128   : > { %720 = vadd.xlane.f32.xlu0 %v719_v21  ;;  %v15741_v16 = vld [vmem:[%s22375_s9 + $0x20] sm:$0xff] }
 0x129   : > { %v718_v23 = vmul.f32 %v20020_v20, %v20020_v20  ;;  %v674_v25 = vmul.f32 %v20023_v22, %v20023_v22  ;;  %v20162_v21 = vpack.c.bf16 %v15742_v17, %v15741_v16 }
 0x12b   : > { %v722_v26 = vsel %vm661_vm0, %v718_v23, 0.0  ;;  %v678_v27 = vsel %vm661_vm0, %v674_v25, 0.0  ;;  %v15744_v23 = vld [vmem:[%s22375_s9 + $0x38] sm:$0xff] }
 0x12c   : > { %723 = vadd.xlane.f32.xlu1 %v722_v26  ;;  %676 = vadd.xlane.f32.xlu0 %v675_v24  ;;  %v22404_v24 = vmov 0.0   ;;  %v20186_v26 = vld [vmem:[%s22373_s7] sm:$0xff] }
 0x130   : > { %679 = vadd.xlane.f32.xlu1 %v678_v27  ;;  %v20200_v27 = vld [vmem:[%s22376_s10] ss:$0 sm:$0xff] }
 0x1b5   : > { %v721_v44 = vpop.xlane.xlu0 %720 }
 0x1b6   : > { %v725_v45 = vmul.f32 0.03125, %v721_v44 }
 0x1b8   : > { %v727_v46 = vadd.f32 1e-06, %v725_v45  ;;  %v20216_v45 = vld [vmem:[%s22374_s8] sm:$0xff] }
 0x1b9   : > { %v677_v47 = vpop.xlane.xlu0 %676  ;;  %v724_v48 = vpop.xlane.xlu1 %723 }
 0x1ba   : > { %19125 = vrsqrt.f32 %v727_v46  ;;  %v681_v49 = vmul.f32 0.03125, %v677_v47  ;;  %v726_v50 = vmul.f32 0.03125, %v724_v48 }
 0x1bc   : > { %v683_v51 = vadd.f32 1e-06, %v681_v49  ;;  %v728_v52 = vadd.f32 1e-06, %v726_v50  ;;  %v20223_v50 = vld [vmem:[%s22376_s10 + $0x1] ss:$0 sm:$0xff] }
 0x1bd   : > { %v680_v53 = vpop.xlane.xlu1 %679 }
 0x1be   : > { %19127 = vrsqrt.f32 %v683_v51  ;;  %v682_v54 = vmul.f32 0.03125, %v680_v53 }
 0x1bf   : > { %19129 = vrsqrt.f32 %v728_v52 }
 0x1c0   : > { %v684_v55 = vadd.f32 1e-06, %v682_v54 }
 0x1c2   : > { %19131 = vrsqrt.f32 %v684_v55 }
 0x1c4   : > { %v19126_v56 = vpop.eup %19125 }
 0x1c5   : > { %v731_v58 = vmul.f32 %v19126_v56, %v20011_v12 }
 0x1c7   : > { %v739_v60 = vmul.f32 %v20085_v57, %v731_v58 }
 0x1c8   : > { %v19128_v61 = vpop.eup %19127 }
 0x1c9   : > { %v19130_v63 = vpop.eup %19129  ;;  %v20100_v2 = vadd.f32 %v20091_v59, %v739_v60  ;;  %v20103_v3 = vmul.f32 %v19128_v61, %v20013_v13 }
 0x1ca   : > { %v732_v4 = vmul.f32 %v19130_v63, %v20020_v20 }
 0x1cb   : > { %22462 = vst [vmem:[#allocation23_spill] sm:$0xff] %v20103_v3  ;;  %16966 = vmatprep.mubr.msk.f32.mxu0 %vm661_vm0, %v20100_v2  ;;  %v695_v6 = vmul.f32 %v20097_v62, %v20103_v3 }
 0x1cc   : > { %v19132_v9 = vpop.eup %19131  ;;  %v740_v10 = vmul.f32 %v20085_v57, %v732_v4 }
 0x1cd   : > { %v20123_v11 = vadd.f32 %v20109_v5, %v695_v6  ;;  %v20126_v12 = vmul.f32 %v19132_v9, %v20023_v22  ;;  %v15743_v22 = vld [vmem:[%s22375_s9 + $0x30] sm:$0xff] }
 0x1ce   : > { %v20129_v13 = vadd.f32 %v20091_v59, %v740_v10  ;;  %v20179_v25 = vpack.c.bf16 %v15744_v23, %v15743_v22 }
 0x1cf   : > { %22464 = vst [vmem:[#allocation24_spill] sm:$0xff] %v20126_v12  ;;  %16948 = vmatprep.mubr.msk.f32.mxu1 %vm661_vm0, %v20123_v11  ;;  %v696_v15 = vmul.f32 %v20097_v62, %v20126_v12 }
 0x1d0   : > { %16967 = vmatmul.mubr.msk.f32.vlgmr.msra.gmra.mrb[0].mxu0 %vm661_vm0, %v20129_v13  ;;  %v20160_v20 = vpack.c.bf16 %v20129_v13, %v20100_v2 }
 0x1d1   : > { %18327 = vmatpush3.bf16.msra.mxu0 %v20078_v42  ;;  %16989 = vmatprep.mubr.msk.f32.mxu0 %vm661_vm0, %v20123_v11  ;;  %v20149_v18 = vadd.f32 %v20109_v5, %v696_v15 }
 0x1d2   : > { %18329 = vmatprep.subr.bf16.mxu0 %v20131_v14 }
 0x1d3   : > { %16949 = vmatmul.mubr.msk.f32.vlgmr.msra.gmra.mrb[0].mxu1 %vm661_vm0, %v20149_v18 }
 0x1d4   : > { %18311 = vmatpush3.bf16.xpose.msk.msra.mxu1 %vm20153_vm1, %v20160_v20  ;;  %16955 = vmatprep.mubr.msk.f32.mxu1 %vm19713_vm2, %v22404_v24 }
 0x1d5   : > { %18331 = vmatpush3.bf16.msra.mxu0 %v20131_v14 }
 0x1d6   : > { %18337 = vmatprep.subr.bf16.mxu0 %v20162_v21 }
 0x1d8   : > { %16990 = vmatmul.mubr.msk.f32.vlgmr.msra.gmra.mrb[2].mxu0 %vm661_vm0, %v20149_v18 }
 0x1d9   : > { %18339 = vmatpush3.bf16.msra.mxu0 %v20162_v21  ;;  %17007 = vmatprep.mubr.msk.f32.mxu0 %vm661_vm0, %v20100_v2 }
 0x1da   : > { %18341 = vmatprep.subr.bf16.mxu0 %v20179_v25 }
 0x1db   : > { %16956 = vmatmul.mubr.msk.f32.vlgmr.msra.gmra.mrb[2].mxu1 %vm661_vm0, %v20186_v26 }
 0x1dd   : > { %18343 = vmatpush3.bf16.msra.mxu0 %v20179_v25 }
 0x1e0   : > { %17008 = vmatmul.mubr.msk.f32.vlgmr.msra.gmra.mrb[4].mxu0 %vm661_vm0, %v20129_v13 }
 0x2a3   : > { %v16968_v28 = vpop.f32.mrb[0].mxu0 }
 0x2a4   : > { %v1005_v29 = vadd.f32 %v16968_v28, %v20200_v27  ;;  %v999_v31 = vpop.f32.mrb[1].mxu0 }
 0x2a5   : > { %v1000_v32 = vadd.f32 %v20200_v27, %v999_v31 }
 0x2a6   : > { %v16950_v35 = vpop.f32.mrb[0].mxu1 }
 0x2a7   : > { %v18320_v37 = vpack.c.bf16 %v1005_v29, %v1000_v32  ;;  %v832_v38 = vpop.f32.mrb[1].mxu1  ;;  %v838_v49 = vadd.f32 %v16950_v35, %v20207_v34  ;;  %v20243_v35 = vld [vmem:[%s22372_s6 + $0x1] ss:$0 sm:$0xff] }
 0x2a8   : > { %v833_v40 = vadd.f32 %v20207_v34, %v832_v38 }
 0x2aa   : > { %16971 = vmatprep.mubr.msk.f32.mxu1 %vm1008_vm3, %v833_v40 }
 0x2ab   : > { %v20211_v41 = vpop.f32.mrb[2].mxu0 }
 0x2ac   : > { %v1274_v44 = vpop.f32.mrb[3].mxu0 }
 0x2ad   : > { %v1275_v38 = vadd.f32 %v20243_v35, %v1274_v44  ;;  %v1280_v44 = vadd.f32 %v20211_v41, %v20243_v35 }
 0x2ae   : > { %v918_v46 = vpop.f32.mrb[2].mxu1 }
 0x2af   : > { %v919_v47 = vadd.f32 %v918_v46, %v20216_v45  ;;  %v16957_v48 = vpop.f32.mrb[3].mxu1 }
 0x2b1   : > { %16969 = vmatprep.subr.mxu1 %v919_v47 }
 0x2b2   : > { %16970 = vmatpush3.msra.mxu1 %v919_v47  ;;  %v20261_v47 = vld [vmem:[%s22374_s8 + $0x8] sm:$0xff] }
 0x2b3   : > { %v17009_v51 = vpop.f32.mrb[4].mxu0  ;;  %16972 = vmatmul.mubr.msk.f32.vlgmr.msra.gmra.mrb[4].mxu1 %vm1008_vm3, %v838_v49  ;;  %18321 = vmatprep.subr.bf16.mxu1 %v18320_v37 }
 0x2b4   : > { %v1445_v52 = vadd.f32 %v17009_v51, %v20223_v50  ;;  %v1439_v53 = vpop.f32.mrb[5].mxu0  ;;  %18323 = vmatpush3.bf16.msra.mxu1 %v18320_v37  ;;  %v20248_v37 = vld [vmem:[%s22373_s7 + $0x8] sm:$0xff] }
 0x2b5   : > { %v1440_v54 = vadd.f32 %v20223_v50, %v1439_v53  ;;  %18332 = vmatprep.subr.bf16.mxu1 %v22406_v43 }
 0x2b7   : > { %v18344_v55 = vpack.c.bf16 %v1445_v52, %v1440_v54 }
 0x386   : > { %v16973_v56 = vpop.f32.mrb[4].mxu1 }
 0x387   : > { %v1081_v58 = vpop.f32.mrb[5].mxu1  ;;  %v1094_v60 = vsel %vm1090_vm4, %v16973_v56, -inf }
 0x388   : > { %1095 = vmax.xlane.f32.xlu1 %v1094_v60  ;;  %v1091_v61 = vsel %vm1090_vm4, %v1081_v58, -inf }
 0x389   : > { %1092 = vmax.xlane.f32.xlu0 %v1091_v61 }
 0x415   : > { %v1096_v63 = vpop.xlane.xlu1 %1095 }
 0x416   : > { %v1098_v4 = vsub.f32 %v16973_v56, %v1096_v63  ;;  %v1093_v6 = vpop.xlane.xlu0 %1092 }
 0x417   : > { %v1097_v7 = vsub.f32 %v1081_v58, %v1093_v6 }
 0x418   : > { %v1101_v8 = vmul.f32 1.442695, %v1098_v4 }
 0x419   : > { %v1099_v9 = vmul.f32 1.442695, %v1097_v7 }
 0x41a   : > { %19133 = vpow2.f32 %v1101_v8 }
 0x41b   : > { %19135 = vpow2.f32 %v1099_v9  ;;  %v15758_v9 = vld [vmem:[%s22371_s5 + $0x40] sm:$0xff] }
 0x424   : > { %v19134_v10 = vpop.eup %19133 }
 0x425   : > { %v19136_v15 = vpop.eup %19135  ;;  %v1106_v16 = vsel %vm1090_vm4, %v19134_v10, 0.0 }
 0x426   : > { %1107 = vadd.xlane.f32.xlu1 %v1106_v16  ;;  %v1103_v17 = vsel %vm1090_vm4, %v19136_v15, 0.0 }
 0x427   : > { %1104 = vadd.xlane.f32.xlu0 %v1103_v17 }
 0x4b3   : > { %v1108_v22 = vpop.xlane.xlu1 %1107 }
 0x4b4   : > { %19137 = vrcp.f32 %v1108_v22  ;;  %v1105_v23 = vpop.xlane.xlu0 %1104 }
 0x4b5   : > { %19139 = vrcp.f32 %v1105_v23  ;;  %v15760_v23 = vld [vmem:[%s22371_s5 + $0x50] sm:$0xff] }
 0x4be   : > { %v19138_v28 = vpop.eup %19137 }
 0x4bf   : > { %v19140_v29 = vpop.eup %19139  ;;  %v1112_v32 = vmul.f32 %v19138_v28, %v19134_v10  ;;  %v15759_v10 = vld [vmem:[%s22371_s5 + $0x48] sm:$0xff]  ;;  %v15761_v28 = vld [vmem:[%s22371_s5 + $0x58] sm:$0xff] }
 0x4c0   : > { %v1110_v31 = vmul.f32 %v19140_v29, %v19136_v15  ;;  %v20277_v15 = vpack.c.bf16 %v15759_v10, %v15758_v9  ;;  %v20371_v10 = vld [vmem:[%s22374_s8 + $0x10] sm:$0xff] }
 0x4c2   : > { %16978 = vmatprep.mubr.msk.f32.mxu1 %vm1090_vm4, %v1110_v31 }
 0x4c3   : > { %16979 = vmatmul.mubr.msk.f32.vlgmr.msra.gmra.mrb[6].mxu1 %vm1090_vm4, %v1112_v32 }
 0x4c4   : > { %18335 = vmatpush3.bf16.xpose.msk.msra.mxu1 %vm20153_vm1, %v20160_v20  ;;  %16996 = vmatprep.mubr.msk.f32.mxu1 %vm19713_vm2, %v22404_v24 }
 0x4cb   : > { %16997 = vmatmul.mubr.msk.f32.vlgmr.msra.gmra.mrb[8].mxu1 %vm661_vm0, %v20248_v37 }
 0x4cc   : > { %17012 = vmatprep.mubr.msk.f32.mxu1 %vm1008_vm3, %v1275_v38  ;;  %v20286_v38 = vpack.c.bf16 %v15761_v28, %v15760_v23 }
 0x596   : > { %v20254_v40 = vpop.f32.mrb[6].mxu1 }
 0x597   : > { %v20256_v46 = vpop.f32.mrb[7].mxu1 }
 0x59e   : > { %v1356_v48 = vpop.f32.mrb[8].mxu1 }
 0x59f   : > { %v1357_v49 = vadd.f32 %v20261_v47, %v1356_v48  ;;  %v16998_v51 = vpop.f32.mrb[9].mxu1  ;;  %v15771_v48 = vld [vmem:[%s22375_s9 + $0x40] sm:$0xff] }
 0x5a1   : > { %17010 = vmatprep.subr.mxu1 %v1357_v49 }
 0x5a2   : > { %17011 = vmatpush3.msra.mxu1 %v1357_v49  ;;  %v15772_v49 = vld [vmem:[%s22375_s9 + $0x48] sm:$0xff] }
 0x5a3   : > { %17013 = vmatmul.mubr.msk.f32.vlgmr.msra.gmra.mrb[10].mxu1 %vm1008_vm3, %v1280_v44  ;;  %18345 = vmatprep.subr.bf16.mxu1 %v18344_v55  ;;  %v20300_v51 = vpack.c.bf16 %v15772_v49, %v15771_v48  ;;  %v15773_v44 = vld [vmem:[%s22375_s9 + $0x50] sm:$0xff] }
 0x5a4   : > { %18347 = vmatpush3.bf16.msra.mxu1 %v18344_v55 }
 0x5a5   : > { %18349 = vmatprep.subr.bf16.mxu1 %v20277_v15 }
 0x676   : > { %v17014_v52 = vpop.f32.mrb[10].mxu1 }
 0x677   : > { %v1520_v53 = vpop.f32.mrb[11].mxu1  ;;  %v1532_v54 = vsel %vm1090_vm4, %v17014_v52, -inf }
 0x678   : > { %1533 = vmax.xlane.f32.xlu1 %v1532_v54  ;;  %v1529_v56 = vsel %vm1090_vm4, %v1520_v53, -inf  ;;  %v20324_v54 = vld [vmem:[%s22377_s11 + $0x8] sm:$0xff] }
 0x679   : > { %1530 = vmax.xlane.f32.xlu0 %v1529_v56  ;;  %17022 = vmatprep.subr.mxu0 %v20324_v54  ;;  %v20331_v56 = vld [vmem:[%s22377_s11] sm:$0xff] }
 0x67a   : > { %17023 = vmatpush3.msra.mxu0 %v20324_v54 }
 0x67b   : > { %17027 = vmatprep.subr.mxu0 %v20331_v56 }
 0x705   : > { %v1534_v58 = vpop.xlane.xlu1 %1533 }
 0x706   : > { %v1536_v60 = vsub.f32 %v17014_v52, %v1534_v58  ;;  %v1531_v61 = vpop.xlane.xlu0 %1530  ;;  %v15774_v52 = vld [vmem:[%s22375_s9 + $0x58] sm:$0xff] }
 0x707   : > { %v1535_v63 = vsub.f32 %v1520_v53, %v1531_v61  ;;  %v20310_v53 = vpack.c.bf16 %v15774_v52, %v15773_v44 }
 0x708   : > { %v1539_v4 = vmul.f32 1.442695, %v1536_v60 }
 0x709   : > { %v1537_v41 = vmul.f32 1.442695, %v1535_v63 }
 0x70a   : > { %19141 = vpow2.f32 %v1539_v4  ;;  %v20350_v4 = vld [vmem:[%s22376_s10 + $0x2] ss:$0 sm:$0xff] }
 0x70b   : > { %19143 = vpow2.f32 %v1537_v41 }
 0x714   : > { %v19142_v6 = vpop.eup %19141 }
 0x715   : > { %v19144_v7 = vpop.eup %19143  ;;  %v1544_v55 = vsel %vm1090_vm4, %v19142_v6, 0.0 }
 0x716   : > { %1545 = vadd.xlane.f32.xlu1 %v1544_v55  ;;  %v1541_v8 = vsel %vm1090_vm4, %v19144_v7, 0.0 }
 0x717   : > { %1542 = vadd.xlane.f32.xlu0 %v1541_v8 }
 0x7a3   : > { %v1546_v16 = vpop.xlane.xlu1 %1545 }
 0x7a4   : > { %19145 = vrcp.f32 %v1546_v16  ;;  %v1543_v17 = vpop.xlane.xlu0 %1542 }
 0x7a5   : > { %19147 = vrcp.f32 %v1543_v17 }
 0x7ae   : > { %v19146_v22 = vpop.eup %19145 }
 0x7af   : > { %v19148_v29 = vpop.eup %19147  ;;  %v1550_v32 = vmul.f32 %v19146_v22, %v19142_v6 }
 0x7b0   : > { %v1548_v31 = vmul.f32 %v19148_v29, %v19144_v7 }
 0x7b2   : > { %17019 = vmatprep.mubr.msk.f32.mxu1 %vm1090_vm4, %v1548_v31 }
 0x7b3   : > { %17020 = vmatmul.mubr.msk.f32.vlgmr.msra.gmra.mrb[12].mxu1 %vm1090_vm4, %v1550_v32 }
 0x7b4   : > { %18351 = vmatpush3.bf16.msra.mxu1 %v20277_v15  ;;  %17040 = vmatprep.mubr.msk.f32.mxu1 %vm661_vm0, %v20123_v11 }
 0x7b5   : > { %18353 = vmatprep.subr.bf16.mxu1 %v20286_v38 }
 0x7b8   : > { %18355 = vmatpush3.bf16.msra.mxu1 %v20286_v38 }
 0x7b9   : > { %18361 = vmatprep.subr.bf16.mxu1 %v20300_v51 }
 0x7bb   : > { %17041 = vmatmul.mubr.msk.f32.vlgmr.msra.gmra.mrb[14].mxu1 %vm661_vm0, %v20149_v18 }
 0x7bc   : > { %18363 = vmatpush3.bf16.msra.mxu1 %v20300_v51  ;;  %17058 = vmatprep.mubr.msk.f32.mxu1 %vm661_vm0, %v20100_v2 }
 0x7bd   : > { %18365 = vmatprep.subr.bf16.mxu1 %v20310_v53 }
 0x7c0   : > { %18367 = vmatpush3.bf16.msra.mxu1 %v20310_v53 }
 0x7c3   : > { %17059 = vmatmul.mubr.msk.f32.vlgmr.msra.gmra.mrb[16].mxu1 %vm661_vm0, %v20129_v13 }
 0x886   : > { %v17021_v58 = vpop.f32.mrb[12].mxu1 }
 0x887   : > { %v1623_v60 = vpop.f32.mrb[13].mxu1 }
 0x888   : > { %17024 = vmatprep.mubr.msk.f32.mxu0 %vm1008_vm3, %v1623_v60 }
 0x889   : > { %17025 = vmatmul.mubr.msk.f32.vlgmr.msra.gmra.mrb[6].mxu0 %vm1008_vm3, %v17021_v58 }
 0x88a   : > { %17028 = vmatpush3.msra.mxu0 %v20331_v56  ;;  %17029 = vmatprep.mubr.msk.f32.mxu0 %vm1008_vm3, %v20256_v46  ;;  %v20355_v46 = vld [vmem:[%s22372_s6 + $0x2] ss:$0 sm:$0xff] }
 0x88b   : > { %18356 = vmatprep.subr.bf16.mxu0 %v22406_v43 }
 0x88e   : > { %v17042_v61 = vpop.f32.mrb[14].mxu1 }
 0x88f   : > { %v1875_v63 = vpop.f32.mrb[15].mxu1  ;;  %v1881_v23 = vadd.f32 %v17042_v61, %v20355_v46 }
 0x890   : > { %v1876_v55 = vadd.f32 %v20355_v46, %v1875_v63 }
 0x891   : > { %17030 = vmatmul.mubr.msk.f32.vlgmr.msra.gmra.mrb[6].mxu0 %vm1008_vm3, %v20254_v40  ;;  %v20360_v40 = vld [vmem:[%s22373_s7 + $0x10] sm:$0xff] }
 0x892   : > { %18359 = vmatpush3.bf16.xpose.msk.msra.mxu0 %vm20153_vm1, %v20160_v20  ;;  %17047 = vmatprep.mubr.msk.f32.mxu0 %vm19713_vm2, %v22404_v24 }
 0x896   : > { %v17060_v41 = vpop.f32.mrb[16].mxu1 }
 0x897   : > { %v2046_v6 = vadd.f32 %v17060_v41, %v20350_v4  ;;  %v2040_v7 = vpop.f32.mrb[17].mxu1 }
 0x898   : > { %v2041_v8 = vadd.f32 %v20350_v4, %v2040_v7  ;;  %v15786_v7 = vld [vmem:[%s22371_s5 + $0x60] sm:$0xff] }
 0x899   : > { %17048 = vmatmul.mubr.msk.f32.vlgmr.msra.gmra.mrb[8].mxu0 %vm661_vm0, %v20360_v40 }
 0x89a   : > { %v18368_v9 = vpack.c.bf16 %v2046_v6, %v2041_v8  ;;  %17063 = vmatprep.mubr.msk.f32.mxu0 %vm1008_vm3, %v1876_v55  ;;  %v15787_v55 = vld [vmem:[%s22371_s5 + $0x68] sm:$0xff] }
 0x89b   : > { %v20386_v8 = vpack.c.bf16 %v15787_v55, %v15786_v7 }
 0x89c   : > { %18369 = vmatprep.subr.bf16.mxu1 %v18368_v9 }
 0x89d   : > { %18371 = vmatpush3.bf16.msra.mxu1 %v18368_v9  ;;  %v20392_v9 = vld [vmem:[%s22377_s11 + $0x10] sm:$0xff] }
 0x89e   : > { %18373 = vmatprep.subr.bf16.mxu1 %v20386_v8 }
 0x96c   : > { %v1957_v16 = vpop.f32.mrb[8].mxu0 }
 0x96d   : > { %v1958_v17 = vadd.f32 %v20371_v10, %v1957_v16  ;;  %v17049_v22 = vpop.f32.mrb[9].mxu0 }
 0x96f   : > { %17061 = vmatprep.subr.mxu0 %v1958_v17 }
 0x970   : > { %17062 = vmatpush3.msra.mxu0 %v1958_v17 }
 0x971   : > { %17064 = vmatmul.mubr.msk.f32.vlgmr.msra.gmra.mrb[10].mxu0 %vm1008_vm3, %v1881_v23  ;;  %17073 = vmatprep.subr.mxu0 %v20392_v9  ;;  %v15788_v23 = vld [vmem:[%s22371_s5 + $0x70] sm:$0xff] }
 0x972   : > { %17074 = vmatpush3.msra.mxu0 %v20392_v9 }
 0x973   : > { %18380 = vmatprep.subr.bf16.mxu0 %v22406_v43 }
 0xa44   : > { %v17065_v28 = vpop.f32.mrb[10].mxu0 }
 0xa45   : > { %v2121_v29 = vpop.f32.mrb[11].mxu0  ;;  %v2133_v31 = vsel %vm1090_vm4, %v17065_v28, -inf }
 0xa46   : > { %2134 = vmax.xlane.f32.xlu1 %v2133_v31  ;;  %v2130_v32 = vsel %vm1090_vm4, %v2121_v29, -inf }
 0xa47   : > { %2131 = vmax.xlane.f32.xlu0 %v2130_v32 }
 0xad3   : > { %v2135_v48 = vpop.xlane.xlu1 %2134 }
 0xad4   : > { %v2137_v49 = vsub.f32 %v17065_v28, %v2135_v48  ;;  %v2132_v44 = vpop.xlane.xlu0 %2131  ;;  %v15789_v28 = vld [vmem:[%s22371_s5 + $0x78] sm:$0xff] }
 0xad5   : > { %v2136_v52 = vsub.f32 %v2121_v29, %v2132_v44  ;;  %v20403_v48 = vpack.c.bf16 %v15789_v28, %v15788_v23  ;;  %v15800_v44 = vld [vmem:[%s22375_s9 + $0x68] sm:$0xff]  ;;  %v20474_v23 = vld [vmem:[%s22374_s8 + $0x18] sm:$0xff] }
 0xad6   : > { %v2140_v58 = vmul.f32 1.442695, %v2137_v49  ;;  %v15799_v49 = vld [vmem:[%s22375_s9 + $0x60] sm:$0xff] }
 0xad7   : > { %v2138_v60 = vmul.f32 1.442695, %v2136_v52  ;;  %v20417_v52 = vpack.c.bf16 %v15800_v44, %v15799_v49 }
 0xad8   : > { %19149 = vpow2.f32 %v2140_v58  ;;  %v15801_v58 = vld [vmem:[%s22375_s9 + $0x70] sm:$0xff] }
 0xad9   : > { %19151 = vpow2.f32 %v2138_v60  ;;  %v15802_v60 = vld [vmem:[%s22375_s9 + $0x78] sm:$0xff] }
 0xae2   : > { %v19150_v61 = vpop.eup %19149 }
 0xae3   : > { %v19152_v63 = vpop.eup %19151  ;;  %v2145_v41 = vsel %vm1090_vm4, %v19150_v61, 0.0 }
 0xae4   : > { %2146 = vadd.xlane.f32.xlu1 %v2145_v41  ;;  %v2142_v6 = vsel %vm1090_vm4, %v19152_v63, 0.0 }
 0xae5   : > { %2143 = vadd.xlane.f32.xlu0 %v2142_v6 }
 0xb71   : > { %v2147_v16 = vpop.xlane.xlu1 %2146 }
 0xb72   : > { %19153 = vrcp.f32 %v2147_v16  ;;  %v2144_v17 = vpop.xlane.xlu0 %2143 }
 0xb73   : > { %19155 = vrcp.f32 %v2144_v17 }
 0xb7c   : > { %v19154_v22 = vpop.eup %19153 }
 0xb7d   : > { %v19156_v29 = vpop.eup %19155  ;;  %v2151_v32 = vmul.f32 %v19154_v22, %v19150_v61  ;;  %v20427_v61 = vpack.c.bf16 %v15802_v60, %v15801_v58 }
 0xb7e   : > { %v2149_v31 = vmul.f32 %v19156_v29, %v19152_v63  ;;  %v20458_v63 = vld [vmem:[%s22373_s7 + $0x18] sm:$0xff] }
 0xb80   : > { %17070 = vmatprep.mubr.msk.f32.mxu1 %vm1090_vm4, %v2149_v31 }
 0xb81   : > { %17071 = vmatmul.mubr.msk.f32.vlgmr.msra.gmra.mrb[18].mxu1 %vm1090_vm4, %v2151_v32 }
 0xb82   : > { %18375 = vmatpush3.bf16.msra.mxu1 %v20386_v8  ;;  %17086 = vmatprep.mubr.msk.f32.mxu1 %vm661_vm0, %v20123_v11 }
 0xb83   : > { %18377 = vmatprep.subr.bf16.mxu1 %v20403_v48 }
 0xb86   : > { %18379 = vmatpush3.bf16.msra.mxu1 %v20403_v48 }
 0xb87   : > { %18385 = vmatprep.subr.bf16.mxu1 %v20417_v52 }
 0xb89   : > { %17087 = vmatmul.mubr.msk.f32.vlgmr.msra.gmra.mrb[20].mxu1 %vm661_vm0, %v20149_v18 }
 0xb8a   : > { %18387 = vmatpush3.bf16.msra.mxu1 %v20417_v52  ;;  %17104 = vmatprep.mubr.msk.f32.mxu1 %vm661_vm0, %v20100_v2  ;;  %v20453_v2 = vld [vmem:[%s22372_s6 + $0x3] ss:$0 sm:$0xff] }
 0xb8b   : > { %18389 = vmatprep.subr.bf16.mxu1 %v20427_v61 }
 0xb8e   : > { %18391 = vmatpush3.bf16.msra.mxu1 %v20427_v61 }
 0xb8f   : > { %18397 = vmatprep.subr.bf16.mxu1 %v20038_v30 }
 0xb91   : > { %17105 = vmatmul.mubr.msk.f32.vlgmr.msra.gmra.mrb[22].mxu1 %vm661_vm0, %v20129_v13 }
 0xb92   : > { %18399 = vmatpush3.bf16.msra.mxu1 %v20038_v30 }
 0xb93   : > { %18401 = vmatprep.subr.bf16.mxu1 %v20058_v36 }
 0xb96   : > { %18403 = vmatpush3.bf16.msra.mxu1 %v20058_v36 }
 0xb97   : > { %18409 = vmatprep.subr.bf16.mxu1 %v20046_v33 }
 0xc54   : > { %v17072_v11 = vpop.f32.mrb[18].mxu1 }
 0xc55   : > { %v2224_v18 = vpop.f32.mrb[19].mxu1 }
 0xc56   : > { %17075 = vmatprep.mubr.msk.f32.mxu0 %vm1008_vm3, %v2224_v18 }
 0xc57   : > { %17076 = vmatmul.mubr.msk.f32.vlgmr.msra.gmra.mrb[6].mxu0 %vm1008_vm3, %v17072_v11 }
 0xc58   : > { %18383 = vmatpush3.bf16.xpose.msk.msra.mxu0 %vm20153_vm1, %v20160_v20  ;;  %17093 = vmatprep.mubr.msk.f32.mxu0 %vm19713_vm2, %v22404_v24  ;;  %v20467_v20 = vld [vmem:[%s22376_s10 + $0x3] ss:$0 sm:$0xff] }
 0xc5c   : > { %v17088_v13 = vpop.f32.mrb[20].mxu1 }
 0xc5d   : > { %v2397_v41 = vpop.f32.mrb[21].mxu1  ;;  %v2403_v32 = vadd.f32 %v17088_v13, %v20453_v2 }
 0xc5e   : > { %v2398_v6 = vadd.f32 %v20453_v2, %v2397_v41 }
 0xc5f   : > { %17094 = vmatmul.mubr.msk.f32.vlgmr.msra.gmra.mrb[12].mxu0 %vm661_vm0, %v20458_v63 }
 0xc60   : > { %17109 = vmatprep.mubr.msk.f32.mxu0 %vm1008_vm3, %v2398_v6 }
 0xc64   : > { %v17106_v7 = vpop.f32.mrb[22].mxu1 }
 0xc65   : > { %v2568_v55 = vadd.f32 %v17106_v7, %v20467_v20  ;;  %v2562_v16 = vpop.f32.mrb[23].mxu1 }
 0xc66   : > { %v2563_v17 = vadd.f32 %v20467_v20, %v2562_v16 }
 0xc68   : > { %v18392_v22 = vpack.c.bf16 %v2568_v55, %v2563_v17 }
 0xd32   : > { %v2479_v28 = vpop.f32.mrb[12].mxu0 }
 0xd33   : > { %v2480_v29 = vadd.f32 %v20474_v23, %v2479_v28  ;;  %v17095_v31 = vpop.f32.mrb[13].mxu0 }
 0xd35   : > { %17107 = vmatprep.subr.mxu0 %v2480_v29 }
 0xd36   : > { %17108 = vmatpush3.msra.mxu0 %v2480_v29 }
 0xd37   : > { %17110 = vmatmul.mubr.msk.f32.vlgmr.msra.gmra.mrb[14].mxu0 %vm1008_vm3, %v2403_v32  ;;  %18393 = vmatprep.subr.bf16.mxu0 %v18392_v22 }
 0xd38   : > { %18395 = vmatpush3.bf16.msra.mxu0 %v18392_v22 }
 0xe0a   : > { %v17111_v49 = vpop.f32.mrb[14].mxu0 }
 0xe0b   : > { %v2643_v44 = vpop.f32.mrb[15].mxu0  ;;  %v2655_v58 = vsel %vm1090_vm4, %v17111_v49, -inf }
 0xe0c   : > { %2656 = vmax.xlane.f32.xlu1 %v2655_v58  ;;  %v2652_v60 = vsel %vm1090_vm4, %v2643_v44, -inf  ;;  %v20488_v58 = vld [vmem:[%s22377_s11 + $0x18] sm:$0xff] }
 0xe0d   : > { %2653 = vmax.xlane.f32.xlu0 %v2652_v60  ;;  %17119 = vmatprep.subr.mxu0 %v20488_v58  ;;  %v20493_v60 = vld [vmem:[%s19994_s30 + $0x28] sm:$0xff] }
 0xe0e   : > { %22467 = vst [vmem:[#allocation25_spill] sm:$0xff] %v20493_v60 }
 0xe99   : > { %v2657_v11 = vpop.xlane.xlu1 %2656 }
 0xe9a   : > { %v2659_v18 = vsub.f32 %v17111_v49, %v2657_v11  ;;  %v2654_v41 = vpop.xlane.xlu0 %2653  ;;  %v20496_v11 = vld [vmem:[%s19994_s30 + $0x20] sm:$0xff] }
 0xe9b   : > { %v2658_v6 = vsub.f32 %v2643_v44, %v2654_v41  ;;  %22468 = vst [vmem:[#allocation26_spill] sm:$0xff] %v20496_v11  ;;  %v2884_v41 = vsel %vm661_vm0, %v20496_v11, 0.0 }
 0xe9c   : > { %v2662_v7 = vmul.f32 1.442695, %v2659_v18  ;;  %v2887_v18 = vsel %vm661_vm0, %v20493_v60, 0.0 }
 0xe9d   : > { %v2660_v13 = vmul.f32 1.442695, %v2658_v6 }
 0xe9e   : > { %19157 = vpow2.f32 %v2662_v7 }
 0xe9f   : > { %19159 = vpow2.f32 %v2660_v13 }
 0xea8   : > { %v19158_v55 = vpop.eup %19157 }
 0xea9   : > { %v19160_v16 = vpop.eup %19159  ;;  %v2667_v17 = vsel %vm1090_vm4, %v19158_v55, 0.0 }
 0xeaa   : > { %2668 = vadd.xlane.f32.xlu1 %v2667_v17  ;;  %v2664_v22 = vsel %vm1090_vm4, %v19160_v16, 0.0 }
 0xeab   : > { %2665 = vadd.xlane.f32.xlu0 %v2664_v22  ;;  %v20507_v22 = vld [vmem:[#allocation2] ss:$0 sm:$0xff] }
 0xeae   : > { %2888 = vadd.xlane.f32.xlu1 %v2887_v18 }
 0xeaf   : > { %2885 = vadd.xlane.f32.xlu0 %v2884_v41 }
 0xf37   : > { %v2669_v28 = vpop.xlane.xlu1 %2668 }
 0xf38   : > { %19161 = vrcp.f32 %v2669_v28  ;;  %v2666_v29 = vpop.xlane.xlu0 %2665 }
 0xf39   : > { %19163 = vrcp.f32 %v2666_v29 }
 0xf3b   : > { %v2889_v13 = vpop.xlane.xlu1 %2888 }
 0xf42   : > { %v19162_v31 = vpop.eup %19161 }
 0xf43   : > { %v19164_v32 = vpop.eup %19163  ;;  %v2673_v44 = vmul.f32 %v19162_v31, %v19158_v55  ;;  %v2886_v55 = vpop.xlane.xlu0 %2885 }
 0xf44   : > { %v2671_v49 = vmul.f32 %v19164_v32, %v19160_v16  ;;  %v2891_v16 = vmul.f32 0.03125, %v2889_v13  ;;  %v2890_v17 = vmul.f32 0.03125, %v2886_v55 }
 0xf46   : > { %17116 = vmatprep.mubr.msk.f32.mxu0 %vm1090_vm4, %v2671_v49  ;;  %v2893_v28 = vsub.f32 %v20493_v60, %v2891_v16  ;;  %v2892_v31 = vsub.f32 %v20496_v11, %v2890_v17 }
 0xf47   : > { %17117 = vmatmul.mubr.msk.f32.vlgmr.msra.gmra.mrb[16].mxu0 %vm1090_vm4, %v2673_v44 }
 0xf48   : > { %17120 = vmatpush3.msra.mxu0 %v20488_v58  ;;  %v2895_v41 = vmul.f32 %v2893_v28, %v2893_v28 }
 0xf49   : > { %18404 = vmatprep.subr.bf16.mxu0 %v22406_v43 }
 0xf4a   : > { %v2899_v16 = vsel %vm661_vm0, %v2895_v41, 0.0 }
0x101a   : > { %v17118_v6 = vpop.f32.mrb[16].mxu0 }
0x101b   : > { %v2746_v7 = vpop.f32.mrb[17].mxu0 }
0x101c   : > { %17121 = vmatprep.mubr.msk.f32.mxu0 %vm1008_vm3, %v2746_v7  ;;  %v2894_v7 = vmul.f32 %v2892_v31, %v2892_v31 }
0x101d   : > { %17122 = vmatmul.mubr.msk.f32.vlgmr.msra.gmra.mrb[6].mxu0 %vm1008_vm3, %v17118_v6 }
0x101e   : > { %17139 = vmatprep.mubr.msk.f32.mxu0 %vm19713_vm2, %v22404_v24  ;;  %v2896_v17 = vsel %vm661_vm0, %v2894_v7, 0.0 }
0x10f0   : > { %v17123_v29 = vpop.f32.mrb[6].mxu0 }
0x10f1   : > { %v2848_v32 = vadd.f32 %v17123_v29, %v20507_v22  ;;  %v2829_v49 = vpop.f32.mrb[7].mxu0 }
0x10f2   : > { %v2847_v44 = vadd.f32 %v20507_v22, %v2829_v49 }
0x10f3   : > { %v2850_v18 = vadd.f32 %v20000_v1, %v2848_v32 }
0x10f4   : > { %v2849_v6 = vadd.f32 %v19997_v0, %v2847_v44 }
0x10f5   : > { %v2857_v13 = vsel %vm661_vm0, %v2850_v18, 0.0 }
0x10f6   : > { %2858 = vadd.xlane.f32.xlu1 %v2857_v13  ;;  %v2854_v55 = vsel %vm661_vm0, %v2849_v6, 0.0 }
0x10f7   : > { %2855 = vadd.xlane.f32.xlu0 %v2854_v55 }
0x10fa   : > { %2900 = vadd.xlane.f32.xlu1 %v2899_v16 }
0x10fb   : > { %2897 = vadd.xlane.f32.xlu0 %v2896_v17 }
0x1183   : > { %v2859_v29 = vpop.xlane.xlu1 %2858 }
0x1184   : > { %v2861_v49 = vmul.f32 0.03125, %v2859_v29  ;;  %v2856_v24 = vpop.xlane.xlu0 %2855 }
0x1185   : > { %v2860_v1 = vmul.f32 0.03125, %v2856_v24 }
0x1186   : > { %v2863_v32 = vsub.f32 %v2850_v18, %v2861_v49 }
0x1187   : > { %v2862_v43 = vsub.f32 %v2849_v6, %v2860_v1  ;;  %v2901_v0 = vpop.xlane.xlu1 %2900 }
0x1188   : > { %v2903_v44 = vmul.f32 0.03125, %v2901_v0  ;;  %v2898_v12 = vpop.xlane.xlu0 %2897  ;;  %v2865_v3 = vmul.f32 %v2863_v32, %v2863_v32 }
0x1189   : > { %v2902_v13 = vmul.f32 0.03125, %v2898_v12  ;;  %v2864_v11 = vmul.f32 %v2862_v43, %v2862_v43 }
0x118a   : > { %v2905_v60 = vadd.f32 1e-06, %v2903_v44  ;;  %v2869_v55 = vsel %vm661_vm0, %v2865_v3, 0.0 }
0x118b   : > { %v2904_v41 = vadd.f32 1e-06, %v2902_v13  ;;  %2870 = vadd.xlane.f32.xlu1 %v2869_v55  ;;  %v2866_v7 = vsel %vm661_vm0, %v2864_v11, 0.0 }
0x118c   : > { %19165 = vrsqrt.f32 %v2905_v60  ;;  %2867 = vadd.xlane.f32.xlu0 %v2866_v7 }
0x118d   : > { %19167 = vrsqrt.f32 %v2904_v41 }
0x1196   : > { %v19166_v16 = vpop.eup %19165 }
0x1197   : > { %v19168_v24 = vpop.eup %19167  ;;  %v2909_v18 = vmul.f32 %v19166_v16, %v2893_v28 }
0x1198   : > { %v2908_v6 = vmul.f32 %v19168_v24, %v2892_v31 }
0x1199   : > { %v2911_v17 = vmul.f32 %v20085_v57, %v2909_v18 }
0x119a   : > { %v2910_v29 = vmul.f32 %v20085_v57, %v2908_v6 }
0x119b   : > { %v20524_v12 = vadd.f32 %v20091_v59, %v2911_v17 }
0x119c   : > { %v20527_v3 = vadd.f32 %v20091_v59, %v2910_v29 }
0x119e   : > { %v20531_v11 = vpack.c.bf16 %v20524_v12, %v20527_v3 }
0x11a0   : > { %18407 = vmatpush3.bf16.xpose.msk.msra.mxu0 %vm20153_vm1, %v20531_v11 }
0x11a7   : > { %17140 = vmatmul.mubr.msk.f32.vlgmr.msra.gmra.mrb[18].mxu0 %vm661_vm0, %v20186_v26 }
0x1218   : > { %v2871_v60 = vpop.xlane.xlu1 %2870 }
0x1219   : > { %v2873_v28 = vmul.f32 0.03125, %v2871_v60  ;;  %v2868_v57 = vpop.xlane.xlu0 %2867  ;;  %v22471_v60 = vmov 0.0|0.0  }
0x121a   : > { %v2872_v31 = vmul.f32 0.03125, %v2868_v57 }
0x121b   : > { %v2875_v49 = vadd.f32 1e-06, %v2873_v28 }
0x121c   : > { %v2874_v1 = vadd.f32 1e-06, %v2872_v31 }
0x121d   : > { %19169 = vrsqrt.f32 %v2875_v49 }
0x121e   : > { %19171 = vrsqrt.f32 %v2874_v1 }
0x1227   : > { %v19170_v59 = vpop.eup %19169 }
0x1228   : > { %v19172_v0 = vpop.eup %19171  ;;  %v20538_v44 = vmul.f32 %v19170_v59, %v2863_v32 }
0x1229   : > { %v20540_v13 = vmul.f32 %v19172_v0, %v2862_v43 }
0x122a   : > { %22469 = vst [vmem:[#allocation27_spill] sm:$0xff] %v20538_v44  ;;  %v2881_v55 = vmul.f32 %v20097_v62, %v20538_v44 }
0x122b   : > { %22470 = vst [vmem:[#allocation28_spill] sm:$0xff] %v20540_v13  ;;  %v2880_v26 = vmul.f32 %v20097_v62, %v20540_v13 }
0x122c   : > { %v20550_v7 = vadd.f32 %v20109_v5, %v2881_v55 }
0x122d   : > { %v20547_v41 = vadd.f32 %v20109_v5, %v2880_v26 }
0x122f   : > { %17132 = vmatprep.mubr.msk.f32.mxu1 %vm661_vm0, %v20547_v41 }
0x1230   : > { %17133 = vmatmul.mubr.msk.f32.vlgmr.msra.gmra.mrb[24].mxu1 %vm661_vm0, %v20550_v7 }
0x1231   : > { %18411 = vmatpush3.bf16.msra.mxu1 %v20046_v33  ;;  %17150 = vmatprep.mubr.msk.f32.mxu1 %vm661_vm0, %v20527_v3 }
0x1232   : > { %18413 = vmatprep.subr.bf16.mxu1 %v20066_v39 }
0x1235   : > { %18415 = vmatpush3.bf16.msra.mxu1 %v20066_v39 }
0x1238   : > { %17151 = vmatmul.mubr.msk.f32.vlgmr.msra.gmra.mrb[26].mxu1 %vm661_vm0, %v20524_v12 }
0x127a   : > { %v3067_v43 = vpop.f32.mrb[18].mxu0 }
0x127b   : > { %v3068_v62 = vadd.f32 %v3067_v43, %v20216_v45  ;;  %v17141_v5 = vpop.f32.mrb[19].mxu0 }
0x127d   : > { %17153 = vmatprep.subr.mxu0 %v3068_v62 }
0x127e   : > { %17154 = vmatpush3.msra.mxu0 %v3068_v62 }
0x127f   : > { %18421 = vmatprep.subr.bf16.mxu0 %v20078_v42 }
0x1303   : > { %v17134_v32 = vpop.f32.mrb[24].mxu1 }
0x1304   : > { %v2986_v16 = vpop.f32.mrb[25].mxu1  ;;  %v2992_v18 = vadd.f32 %v17134_v32, %v20207_v34 }
0x1305   : > { %v2987_v24 = vadd.f32 %v20207_v34, %v2986_v16 }
0x1307   : > { %17155 = vmatprep.mubr.msk.f32.mxu0 %vm1008_vm3, %v2987_v24 }
0x1308   : > { %17156 = vmatmul.mubr.msk.f32.vlgmr.msra.gmra.mrb[20].mxu0 %vm1008_vm3, %v2992_v18 }
0x1309   : > { %18423 = vmatpush3.bf16.msra.mxu0 %v20078_v42  ;;  %17173 = vmatprep.mubr.msk.f32.mxu0 %vm661_vm0, %v20547_v41 }
0x130a   : > { %18425 = vmatprep.subr.bf16.mxu0 %v20131_v14 }
0x130b   : > { %v17152_v45 = vpop.f32.mrb[26].mxu1 }
0x130c   : > { %v3143_v6 = vadd.f32 %v17152_v45, %v20200_v27  ;;  %v3137_v17 = vpop.f32.mrb[27].mxu1 }
0x130d   : > { %v3138_v29 = vadd.f32 %v20200_v27, %v3137_v17  ;;  %18427 = vmatpush3.bf16.msra.mxu0 %v20131_v14 }
0x130e   : > { %18433 = vmatprep.subr.bf16.mxu0 %v20162_v21 }
0x130f   : > { %v18416_v34 = vpack.c.bf16 %v3143_v6, %v3138_v29 }
0x1310   : > { %17174 = vmatmul.mubr.msk.f32.vlgmr.msra.gmra.mrb[22].mxu0 %vm661_vm0, %v20550_v7 }
0x1311   : > { %18417 = vmatprep.subr.bf16.mxu1 %v18416_v34  ;;  %18435 = vmatpush3.bf16.msra.mxu0 %v20162_v21 }
0x1312   : > { %17191 = vmatprep.mubr.msk.f32.mxu0 %vm661_vm0, %v20527_v3  ;;  %18419 = vmatpush3.bf16.msra.mxu1 %v18416_v34 }
0x1313   : > { %18437 = vmatprep.subr.bf16.mxu0 %v20179_v25  ;;  %18428 = vmatprep.subr.bf16.mxu1 %v22471_v60 }
0x1315   : > { %18439 = vmatpush3.bf16.msra.mxu0 %v20179_v25 }
0x1316   : > { %17206 = vmatprep.subr.mxu0 %v20324_v54 }
0x1318   : > { %17192 = vmatmul.mubr.msk.f32.vlgmr.msra.gmra.mrb[24].mxu0 %vm661_vm0, %v20524_v12 }
0x1319   : > { %17207 = vmatpush3.msra.mxu0 %v20324_v54 }
0x131a   : > { %17211 = vmatprep.subr.mxu0 %v20331_v56 }
0x13db   : > { %v17157_v27 = vpop.f32.mrb[20].mxu0 }
0x13dc   : > { %v3218_v28 = vpop.f32.mrb[21].mxu0  ;;  %v3230_v57 = vsel %vm1090_vm4, %v17157_v27, -inf }
0x13dd   : > { %3231 = vmax.xlane.f32.xlu1 %v3230_v57  ;;  %v3227_v31 = vsel %vm1090_vm4, %v3218_v28, -inf }
0x13de   : > { %3228 = vmax.xlane.f32.xlu0 %v3227_v31  ;;  %v22472_v31 = vmov 0.0  }
0x13e3   : > { %v17175_v49 = vpop.f32.mrb[22].mxu0 }
0x13e4   : > { %v3396_v1 = vpop.f32.mrb[23].mxu0 }
0x13eb   : > { %v17193_v59 = vpop.f32.mrb[24].mxu0 }
0x13ec   : > { %v3547_v0 = vadd.f32 %v17193_v59, %v20223_v50  ;;  %v3541_v55 = vpop.f32.mrb[25].mxu0  ;;  %v3397_v59 = vadd.f32 %v20243_v35, %v3396_v1 }
0x13ed   : > { %v3542_v26 = vadd.f32 %v20223_v50, %v3541_v55 }
0x13ef   : > { %v18440_v43 = vpack.c.bf16 %v3547_v0, %v3542_v26 }
0x146a   : > { %v3232_v54 = vpop.xlane.xlu1 %3231 }
0x146b   : > { %v3234_v62 = vsub.f32 %v17157_v27, %v3232_v54  ;;  %v3229_v5 = vpop.xlane.xlu0 %3228 }
0x146c   : > { %v3233_v32 = vsub.f32 %v3218_v28, %v3229_v5  ;;  %v3402_v5 = vadd.f32 %v17175_v49, %v20243_v35 }
0x146d   : > { %v3237_v16 = vmul.f32 1.442695, %v3234_v62 }
0x146e   : > { %v3235_v24 = vmul.f32 1.442695, %v3233_v32 }
0x146f   : > { %19173 = vpow2.f32 %v3237_v16 }
0x1470   : > { %19175 = vpow2.f32 %v3235_v24 }
0x1479   : > { %v19174_v18 = vpop.eup %19173 }
0x147a   : > { %v19176_v45 = vpop.eup %19175  ;;  %v3242_v6 = vsel %vm1090_vm4, %v19174_v18, 0.0 }
0x147b   : > { %3243 = vadd.xlane.f32.xlu1 %v3242_v6  ;;  %v3239_v17 = vsel %vm1090_vm4, %v19176_v45, 0.0 }
0x147c   : > { %3240 = vadd.xlane.f32.xlu0 %v3239_v17 }
0x1508   : > { %v3244_v29 = vpop.xlane.xlu1 %3243 }
0x1509   : > { %19177 = vrcp.f32 %v3244_v29  ;;  %v3241_v50 = vpop.xlane.xlu0 %3240 }
0x150a   : > { %19179 = vrcp.f32 %v3241_v50 }
0x1513   : > { %v19178_v34 = vpop.eup %19177 }
0x1514   : > { %v19180_v27 = vpop.eup %19179  ;;  %v3248_v28 = vmul.f32 %v19178_v34, %v19174_v18 }
0x1515   : > { %v3246_v57 = vmul.f32 %v19180_v27, %v19176_v45 }
0x1517   : > { %17162 = vmatprep.mubr.msk.f32.mxu1 %vm1090_vm4, %v3246_v57 }
0x1518   : > { %17163 = vmatmul.mubr.msk.f32.vlgmr.msra.gmra.mrb[28].mxu1 %vm1090_vm4, %v3248_v28 }
0x1519   : > { %18431 = vmatpush3.bf16.xpose.msk.msra.mxu1 %vm20153_vm1, %v20531_v11  ;;  %17180 = vmatprep.mubr.msk.f32.mxu1 %vm19713_vm2, %v22472_v31 }
0x1520   : > { %17181 = vmatmul.mubr.msk.f32.vlgmr.msra.gmra.mrb[30].mxu1 %vm661_vm0, %v20248_v37 }
0x1521   : > { %17196 = vmatprep.mubr.msk.f32.mxu1 %vm1008_vm3, %v3397_v59 }
0x15eb   : > { %v17164_v0 = vpop.f32.mrb[28].mxu1 }
0x15ec   : > { %v3321_v55 = vpop.f32.mrb[29].mxu1 }
0x15f3   : > { %v3471_v26 = vpop.f32.mrb[30].mxu1 }
0x15f4   : > { %v3472_v54 = vadd.f32 %v20261_v47, %v3471_v26  ;;  %v17182_v62 = vpop.f32.mrb[31].mxu1 }
0x15f6   : > { %17194 = vmatprep.subr.mxu1 %v3472_v54 }
0x15f7   : > { %17195 = vmatpush3.msra.mxu1 %v3472_v54 }
0x15f8   : > { %17197 = vmatmul.mubr.msk.f32.vlgmr.msra.gmra.mrb[32].mxu1 %vm1008_vm3, %v3402_v5  ;;  %18441 = vmatprep.subr.bf16.mxu1 %v18440_v43 }
0x15f9   : > { %18443 = vmatpush3.bf16.msra.mxu1 %v18440_v43 }
0x15fa   : > { %18445 = vmatprep.subr.bf16.mxu1 %v20277_v15 }
0x16cb   : > { %v17198_v1 = vpop.f32.mrb[32].mxu1 }
0x16cc   : > { %v3622_v37 = vpop.f32.mrb[33].mxu1  ;;  %v3634_v32 = vsel %vm1090_vm4, %v17198_v1, -inf }
0x16cd   : > { %3635 = vmax.xlane.f32.xlu1 %v3634_v32  ;;  %v3631_v16 = vsel %vm1090_vm4, %v3622_v37, -inf }
0x16ce   : > { %3632 = vmax.xlane.f32.xlu0 %v3631_v16 }
0x175a   : > { %v3636_v47 = vpop.xlane.xlu1 %3635 }
0x175b   : > { %v3638_v24 = vsub.f32 %v17198_v1, %v3636_v47  ;;  %v3633_v18 = vpop.xlane.xlu0 %3632 }
0x175c   : > { %v3637_v35 = vsub.f32 %v3622_v37, %v3633_v18 }
0x175d   : > { %v3641_v49 = vmul.f32 1.442695, %v3638_v24 }
0x175e   : > { %v3639_v45 = vmul.f32 1.442695, %v3637_v35 }
0x175f   : > { %19181 = vpow2.f32 %v3641_v49 }
0x1760   : > { %19183 = vpow2.f32 %v3639_v45 }
0x1769   : > { %v19182_v6 = vpop.eup %19181 }
0x176a   : > { %v19184_v43 = vpop.eup %19183  ;;  %v3646_v17 = vsel %vm1090_vm4, %v19182_v6, 0.0 }
0x176b   : > { %3647 = vadd.xlane.f32.xlu1 %v3646_v17  ;;  %v3643_v29 = vsel %vm1090_vm4, %v19184_v43, 0.0 }
0x176c   : > { %3644 = vadd.xlane.f32.xlu0 %v3643_v29 }
0x17f8   : > { %v3648_v50 = vpop.xlane.xlu1 %3647 }
0x17f9   : > { %19185 = vrcp.f32 %v3648_v50  ;;  %v3645_v34 = vpop.xlane.xlu0 %3644 }
0x17fa   : > { %19187 = vrcp.f32 %v3645_v34 }
0x1803   : > { %v19186_v27 = vpop.eup %19185 }
0x1804   : > { %v19188_v57 = vpop.eup %19187  ;;  %v3652_v59 = vmul.f32 %v19186_v27, %v19182_v6 }
0x1805   : > { %v3650_v28 = vmul.f32 %v19188_v57, %v19184_v43 }
0x1807   : > { %17203 = vmatprep.mubr.msk.f32.mxu1 %vm1090_vm4, %v3650_v28 }
0x1808   : > { %17204 = vmatmul.mubr.msk.f32.vlgmr.msra.gmra.mrb[34].mxu1 %vm1090_vm4, %v3652_v59 }
0x1809   : > { %18447 = vmatpush3.bf16.msra.mxu1 %v20277_v15  ;;  %17224 = vmatprep.mubr.msk.f32.mxu1 %vm661_vm0, %v20547_v41 }
0x180a   : > { %18449 = vmatprep.subr.bf16.mxu1 %v20286_v38 }
0x180d   : > { %18451 = vmatpush3.bf16.msra.mxu1 %v20286_v38 }
0x180e   : > { %18457 = vmatprep.subr.bf16.mxu1 %v20300_v51 }
0x1810   : > { %17225 = vmatmul.mubr.msk.f32.vlgmr.msra.gmra.mrb[36].mxu1 %vm661_vm0, %v20550_v7 }
0x1811   : > { %18459 = vmatpush3.bf16.msra.mxu1 %v20300_v51  ;;  %17242 = vmatprep.mubr.msk.f32.mxu1 %vm661_vm0, %v20527_v3 }
0x1812   : > { %18461 = vmatprep.subr.bf16.mxu1 %v20310_v53 }
0x1815   : > { %18463 = vmatpush3.bf16.msra.mxu1 %v20310_v53 }
0x1818   : > { %17243 = vmatmul.mubr.msk.f32.vlgmr.msra.gmra.mrb[38].mxu1 %vm661_vm0, %v20524_v12 }
0x18db   : > { %v17205_v26 = vpop.f32.mrb[34].mxu1 }
0x18dc   : > { %v3725_v54 = vpop.f32.mrb[35].mxu1 }
0x18dd   : > { %17208 = vmatprep.mubr.msk.f32.mxu0 %vm1008_vm3, %v3725_v54 }
0x18de   : > { %17209 = vmatmul.mubr.msk.f32.vlgmr.msra.gmra.mrb[26].mxu0 %vm1008_vm3, %v17205_v26 }
0x18df   : > { %17212 = vmatpush3.msra.mxu0 %v20331_v56  ;;  %17213 = vmatprep.mubr.msk.f32.mxu0 %vm1008_vm3, %v3321_v55 }
0x18e0   : > { %18452 = vmatprep.subr.bf16.mxu0 %v22471_v60 }
0x18e3   : > { %v17226_v62 = vpop.f32.mrb[36].mxu1 }
0x18e4   : > { %v3962_v5 = vpop.f32.mrb[37].mxu1  ;;  %v3968_v18 = vadd.f32 %v17226_v62, %v20355_v46 }
0x18e5   : > { %v3963_v56 = vadd.f32 %v20355_v46, %v3962_v5 }
0x18e6   : > { %17214 = vmatmul.mubr.msk.f32.vlgmr.msra.gmra.mrb[26].mxu0 %vm1008_vm3, %v17164_v0 }
0x18e7   : > { %18455 = vmatpush3.bf16.xpose.msk.msra.mxu0 %vm20153_vm1, %v20531_v11  ;;  %17231 = vmatprep.mubr.msk.f32.mxu0 %vm19713_vm2, %v22472_v31 }
0x18eb   : > { %v17244_v1 = vpop.f32.mrb[38].mxu1 }
0x18ec   : > { %v4113_v37 = vadd.f32 %v17244_v1, %v20350_v4  ;;  %v4107_v32 = vpop.f32.mrb[39].mxu1 }
0x18ed   : > { %v4108_v55 = vadd.f32 %v20350_v4, %v4107_v32 }
0x18ee   : > { %17232 = vmatmul.mubr.msk.f32.vlgmr.msra.gmra.mrb[28].mxu0 %vm661_vm0, %v20360_v40 }
0x18ef   : > { %v18464_v16 = vpack.c.bf16 %v4113_v37, %v4108_v55  ;;  %17247 = vmatprep.mubr.msk.f32.mxu0 %vm1008_vm3, %v3963_v56 }
0x18f1   : > { %18465 = vmatprep.subr.bf16.mxu1 %v18464_v16 }
0x18f2   : > { %18467 = vmatpush3.bf16.msra.mxu1 %v18464_v16 }
0x18f3   : > { %18469 = vmatprep.subr.bf16.mxu1 %v20386_v8 }
0x19c1   : > { %v4037_v0 = vpop.f32.mrb[28].mxu0 }
0x19c2   : > { %v4038_v47 = vadd.f32 %v20371_v10, %v4037_v0  ;;  %v17233_v24 = vpop.f32.mrb[29].mxu0 }
0x19c4   : > { %17245 = vmatprep.subr.mxu0 %v4038_v47 }
0x19c5   : > { %17246 = vmatpush3.msra.mxu0 %v4038_v47 }
0x19c6   : > { %17248 = vmatmul.mubr.msk.f32.vlgmr.msra.gmra.mrb[30].mxu0 %vm1008_vm3, %v3968_v18  ;;  %17257 = vmatprep.subr.mxu0 %v20392_v9 }
0x19c7   : > { %17258 = vmatpush3.msra.mxu0 %v20392_v9 }
0x19c8   : > { %18476 = vmatprep.subr.bf16.mxu0 %v22471_v60 }
0x1a99   : > { %v17249_v4 = vpop.f32.mrb[30].mxu0 }
0x1a9a   : > { %v4188_v40 = vpop.f32.mrb[31].mxu0  ;;  %v4200_v35 = vsel %vm1090_vm4, %v17249_v4, -inf }
0x1a9b   : > { %4201 = vmax.xlane.f32.xlu1 %v4200_v35  ;;  %v4197_v10 = vsel %vm1090_vm4, %v4188_v40, -inf }
0x1a9c   : > { %4198 = vmax.xlane.f32.xlu0 %v4197_v10 }
0x1b28   : > { %v4202_v49 = vpop.xlane.xlu1 %4201 }
0x1b29   : > { %v4204_v46 = vsub.f32 %v17249_v4, %v4202_v49  ;;  %v4199_v45 = vpop.xlane.xlu0 %4198 }
0x1b2a   : > { %v4203_v6 = vsub.f32 %v4188_v40, %v4199_v45 }
0x1b2b   : > { %v4207_v43 = vmul.f32 1.442695, %v4204_v46 }
0x1b2c   : > { %v4205_v17 = vmul.f32 1.442695, %v4203_v6 }
0x1b2d   : > { %19189 = vpow2.f32 %v4207_v43 }
0x1b2e   : > { %19191 = vpow2.f32 %v4205_v17 }
0x1b37   : > { %v19190_v29 = vpop.eup %19189 }
0x1b38   : > { %v19192_v9 = vpop.eup %19191  ;;  %v4212_v50 = vsel %vm1090_vm4, %v19190_v29, 0.0 }
0x1b39   : > { %4213 = vadd.xlane.f32.xlu1 %v4212_v50  ;;  %v4209_v34 = vsel %vm1090_vm4, %v19192_v9, 0.0 }
0x1b3a   : > { %4210 = vadd.xlane.f32.xlu0 %v4209_v34  ;;  %v20708_v34 = vld [vmem:[%s19994_s30 + $0x38] sm:$0xff] }
0x1bc6   : > { %v4214_v27 = vpop.xlane.xlu1 %4213 }
0x1bc7   : > { %19193 = vrcp.f32 %v4214_v27  ;;  %v4211_v57 = vpop.xlane.xlu0 %4210  ;;  %v20711_v27 = vld [vmem:[%s19994_s30 + $0x30] sm:$0xff] }
0x1bc8   : > { %19195 = vrcp.f32 %v4211_v57  ;;  %v4910_v57 = vsel %vm661_vm0, %v20708_v34, 0.0 }
0x1bd1   : > { %v19194_v28 = vpop.eup %19193 }
0x1bd2   : > { %v19196_v59 = vpop.eup %19195  ;;  %v4218_v54 = vmul.f32 %v19194_v28, %v19190_v29  ;;  %v4907_v28 = vsel %vm661_vm0, %v20711_v27, 0.0 }
0x1bd3   : > { %v4216_v26 = vmul.f32 %v19196_v59, %v19192_v9 }
0x1bd5   : > { %17254 = vmatprep.mubr.msk.f32.mxu1 %vm1090_vm4, %v4216_v26 }
0x1bd6   : > { %17255 = vmatmul.mubr.msk.f32.vlgmr.msra.gmra.mrb[40].mxu1 %vm1090_vm4, %v4218_v54 }
0x1bd7   : > { %18471 = vmatpush3.bf16.msra.mxu1 %v20386_v8  ;;  %17270 = vmatprep.mubr.msk.f32.mxu1 %vm661_vm0, %v20547_v41 }
0x1bd8   : > { %18473 = vmatprep.subr.bf16.mxu1 %v20403_v48 }
0x1bdb   : > { %18475 = vmatpush3.bf16.msra.mxu1 %v20403_v48 }
0x1bdc   : > { %18481 = vmatprep.subr.bf16.mxu1 %v20417_v52 }
0x1bde   : > { %17271 = vmatmul.mubr.msk.f32.vlgmr.msra.gmra.mrb[42].mxu1 %vm661_vm0, %v20550_v7 }
0x1bdf   : > { %18483 = vmatpush3.bf16.msra.mxu1 %v20417_v52  ;;  %17288 = vmatprep.mubr.msk.f32.mxu1 %vm661_vm0, %v20527_v3 }
0x1be0   : > { %18485 = vmatprep.subr.bf16.mxu1 %v20427_v61 }
0x1be3   : > { %18487 = vmatpush3.bf16.msra.mxu1 %v20427_v61 }
0x1be4   : > { %18493 = vmatprep.subr.bf16.mxu1 %v20038_v30 }
0x1be6   : > { %17289 = vmatmul.mubr.msk.f32.vlgmr.msra.gmra.mrb[44].mxu1 %vm661_vm0, %v20524_v12 }
0x1be7   : > { %18495 = vmatpush3.bf16.msra.mxu1 %v20038_v30 }
0x1be8   : > { %18497 = vmatprep.subr.bf16.mxu1 %v20058_v36 }
0x1beb   : > { %18499 = vmatpush3.bf16.msra.mxu1 %v20058_v36 }
0x1bec   : > { %18505 = vmatprep.subr.bf16.mxu1 %v20046_v33 }
0x1ca9   : > { %v17256_v41 = vpop.f32.mrb[40].mxu1 }
0x1caa   : > { %v4291_v7 = vpop.f32.mrb[41].mxu1 }
0x1cab   : > { %17259 = vmatprep.mubr.msk.f32.mxu0 %vm1008_vm3, %v4291_v7 }
0x1cac   : > { %17260 = vmatmul.mubr.msk.f32.vlgmr.msra.gmra.mrb[26].mxu0 %vm1008_vm3, %v17256_v41 }
0x1cad   : > { %18479 = vmatpush3.bf16.xpose.msk.msra.mxu0 %vm20153_vm1, %v20531_v11  ;;  %17277 = vmatprep.mubr.msk.f32.mxu0 %vm19713_vm2, %v22472_v31 }
0x1cb1   : > { %v17272_v12 = vpop.f32.mrb[42].mxu1 }
0x1cb2   : > { %v4449_v3 = vpop.f32.mrb[43].mxu1  ;;  %v4455_v0 = vadd.f32 %v17272_v12, %v20453_v2 }
0x1cb3   : > { %v4450_v62 = vadd.f32 %v20453_v2, %v4449_v3 }
0x1cb4   : > { %17278 = vmatmul.mubr.msk.f32.vlgmr.msra.gmra.mrb[32].mxu0 %vm661_vm0, %v20458_v63 }
0x1cb5   : > { %17293 = vmatprep.mubr.msk.f32.mxu0 %vm1008_vm3, %v4450_v62 }
0x1cb9   : > { %v17290_v5 = vpop.f32.mrb[44].mxu1 }
0x1cba   : > { %v4600_v1 = vadd.f32 %v17290_v5, %v20467_v20  ;;  %v4594_v37 = vpop.f32.mrb[45].mxu1 }
0x1cbb   : > { %v4595_v32 = vadd.f32 %v20467_v20, %v4594_v37 }
0x1cbd   : > { %v18488_v56 = vpack.c.bf16 %v4600_v1, %v4595_v32  ;;  %v22473_v32 = vld [vmem:[#allocation25_spill] sm:$0xff] }
0x1d87   : > { %v4524_v11 = vpop.f32.mrb[32].mxu0 }
0x1d88   : > { %v4525_v55 = vadd.f32 %v20474_v23, %v4524_v11  ;;  %v17279_v16 = vpop.f32.mrb[33].mxu0 }
0x1d8a   : > { %17291 = vmatprep.subr.mxu0 %v4525_v55 }
0x1d8b   : > { %17292 = vmatpush3.msra.mxu0 %v4525_v55  ;;  %v22474_v55 = vld [vmem:[#allocation26_spill] sm:$0xff] }
0x1d8c   : > { %17294 = vmatmul.mubr.msk.f32.vlgmr.msra.gmra.mrb[34].mxu0 %vm1008_vm3, %v4455_v0  ;;  %18489 = vmatprep.subr.bf16.mxu0 %v18488_v56 }
0x1d8d   : > { %18491 = vmatpush3.bf16.msra.mxu0 %v18488_v56 }
0x1d8e   : > { %17303 = vmatprep.subr.mxu0 %v20488_v58 }
0x1e5f   : > { %v17295_v63 = vpop.f32.mrb[34].mxu0 }
0x1e60   : > { %v4675_v47 = vpop.f32.mrb[35].mxu0  ;;  %v4687_v24 = vsel %vm1090_vm4, %v17295_v63, -inf }
0x1e61   : > { %4688 = vmax.xlane.f32.xlu1 %v4687_v24  ;;  %v4684_v20 = vsel %vm1090_vm4, %v4675_v47, -inf }
0x1e62   : > { %4685 = vmax.xlane.f32.xlu0 %v4684_v20 }
0x1eee   : > { %v4689_v23 = vpop.xlane.xlu1 %4688 }
0x1eef   : > { %v4691_v18 = vsub.f32 %v17295_v63, %v4689_v23  ;;  %v4686_v4 = vpop.xlane.xlu0 %4685 }
0x1ef0   : > { %v4690_v2 = vsub.f32 %v4675_v47, %v4686_v4 }
0x1ef1   : > { %v4694_v40 = vmul.f32 1.442695, %v4691_v18 }
0x1ef2   : > { %v4692_v35 = vmul.f32 1.442695, %v4690_v2 }
0x1ef3   : > { %19197 = vpow2.f32 %v4694_v40 }
0x1ef4   : > { %19199 = vpow2.f32 %v4692_v35 }
0x1efd   : > { %v19198_v10 = vpop.eup %19197 }
0x1efe   : > { %v19200_v49 = vpop.eup %19199  ;;  %v4699_v46 = vsel %vm1090_vm4, %v19198_v10, 0.0 }
0x1eff   : > { %4700 = vadd.xlane.f32.xlu1 %v4699_v46  ;;  %v4696_v45 = vsel %vm1090_vm4, %v19200_v49, 0.0 }
0x1f00   : > { %4697 = vadd.xlane.f32.xlu0 %v4696_v45 }
0x1f03   : > { %4911 = vadd.xlane.f32.xlu1 %v4910_v57 }
0x1f04   : > { %4908 = vadd.xlane.f32.xlu0 %v4907_v28 }
0x1f8c   : > { %v4701_v6 = vpop.xlane.xlu1 %4700 }
0x1f8d   : > { %19201 = vrcp.f32 %v4701_v6  ;;  %v4698_v43 = vpop.xlane.xlu0 %4697 }
0x1f8e   : > { %19203 = vrcp.f32 %v4698_v43 }
0x1f91   : > { %v4909_v54 = vpop.xlane.xlu0 %4908 }
0x1f92   : > { %v4913_v7 = vmul.f32 0.03125, %v4909_v54 }
0x1f94   : > { %v4915_v62 = vsub.f32 %v20711_v27, %v4913_v7 }
0x1f96   : > { %v4917_v0 = vmul.f32 %v4915_v62, %v4915_v62 }
0x1f97   : > { %v19202_v17 = vpop.eup %19201 }
0x1f98   : > { %v19204_v29 = vpop.eup %19203  ;;  %v4705_v50 = vmul.f32 %v19202_v17, %v19198_v10  ;;  %v4919_v20 = vsel %vm661_vm0, %v4917_v0, 0.0 }
0x1f99   : > { %v4703_v9 = vmul.f32 %v19204_v29, %v19200_v49 }
0x1f9b   : > { %17300 = vmatprep.mubr.msk.f32.mxu0 %vm1090_vm4, %v4703_v9 }
0x1f9c   : > { %17301 = vmatmul.mubr.msk.f32.vlgmr.msra.gmra.mrb[36].mxu0 %vm1090_vm4, %v4705_v50 }
0x1f9d   : > { %17304 = vmatpush3.msra.mxu0 %v20488_v58  ;;  %v4912_v58 = vpop.xlane.xlu1 %4911 }
0x1f9e   : > { %18500 = vmatprep.subr.bf16.mxu0 %v22471_v60  ;;  %v4914_v41 = vmul.f32 0.03125, %v4912_v58 }
0x1fa0   : > { %v4916_v12 = vsub.f32 %v20708_v34, %v4914_v41  ;;  %v20743_v41 = vld [vmem:[%s22370_s4] ss:$0 sm:$0xff] }
0x1fa2   : > { %v4918_v11 = vmul.f32 %v4916_v12, %v4916_v12 }
0x1fa4   : > { %v4922_v24 = vsel %vm661_vm0, %v4918_v11, 0.0 }
0x206f   : > { %v17302_v59 = vpop.f32.mrb[36].mxu0 }
0x2070   : > { %v4778_v26 = vpop.f32.mrb[37].mxu0 }
0x2071   : > { %17305 = vmatprep.mubr.msk.f32.mxu0 %vm1008_vm3, %v4778_v26  ;;  %v20736_v26 = vld [vmem:[%s22460_s25] ss:$0 sm:$0xff] }
0x2072   : > { %17306 = vmatmul.mubr.msk.f32.vlgmr.msra.gmra.mrb[26].mxu0 %vm1008_vm3, %v17302_v59 }
0x2073   : > { %17323 = vmatprep.mubr.msk.f32.mxu0 %vm19713_vm2, %v22472_v31 }
0x2145   : > { %v17307_v3 = vpop.f32.mrb[26].mxu0 }
0x2146   : > { %v4871_v5 = vadd.f32 %v17307_v3, %v20507_v22  ;;  %v4859_v1 = vpop.f32.mrb[27].mxu0 }
0x2147   : > { %v4870_v37 = vadd.f32 %v20507_v22, %v4859_v1 }
0x2148   : > { %v4873_v56 = vadd.f32 %v22473_v32, %v4871_v5 }
0x2149   : > { %v4872_v16 = vadd.f32 %v22474_v55, %v4870_v37 }
0x214a   : > { %v4880_v63 = vsel %vm661_vm0, %v4873_v56, 0.0 }
0x214b   : > { %4881 = vadd.xlane.f32.xlu1 %v4880_v63  ;;  %v4877_v47 = vsel %vm661_vm0, %v4872_v16, 0.0 }
0x214c   : > { %4878 = vadd.xlane.f32.xlu0 %v4877_v47  ;;  %v20772_v47 = vld [vmem:[%s22461_s19] ss:$0 sm:$0xff] }
0x214f   : > { %4923 = vadd.xlane.f32.xlu1 %v4922_v24 }
0x2150   : > { %4920 = vadd.xlane.f32.xlu0 %v4919_v20 }
0x21d8   : > { %v4882_v23 = vpop.xlane.xlu1 %4881 }
0x21d9   : > { %v4884_v22 = vmul.f32 0.03125, %v4882_v23  ;;  %v4879_v18 = vpop.xlane.xlu0 %4878  ;;  %v20781_v23 = vld [vmem:[%s22463_s17] ss:$0 sm:$0xff] }
0x21da   : > { %v4883_v4 = vmul.f32 0.03125, %v4879_v18 }
0x21db   : > { %v4886_v2 = vsub.f32 %v4873_v56, %v4884_v22 }
0x21dc   : > { %v4885_v40 = vsub.f32 %v4872_v16, %v4883_v4  ;;  %v4924_v35 = vpop.xlane.xlu1 %4923 }
0x21dd   : > { %v4926_v10 = vmul.f32 0.03125, %v4924_v35  ;;  %v4921_v49 = vpop.xlane.xlu0 %4920  ;;  %v4888_v46 = vmul.f32 %v4886_v2, %v4886_v2 }
0x21de   : > { %v4925_v45 = vmul.f32 0.03125, %v4921_v49  ;;  %v4887_v6 = vmul.f32 %v4885_v40, %v4885_v40 }
0x21df   : > { %v4928_v43 = vadd.f32 1e-06, %v4926_v10  ;;  %v4892_v17 = vsel %vm661_vm0, %v4888_v46, 0.0  ;;  %v20810_v46 = vld [vmem:[%s22372_s6] ss:$0 sm:$0xff] }
0x21e0   : > { %v4927_v29 = vadd.f32 1e-06, %v4925_v45  ;;  %4893 = vadd.xlane.f32.xlu1 %v4892_v17  ;;  %v4889_v9 = vsel %vm661_vm0, %v4887_v6, 0.0  ;;  %v20823_v17 = vld [vmem:[%s22376_s10] ss:$0 sm:$0xff] }
0x21e1   : > { %19205 = vrsqrt.f32 %v4928_v43  ;;  %4890 = vadd.xlane.f32.xlu0 %v4889_v9 }
0x21e2   : > { %19207 = vrsqrt.f32 %v4927_v29 }
0x21eb   : > { %v19206_v50 = vpop.eup %19205 }
0x21ec   : > { %v19208_v57 = vpop.eup %19207  ;;  %v4932_v28 = vmul.f32 %v19206_v50, %v4916_v12 }
0x21ed   : > { %v4931_v59 = vmul.f32 %v19208_v57, %v4915_v62  ;;  %v20761_v62 = vld [vmem:[%s22373_s7] sm:$0xff] }
0x21ee   : > { %v4934_v58 = vmul.f32 %v20736_v26, %v4932_v28  ;;  %v20840_v28 = vld [vmem:[%s22377_s11 + $0x8] sm:$0xff] }
0x21ef   : > { %v4933_v54 = vmul.f32 %v20736_v26, %v4931_v59  ;;  %v20849_v59 = vld [vmem:[%s22377_s11] sm:$0xff] }
0x21f0   : > { %v20746_v7 = vadd.f32 %v20743_v41, %v4934_v58 }
0x21f1   : > { %v20749_v12 = vadd.f32 %v20743_v41, %v4933_v54 }
0x21f3   : > { %v20753_v3 = vpack.c.bf16 %v20746_v7, %v20749_v12 }
0x21f5   : > { %18503 = vmatpush3.bf16.xpose.msk.msra.mxu0 %vm20153_vm1, %v20753_v3 }
0x21fc   : > { %17324 = vmatmul.mubr.msk.f32.vlgmr.msra.gmra.mrb[38].mxu0 %vm661_vm0, %v20761_v62 }
0x226d   : > { %v4894_v5 = vpop.xlane.xlu1 %4893 }
0x226e   : > { %v4896_v1 = vmul.f32 0.03125, %v4894_v5  ;;  %v4891_v37 = vpop.xlane.xlu0 %4890 }
0x226f   : > { %v4895_v32 = vmul.f32 0.03125, %v4891_v37 }
0x2270   : > { %v4898_v56 = vadd.f32 1e-06, %v4896_v1 }
0x2271   : > { %v4897_v11 = vadd.f32 1e-06, %v4895_v32 }
0x2272   : > { %19209 = vrsqrt.f32 %v4898_v56 }
0x2273   : > { %19211 = vrsqrt.f32 %v4897_v11  ;;  %v20857_v11 = vld [vmem:[%s22376_s10 + $0x1] ss:$0 sm:$0xff] }
0x227c   : > { %v19210_v55 = vpop.eup %19209 }
0x227d   : > { %v19212_v16 = vpop.eup %19211  ;;  %v20765_v0 = vmul.f32 %v19210_v55, %v4886_v2  ;;  %v20803_v2 = vld [vmem:[%s22374_s8] sm:$0xff] }
0x227e   : > { %v20767_v63 = vmul.f32 %v19212_v16, %v4885_v40 }
0x227f   : > { %22475 = vst [vmem:[#allocation25_spill] sm:$0xff] %v20765_v0  ;;  %v4904_v24 = vmul.f32 %v20772_v47, %v20765_v0 }
0x2280   : > { %22476 = vst [vmem:[#allocation26_spill] sm:$0xff] %v20767_v63  ;;  %v4903_v20 = vmul.f32 %v20772_v47, %v20767_v63 }
0x2281   : > { %v20787_v18 = vadd.f32 %v20781_v23, %v4904_v24 }
0x2282   : > { %v20784_v22 = vadd.f32 %v20781_v23, %v4903_v20 }
0x2284   : > { %17316 = vmatprep.mubr.msk.f32.mxu1 %vm661_vm0, %v20784_v22 }
0x2285   : > { %17317 = vmatmul.mubr.msk.f32.vlgmr.msra.gmra.mrb[46].mxu1 %vm661_vm0, %v20787_v18 }
0x2286   : > { %18507 = vmatpush3.bf16.msra.mxu1 %v20046_v33  ;;  %17334 = vmatprep.mubr.msk.f32.mxu1 %vm661_vm0, %v20749_v12 }
0x2287   : > { %18509 = vmatprep.subr.bf16.mxu1 %v20066_v39 }
0x228a   : > { %18511 = vmatpush3.bf16.msra.mxu1 %v20066_v39 }
0x228d   : > { %17335 = vmatmul.mubr.msk.f32.vlgmr.msra.gmra.mrb[48].mxu1 %vm661_vm0, %v20746_v7 }
0x22cf   : > { %v5090_v4 = vpop.f32.mrb[38].mxu0 }
0x22d0   : > { %v5091_v40 = vadd.f32 %v20803_v2, %v5090_v4  ;;  %v17325_v35 = vpop.f32.mrb[39].mxu0 }
0x22d2   : > { %17337 = vmatprep.subr.mxu0 %v5091_v40 }
0x22d3   : > { %17338 = vmatpush3.msra.mxu0 %v5091_v40 }
0x22d4   : > { %18517 = vmatprep.subr.bf16.mxu0 %v20078_v42 }
0x2358   : > { %v17318_v10 = vpop.f32.mrb[46].mxu1 }
0x2359   : > { %v5009_v49 = vpop.f32.mrb[47].mxu1  ;;  %v5015_v6 = vadd.f32 %v20810_v46, %v17318_v10 }
0x235a   : > { %v5010_v45 = vadd.f32 %v20810_v46, %v5009_v49 }
0x235c   : > { %17339 = vmatprep.mubr.msk.f32.mxu0 %vm1008_vm3, %v5010_v45 }
0x235d   : > { %17340 = vmatmul.mubr.msk.f32.vlgmr.msra.gmra.mrb[40].mxu0 %vm1008_vm3, %v5015_v6 }
0x235e   : > { %18519 = vmatpush3.bf16.msra.mxu0 %v20078_v42  ;;  %17357 = vmatprep.mubr.msk.f32.mxu0 %vm661_vm0, %v20784_v22 }
0x235f   : > { %18521 = vmatprep.subr.bf16.mxu0 %v20131_v14 }
0x2360   : > { %v17336_v43 = vpop.f32.mrb[48].mxu1 }
0x2361   : > { %v5166_v29 = vadd.f32 %v20823_v17, %v17336_v43  ;;  %v5160_v9 = vpop.f32.mrb[49].mxu1 }
0x2362   : > { %v5161_v50 = vadd.f32 %v20823_v17, %v5160_v9  ;;  %18523 = vmatpush3.bf16.msra.mxu0 %v20131_v14 }
0x2363   : > { %18529 = vmatprep.subr.bf16.mxu0 %v20162_v21 }
0x2364   : > { %v18512_v57 = vpack.c.bf16 %v5166_v29, %v5161_v50 }
0x2365   : > { %17358 = vmatmul.mubr.msk.f32.vlgmr.msra.gmra.mrb[42].mxu0 %vm661_vm0, %v20787_v18 }
0x2366   : > { %18513 = vmatprep.subr.bf16.mxu1 %v18512_v57  ;;  %18531 = vmatpush3.bf16.msra.mxu0 %v20162_v21 }
0x2367   : > { %17375 = vmatprep.mubr.msk.f32.mxu0 %vm661_vm0, %v20749_v12  ;;  %18515 = vmatpush3.bf16.msra.mxu1 %v18512_v57 }
0x2368   : > { %18533 = vmatprep.subr.bf16.mxu0 %v20179_v25  ;;  %18524 = vmatprep.subr.bf16.mxu1 %v22471_v60 }
0x236a   : > { %18535 = vmatpush3.bf16.msra.mxu0 %v20179_v25 }
0x236b   : > { %17390 = vmatprep.subr.mxu0 %v20840_v28 }
0x236d   : > { %17376 = vmatmul.mubr.msk.f32.vlgmr.msra.gmra.mrb[44].mxu0 %vm661_vm0, %v20746_v7 }
0x236e   : > { %17391 = vmatpush3.msra.mxu0 %v20840_v28 }
0x236f   : > { %17395 = vmatprep.subr.mxu0 %v20849_v59 }
0x2430   : > { %v17341_v58 = vpop.f32.mrb[40].mxu0 }
0x2431   : > { %v5241_v54 = vpop.f32.mrb[41].mxu0  ;;  %v5253_v5 = vsel %vm1090_vm4, %v17341_v58, -inf }
0x2432   : > { %5254 = vmax.xlane.f32.xlu1 %v5253_v5  ;;  %v5250_v1 = vsel %vm1090_vm4, %v5241_v54, -inf }
0x2433   : > { %5251 = vmax.xlane.f32.xlu0 %v5250_v1 }
0x2438   : > { %v17359_v37 = vpop.f32.mrb[42].mxu0 }
0x2439   : > { %v5419_v32 = vpop.f32.mrb[43].mxu0 }
0x2440   : > { %v17377_v56 = vpop.f32.mrb[44].mxu0 }
0x2441   : > { %v5570_v55 = vadd.f32 %v20857_v11, %v17377_v56  ;;  %v5564_v16 = vpop.f32.mrb[45].mxu0  ;;  %v20873_v56 = vld [vmem:[%s22372_s6 + $0x1] ss:$0 sm:$0xff] }
0x2442   : > { %v5565_v24 = vadd.f32 %v20857_v11, %v5564_v16  ;;  %v20879_v16 = vld [vmem:[%s22373_s7 + $0x8] sm:$0xff] }
0x2444   : > { %v18536_v20 = vpack.c.bf16 %v5570_v55, %v5565_v24  ;;  %v5420_v55 = vadd.f32 %v20873_v56, %v5419_v32 }
0x24bf   : > { %v5255_v4 = vpop.xlane.xlu1 %5254 }
0x24c0   : > { %v5257_v40 = vsub.f32 %v17341_v58, %v5255_v4  ;;  %v5252_v35 = vpop.xlane.xlu0 %5251 }
0x24c1   : > { %v5256_v10 = vsub.f32 %v5241_v54, %v5252_v35  ;;  %v20889_v35 = vld [vmem:[%s22374_s8 + $0x8] sm:$0xff] }
0x24c2   : > { %v5260_v49 = vmul.f32 1.442695, %v5257_v40 }
0x24c3   : > { %v5258_v45 = vmul.f32 1.442695, %v5256_v10 }
0x24c4   : > { %19213 = vpow2.f32 %v5260_v49  ;;  %v5425_v49 = vadd.f32 %v20873_v56, %v17359_v37 }
0x24c5   : > { %19215 = vpow2.f32 %v5258_v45 }
0x24ce   : > { %v19214_v6 = vpop.eup %19213 }
0x24cf   : > { %v19216_v43 = vpop.eup %19215  ;;  %v5265_v29 = vsel %vm1090_vm4, %v19214_v6, 0.0 }
0x24d0   : > { %5266 = vadd.xlane.f32.xlu1 %v5265_v29  ;;  %v5262_v9 = vsel %vm1090_vm4, %v19216_v43, 0.0 }
0x24d1   : > { %5263 = vadd.xlane.f32.xlu0 %v5262_v9 }
0x255d   : > { %v5267_v50 = vpop.xlane.xlu1 %5266 }
0x255e   : > { %19217 = vrcp.f32 %v5267_v50  ;;  %v5264_v57 = vpop.xlane.xlu0 %5263 }
0x255f   : > { %19219 = vrcp.f32 %v5264_v57 }
0x2568   : > { %v19218_v5 = vpop.eup %19217 }
0x2569   : > { %v19220_v58 = vpop.eup %19219  ;;  %v5271_v54 = vmul.f32 %v19218_v5, %v19214_v6 }
0x256a   : > { %v5269_v1 = vmul.f32 %v19220_v58, %v19216_v43 }
0x256c   : > { %17346 = vmatprep.mubr.msk.f32.mxu1 %vm1090_vm4, %v5269_v1 }
0x256d   : > { %17347 = vmatmul.mubr.msk.f32.vlgmr.msra.gmra.mrb[50].mxu1 %vm1090_vm4, %v5271_v54 }
0x256e   : > { %18527 = vmatpush3.bf16.xpose.msk.msra.mxu1 %vm20153_vm1, %v20753_v3  ;;  %17364 = vmatprep.mubr.msk.f32.mxu1 %vm19713_vm2, %v22472_v31 }
0x2575   : > { %17365 = vmatmul.mubr.msk.f32.vlgmr.msra.gmra.mrb[52].mxu1 %vm661_vm0, %v20879_v16 }
0x2576   : > { %17380 = vmatprep.mubr.msk.f32.mxu1 %vm1008_vm3, %v5420_v55 }
0x2640   : > { %v20884_v24 = vpop.f32.mrb[50].mxu1 }
0x2641   : > { %v5344_v4 = vpop.f32.mrb[51].mxu1 }
0x2648   : > { %v5494_v40 = vpop.f32.mrb[52].mxu1 }
0x2649   : > { %v5495_v32 = vadd.f32 %v20889_v35, %v5494_v40  ;;  %v17366_v10 = vpop.f32.mrb[53].mxu1 }
0x264b   : > { %17378 = vmatprep.subr.mxu1 %v5495_v32 }
0x264c   : > { %17379 = vmatpush3.msra.mxu1 %v5495_v32 }
0x264d   : > { %17381 = vmatmul.mubr.msk.f32.vlgmr.msra.gmra.mrb[54].mxu1 %vm1008_vm3, %v5425_v49  ;;  %18537 = vmatprep.subr.bf16.mxu1 %v18536_v20 }
0x264e   : > { %18539 = vmatpush3.bf16.msra.mxu1 %v18536_v20 }
0x264f   : > { %18541 = vmatprep.subr.bf16.mxu1 %v20277_v15 }
0x2720   : > { %v17382_v45 = vpop.f32.mrb[54].mxu1 }
0x2721   : > { %v5645_v6 = vpop.f32.mrb[55].mxu1  ;;  %v5657_v43 = vsel %vm1090_vm4, %v17382_v45, -inf }
0x2722   : > { %5658 = vmax.xlane.f32.xlu1 %v5657_v43  ;;  %v5654_v29 = vsel %vm1090_vm4, %v5645_v6, -inf }
0x2723   : > { %5655 = vmax.xlane.f32.xlu0 %v5654_v29 }
0x27af   : > { %v5659_v9 = vpop.xlane.xlu1 %5658 }
0x27b0   : > { %v5661_v50 = vsub.f32 %v17382_v45, %v5659_v9  ;;  %v5656_v57 = vpop.xlane.xlu0 %5655 }
0x27b1   : > { %v5660_v37 = vsub.f32 %v5645_v6, %v5656_v57 }
0x27b2   : > { %v5664_v5 = vmul.f32 1.442695, %v5661_v50 }
0x27b3   : > { %v5662_v58 = vmul.f32 1.442695, %v5660_v37  ;;  %v20931_v37 = vld [vmem:[%s22376_s10 + $0x2] ss:$0 sm:$0xff] }
0x27b4   : > { %19221 = vpow2.f32 %v5664_v5 }
0x27b5   : > { %19223 = vpow2.f32 %v5662_v58 }
0x27be   : > { %v19222_v1 = vpop.eup %19221 }
0x27bf   : > { %v19224_v20 = vpop.eup %19223  ;;  %v5669_v54 = vsel %vm1090_vm4, %v19222_v1, 0.0 }
0x27c0   : > { %5670 = vadd.xlane.f32.xlu1 %v5669_v54  ;;  %v5666_v55 = vsel %vm1090_vm4, %v19224_v20, 0.0 }
0x27c1   : > { %5667 = vadd.xlane.f32.xlu0 %v5666_v55 }
0x284d   : > { %v5671_v40 = vpop.xlane.xlu1 %5670 }
0x284e   : > { %19225 = vrcp.f32 %v5671_v40  ;;  %v5668_v32 = vpop.xlane.xlu0 %5667  ;;  %v20953_v40 = vld [vmem:[%s22374_s8 + $0x10] sm:$0xff] }
0x284f   : > { %19227 = vrcp.f32 %v5668_v32 }
0x2858   : > { %v19226_v10 = vpop.eup %19225 }
0x2859   : > { %v19228_v49 = vpop.eup %19227  ;;  %v5675_v6 = vmul.f32 %v19226_v10, %v19222_v1 }
0x285a   : > { %v5673_v45 = vmul.f32 %v19228_v49, %v19224_v20  ;;  %v20944_v20 = vld [vmem:[%s22373_s7 + $0x10] sm:$0xff] }
0x285c   : > { %17387 = vmatprep.mubr.msk.f32.mxu1 %vm1090_vm4, %v5673_v45  ;;  %v20961_v45 = vld [vmem:[%s22377_s11 + $0x10] sm:$0xff] }
0x285d   : > { %17388 = vmatmul.mubr.msk.f32.vlgmr.msra.gmra.mrb[56].mxu1 %vm1090_vm4, %v5675_v6 }
0x285e   : > { %18543 = vmatpush3.bf16.msra.mxu1 %v20277_v15  ;;  %17408 = vmatprep.mubr.msk.f32.mxu1 %vm661_vm0, %v20784_v22 }
0x285f   : > { %18545 = vmatprep.subr.bf16.mxu1 %v20286_v38 }
0x2862   : > { %18547 = vmatpush3.bf16.msra.mxu1 %v20286_v38 }
0x2863   : > { %18553 = vmatprep.subr.bf16.mxu1 %v20300_v51 }
0x2865   : > { %17409 = vmatmul.mubr.msk.f32.vlgmr.msra.gmra.mrb[58].mxu1 %vm661_vm0, %v20787_v18 }
0x2866   : > { %18555 = vmatpush3.bf16.msra.mxu1 %v20300_v51  ;;  %17426 = vmatprep.mubr.msk.f32.mxu1 %vm661_vm0, %v20749_v12 }
0x2867   : > { %18557 = vmatprep.subr.bf16.mxu1 %v20310_v53 }
0x286a   : > { %18559 = vmatpush3.bf16.msra.mxu1 %v20310_v53 }
0x286d   : > { %17427 = vmatmul.mubr.msk.f32.vlgmr.msra.gmra.mrb[60].mxu1 %vm661_vm0, %v20746_v7 }
0x2930   : > { %v17389_v43 = vpop.f32.mrb[56].mxu1 }
0x2931   : > { %v5748_v29 = vpop.f32.mrb[57].mxu1 }
0x2932   : > { %17392 = vmatprep.mubr.msk.f32.mxu0 %vm1008_vm3, %v5748_v29 }
0x2933   : > { %17393 = vmatmul.mubr.msk.f32.vlgmr.msra.gmra.mrb[46].mxu0 %vm1008_vm3, %v17389_v43 }
0x2934   : > { %17396 = vmatpush3.msra.mxu0 %v20849_v59  ;;  %17397 = vmatprep.mubr.msk.f32.mxu0 %vm1008_vm3, %v5344_v4 }
0x2935   : > { %18548 = vmatprep.subr.bf16.mxu0 %v22471_v60 }
0x2938   : > { %v17410_v9 = vpop.f32.mrb[58].mxu1 }
0x2939   : > { %v5985_v50 = vpop.f32.mrb[59].mxu1 }
0x293b   : > { %17398 = vmatmul.mubr.msk.f32.vlgmr.msra.gmra.mrb[46].mxu0 %vm1008_vm3, %v20884_v24  ;;  %v20937_v24 = vld [vmem:[%s22372_s6 + $0x2] ss:$0 sm:$0xff] }
0x293c   : > { %18551 = vmatpush3.bf16.xpose.msk.msra.mxu0 %vm20153_vm1, %v20753_v3  ;;  %17415 = vmatprep.mubr.msk.f32.mxu0 %vm19713_vm2, %v22472_v31  ;;  %v5986_v58 = vadd.f32 %v20937_v24, %v5985_v50  ;;  %v5991_v49 = vadd.f32 %v20937_v24, %v17410_v9 }
0x2940   : > { %v17428_v57 = vpop.f32.mrb[60].mxu1 }
0x2941   : > { %v6136_v4 = vadd.f32 %v20931_v37, %v17428_v57  ;;  %v6130_v5 = vpop.f32.mrb[61].mxu1 }
0x2942   : > { %v6131_v1 = vadd.f32 %v20931_v37, %v6130_v5 }
0x2943   : > { %17416 = vmatmul.mubr.msk.f32.vlgmr.msra.gmra.mrb[48].mxu0 %vm661_vm0, %v20944_v20 }
0x2944   : > { %v18560_v54 = vpack.c.bf16 %v6136_v4, %v6131_v1  ;;  %17431 = vmatprep.mubr.msk.f32.mxu0 %vm1008_vm3, %v5986_v58 }
0x2946   : > { %18561 = vmatprep.subr.bf16.mxu1 %v18560_v54 }
0x2947   : > { %18563 = vmatpush3.bf16.msra.mxu1 %v18560_v54 }
0x2948   : > { %18565 = vmatprep.subr.bf16.mxu1 %v20386_v8 }
0x2a16   : > { %v6060_v55 = vpop.f32.mrb[48].mxu0 }
0x2a17   : > { %v6061_v32 = vadd.f32 %v20953_v40, %v6060_v55  ;;  %v17417_v10 = vpop.f32.mrb[49].mxu0 }
0x2a19   : > { %17429 = vmatprep.subr.mxu0 %v6061_v32 }
0x2a1a   : > { %17430 = vmatpush3.msra.mxu0 %v6061_v32 }
0x2a1b   : > { %17432 = vmatmul.mubr.msk.f32.vlgmr.msra.gmra.mrb[50].mxu0 %vm1008_vm3, %v5991_v49  ;;  %17441 = vmatprep.subr.mxu0 %v20961_v45 }
0x2a1c   : > { %17442 = vmatpush3.msra.mxu0 %v20961_v45 }
0x2a1d   : > { %18572 = vmatprep.subr.bf16.mxu0 %v22471_v60 }
0x2aee   : > { %v17433_v6 = vpop.f32.mrb[50].mxu0 }
0x2aef   : > { %v6211_v43 = vpop.f32.mrb[51].mxu0  ;;  %v6223_v29 = vsel %vm1090_vm4, %v17433_v6, -inf }
0x2af0   : > { %6224 = vmax.xlane.f32.xlu1 %v6223_v29  ;;  %v6220_v9 = vsel %vm1090_vm4, %v6211_v43, -inf }
0x2af1   : > { %6221 = vmax.xlane.f32.xlu0 %v6220_v9 }
0x2b7d   : > { %v6225_v50 = vpop.xlane.xlu1 %6224 }
0x2b7e   : > { %v6227_v57 = vsub.f32 %v17433_v6, %v6225_v50  ;;  %v6222_v4 = vpop.xlane.xlu0 %6221 }
0x2b7f   : > { %v6226_v5 = vsub.f32 %v6211_v43, %v6222_v4 }
0x2b80   : > { %v6230_v58 = vmul.f32 1.442695, %v6227_v57  ;;  %v21002_v57 = vld [vmem:[%s22372_s6 + $0x3] ss:$0 sm:$0xff] }
0x2b81   : > { %v6228_v1 = vmul.f32 1.442695, %v6226_v5  ;;  %v21008_v5 = vld [vmem:[%s22373_s7 + $0x18] sm:$0xff] }
0x2b82   : > { %19229 = vpow2.f32 %v6230_v58  ;;  %v21016_v58 = vld [vmem:[%s22376_s10 + $0x3] ss:$0 sm:$0xff] }
0x2b83   : > { %19231 = vpow2.f32 %v6228_v1 }
0x2b8c   : > { %v19230_v54 = vpop.eup %19229 }
0x2b8d   : > { %v19232_v55 = vpop.eup %19231  ;;  %v6235_v32 = vsel %vm1090_vm4, %v19230_v54, 0.0 }
0x2b8e   : > { %6236 = vadd.xlane.f32.xlu1 %v6235_v32  ;;  %v6232_v10 = vsel %vm1090_vm4, %v19232_v55, 0.0 }
0x2b8f   : > { %6233 = vadd.xlane.f32.xlu0 %v6232_v10 }
0x2c1b   : > { %v6237_v49 = vpop.xlane.xlu1 %6236 }
0x2c1c   : > { %19233 = vrcp.f32 %v6237_v49  ;;  %v6234_v29 = vpop.xlane.xlu0 %6233  ;;  %v21023_v49 = vld [vmem:[%s22374_s8 + $0x18] sm:$0xff] }
0x2c1d   : > { %19235 = vrcp.f32 %v6234_v29 }
0x2c26   : > { %v19234_v9 = vpop.eup %19233 }
0x2c27   : > { %v19236_v6 = vpop.eup %19235  ;;  %v6241_v43 = vmul.f32 %v19234_v9, %v19230_v54 }
0x2c28   : > { %v6239_v50 = vmul.f32 %v19236_v6, %v19232_v55 }
0x2c2a   : > { %17438 = vmatprep.mubr.msk.f32.mxu1 %vm1090_vm4, %v6239_v50  ;;  %v21031_v50 = vld [vmem:[%s22377_s11 + $0x18] sm:$0xff] }
0x2c2b   : > { %17439 = vmatmul.mubr.msk.f32.vlgmr.msra.gmra.mrb[62].mxu1 %vm1090_vm4, %v6241_v43  ;;  %22477 = vst [vmem:[#allocation29_spill] sm:$0xff] %v21031_v50 }
0x2c2c   : > { %18567 = vmatpush3.bf16.msra.mxu1 %v20386_v8  ;;  %17454 = vmatprep.mubr.msk.f32.mxu1 %vm661_vm0, %v20784_v22 }
0x2c2d   : > { %18569 = vmatprep.subr.bf16.mxu1 %v20403_v48 }
0x2c30   : > { %18571 = vmatpush3.bf16.msra.mxu1 %v20403_v48 }
0x2c31   : > { %18577 = vmatprep.subr.bf16.mxu1 %v20417_v52 }
0x2c33   : > { %17455 = vmatmul.mubr.msk.f32.vlgmr.msra.gmra.mrb[64].mxu1 %vm661_vm0, %v20787_v18 }
0x2c34   : > { %18579 = vmatpush3.bf16.msra.mxu1 %v20417_v52  ;;  %17472 = vmatprep.mubr.msk.f32.mxu1 %vm661_vm0, %v20749_v12 }
0x2c35   : > { %18581 = vmatprep.subr.bf16.mxu1 %v20427_v61 }
0x2c38   : > { %18583 = vmatpush3.bf16.msra.mxu1 %v20427_v61 }
0x2c39   : > { %18589 = vmatprep.subr.bf16.mxu1 %v20038_v30 }
0x2c3b   : > { %17473 = vmatmul.mubr.msk.f32.vlgmr.msra.gmra.mrb[66].mxu1 %vm661_vm0, %v20746_v7 }
0x2c3c   : > { %18591 = vmatpush3.bf16.msra.mxu1 %v20038_v30 }
0x2c3d   : > { %18593 = vmatprep.subr.bf16.mxu1 %v20058_v36 }
0x2c40   : > { %18595 = vmatpush3.bf16.msra.mxu1 %v20058_v36 }
0x2c41   : > { %18601 = vmatprep.subr.bf16.mxu1 %v20046_v33 }
0x2cfe   : > { %v17440_v22 = vpop.f32.mrb[62].mxu1 }
0x2cff   : > { %v6314_v18 = vpop.f32.mrb[63].mxu1 }
0x2d00   : > { %17443 = vmatprep.mubr.msk.f32.mxu0 %vm1008_vm3, %v6314_v18 }
0x2d01   : > { %17444 = vmatmul.mubr.msk.f32.vlgmr.msra.gmra.mrb[46].mxu0 %vm1008_vm3, %v17440_v22 }
0x2d02   : > { %18575 = vmatpush3.bf16.xpose.msk.msra.mxu0 %vm20153_vm1, %v20753_v3  ;;  %17461 = vmatprep.mubr.msk.f32.mxu0 %vm19713_vm2, %v22472_v31 }
0x2d06   : > { %v17456_v7 = vpop.f32.mrb[64].mxu1 }
0x2d07   : > { %v6472_v12 = vpop.f32.mrb[65].mxu1  ;;  %v6478_v6 = vadd.f32 %v21002_v57, %v17456_v7 }
0x2d08   : > { %v6473_v4 = vadd.f32 %v21002_v57, %v6472_v12 }
0x2d09   : > { %17462 = vmatmul.mubr.msk.f32.vlgmr.msra.gmra.mrb[52].mxu0 %vm661_vm0, %v21008_v5 }
0x2d0a   : > { %17477 = vmatprep.mubr.msk.f32.mxu0 %vm1008_vm3, %v6473_v4 }
0x2d0e   : > { %v17474_v3 = vpop.f32.mrb[66].mxu1 }
0x2d0f   : > { %v6623_v1 = vadd.f32 %v21016_v58, %v17474_v3  ;;  %v6617_v54 = vpop.f32.mrb[67].mxu1 }
0x2d10   : > { %v6618_v55 = vadd.f32 %v21016_v58, %v6617_v54 }
0x2d12   : > { %v18584_v32 = vpack.c.bf16 %v6623_v1, %v6618_v55 }
0x2ddc   : > { %v6547_v10 = vpop.f32.mrb[52].mxu0 }
0x2ddd   : > { %v6548_v29 = vadd.f32 %v21023_v49, %v6547_v10  ;;  %v17463_v9 = vpop.f32.mrb[53].mxu0 }
0x2ddf   : > { %17475 = vmatprep.subr.mxu0 %v6548_v29 }
0x2de0   : > { %17476 = vmatpush3.msra.mxu0 %v6548_v29 }
0x2de1   : > { %17478 = vmatmul.mubr.msk.f32.vlgmr.msra.gmra.mrb[54].mxu0 %vm1008_vm3, %v6478_v6  ;;  %18585 = vmatprep.subr.bf16.mxu0 %v18584_v32 }
0x2de2   : > { %18587 = vmatpush3.bf16.msra.mxu0 %v18584_v32 }
0x2de3   : > { %17487 = vmatprep.subr.mxu0 %v21031_v50 }
0x2eb4   : > { %v17479_v43 = vpop.f32.mrb[54].mxu0 }
0x2eb5   : > { %v6698_v22 = vpop.f32.mrb[55].mxu0  ;;  %v6710_v18 = vsel %vm1090_vm4, %v17479_v43, -inf }
0x2eb6   : > { %6711 = vmax.xlane.f32.xlu1 %v6710_v18  ;;  %v6707_v7 = vsel %vm1090_vm4, %v6698_v22, -inf }
0x2eb7   : > { %6708 = vmax.xlane.f32.xlu0 %v6707_v7 }
0x2f43   : > { %v6712_v12 = vpop.xlane.xlu1 %6711 }
0x2f44   : > { %v6714_v4 = vsub.f32 %v17479_v43, %v6712_v12  ;;  %v6709_v3 = vpop.xlane.xlu0 %6708 }
0x2f45   : > { %v6713_v1 = vsub.f32 %v6698_v22, %v6709_v3  ;;  %v21046_v3 = vld [vmem:[%s19994_s30 + $0x40] sm:$0xff] }
0x2f46   : > { %v6717_v54 = vmul.f32 1.442695, %v6714_v4  ;;  %v21043_v4 = vld [vmem:[%s19994_s30 + $0x48] sm:$0xff]  ;;  %22479 = vst [vmem:[#allocation31_spill] sm:$0xff] %v21046_v3 }
0x2f47   : > { %v6715_v55 = vmul.f32 1.442695, %v6713_v1  ;;  %22478 = vst [vmem:[#allocation30_spill] sm:$0xff] %v21043_v4  ;;  %v6933_v1 = vsel %vm661_vm0, %v21043_v4, 0.0 }
0x2f48   : > { %19237 = vpow2.f32 %v6717_v54  ;;  %v6930_v54 = vsel %vm661_vm0, %v21046_v3, 0.0 }
0x2f49   : > { %19239 = vpow2.f32 %v6715_v55 }
0x2f52   : > { %v19238_v32 = vpop.eup %19237 }
0x2f53   : > { %v19240_v10 = vpop.eup %19239  ;;  %v6722_v29 = vsel %vm1090_vm4, %v19238_v32, 0.0 }
0x2f54   : > { %6723 = vadd.xlane.f32.xlu1 %v6722_v29  ;;  %v6719_v9 = vsel %vm1090_vm4, %v19240_v10, 0.0 }
0x2f55   : > { %6720 = vadd.xlane.f32.xlu0 %v6719_v9 }
0x2f58   : > { %6934 = vadd.xlane.f32.xlu1 %v6933_v1 }
0x2f59   : > { %6931 = vadd.xlane.f32.xlu0 %v6930_v54 }
0x2fe1   : > { %v6724_v6 = vpop.xlane.xlu1 %6723 }
0x2fe2   : > { %19241 = vrcp.f32 %v6724_v6  ;;  %v6721_v18 = vpop.xlane.xlu0 %6720 }
0x2fe3   : > { %19243 = vrcp.f32 %v6721_v18 }
0x2fe6   : > { %v6932_v29 = vpop.xlane.xlu0 %6931 }
0x2fe7   : > { %v6936_v6 = vmul.f32 0.03125, %v6932_v29 }
0x2fec   : > { %v19242_v43 = vpop.eup %19241 }
0x2fed   : > { %v19244_v22 = vpop.eup %19243  ;;  %v6728_v12 = vmul.f32 %v19242_v43, %v19238_v32 }
0x2fee   : > { %v6726_v7 = vmul.f32 %v19244_v22, %v19240_v10  ;;  %v6935_v10 = vpop.xlane.xlu1 %6934  ;;  %v6938_v22 = vsub.f32 %v21046_v3, %v6936_v6 }
0x2fef   : > { %v6937_v9 = vmul.f32 0.03125, %v6935_v10 }
0x2ff0   : > { %17484 = vmatprep.mubr.msk.f32.mxu0 %vm1090_vm4, %v6726_v7  ;;  %v21058_v7 = vld [vmem:[#allocation2] ss:$0 sm:$0xff]  ;;  %v6940_v63 = vmul.f32 %v6938_v22, %v6938_v22 }
0x2ff1   : > { %17485 = vmatmul.mubr.msk.f32.vlgmr.msra.gmra.mrb[56].mxu0 %vm1090_vm4, %v6728_v12  ;;  %v6939_v18 = vsub.f32 %v21043_v4, %v6937_v9  ;;  %22480 = vst [vmem:[#allocation32_spill] sm:$0xff] %v21058_v7 }
0x2ff2   : > { %17488 = vmatpush3.msra.mxu0 %v21031_v50  ;;  %v6942_v6 = vsel %vm661_vm0, %v6940_v63, 0.0 }
0x2ff3   : > { %18596 = vmatprep.subr.bf16.mxu0 %v22471_v60 }
0x30c4   : > { %v17486_v55 = vpop.f32.mrb[56].mxu0 }
0x30c5   : > { %v6801_v32 = vpop.f32.mrb[57].mxu0 }
0x30c6   : > { %17489 = vmatprep.mubr.msk.f32.mxu0 %vm1008_vm3, %v6801_v32  ;;  %v6941_v32 = vmul.f32 %v6939_v18, %v6939_v18 }
0x30c7   : > { %17490 = vmatmul.mubr.msk.f32.vlgmr.msra.gmra.mrb[46].mxu0 %vm1008_vm3, %v17486_v55 }
0x30c8   : > { %17507 = vmatprep.mubr.msk.f32.mxu0 %vm19713_vm2, %v22472_v31  ;;  %v6945_v9 = vsel %vm661_vm0, %v6941_v32, 0.0 }
0x319a   : > { %v17491_v43 = vpop.f32.mrb[46].mxu0 }
0x319b   : > { %v6894_v12 = vadd.f32 %v21058_v7, %v17491_v43  ;;  %v6882_v1 = vpop.f32.mrb[47].mxu0 }
0x319c   : > { %v6893_v54 = vadd.f32 %v21058_v7, %v6882_v1 }
0x319d   : > { %v6896_v55 = vadd.f32 %v20708_v34, %v6894_v12 }
0x319e   : > { %v6895_v0 = vadd.f32 %v20711_v27, %v6893_v54 }
0x319f   : > { %v6903_v10 = vsel %vm661_vm0, %v6896_v55, 0.0 }
0x31a0   : > { %6904 = vadd.xlane.f32.xlu1 %v6903_v10  ;;  %v6900_v29 = vsel %vm661_vm0, %v6895_v0, 0.0 }
0x31a1   : > { %6901 = vadd.xlane.f32.xlu0 %v6900_v29 }
0x31a4   : > { %6946 = vadd.xlane.f32.xlu1 %v6945_v9 }
0x31a5   : > { %6943 = vadd.xlane.f32.xlu0 %v6942_v6 }
0x322d   : > { %v6905_v43 = vpop.xlane.xlu1 %6904 }
0x322e   : > { %v6907_v1 = vmul.f32 0.03125, %v6905_v43  ;;  %v6902_v44 = vpop.xlane.xlu0 %6901 }
0x322f   : > { %v6906_v34 = vmul.f32 0.03125, %v6902_v44 }
0x3230   : > { %v6909_v12 = vsub.f32 %v6896_v55, %v6907_v1 }
0x3231   : > { %v6908_v13 = vsub.f32 %v6895_v0, %v6906_v34  ;;  %v6947_v27 = vpop.xlane.xlu1 %6946 }
0x3232   : > { %v6949_v54 = vmul.f32 0.03125, %v6947_v27  ;;  %v6944_v3 = vpop.xlane.xlu0 %6943  ;;  %v6911_v4 = vmul.f32 %v6909_v12, %v6909_v12 }
0x3233   : > { %v6948_v10 = vmul.f32 0.03125, %v6944_v3  ;;  %v6910_v7 = vmul.f32 %v6908_v13, %v6908_v13 }
0x3234   : > { %v6951_v50 = vadd.f32 1e-06, %v6949_v54  ;;  %v6915_v29 = vsel %vm661_vm0, %v6911_v4, 0.0 }
0x3235   : > { %v6950_v32 = vadd.f32 1e-06, %v6948_v10  ;;  %6916 = vadd.xlane.f32.xlu1 %v6915_v29  ;;  %v6912_v63 = vsel %vm661_vm0, %v6910_v7, 0.0 }
0x3236   : > { %19245 = vrsqrt.f32 %v6951_v50  ;;  %6913 = vadd.xlane.f32.xlu0 %v6912_v63 }
0x3237   : > { %19247 = vrsqrt.f32 %v6950_v32 }
0x3240   : > { %v19246_v9 = vpop.eup %19245 }
0x3241   : > { %v19248_v44 = vpop.eup %19247  ;;  %v6955_v55 = vmul.f32 %v19246_v9, %v6939_v18 }
0x3242   : > { %v6954_v0 = vmul.f32 %v19248_v44, %v6938_v22 }
0x3243   : > { %v6957_v6 = vmul.f32 %v20736_v26, %v6955_v55 }
0x3244   : > { %v6956_v43 = vmul.f32 %v20736_v26, %v6954_v0 }
0x3245   : > { %v21073_v3 = vadd.f32 %v20743_v41, %v6957_v6 }
0x3246   : > { %v21076_v4 = vadd.f32 %v20743_v41, %v6956_v43 }
0x3248   : > { %v21080_v7 = vpack.c.bf16 %v21073_v3, %v21076_v4 }
0x324a   : > { %18599 = vmatpush3.bf16.xpose.msk.msra.mxu0 %vm20153_vm1, %v21080_v7 }
0x3251   : > { %17508 = vmatmul.mubr.msk.f32.vlgmr.msra.gmra.mrb[58].mxu0 %vm661_vm0, %v20761_v62 }
0x32c2   : > { %v6917_v50 = vpop.xlane.xlu1 %6916 }
0x32c3   : > { %v6919_v18 = vmul.f32 0.03125, %v6917_v50  ;;  %v6914_v26 = vpop.xlane.xlu0 %6913 }
0x32c4   : > { %v6918_v22 = vmul.f32 0.03125, %v6914_v26 }
0x32c5   : > { %v6921_v1 = vadd.f32 1e-06, %v6919_v18 }
0x32c6   : > { %v6920_v34 = vadd.f32 1e-06, %v6918_v22 }
0x32c7   : > { %19249 = vrsqrt.f32 %v6921_v1 }
0x32c8   : > { %19251 = vrsqrt.f32 %v6920_v34 }
0x32d1   : > { %v19250_v41 = vpop.eup %19249 }
0x32d2   : > { %v19252_v27 = vpop.eup %19251  ;;  %v21087_v54 = vmul.f32 %v19250_v41, %v6909_v12 }
0x32d3   : > { %v21089_v10 = vmul.f32 %v19252_v27, %v6908_v13 }
0x32d4   : > { %22481 = vst [vmem:[#allocation33_spill] sm:$0xff] %v21087_v54  ;;  %v6927_v29 = vmul.f32 %v20772_v47, %v21087_v54 }
0x32d5   : > { %22482 = vst [vmem:[#allocation34_spill] sm:$0xff] %v21089_v10  ;;  %v6926_v62 = vmul.f32 %v20772_v47, %v21089_v10 }
0x32d6   : > { %v21099_v63 = vadd.f32 %v20781_v23, %v6927_v29 }
0x32d7   : > { %v21096_v32 = vadd.f32 %v20781_v23, %v6926_v62 }
0x32d9   : > { %17500 = vmatprep.mubr.msk.f32.mxu1 %vm661_vm0, %v21096_v32 }
0x32da   : > { %17501 = vmatmul.mubr.msk.f32.vlgmr.msra.gmra.mrb[68].mxu1 %vm661_vm0, %v21099_v63 }
0x32db   : > { %18603 = vmatpush3.bf16.msra.mxu1 %v20046_v33  ;;  %17518 = vmatprep.mubr.msk.f32.mxu1 %vm661_vm0, %v21076_v4 }
0x32dc   : > { %18605 = vmatprep.subr.bf16.mxu1 %v20066_v39 }
0x32df   : > { %18607 = vmatpush3.bf16.msra.mxu1 %v20066_v39 }
0x32e2   : > { %17519 = vmatmul.mubr.msk.f32.vlgmr.msra.gmra.mrb[70].mxu1 %vm661_vm0, %v21073_v3 }
0x3324   : > { %v7113_v13 = vpop.f32.mrb[58].mxu0 }
0x3325   : > { %v7114_v47 = vadd.f32 %v20803_v2, %v7113_v13  ;;  %v17509_v23 = vpop.f32.mrb[59].mxu0 }
0x3327   : > { %17521 = vmatprep.subr.mxu0 %v7114_v47 }
0x3328   : > { %17522 = vmatpush3.msra.mxu0 %v7114_v47 }
0x3329   : > { %18613 = vmatprep.subr.bf16.mxu0 %v20078_v42 }
0x33ad   : > { %v17502_v12 = vpop.f32.mrb[68].mxu1 }
0x33ae   : > { %v7032_v9 = vpop.f32.mrb[69].mxu1  ;;  %v7038_v55 = vadd.f32 %v20810_v46, %v17502_v12 }
0x33af   : > { %v7033_v44 = vadd.f32 %v20810_v46, %v7032_v9 }
0x33b1   : > { %17523 = vmatprep.mubr.msk.f32.mxu0 %vm1008_vm3, %v7033_v44 }
0x33b2   : > { %17524 = vmatmul.mubr.msk.f32.vlgmr.msra.gmra.mrb[60].mxu0 %vm1008_vm3, %v7038_v55 }
0x33b3   : > { %18615 = vmatpush3.bf16.msra.mxu0 %v20078_v42  ;;  %17541 = vmatprep.mubr.msk.f32.mxu0 %vm661_vm0, %v21096_v32 }
0x33b4   : > { %18617 = vmatprep.subr.bf16.mxu0 %v20131_v14 }
0x33b5   : > { %v17520_v2 = vpop.f32.mrb[70].mxu1 }
0x33b6   : > { %v7189_v0 = vadd.f32 %v20823_v17, %v17520_v2  ;;  %v7183_v6 = vpop.f32.mrb[71].mxu1 }
0x33b7   : > { %v7184_v43 = vadd.f32 %v20823_v17, %v7183_v6  ;;  %18619 = vmatpush3.bf16.msra.mxu0 %v20131_v14 }
0x33b8   : > { %18625 = vmatprep.subr.bf16.mxu0 %v20162_v21 }
0x33b9   : > { %v18608_v46 = vpack.c.bf16 %v7189_v0, %v7184_v43 }
0x33ba   : > { %17542 = vmatmul.mubr.msk.f32.vlgmr.msra.gmra.mrb[62].mxu0 %vm661_vm0, %v21099_v63 }
0x33bb   : > { %18609 = vmatprep.subr.bf16.mxu1 %v18608_v46  ;;  %18627 = vmatpush3.bf16.msra.mxu0 %v20162_v21 }
0x33bc   : > { %17559 = vmatprep.mubr.msk.f32.mxu0 %vm661_vm0, %v21076_v4  ;;  %18611 = vmatpush3.bf16.msra.mxu1 %v18608_v46 }
0x33bd   : > { %18629 = vmatprep.subr.bf16.mxu0 %v20179_v25  ;;  %18620 = vmatprep.subr.bf16.mxu1 %v22471_v60 }
0x33bf   : > { %18631 = vmatpush3.bf16.msra.mxu0 %v20179_v25 }
0x33c0   : > { %17574 = vmatprep.subr.mxu0 %v20840_v28 }
0x33c2   : > { %17560 = vmatmul.mubr.msk.f32.vlgmr.msra.gmra.mrb[64].mxu0 %vm661_vm0, %v21073_v3 }
0x33c3   : > { %17575 = vmatpush3.msra.mxu0 %v20840_v28 }
0x33c4   : > { %17579 = vmatprep.subr.mxu0 %v20849_v59 }
0x3485   : > { %v17525_v17 = vpop.f32.mrb[60].mxu0 }
0x3486   : > { %v7264_v50 = vpop.f32.mrb[61].mxu0  ;;  %v7276_v18 = vsel %vm1090_vm4, %v17525_v17, -inf }
0x3487   : > { %7277 = vmax.xlane.f32.xlu1 %v7276_v18  ;;  %v7273_v26 = vsel %vm1090_vm4, %v7264_v50, -inf }
0x3488   : > { %7274 = vmax.xlane.f32.xlu0 %v7273_v26 }
0x348d   : > { %v17543_v22 = vpop.f32.mrb[62].mxu0 }
0x348e   : > { %v7442_v1 = vpop.f32.mrb[63].mxu0 }
0x348f   : > { %v7443_v18 = vadd.f32 %v20873_v56, %v7442_v1 }
0x3495   : > { %v17561_v34 = vpop.f32.mrb[64].mxu0 }
0x3496   : > { %v7593_v41 = vadd.f32 %v20857_v11, %v17561_v34  ;;  %v7587_v27 = vpop.f32.mrb[65].mxu0 }
0x3497   : > { %v7588_v29 = vadd.f32 %v20857_v11, %v7587_v27 }
0x3499   : > { %v18632_v62 = vpack.c.bf16 %v7593_v41, %v7588_v29 }
0x3514   : > { %v7278_v28 = vpop.xlane.xlu1 %7277 }
0x3515   : > { %v7280_v13 = vsub.f32 %v17525_v17, %v7278_v28  ;;  %v7275_v47 = vpop.xlane.xlu0 %7274  ;;  %v7448_v28 = vadd.f32 %v20873_v56, %v17543_v22 }
0x3516   : > { %v7279_v23 = vsub.f32 %v7264_v50, %v7275_v47 }
0x3517   : > { %v7283_v12 = vmul.f32 1.442695, %v7280_v13 }
0x3518   : > { %v7281_v9 = vmul.f32 1.442695, %v7279_v23 }
0x3519   : > { %19253 = vpow2.f32 %v7283_v12 }
0x351a   : > { %19255 = vpow2.f32 %v7281_v9 }
0x3523   : > { %v19254_v44 = vpop.eup %19253 }
0x3524   : > { %v19256_v55 = vpop.eup %19255  ;;  %v7288_v2 = vsel %vm1090_vm4, %v19254_v44, 0.0 }
0x3525   : > { %7289 = vadd.xlane.f32.xlu1 %v7288_v2  ;;  %v7285_v0 = vsel %vm1090_vm4, %v19256_v55, 0.0 }
0x3526   : > { %7286 = vadd.xlane.f32.xlu0 %v7285_v0 }
0x35b2   : > { %v7290_v6 = vpop.xlane.xlu1 %7289 }
0x35b3   : > { %19257 = vrcp.f32 %v7290_v6  ;;  %v7287_v11 = vpop.xlane.xlu0 %7286 }
0x35b4   : > { %19259 = vrcp.f32 %v7287_v11 }
0x35bd   : > { %v19258_v43 = vpop.eup %19257 }
0x35be   : > { %v19260_v46 = vpop.eup %19259  ;;  %v7294_v50 = vmul.f32 %v19258_v43, %v19254_v44 }
0x35bf   : > { %v7292_v17 = vmul.f32 %v19260_v46, %v19256_v55 }
0x35c1   : > { %17530 = vmatprep.mubr.msk.f32.mxu1 %vm1090_vm4, %v7292_v17 }
0x35c2   : > { %17531 = vmatmul.mubr.msk.f32.vlgmr.msra.gmra.mrb[72].mxu1 %vm1090_vm4, %v7294_v50 }
0x35c3   : > { %18623 = vmatpush3.bf16.xpose.msk.msra.mxu1 %vm20153_vm1, %v21080_v7  ;;  %17548 = vmatprep.mubr.msk.f32.mxu1 %vm19713_vm2, %v22472_v31 }
0x35ca   : > { %17549 = vmatmul.mubr.msk.f32.vlgmr.msra.gmra.mrb[74].mxu1 %vm661_vm0, %v20879_v16 }
0x35cb   : > { %17564 = vmatprep.mubr.msk.f32.mxu1 %vm1008_vm3, %v7443_v18 }
0x3695   : > { %v17532_v26 = vpop.f32.mrb[72].mxu1 }
0x3696   : > { %v7367_v34 = vpop.f32.mrb[73].mxu1 }
0x369d   : > { %v7517_v41 = vpop.f32.mrb[74].mxu1 }
0x369e   : > { %v7518_v27 = vadd.f32 %v20889_v35, %v7517_v41  ;;  %v17550_v29 = vpop.f32.mrb[75].mxu1 }
0x36a0   : > { %17562 = vmatprep.subr.mxu1 %v7518_v27 }
0x36a1   : > { %17563 = vmatpush3.msra.mxu1 %v7518_v27 }
0x36a2   : > { %17565 = vmatmul.mubr.msk.f32.vlgmr.msra.gmra.mrb[76].mxu1 %vm1008_vm3, %v7448_v28  ;;  %18633 = vmatprep.subr.bf16.mxu1 %v18632_v62 }
0x36a3   : > { %18635 = vmatpush3.bf16.msra.mxu1 %v18632_v62 }
0x36a4   : > { %18637 = vmatprep.subr.bf16.mxu1 %v20277_v15 }
0x3775   : > { %v17566_v1 = vpop.f32.mrb[76].mxu1 }
0x3776   : > { %v7668_v16 = vpop.f32.mrb[77].mxu1  ;;  %v7680_v13 = vsel %vm1090_vm4, %v17566_v1, -inf }
0x3777   : > { %7681 = vmax.xlane.f32.xlu1 %v7680_v13  ;;  %v7677_v47 = vsel %vm1090_vm4, %v7668_v16, -inf }
0x3778   : > { %7678 = vmax.xlane.f32.xlu0 %v7677_v47 }
0x3804   : > { %v7682_v35 = vpop.xlane.xlu1 %7681 }
0x3805   : > { %v7684_v23 = vsub.f32 %v17566_v1, %v7682_v35  ;;  %v7679_v12 = vpop.xlane.xlu0 %7678 }
0x3806   : > { %v7683_v56 = vsub.f32 %v7668_v16, %v7679_v12 }
0x3807   : > { %v7687_v22 = vmul.f32 1.442695, %v7684_v23 }
0x3808   : > { %v7685_v9 = vmul.f32 1.442695, %v7683_v56 }
0x3809   : > { %19261 = vpow2.f32 %v7687_v22 }
0x380a   : > { %19263 = vpow2.f32 %v7685_v9 }
0x3813   : > { %v19262_v44 = vpop.eup %19261 }
0x3814   : > { %v19264_v62 = vpop.eup %19263  ;;  %v7692_v55 = vsel %vm1090_vm4, %v19262_v44, 0.0 }
0x3815   : > { %7693 = vadd.xlane.f32.xlu1 %v7692_v55  ;;  %v7689_v2 = vsel %vm1090_vm4, %v19264_v62, 0.0 }
0x3816   : > { %7690 = vadd.xlane.f32.xlu0 %v7689_v2 }
0x38a2   : > { %v7694_v0 = vpop.xlane.xlu1 %7693 }
0x38a3   : > { %19265 = vrcp.f32 %v7694_v0  ;;  %v7691_v6 = vpop.xlane.xlu0 %7690 }
0x38a4   : > { %19267 = vrcp.f32 %v7691_v6 }
0x38ad   : > { %v19266_v11 = vpop.eup %19265 }
0x38ae   : > { %v19268_v43 = vpop.eup %19267  ;;  %v7698_v17 = vmul.f32 %v19266_v11, %v19262_v44 }
0x38af   : > { %v7696_v46 = vmul.f32 %v19268_v43, %v19264_v62 }
0x38b1   : > { %17571 = vmatprep.mubr.msk.f32.mxu1 %vm1090_vm4, %v7696_v46 }
0x38b2   : > { %17572 = vmatmul.mubr.msk.f32.vlgmr.msra.gmra.mrb[78].mxu1 %vm1090_vm4, %v7698_v17 }
0x38b3   : > { %18639 = vmatpush3.bf16.msra.mxu1 %v20277_v15  ;;  %17592 = vmatprep.mubr.msk.f32.mxu1 %vm661_vm0, %v21096_v32 }
0x38b4   : > { %18641 = vmatprep.subr.bf16.mxu1 %v20286_v38 }
0x38b7   : > { %18643 = vmatpush3.bf16.msra.mxu1 %v20286_v38 }
0x38b8   : > { %18649 = vmatprep.subr.bf16.mxu1 %v20300_v51 }
0x38ba   : > { %17593 = vmatmul.mubr.msk.f32.vlgmr.msra.gmra.mrb[80].mxu1 %vm661_vm0, %v21099_v63 }
0x38bb   : > { %18651 = vmatpush3.bf16.msra.mxu1 %v20300_v51  ;;  %17610 = vmatprep.mubr.msk.f32.mxu1 %vm661_vm0, %v21076_v4 }
0x38bc   : > { %18653 = vmatprep.subr.bf16.mxu1 %v20310_v53 }
0x38bf   : > { %18655 = vmatpush3.bf16.msra.mxu1 %v20310_v53 }
0x38c2   : > { %17611 = vmatmul.mubr.msk.f32.vlgmr.msra.gmra.mrb[82].mxu1 %vm661_vm0, %v21073_v3 }
0x3985   : > { %v17573_v50 = vpop.f32.mrb[78].mxu1 }
0x3986   : > { %v7771_v18 = vpop.f32.mrb[79].mxu1 }
0x3987   : > { %17576 = vmatprep.mubr.msk.f32.mxu0 %vm1008_vm3, %v7771_v18 }
0x3988   : > { %17577 = vmatmul.mubr.msk.f32.vlgmr.msra.gmra.mrb[66].mxu0 %vm1008_vm3, %v17573_v50 }
0x3989   : > { %17580 = vmatpush3.msra.mxu0 %v20849_v59  ;;  %17581 = vmatprep.mubr.msk.f32.mxu0 %vm1008_vm3, %v7367_v34 }
0x398a   : > { %18644 = vmatprep.subr.bf16.mxu0 %v22471_v60 }
0x398d   : > { %v17594_v41 = vpop.f32.mrb[80].mxu1 }
0x398e   : > { %v8008_v27 = vpop.f32.mrb[81].mxu1  ;;  %v8014_v35 = vadd.f32 %v20937_v24, %v17594_v41 }
0x398f   : > { %v8009_v59 = vadd.f32 %v20937_v24, %v8008_v27 }
0x3990   : > { %17582 = vmatmul.mubr.msk.f32.vlgmr.msra.gmra.mrb[66].mxu0 %vm1008_vm3, %v17532_v26 }
0x3991   : > { %18647 = vmatpush3.bf16.xpose.msk.msra.mxu0 %vm20153_vm1, %v21080_v7  ;;  %17599 = vmatprep.mubr.msk.f32.mxu0 %vm19713_vm2, %v22472_v31 }
0x3995   : > { %v17612_v29 = vpop.f32.mrb[82].mxu1 }
0x3996   : > { %v8159_v28 = vadd.f32 %v20931_v37, %v17612_v29  ;;  %v8153_v1 = vpop.f32.mrb[83].mxu1 }
0x3997   : > { %v8154_v34 = vadd.f32 %v20931_v37, %v8153_v1 }
0x3998   : > { %17600 = vmatmul.mubr.msk.f32.vlgmr.msra.gmra.mrb[68].mxu0 %vm661_vm0, %v20944_v20 }
0x3999   : > { %v18656_v16 = vpack.c.bf16 %v8159_v28, %v8154_v34  ;;  %17615 = vmatprep.mubr.msk.f32.mxu0 %vm1008_vm3, %v8009_v59 }
0x399b   : > { %18657 = vmatprep.subr.bf16.mxu1 %v18656_v16 }
0x399c   : > { %18659 = vmatpush3.bf16.msra.mxu1 %v18656_v16 }
0x399d   : > { %18661 = vmatprep.subr.bf16.mxu1 %v20386_v8 }
0x3a6b   : > { %v8083_v26 = vpop.f32.mrb[68].mxu0 }
0x3a6c   : > { %v8084_v13 = vadd.f32 %v20953_v40, %v8083_v26  ;;  %v17601_v47 = vpop.f32.mrb[69].mxu0 }
0x3a6e   : > { %17613 = vmatprep.subr.mxu0 %v8084_v13 }
0x3a6f   : > { %17614 = vmatpush3.msra.mxu0 %v8084_v13 }
0x3a70   : > { %17616 = vmatmul.mubr.msk.f32.vlgmr.msra.gmra.mrb[70].mxu0 %vm1008_vm3, %v8014_v35  ;;  %17625 = vmatprep.subr.mxu0 %v20961_v45 }
0x3a71   : > { %17626 = vmatpush3.msra.mxu0 %v20961_v45 }
0x3a72   : > { %18668 = vmatprep.subr.bf16.mxu0 %v22471_v60 }
0x3b43   : > { %v17617_v37 = vpop.f32.mrb[70].mxu0 }
0x3b44   : > { %v8234_v20 = vpop.f32.mrb[71].mxu0  ;;  %v8246_v23 = vsel %vm1090_vm4, %v17617_v37, -inf }
0x3b45   : > { %8247 = vmax.xlane.f32.xlu1 %v8246_v23  ;;  %v8243_v40 = vsel %vm1090_vm4, %v8234_v20, -inf }
0x3b46   : > { %8244 = vmax.xlane.f32.xlu0 %v8243_v40 }
0x3bd2   : > { %v8248_v12 = vpop.xlane.xlu1 %8247 }
0x3bd3   : > { %v8250_v24 = vsub.f32 %v17617_v37, %v8248_v12  ;;  %v8245_v56 = vpop.xlane.xlu0 %8244 }
0x3bd4   : > { %v8249_v22 = vsub.f32 %v8234_v20, %v8245_v56 }
0x3bd5   : > { %v8253_v9 = vmul.f32 1.442695, %v8250_v24 }
0x3bd6   : > { %v8251_v44 = vmul.f32 1.442695, %v8249_v22 }
0x3bd7   : > { %19269 = vpow2.f32 %v8253_v9 }
0x3bd8   : > { %19271 = vpow2.f32 %v8251_v44 }
0x3be1   : > { %v19270_v62 = vpop.eup %19269 }
0x3be2   : > { %v19272_v45 = vpop.eup %19271  ;;  %v8258_v55 = vsel %vm1090_vm4, %v19270_v62, 0.0 }
0x3be3   : > { %8259 = vadd.xlane.f32.xlu1 %v8258_v55  ;;  %v8255_v2 = vsel %vm1090_vm4, %v19272_v45, 0.0  ;;  %v21257_v55 = vld [vmem:[%s19994_s30 + $0x58] sm:$0xff] }
0x3be4   : > { %8256 = vadd.xlane.f32.xlu0 %v8255_v2  ;;  %v21260_v2 = vld [vmem:[%s19994_s30 + $0x50] sm:$0xff] }
0x3c70   : > { %v8260_v0 = vpop.xlane.xlu1 %8259 }
0x3c71   : > { %19273 = vrcp.f32 %v8260_v0  ;;  %v8257_v6 = vpop.xlane.xlu0 %8256  ;;  %v8956_v0 = vsel %vm661_vm0, %v21257_v55, 0.0 }
0x3c72   : > { %19275 = vrcp.f32 %v8257_v6  ;;  %v8953_v6 = vsel %vm661_vm0, %v21260_v2, 0.0 }
0x3c7b   : > { %v19274_v11 = vpop.eup %19273 }
0x3c7c   : > { %v19276_v43 = vpop.eup %19275  ;;  %v8264_v17 = vmul.f32 %v19274_v11, %v19270_v62 }
0x3c7d   : > { %v8262_v46 = vmul.f32 %v19276_v43, %v19272_v45 }
0x3c7f   : > { %17622 = vmatprep.mubr.msk.f32.mxu1 %vm1090_vm4, %v8262_v46 }
0x3c80   : > { %17623 = vmatmul.mubr.msk.f32.vlgmr.msra.gmra.mrb[84].mxu1 %vm1090_vm4, %v8264_v17 }
0x3c81   : > { %18663 = vmatpush3.bf16.msra.mxu1 %v20386_v8  ;;  %17638 = vmatprep.mubr.msk.f32.mxu1 %vm661_vm0, %v21096_v32 }
0x3c82   : > { %18665 = vmatprep.subr.bf16.mxu1 %v20403_v48 }
0x3c85   : > { %18667 = vmatpush3.bf16.msra.mxu1 %v20403_v48 }
0x3c86   : > { %18673 = vmatprep.subr.bf16.mxu1 %v20417_v52 }
0x3c88   : > { %17639 = vmatmul.mubr.msk.f32.vlgmr.msra.gmra.mrb[86].mxu1 %vm661_vm0, %v21099_v63 }
0x3c89   : > { %18675 = vmatpush3.bf16.msra.mxu1 %v20417_v52  ;;  %17656 = vmatprep.mubr.msk.f32.mxu1 %vm661_vm0, %v21076_v4 }
0x3c8a   : > { %18677 = vmatprep.subr.bf16.mxu1 %v20427_v61 }
0x3c8d   : > { %18679 = vmatpush3.bf16.msra.mxu1 %v20427_v61 }
0x3c8e   : > { %18685 = vmatprep.subr.bf16.mxu1 %v20038_v30 }
0x3c90   : > { %17657 = vmatmul.mubr.msk.f32.vlgmr.msra.gmra.mrb[88].mxu1 %vm661_vm0, %v21073_v3 }
0x3c91   : > { %18687 = vmatpush3.bf16.msra.mxu1 %v20038_v30 }
0x3c92   : > { %18689 = vmatprep.subr.bf16.mxu1 %v20058_v36 }
0x3c95   : > { %18691 = vmatpush3.bf16.msra.mxu1 %v20058_v36 }
0x3c96   : > { %18697 = vmatprep.subr.bf16.mxu1 %v20046_v33 }
0x3d53   : > { %v17624_v32 = vpop.f32.mrb[84].mxu1 }
0x3d54   : > { %v8337_v63 = vpop.f32.mrb[85].mxu1 }
0x3d55   : > { %17627 = vmatprep.mubr.msk.f32.mxu0 %vm1008_vm3, %v8337_v63 }
0x3d56   : > { %17628 = vmatmul.mubr.msk.f32.vlgmr.msra.gmra.mrb[66].mxu0 %vm1008_vm3, %v17624_v32 }
0x3d57   : > { %18671 = vmatpush3.bf16.xpose.msk.msra.mxu0 %vm20153_vm1, %v21080_v7  ;;  %17645 = vmatprep.mubr.msk.f32.mxu0 %vm19713_vm2, %v22472_v31 }
0x3d5b   : > { %v17640_v3 = vpop.f32.mrb[86].mxu1 }
0x3d5c   : > { %v8495_v4 = vpop.f32.mrb[87].mxu1  ;;  %v8501_v34 = vadd.f32 %v21002_v57, %v17640_v3 }
0x3d5d   : > { %v8496_v50 = vadd.f32 %v21002_v57, %v8495_v4 }
0x3d5e   : > { %17646 = vmatmul.mubr.msk.f32.vlgmr.msra.gmra.mrb[72].mxu0 %vm661_vm0, %v21008_v5  ;;  %v22483_v5 = vld [vmem:[#allocation29_spill] sm:$0xff] }
0x3d5f   : > { %17661 = vmatprep.mubr.msk.f32.mxu0 %vm1008_vm3, %v8496_v50 }
0x3d63   : > { %v17658_v18 = vpop.f32.mrb[88].mxu1 }
0x3d64   : > { %v8646_v41 = vadd.f32 %v21016_v58, %v17658_v18  ;;  %v8640_v27 = vpop.f32.mrb[89].mxu1  ;;  %v22484_v18 = vld [vmem:[#allocation32_spill] sm:$0xff] }
0x3d65   : > { %v8641_v29 = vadd.f32 %v21016_v58, %v8640_v27 }
0x3d67   : > { %v18680_v28 = vpack.c.bf16 %v8646_v41, %v8641_v29 }
0x3e31   : > { %v8570_v7 = vpop.f32.mrb[72].mxu0 }
0x3e32   : > { %v8571_v1 = vadd.f32 %v21023_v49, %v8570_v7  ;;  %v17647_v59 = vpop.f32.mrb[73].mxu0 }
0x3e33   : > { %v22486_v59 = vld [vmem:[#allocation31_spill] sm:$0xff] }
0x3e34   : > { %17659 = vmatprep.subr.mxu0 %v8571_v1 }
0x3e35   : > { %17660 = vmatpush3.msra.mxu0 %v8571_v1 }
0x3e36   : > { %17662 = vmatmul.mubr.msk.f32.vlgmr.msra.gmra.mrb[74].mxu0 %vm1008_vm3, %v8501_v34  ;;  %18681 = vmatprep.subr.bf16.mxu0 %v18680_v28 }
0x3e37   : > { %18683 = vmatpush3.bf16.msra.mxu0 %v18680_v28  ;;  %v22485_v28 = vld [vmem:[#allocation30_spill] sm:$0xff] }
0x3e38   : > { %17671 = vmatprep.subr.mxu0 %v22483_v5 }
0x3f09   : > { %v17663_v16 = vpop.f32.mrb[74].mxu0 }
0x3f0a   : > { %v8721_v26 = vpop.f32.mrb[75].mxu0  ;;  %v8733_v13 = vsel %vm1090_vm4, %v17663_v16, -inf }
0x3f0b   : > { %8734 = vmax.xlane.f32.xlu1 %v8733_v13  ;;  %v8730_v58 = vsel %vm1090_vm4, %v8721_v26, -inf }
0x3f0c   : > { %8731 = vmax.xlane.f32.xlu0 %v8730_v58 }
0x3f98   : > { %v8735_v49 = vpop.xlane.xlu1 %8734 }
0x3f99   : > { %v8737_v47 = vsub.f32 %v17663_v16, %v8735_v49  ;;  %v8732_v35 = vpop.xlane.xlu0 %8731 }
0x3f9a   : > { %v8736_v57 = vsub.f32 %v8721_v26, %v8732_v35 }
0x3f9b   : > { %v8740_v37 = vmul.f32 1.442695, %v8737_v47 }
0x3f9c   : > { %v8738_v20 = vmul.f32 1.442695, %v8736_v57 }
0x3f9d   : > { %19277 = vpow2.f32 %v8740_v37 }
0x3f9e   : > { %19279 = vpow2.f32 %v8738_v20 }
0x3fa7   : > { %v19278_v23 = vpop.eup %19277 }
0x3fa8   : > { %v19280_v40 = vpop.eup %19279  ;;  %v8745_v12 = vsel %vm1090_vm4, %v19278_v23, 0.0 }
0x3fa9   : > { %8746 = vadd.xlane.f32.xlu1 %v8745_v12  ;;  %v8742_v24 = vsel %vm1090_vm4, %v19280_v40, 0.0 }
0x3faa   : > { %8743 = vadd.xlane.f32.xlu0 %v8742_v24 }
0x3fad   : > { %8957 = vadd.xlane.f32.xlu1 %v8956_v0 }
0x3fae   : > { %8954 = vadd.xlane.f32.xlu0 %v8953_v6 }
0x4036   : > { %v8747_v56 = vpop.xlane.xlu1 %8746 }
0x4037   : > { %19281 = vrcp.f32 %v8747_v56  ;;  %v8744_v22 = vpop.xlane.xlu0 %8743 }
0x4038   : > { %19283 = vrcp.f32 %v8744_v22 }
0x403a   : > { %v8958_v46 = vpop.xlane.xlu1 %8957 }
0x403b   : > { %v8955_v17 = vpop.xlane.xlu0 %8954  ;;  %v8960_v32 = vmul.f32 0.03125, %v8958_v46  ;;  %v21285_v46 = vld [vmem:[%s22460_s25] ss:$0 sm:$0xff] }
0x403c   : > { %v8959_v63 = vmul.f32 0.03125, %v8955_v17 }
0x403d   : > { %v8962_v3 = vsub.f32 %v21257_v55, %v8960_v32 }
0x403e   : > { %v8961_v50 = vsub.f32 %v21260_v2, %v8959_v63  ;;  %v21292_v63 = vld [vmem:[%s22370_s4] ss:$0 sm:$0xff] }
0x403f   : > { %v8964_v1 = vmul.f32 %v8962_v3, %v8962_v3 }
0x4041   : > { %v19282_v9 = vpop.eup %19281  ;;  %v8968_v13 = vsel %vm661_vm0, %v8964_v1, 0.0 }
0x4042   : > { %v19284_v44 = vpop.eup %19283  ;;  %v8751_v45 = vmul.f32 %v19282_v9, %v19278_v23 }
0x4043   : > { %v8749_v62 = vmul.f32 %v19284_v44, %v19280_v40 }
0x4045   : > { %17668 = vmatprep.mubr.msk.f32.mxu0 %vm1090_vm4, %v8749_v62 }
0x4046   : > { %17669 = vmatmul.mubr.msk.f32.vlgmr.msra.gmra.mrb[76].mxu0 %vm1090_vm4, %v8751_v45 }
0x4047   : > { %17672 = vmatpush3.msra.mxu0 %v22483_v5  ;;  %v8963_v5 = vmul.f32 %v8961_v50, %v8961_v50 }
0x4048   : > { %18692 = vmatprep.subr.bf16.mxu0 %v22471_v60 }
0x4049   : > { %v8965_v58 = vsel %vm661_vm0, %v8963_v5, 0.0 }
0x4119   : > { %v17670_v11 = vpop.f32.mrb[76].mxu0 }
0x411a   : > { %v8824_v43 = vpop.f32.mrb[77].mxu0 }
0x411b   : > { %17673 = vmatprep.mubr.msk.f32.mxu0 %vm1008_vm3, %v8824_v43 }
0x411c   : > { %17674 = vmatmul.mubr.msk.f32.vlgmr.msra.gmra.mrb[66].mxu0 %vm1008_vm3, %v17670_v11 }
0x411d   : > { %17691 = vmatprep.mubr.msk.f32.mxu0 %vm19713_vm2, %v22472_v31 }
0x41ef   : > { %v17675_v4 = vpop.f32.mrb[66].mxu0 }
0x41f0   : > { %v8917_v41 = vadd.f32 %v22484_v18, %v17675_v4  ;;  %v8905_v27 = vpop.f32.mrb[67].mxu0 }
0x41f1   : > { %v8916_v29 = vadd.f32 %v22484_v18, %v8905_v27  ;;  %v21310_v18 = vld [vmem:[%s22373_s7] sm:$0xff] }
0x41f2   : > { %v8919_v7 = vadd.f32 %v22485_v28, %v8917_v41 }
0x41f3   : > { %v8918_v34 = vadd.f32 %v22486_v59, %v8916_v29 }
0x41f4   : > { %v8926_v16 = vsel %vm661_vm0, %v8919_v7, 0.0 }
0x41f5   : > { %8927 = vadd.xlane.f32.xlu1 %v8926_v16  ;;  %v8923_v26 = vsel %vm661_vm0, %v8918_v34, 0.0 }
0x41f6   : > { %8924 = vadd.xlane.f32.xlu0 %v8923_v26  ;;  %v21321_v26 = vld [vmem:[%s22461_s19] ss:$0 sm:$0xff] }
0x41f9   : > { %8969 = vadd.xlane.f32.xlu1 %v8968_v13 }
0x41fa   : > { %8966 = vadd.xlane.f32.xlu0 %v8965_v58 }
0x4282   : > { %v8928_v49 = vpop.xlane.xlu1 %8927 }
0x4283   : > { %v8930_v47 = vmul.f32 0.03125, %v8928_v49  ;;  %v8925_v35 = vpop.xlane.xlu0 %8924  ;;  %v21330_v49 = vld [vmem:[%s22463_s17] ss:$0 sm:$0xff] }
0x4284   : > { %v8929_v57 = vmul.f32 0.03125, %v8925_v35 }
0x4285   : > { %v8932_v37 = vsub.f32 %v8919_v7, %v8930_v47 }
0x4286   : > { %v8931_v20 = vsub.f32 %v8918_v34, %v8929_v57  ;;  %v8970_v23 = vpop.xlane.xlu1 %8969 }
0x4287   : > { %v8972_v40 = vmul.f32 0.03125, %v8970_v23  ;;  %v8967_v12 = vpop.xlane.xlu0 %8966  ;;  %v8934_v24 = vmul.f32 %v8932_v37, %v8932_v37 }
0x4288   : > { %v8971_v56 = vmul.f32 0.03125, %v8967_v12  ;;  %v8933_v22 = vmul.f32 %v8931_v20, %v8931_v20 }
0x4289   : > { %v8974_v9 = vadd.f32 1e-06, %v8972_v40  ;;  %v8938_v44 = vsel %vm661_vm0, %v8934_v24, 0.0  ;;  %v21359_v24 = vld [vmem:[%s22372_s6] ss:$0 sm:$0xff] }
0x428a   : > { %v8973_v62 = vadd.f32 1e-06, %v8971_v56  ;;  %8939 = vadd.xlane.f32.xlu1 %v8938_v44  ;;  %v8935_v45 = vsel %vm661_vm0, %v8933_v22, 0.0  ;;  %v21372_v44 = vld [vmem:[%s22376_s10] ss:$0 sm:$0xff] }
0x428b   : > { %19285 = vrsqrt.f32 %v8974_v9  ;;  %8936 = vadd.xlane.f32.xlu0 %v8935_v45 }
0x428c   : > { %19287 = vrsqrt.f32 %v8973_v62 }
0x4295   : > { %v19286_v0 = vpop.eup %19285 }
0x4296   : > { %v19288_v6 = vpop.eup %19287  ;;  %v8978_v11 = vmul.f32 %v19286_v0, %v8962_v3 }
0x4297   : > { %v8977_v43 = vmul.f32 %v19288_v6, %v8961_v50 }
0x4298   : > { %v8980_v17 = vmul.f32 %v21285_v46, %v8978_v11  ;;  %v21389_v11 = vld [vmem:[%s22377_s11 + $0x8] sm:$0xff] }
0x4299   : > { %v8979_v32 = vmul.f32 %v21285_v46, %v8977_v43  ;;  %v21398_v43 = vld [vmem:[%s22377_s11] sm:$0xff] }
0x429a   : > { %v21295_v4 = vadd.f32 %v21292_v63, %v8980_v17 }
0x429b   : > { %v21298_v3 = vadd.f32 %v21292_v63, %v8979_v32 }
0x429d   : > { %v21302_v50 = vpack.c.bf16 %v21295_v4, %v21298_v3 }
0x429f   : > { %18695 = vmatpush3.bf16.xpose.msk.msra.mxu0 %vm20153_vm1, %v21302_v50 }
0x42a6   : > { %17692 = vmatmul.mubr.msk.f32.vlgmr.msra.gmra.mrb[78].mxu0 %vm661_vm0, %v21310_v18 }
0x4317   : > { %v8940_v41 = vpop.xlane.xlu1 %8939 }
0x4318   : > { %v8942_v27 = vmul.f32 0.03125, %v8940_v41  ;;  %v8937_v29 = vpop.xlane.xlu0 %8936 }
0x4319   : > { %v8941_v28 = vmul.f32 0.03125, %v8937_v29 }
0x431a   : > { %v8944_v7 = vadd.f32 1e-06, %v8942_v27 }
0x431b   : > { %v8943_v1 = vadd.f32 1e-06, %v8941_v28 }
0x431c   : > { %19289 = vrsqrt.f32 %v8944_v7 }
0x431d   : > { %19291 = vrsqrt.f32 %v8943_v1  ;;  %v21406_v1 = vld [vmem:[%s22376_s10 + $0x1] ss:$0 sm:$0xff] }
0x4326   : > { %v19290_v59 = vpop.eup %19289 }
0x4327   : > { %v19292_v34 = vpop.eup %19291  ;;  %v21314_v5 = vmul.f32 %v19290_v59, %v8932_v37  ;;  %v21352_v37 = vld [vmem:[%s22374_s8] sm:$0xff] }
0x4328   : > { %v21316_v16 = vmul.f32 %v19292_v34, %v8931_v20 }
0x4329   : > { %22487 = vst [vmem:[#allocation29_spill] sm:$0xff] %v21314_v5  ;;  %v8950_v13 = vmul.f32 %v21321_v26, %v21314_v5 }
0x432a   : > { %22488 = vst [vmem:[#allocation32_spill] sm:$0xff] %v21316_v16  ;;  %v8949_v58 = vmul.f32 %v21321_v26, %v21316_v16 }
0x432b   : > { %v21336_v35 = vadd.f32 %v21330_v49, %v8950_v13 }
0x432c   : > { %v21333_v47 = vadd.f32 %v21330_v49, %v8949_v58 }
0x432e   : > { %17684 = vmatprep.mubr.msk.f32.mxu1 %vm661_vm0, %v21333_v47 }
0x432f   : > { %17685 = vmatmul.mubr.msk.f32.vlgmr.msra.gmra.mrb[90].mxu1 %vm661_vm0, %v21336_v35 }
0x4330   : > { %18699 = vmatpush3.bf16.msra.mxu1 %v20046_v33  ;;  %17702 = vmatprep.mubr.msk.f32.mxu1 %vm661_vm0, %v21298_v3 }
0x4331   : > { %18701 = vmatprep.subr.bf16.mxu1 %v20066_v39 }
0x4334   : > { %18703 = vmatpush3.bf16.msra.mxu1 %v20066_v39 }
0x4337   : > { %17703 = vmatmul.mubr.msk.f32.vlgmr.msra.gmra.mrb[92].mxu1 %vm661_vm0, %v21295_v4 }
0x4379   : > { %v9136_v57 = vpop.f32.mrb[78].mxu0 }
0x437a   : > { %v9137_v20 = vadd.f32 %v21352_v37, %v9136_v57  ;;  %v17693_v23 = vpop.f32.mrb[79].mxu0 }
0x437c   : > { %17705 = vmatprep.subr.mxu0 %v9137_v20 }
0x437d   : > { %17706 = vmatpush3.msra.mxu0 %v9137_v20 }
0x437e   : > { %18709 = vmatprep.subr.bf16.mxu0 %v20078_v42 }
0x4402   : > { %v17686_v40 = vpop.f32.mrb[90].mxu1 }
0x4403   : > { %v9055_v12 = vpop.f32.mrb[91].mxu1  ;;  %v9061_v22 = vadd.f32 %v21359_v24, %v17686_v40 }
0x4404   : > { %v9056_v56 = vadd.f32 %v21359_v24, %v9055_v12 }
0x4406   : > { %17707 = vmatprep.mubr.msk.f32.mxu0 %vm1008_vm3, %v9056_v56 }
0x4407   : > { %17708 = vmatmul.mubr.msk.f32.vlgmr.msra.gmra.mrb[80].mxu0 %vm1008_vm3, %v9061_v22 }
0x4408   : > { %18711 = vmatpush3.bf16.msra.mxu0 %v20078_v42  ;;  %17725 = vmatprep.mubr.msk.f32.mxu0 %vm661_vm0, %v21333_v47 }
0x4409   : > { %18713 = vmatprep.subr.bf16.mxu0 %v20131_v14 }
0x440a   : > { %v17704_v9 = vpop.f32.mrb[92].mxu1 }
0x440b   : > { %v9212_v62 = vadd.f32 %v21372_v44, %v17704_v9  ;;  %v9206_v45 = vpop.f32.mrb[93].mxu1 }
0x440c   : > { %v9207_v0 = vadd.f32 %v21372_v44, %v9206_v45  ;;  %18715 = vmatpush3.bf16.msra.mxu0 %v20131_v14 }
0x440d   : > { %18721 = vmatprep.subr.bf16.mxu0 %v20162_v21 }
0x440e   : > { %v18704_v6 = vpack.c.bf16 %v9212_v62, %v9207_v0 }
0x440f   : > { %17726 = vmatmul.mubr.msk.f32.vlgmr.msra.gmra.mrb[82].mxu0 %vm661_vm0, %v21336_v35 }
0x4410   : > { %18705 = vmatprep.subr.bf16.mxu1 %v18704_v6  ;;  %18723 = vmatpush3.bf16.msra.mxu0 %v20162_v21 }
0x4411   : > { %17743 = vmatprep.mubr.msk.f32.mxu0 %vm661_vm0, %v21298_v3  ;;  %18707 = vmatpush3.bf16.msra.mxu1 %v18704_v6 }
0x4412   : > { %18725 = vmatprep.subr.bf16.mxu0 %v20179_v25  ;;  %18716 = vmatprep.subr.bf16.mxu1 %v22471_v60 }
0x4414   : > { %18727 = vmatpush3.bf16.msra.mxu0 %v20179_v25 }
0x4415   : > { %17758 = vmatprep.subr.mxu0 %v21389_v11 }
0x4417   : > { %17744 = vmatmul.mubr.msk.f32.vlgmr.msra.gmra.mrb[84].mxu0 %vm661_vm0, %v21295_v4 }
0x4418   : > { %17759 = vmatpush3.msra.mxu0 %v21389_v11 }
0x4419   : > { %17763 = vmatprep.subr.mxu0 %v21398_v43 }
0x44da   : > { %v17709_v17 = vpop.f32.mrb[80].mxu0 }
0x44db   : > { %v9287_v32 = vpop.f32.mrb[81].mxu0  ;;  %v9299_v41 = vsel %vm1090_vm4, %v17709_v17, -inf }
0x44dc   : > { %9300 = vmax.xlane.f32.xlu1 %v9299_v41  ;;  %v9296_v27 = vsel %vm1090_vm4, %v9287_v32, -inf }
0x44dd   : > { %9297 = vmax.xlane.f32.xlu0 %v9296_v27 }
0x44e2   : > { %v17727_v29 = vpop.f32.mrb[82].mxu0 }
0x44e3   : > { %v9465_v28 = vpop.f32.mrb[83].mxu0 }
0x44ea   : > { %v17745_v7 = vpop.f32.mrb[84].mxu0 }
0x44eb   : > { %v9616_v59 = vadd.f32 %v21406_v1, %v17745_v7  ;;  %v9610_v34 = vpop.f32.mrb[85].mxu0  ;;  %v21422_v7 = vld [vmem:[%s22372_s6 + $0x1] ss:$0 sm:$0xff] }
0x44ec   : > { %v9611_v13 = vadd.f32 %v21406_v1, %v9610_v34  ;;  %v21428_v34 = vld [vmem:[%s22373_s7 + $0x8] sm:$0xff] }
0x44ee   : > { %v18728_v58 = vpack.c.bf16 %v9616_v59, %v9611_v13  ;;  %v9466_v59 = vadd.f32 %v21422_v7, %v9465_v28 }
0x4569   : > { %v9301_v57 = vpop.xlane.xlu1 %9300 }
0x456a   : > { %v9303_v20 = vsub.f32 %v17709_v17, %v9301_v57  ;;  %v9298_v23 = vpop.xlane.xlu0 %9297 }
0x456b   : > { %v9302_v40 = vsub.f32 %v9287_v32, %v9298_v23  ;;  %v21438_v23 = vld [vmem:[%s22374_s8 + $0x8] sm:$0xff] }
0x456c   : > { %v9306_v12 = vmul.f32 1.442695, %v9303_v20 }
0x456d   : > { %v9304_v56 = vmul.f32 1.442695, %v9302_v40 }
0x456e   : > { %19293 = vpow2.f32 %v9306_v12  ;;  %v9471_v12 = vadd.f32 %v21422_v7, %v17727_v29 }
0x456f   : > { %19295 = vpow2.f32 %v9304_v56 }
0x4578   : > { %v19294_v22 = vpop.eup %19293 }
0x4579   : > { %v19296_v9 = vpop.eup %19295  ;;  %v9311_v62 = vsel %vm1090_vm4, %v19294_v22, 0.0 }
0x457a   : > { %9312 = vadd.xlane.f32.xlu1 %v9311_v62  ;;  %v9308_v45 = vsel %vm1090_vm4, %v19296_v9, 0.0 }
0x457b   : > { %9309 = vadd.xlane.f32.xlu0 %v9308_v45 }
0x4607   : > { %v9313_v0 = vpop.xlane.xlu1 %9312 }
0x4608   : > { %19297 = vrcp.f32 %v9313_v0  ;;  %v9310_v6 = vpop.xlane.xlu0 %9309 }
0x4609   : > { %19299 = vrcp.f32 %v9310_v6 }
0x4612   : > { %v19298_v41 = vpop.eup %19297 }
0x4613   : > { %v19300_v17 = vpop.eup %19299  ;;  %v9317_v32 = vmul.f32 %v19298_v41, %v19294_v22 }
0x4614   : > { %v9315_v27 = vmul.f32 %v19300_v17, %v19296_v9 }
0x4616   : > { %17714 = vmatprep.mubr.msk.f32.mxu1 %vm1090_vm4, %v9315_v27 }
0x4617   : > { %17715 = vmatmul.mubr.msk.f32.vlgmr.msra.gmra.mrb[94].mxu1 %vm1090_vm4, %v9317_v32 }
0x4618   : > { %18719 = vmatpush3.bf16.xpose.msk.msra.mxu1 %vm20153_vm1, %v21302_v50  ;;  %17732 = vmatprep.mubr.msk.f32.mxu1 %vm19713_vm2, %v22472_v31 }
0x461f   : > { %17733 = vmatmul.mubr.msk.f32.vlgmr.msra.gmra.mrb[96].mxu1 %vm661_vm0, %v21428_v34 }
0x4620   : > { %17748 = vmatprep.mubr.msk.f32.mxu1 %vm1008_vm3, %v9466_v59 }
0x46ea   : > { %v21433_v13 = vpop.f32.mrb[94].mxu1 }
0x46eb   : > { %v9390_v57 = vpop.f32.mrb[95].mxu1 }
0x46f2   : > { %v9540_v20 = vpop.f32.mrb[96].mxu1 }
0x46f3   : > { %v9541_v28 = vadd.f32 %v21438_v23, %v9540_v20  ;;  %v17734_v40 = vpop.f32.mrb[97].mxu1 }
0x46f5   : > { %17746 = vmatprep.subr.mxu1 %v9541_v28 }
0x46f6   : > { %17747 = vmatpush3.msra.mxu1 %v9541_v28 }
0x46f7   : > { %17749 = vmatmul.mubr.msk.f32.vlgmr.msra.gmra.mrb[98].mxu1 %vm1008_vm3, %v9471_v12  ;;  %18729 = vmatprep.subr.bf16.mxu1 %v18728_v58 }
0x46f8   : > { %18731 = vmatpush3.bf16.msra.mxu1 %v18728_v58 }
0x46f9   : > { %18733 = vmatprep.subr.bf16.mxu1 %v20277_v15 }
0x47ca   : > { %v17750_v56 = vpop.f32.mrb[98].mxu1 }
0x47cb   : > { %v9691_v22 = vpop.f32.mrb[99].mxu1  ;;  %v9703_v9 = vsel %vm1090_vm4, %v17750_v56, -inf }
0x47cc   : > { %9704 = vmax.xlane.f32.xlu1 %v9703_v9  ;;  %v9700_v62 = vsel %vm1090_vm4, %v9691_v22, -inf }
0x47cd   : > { %9701 = vmax.xlane.f32.xlu0 %v9700_v62 }
0x4859   : > { %v9705_v45 = vpop.xlane.xlu1 %9704 }
0x485a   : > { %v9707_v0 = vsub.f32 %v17750_v56, %v9705_v45  ;;  %v9702_v6 = vpop.xlane.xlu0 %9701 }
0x485b   : > { %v9706_v29 = vsub.f32 %v9691_v22, %v9702_v6 }
0x485c   : > { %v9710_v41 = vmul.f32 1.442695, %v9707_v0 }
0x485d   : > { %v9708_v17 = vmul.f32 1.442695, %v9706_v29  ;;  %v21480_v29 = vld [vmem:[%s22376_s10 + $0x2] ss:$0 sm:$0xff] }
0x485e   : > { %19301 = vpow2.f32 %v9710_v41 }
0x485f   : > { %19303 = vpow2.f32 %v9708_v17 }
0x4868   : > { %v19302_v27 = vpop.eup %19301 }
0x4869   : > { %v19304_v58 = vpop.eup %19303  ;;  %v9715_v32 = vsel %vm1090_vm4, %v19302_v27, 0.0 }
0x486a   : > { %9716 = vadd.xlane.f32.xlu1 %v9715_v32  ;;  %v9712_v59 = vsel %vm1090_vm4, %v19304_v58, 0.0 }
0x486b   : > { %9713 = vadd.xlane.f32.xlu0 %v9712_v59 }
0x48f7   : > { %v9717_v20 = vpop.xlane.xlu1 %9716 }
0x48f8   : > { %19305 = vrcp.f32 %v9717_v20  ;;  %v9714_v28 = vpop.xlane.xlu0 %9713  ;;  %v21502_v20 = vld [vmem:[%s22374_s8 + $0x10] sm:$0xff] }
0x48f9   : > { %19307 = vrcp.f32 %v9714_v28 }
0x4902   : > { %v19306_v40 = vpop.eup %19305 }
0x4903   : > { %v19308_v12 = vpop.eup %19307  ;;  %v9721_v22 = vmul.f32 %v19306_v40, %v19302_v27 }
0x4904   : > { %v9719_v56 = vmul.f32 %v19308_v12, %v19304_v58  ;;  %v21493_v58 = vld [vmem:[%s22373_s7 + $0x10] sm:$0xff] }
0x4906   : > { %17755 = vmatprep.mubr.msk.f32.mxu1 %vm1090_vm4, %v9719_v56  ;;  %v21510_v56 = vld [vmem:[%s22377_s11 + $0x10] sm:$0xff] }
0x4907   : > { %17756 = vmatmul.mubr.msk.f32.vlgmr.msra.gmra.mrb[100].mxu1 %vm1090_vm4, %v9721_v22 }
0x4908   : > { %18735 = vmatpush3.bf16.msra.mxu1 %v20277_v15  ;;  %17776 = vmatprep.mubr.msk.f32.mxu1 %vm661_vm0, %v21333_v47 }
0x4909   : > { %18737 = vmatprep.subr.bf16.mxu1 %v20286_v38 }
0x490c   : > { %18739 = vmatpush3.bf16.msra.mxu1 %v20286_v38 }
0x490d   : > { %18745 = vmatprep.subr.bf16.mxu1 %v20300_v51 }
0x490f   : > { %17777 = vmatmul.mubr.msk.f32.vlgmr.msra.gmra.mrb[102].mxu1 %vm661_vm0, %v21336_v35 }
0x4910   : > { %18747 = vmatpush3.bf16.msra.mxu1 %v20300_v51  ;;  %17794 = vmatprep.mubr.msk.f32.mxu1 %vm661_vm0, %v21298_v3 }
0x4911   : > { %18749 = vmatprep.subr.bf16.mxu1 %v20310_v53 }
0x4914   : > { %18751 = vmatpush3.bf16.msra.mxu1 %v20310_v53 }
0x4917   : > { %17795 = vmatmul.mubr.msk.f32.vlgmr.msra.gmra.mrb[104].mxu1 %vm661_vm0, %v21295_v4 }
0x49da   : > { %v17757_v9 = vpop.f32.mrb[100].mxu1 }
0x49db   : > { %v9794_v62 = vpop.f32.mrb[101].mxu1 }
0x49dc   : > { %17760 = vmatprep.mubr.msk.f32.mxu0 %vm1008_vm3, %v9794_v62 }
0x49dd   : > { %17761 = vmatmul.mubr.msk.f32.vlgmr.msra.gmra.mrb[86].mxu0 %vm1008_vm3, %v17757_v9 }
0x49de   : > { %17764 = vmatpush3.msra.mxu0 %v21398_v43  ;;  %17765 = vmatprep.mubr.msk.f32.mxu0 %vm1008_vm3, %v9390_v57 }
0x49df   : > { %18740 = vmatprep.subr.bf16.mxu0 %v22471_v60 }
0x49e2   : > { %v17778_v45 = vpop.f32.mrb[102].mxu1 }
0x49e3   : > { %v10031_v0 = vpop.f32.mrb[103].mxu1 }
0x49e5   : > { %17766 = vmatmul.mubr.msk.f32.vlgmr.msra.gmra.mrb[86].mxu0 %vm1008_vm3, %v21433_v13  ;;  %v21486_v13 = vld [vmem:[%s22372_s6 + $0x2] ss:$0 sm:$0xff] }
0x49e6   : > { %18743 = vmatpush3.bf16.xpose.msk.msra.mxu0 %vm20153_vm1, %v21302_v50  ;;  %17783 = vmatprep.mubr.msk.f32.mxu0 %vm19713_vm2, %v22472_v31  ;;  %v10032_v17 = vadd.f32 %v21486_v13, %v10031_v0  ;;  %v10037_v12 = vadd.f32 %v21486_v13, %v17778_v45 }
0x49ea   : > { %v17796_v6 = vpop.f32.mrb[104].mxu1 }
0x49eb   : > { %v10182_v57 = vadd.f32 %v21480_v29, %v17796_v6  ;;  %v10176_v41 = vpop.f32.mrb[105].mxu1 }
0x49ec   : > { %v10177_v27 = vadd.f32 %v21480_v29, %v10176_v41 }
0x49ed   : > { %17784 = vmatmul.mubr.msk.f32.vlgmr.msra.gmra.mrb[88].mxu0 %vm661_vm0, %v21493_v58 }
0x49ee   : > { %v18752_v32 = vpack.c.bf16 %v10182_v57, %v10177_v27  ;;  %17799 = vmatprep.mubr.msk.f32.mxu0 %vm1008_vm3, %v10032_v17 }
0x49f0   : > { %18753 = vmatprep.subr.bf16.mxu1 %v18752_v32 }
0x49f1   : > { %18755 = vmatpush3.bf16.msra.mxu1 %v18752_v32 }
0x49f2   : > { %18757 = vmatprep.subr.bf16.mxu1 %v20386_v8 }
0x4ac0   : > { %v10106_v59 = vpop.f32.mrb[88].mxu0 }
0x4ac1   : > { %v10107_v28 = vadd.f32 %v21502_v20, %v10106_v59  ;;  %v17785_v40 = vpop.f32.mrb[89].mxu0 }
0x4ac3   : > { %17797 = vmatprep.subr.mxu0 %v10107_v28 }
0x4ac4   : > { %17798 = vmatpush3.msra.mxu0 %v10107_v28 }
0x4ac5   : > { %17800 = vmatmul.mubr.msk.f32.vlgmr.msra.gmra.mrb[90].mxu0 %vm1008_vm3, %v10037_v12  ;;  %17809 = vmatprep.subr.mxu0 %v21510_v56 }
0x4ac6   : > { %17810 = vmatpush3.msra.mxu0 %v21510_v56 }
0x4ac7   : > { %18764 = vmatprep.subr.bf16.mxu0 %v22471_v60 }
0x4b98   : > { %v17801_v22 = vpop.f32.mrb[90].mxu0 }
0x4b99   : > { %v10257_v9 = vpop.f32.mrb[91].mxu0  ;;  %v10269_v62 = vsel %vm1090_vm4, %v17801_v22, -inf }
0x4b9a   : > { %10270 = vmax.xlane.f32.xlu1 %v10269_v62  ;;  %v10266_v45 = vsel %vm1090_vm4, %v10257_v9, -inf }
0x4b9b   : > { %10267 = vmax.xlane.f32.xlu0 %v10266_v45 }
0x4c27   : > { %v10271_v0 = vpop.xlane.xlu1 %10270 }
0x4c28   : > { %v10273_v6 = vsub.f32 %v17801_v22, %v10271_v0  ;;  %v10268_v57 = vpop.xlane.xlu0 %10267 }
0x4c29   : > { %v10272_v41 = vsub.f32 %v10257_v9, %v10268_v57 }
0x4c2a   : > { %v10276_v17 = vmul.f32 1.442695, %v10273_v6  ;;  %v21551_v6 = vld [vmem:[%s22372_s6 + $0x3] ss:$0 sm:$0xff] }
0x4c2b   : > { %v10274_v27 = vmul.f32 1.442695, %v10272_v41  ;;  %v21557_v41 = vld [vmem:[%s22373_s7 + $0x18] sm:$0xff] }
0x4c2c   : > { %19309 = vpow2.f32 %v10276_v17  ;;  %v21565_v17 = vld [vmem:[%s22376_s10 + $0x3] ss:$0 sm:$0xff] }
0x4c2d   : > { %19311 = vpow2.f32 %v10274_v27 }
0x4c36   : > { %v19310_v32 = vpop.eup %19309 }
0x4c37   : > { %v19312_v59 = vpop.eup %19311  ;;  %v10281_v28 = vsel %vm1090_vm4, %v19310_v32, 0.0 }
0x4c38   : > { %10282 = vadd.xlane.f32.xlu1 %v10281_v28  ;;  %v10278_v40 = vsel %vm1090_vm4, %v19312_v59, 0.0 }
0x4c39   : > { %10279 = vadd.xlane.f32.xlu0 %v10278_v40 }
0x4cc5   : > { %v10283_v12 = vpop.xlane.xlu1 %10282 }
0x4cc6   : > { %19313 = vrcp.f32 %v10283_v12  ;;  %v10280_v62 = vpop.xlane.xlu0 %10279  ;;  %v21572_v12 = vld [vmem:[%s22374_s8 + $0x18] sm:$0xff] }
0x4cc7   : > { %19315 = vrcp.f32 %v10280_v62 }
0x4cd0   : > { %v19314_v45 = vpop.eup %19313 }
0x4cd1   : > { %v19316_v22 = vpop.eup %19315  ;;  %v10287_v9 = vmul.f32 %v19314_v45, %v19310_v32 }
0x4cd2   : > { %v10285_v0 = vmul.f32 %v19316_v22, %v19312_v59 }
0x4cd4   : > { %17806 = vmatprep.mubr.msk.f32.mxu1 %vm1090_vm4, %v10285_v0  ;;  %v21580_v0 = vld [vmem:[%s22377_s11 + $0x18] sm:$0xff] }
0x4cd5   : > { %17807 = vmatmul.mubr.msk.f32.vlgmr.msra.gmra.mrb[106].mxu1 %vm1090_vm4, %v10287_v9  ;;  %22489 = vst [vmem:[#allocation30_spill] sm:$0xff] %v21580_v0 }
0x4cd6   : > { %18759 = vmatpush3.bf16.msra.mxu1 %v20386_v8  ;;  %17822 = vmatprep.mubr.msk.f32.mxu1 %vm661_vm0, %v21333_v47 }
0x4cd7   : > { %18761 = vmatprep.subr.bf16.mxu1 %v20403_v48 }
0x4cda   : > { %18763 = vmatpush3.bf16.msra.mxu1 %v20403_v48 }
0x4cdb   : > { %18769 = vmatprep.subr.bf16.mxu1 %v20417_v52 }
0x4cdd   : > { %17823 = vmatmul.mubr.msk.f32.vlgmr.msra.gmra.mrb[108].mxu1 %vm661_vm0, %v21336_v35 }
0x4cde   : > { %18771 = vmatpush3.bf16.msra.mxu1 %v20417_v52  ;;  %17840 = vmatprep.mubr.msk.f32.mxu1 %vm661_vm0, %v21298_v3 }
0x4cdf   : > { %18773 = vmatprep.subr.bf16.mxu1 %v20427_v61 }
0x4ce2   : > { %18775 = vmatpush3.bf16.msra.mxu1 %v20427_v61 }
0x4ce3   : > { %18781 = vmatprep.subr.bf16.mxu1 %v20038_v30 }
0x4ce5   : > { %17841 = vmatmul.mubr.msk.f32.vlgmr.msra.gmra.mrb[110].mxu1 %vm661_vm0, %v21295_v4 }
0x4ce6   : > { %18783 = vmatpush3.bf16.msra.mxu1 %v20038_v30 }
0x4ce7   : > { %18785 = vmatprep.subr.bf16.mxu1 %v20058_v36 }
0x4cea   : > { %18787 = vmatpush3.bf16.msra.mxu1 %v20058_v36 }
0x4ceb   : > { %18793 = vmatprep.subr.bf16.mxu1 %v20046_v33 }
0x4da8   : > { %v17808_v47 = vpop.f32.mrb[106].mxu1 }
0x4da9   : > { %v10360_v35 = vpop.f32.mrb[107].mxu1 }
0x4daa   : > { %17811 = vmatprep.mubr.msk.f32.mxu0 %vm1008_vm3, %v10360_v35 }
0x4dab   : > { %17812 = vmatmul.mubr.msk.f32.vlgmr.msra.gmra.mrb[86].mxu0 %vm1008_vm3, %v17808_v47 }
0x4dac   : > { %18767 = vmatpush3.bf16.xpose.msk.msra.mxu0 %vm20153_vm1, %v21302_v50  ;;  %17829 = vmatprep.mubr.msk.f32.mxu0 %vm19713_vm2, %v22472_v31 }
0x4db0   : > { %v17824_v4 = vpop.f32.mrb[108].mxu1 }
0x4db1   : > { %v10518_v3 = vpop.f32.mrb[109].mxu1  ;;  %v10524_v22 = vadd.f32 %v21551_v6, %v17824_v4 }
0x4db2   : > { %v10519_v57 = vadd.f32 %v21551_v6, %v10518_v3 }
0x4db3   : > { %17830 = vmatmul.mubr.msk.f32.vlgmr.msra.gmra.mrb[92].mxu0 %vm661_vm0, %v21557_v41 }
0x4db4   : > { %17845 = vmatprep.mubr.msk.f32.mxu0 %vm1008_vm3, %v10519_v57 }
0x4db8   : > { %v17842_v50 = vpop.f32.mrb[110].mxu1 }
0x4db9   : > { %v10669_v27 = vadd.f32 %v21565_v17, %v17842_v50  ;;  %v10663_v32 = vpop.f32.mrb[111].mxu1 }
0x4dba   : > { %v10664_v59 = vadd.f32 %v21565_v17, %v10663_v32 }
0x4dbc   : > { %v18776_v28 = vpack.c.bf16 %v10669_v27, %v10664_v59 }
0x4e86   : > { %v10593_v40 = vpop.f32.mrb[92].mxu0 }
0x4e87   : > { %v10594_v62 = vadd.f32 %v21572_v12, %v10593_v40  ;;  %v17831_v45 = vpop.f32.mrb[93].mxu0 }
0x4e89   : > { %17843 = vmatprep.subr.mxu0 %v10594_v62 }
0x4e8a   : > { %17844 = vmatpush3.msra.mxu0 %v10594_v62 }
0x4e8b   : > { %17846 = vmatmul.mubr.msk.f32.vlgmr.msra.gmra.mrb[94].mxu0 %vm1008_vm3, %v10524_v22  ;;  %18777 = vmatprep.subr.bf16.mxu0 %v18776_v28 }
0x4e8c   : > { %18779 = vmatpush3.bf16.msra.mxu0 %v18776_v28 }
0x4e8d   : > { %17855 = vmatprep.subr.mxu0 %v21580_v0 }
0x4f5e   : > { %v17847_v9 = vpop.f32.mrb[94].mxu0 }
0x4f5f   : > { %v10744_v47 = vpop.f32.mrb[95].mxu0  ;;  %v10756_v35 = vsel %vm1090_vm4, %v17847_v9, -inf }
0x4f60   : > { %10757 = vmax.xlane.f32.xlu1 %v10756_v35  ;;  %v10753_v4 = vsel %vm1090_vm4, %v10744_v47, -inf }
0x4f61   : > { %10754 = vmax.xlane.f32.xlu0 %v10753_v4 }
0x4fed   : > { %v10758_v3 = vpop.xlane.xlu1 %10757 }
0x4fee   : > { %v10760_v57 = vsub.f32 %v17847_v9, %v10758_v3  ;;  %v10755_v50 = vpop.xlane.xlu0 %10754 }
0x4fef   : > { %v10759_v27 = vsub.f32 %v10744_v47, %v10755_v50  ;;  %v21595_v50 = vld [vmem:[%s19994_s30 + $0x60] sm:$0xff] }
0x4ff0   : > { %v10763_v32 = vmul.f32 1.442695, %v10760_v57  ;;  %v21592_v57 = vld [vmem:[%s19994_s30 + $0x68] sm:$0xff]  ;;  %22491 = vst [vmem:[#allocation35_spill] sm:$0xff] %v21595_v50 }
0x4ff1   : > { %v10761_v59 = vmul.f32 1.442695, %v10759_v27  ;;  %22490 = vst [vmem:[#allocation31_spill] sm:$0xff] %v21592_v57  ;;  %v10979_v27 = vsel %vm661_vm0, %v21592_v57, 0.0 }
0x4ff2   : > { %19317 = vpow2.f32 %v10763_v32  ;;  %v10976_v32 = vsel %vm661_vm0, %v21595_v50, 0.0 }
0x4ff3   : > { %19319 = vpow2.f32 %v10761_v59 }
0x4ffc   : > { %v19318_v28 = vpop.eup %19317 }
0x4ffd   : > { %v19320_v40 = vpop.eup %19319  ;;  %v10768_v62 = vsel %vm1090_vm4, %v19318_v28, 0.0 }
0x4ffe   : > { %10769 = vadd.xlane.f32.xlu1 %v10768_v62  ;;  %v10765_v45 = vsel %vm1090_vm4, %v19320_v40, 0.0 }
0x4fff   : > { %10766 = vadd.xlane.f32.xlu0 %v10765_v45 }
0x5002   : > { %10980 = vadd.xlane.f32.xlu1 %v10979_v27 }
0x5003   : > { %10977 = vadd.xlane.f32.xlu0 %v10976_v32 }
0x508b   : > { %v10770_v22 = vpop.xlane.xlu1 %10769 }
0x508c   : > { %19321 = vrcp.f32 %v10770_v22  ;;  %v10767_v35 = vpop.xlane.xlu0 %10766 }
0x508d   : > { %19323 = vrcp.f32 %v10767_v35 }
0x5090   : > { %v10978_v62 = vpop.xlane.xlu0 %10977 }
0x5091   : > { %v10982_v22 = vmul.f32 0.03125, %v10978_v62 }
0x5096   : > { %v19322_v9 = vpop.eup %19321 }
0x5097   : > { %v19324_v47 = vpop.eup %19323  ;;  %v10774_v3 = vmul.f32 %v19322_v9, %v19318_v28 }
0x5098   : > { %v10772_v4 = vmul.f32 %v19324_v47, %v19320_v40  ;;  %v10981_v40 = vpop.xlane.xlu1 %10980  ;;  %v10984_v47 = vsub.f32 %v21595_v50, %v10982_v22 }
0x5099   : > { %v10983_v45 = vmul.f32 0.03125, %v10981_v40 }
0x509a   : > { %17852 = vmatprep.mubr.msk.f32.mxu0 %vm1090_vm4, %v10772_v4  ;;  %v21607_v4 = vld [vmem:[#allocation2] ss:$0 sm:$0xff]  ;;  %v10986_v16 = vmul.f32 %v10984_v47, %v10984_v47 }
0x509b   : > { %17853 = vmatmul.mubr.msk.f32.vlgmr.msra.gmra.mrb[96].mxu0 %vm1090_vm4, %v10774_v3  ;;  %v10985_v35 = vsub.f32 %v21592_v57, %v10983_v45  ;;  %22492 = vst [vmem:[#allocation36_spill] sm:$0xff] %v21607_v4 }
0x509c   : > { %17856 = vmatpush3.msra.mxu0 %v21580_v0  ;;  %v10988_v22 = vsel %vm661_vm0, %v10986_v16, 0.0 }
0x509d   : > { %18788 = vmatprep.subr.bf16.mxu0 %v22471_v60 }
0x516e   : > { %v17854_v59 = vpop.f32.mrb[96].mxu0 }
0x516f   : > { %v10847_v28 = vpop.f32.mrb[97].mxu0 }
0x5170   : > { %17857 = vmatprep.mubr.msk.f32.mxu0 %vm1008_vm3, %v10847_v28  ;;  %v10987_v28 = vmul.f32 %v10985_v35, %v10985_v35 }
0x5171   : > { %17858 = vmatmul.mubr.msk.f32.vlgmr.msra.gmra.mrb[86].mxu0 %vm1008_vm3, %v17854_v59 }
0x5172   : > { %17875 = vmatprep.mubr.msk.f32.mxu0 %vm19713_vm2, %v22472_v31  ;;  %v10991_v45 = vsel %vm661_vm0, %v10987_v28, 0.0 }
0x5244   : > { %v17859_v9 = vpop.f32.mrb[86].mxu0 }
0x5245   : > { %v10940_v3 = vadd.f32 %v21607_v4, %v17859_v9  ;;  %v10928_v27 = vpop.f32.mrb[87].mxu0 }
0x5246   : > { %v10939_v32 = vadd.f32 %v21607_v4, %v10928_v27 }
0x5247   : > { %v10942_v59 = vadd.f32 %v21257_v55, %v10940_v3 }
0x5248   : > { %v10941_v5 = vadd.f32 %v21260_v2, %v10939_v32 }
0x5249   : > { %v10949_v40 = vsel %vm661_vm0, %v10942_v59, 0.0 }
0x524a   : > { %10950 = vadd.xlane.f32.xlu1 %v10949_v40  ;;  %v10946_v62 = vsel %vm661_vm0, %v10941_v5, 0.0 }
0x524b   : > { %10947 = vadd.xlane.f32.xlu0 %v10946_v62 }
0x524e   : > { %10992 = vadd.xlane.f32.xlu1 %v10991_v45 }
0x524f   : > { %10989 = vadd.xlane.f32.xlu0 %v10988_v22 }
0x52d7   : > { %v10951_v9 = vpop.xlane.xlu1 %10950 }
0x52d8   : > { %v10953_v27 = vmul.f32 0.03125, %v10951_v9  ;;  %v10948_v54 = vpop.xlane.xlu0 %10947 }
0x52d9   : > { %v10952_v55 = vmul.f32 0.03125, %v10948_v54 }
0x52da   : > { %v10955_v3 = vsub.f32 %v10942_v59, %v10953_v27 }
0x52db   : > { %v10954_v10 = vsub.f32 %v10941_v5, %v10952_v55  ;;  %v10993_v2 = vpop.xlane.xlu1 %10992 }
0x52dc   : > { %v10995_v32 = vmul.f32 0.03125, %v10993_v2  ;;  %v10990_v50 = vpop.xlane.xlu0 %10989  ;;  %v10957_v57 = vmul.f32 %v10955_v3, %v10955_v3 }
0x52dd   : > { %v10994_v40 = vmul.f32 0.03125, %v10990_v50  ;;  %v10956_v4 = vmul.f32 %v10954_v10, %v10954_v10 }
0x52de   : > { %v10997_v0 = vadd.f32 1e-06, %v10995_v32  ;;  %v10961_v62 = vsel %vm661_vm0, %v10957_v57, 0.0 }
0x52df   : > { %v10996_v28 = vadd.f32 1e-06, %v10994_v40  ;;  %10962 = vadd.xlane.f32.xlu1 %v10961_v62  ;;  %v10958_v16 = vsel %vm661_vm0, %v10956_v4, 0.0 }
0x52e0   : > { %19325 = vrsqrt.f32 %v10997_v0  ;;  %10959 = vadd.xlane.f32.xlu0 %v10958_v16 }
0x52e1   : > { %19327 = vrsqrt.f32 %v10996_v28 }
0x52ea   : > { %v19326_v45 = vpop.eup %19325 }
0x52eb   : > { %v19328_v54 = vpop.eup %19327  ;;  %v11001_v59 = vmul.f32 %v19326_v45, %v10985_v35 }
0x52ec   : > { %v11000_v5 = vmul.f32 %v19328_v54, %v10984_v47 }
0x52ed   : > { %v11003_v22 = vmul.f32 %v21285_v46, %v11001_v59 }
0x52ee   : > { %v11002_v9 = vmul.f32 %v21285_v46, %v11000_v5 }
0x52ef   : > { %v21622_v50 = vadd.f32 %v21292_v63, %v11003_v22 }
0x52f0   : > { %v21625_v57 = vadd.f32 %v21292_v63, %v11002_v9 }
0x52f2   : > { %v21629_v4 = vpack.c.bf16 %v21622_v50, %v21625_v57 }
0x52f4   : > { %18791 = vmatpush3.bf16.xpose.msk.msra.mxu0 %vm20153_vm1, %v21629_v4 }
0x52fb   : > { %17876 = vmatmul.mubr.msk.f32.vlgmr.msra.gmra.mrb[98].mxu0 %vm661_vm0, %v21310_v18 }
0x536c   : > { %v10963_v0 = vpop.xlane.xlu1 %10962 }
0x536d   : > { %v10965_v35 = vmul.f32 0.03125, %v10963_v0  ;;  %v10960_v46 = vpop.xlane.xlu0 %10959 }
0x536e   : > { %v10964_v47 = vmul.f32 0.03125, %v10960_v46 }
0x536f   : > { %v10967_v27 = vadd.f32 1e-06, %v10965_v35 }
0x5370   : > { %v10966_v55 = vadd.f32 1e-06, %v10964_v47 }
0x5371   : > { %19329 = vrsqrt.f32 %v10967_v27 }
0x5372   : > { %19331 = vrsqrt.f32 %v10966_v55 }
0x537b   : > { %v19330_v63 = vpop.eup %19329 }
0x537c   : > { %v19332_v2 = vpop.eup %19331  ;;  %v21636_v32 = vmul.f32 %v19330_v63, %v10955_v3 }
0x537d   : > { %v21638_v40 = vmul.f32 %v19332_v2, %v10954_v10 }
0x537e   : > { %v10973_v62 = vmul.f32 %v21321_v26, %v21636_v32 }
0x537f   : > { %v10972_v18 = vmul.f32 %v21321_v26, %v21638_v40 }
0x5380   : > { %v21648_v16 = vadd.f32 %v21330_v49, %v10973_v62 }
0x5381   : > { %v21645_v28 = vadd.f32 %v21330_v49, %v10972_v18 }
0x5383   : > { %17868 = vmatprep.mubr.msk.f32.mxu1 %vm661_vm0, %v21645_v28 }
0x5384   : > { %17869 = vmatmul.mubr.msk.f32.vlgmr.msra.gmra.mrb[112].mxu1 %vm661_vm0, %v21648_v16 }
0x5385   : > { %18795 = vmatpush3.bf16.msra.mxu1 %v20046_v33  ;;  %17886 = vmatprep.mubr.msk.f32.mxu1 %vm661_vm0, %v21625_v57 }
0x5386   : > { %18797 = vmatprep.subr.bf16.mxu1 %v20066_v39 }
0x5389   : > { %18799 = vmatpush3.bf16.msra.mxu1 %v20066_v39 }
0x538c   : > { %17887 = vmatmul.mubr.msk.f32.vlgmr.msra.gmra.mrb[114].mxu1 %vm661_vm0, %v21622_v50 }
0x53ce   : > { %v11159_v10 = vpop.f32.mrb[98].mxu0 }
0x53cf   : > { %v11160_v26 = vadd.f32 %v21352_v37, %v11159_v10  ;;  %v17877_v49 = vpop.f32.mrb[99].mxu0 }
0x53d1   : > { %17889 = vmatprep.subr.mxu0 %v11160_v26 }
0x53d2   : > { %17890 = vmatpush3.msra.mxu0 %v11160_v26 }
0x53d3   : > { %18805 = vmatprep.subr.bf16.mxu0 %v20078_v42 }
0x5457   : > { %v17870_v3 = vpop.f32.mrb[112].mxu1 }
0x5458   : > { %v11078_v45 = vpop.f32.mrb[113].mxu1  ;;  %v11084_v59 = vadd.f32 %v21359_v24, %v17870_v3 }
0x5459   : > { %v11079_v54 = vadd.f32 %v21359_v24, %v11078_v45 }
0x545b   : > { %17891 = vmatprep.mubr.msk.f32.mxu0 %vm1008_vm3, %v11079_v54 }
0x545c   : > { %17892 = vmatmul.mubr.msk.f32.vlgmr.msra.gmra.mrb[100].mxu0 %vm1008_vm3, %v11084_v59 }
0x545d   : > { %18807 = vmatpush3.bf16.msra.mxu0 %v20078_v42  ;;  %17909 = vmatprep.mubr.msk.f32.mxu0 %vm661_vm0, %v21645_v28 }
0x545e   : > { %18809 = vmatprep.subr.bf16.mxu0 %v20131_v14 }
0x545f   : > { %v17888_v37 = vpop.f32.mrb[114].mxu1 }
0x5460   : > { %v11235_v5 = vadd.f32 %v21372_v44, %v17888_v37  ;;  %v11229_v22 = vpop.f32.mrb[115].mxu1 }
0x5461   : > { %v11230_v9 = vadd.f32 %v21372_v44, %v11229_v22  ;;  %18811 = vmatpush3.bf16.msra.mxu0 %v20131_v14 }
0x5462   : > { %18817 = vmatprep.subr.bf16.mxu0 %v20162_v21 }
0x5463   : > { %v18800_v24 = vpack.c.bf16 %v11235_v5, %v11230_v9 }
0x5464   : > { %17910 = vmatmul.mubr.msk.f32.vlgmr.msra.gmra.mrb[102].mxu0 %vm661_vm0, %v21648_v16 }
0x5465   : > { %18801 = vmatprep.subr.bf16.mxu1 %v18800_v24  ;;  %18819 = vmatpush3.bf16.msra.mxu0 %v20162_v21 }
0x5466   : > { %17927 = vmatprep.mubr.msk.f32.mxu0 %vm661_vm0, %v21625_v57  ;;  %18803 = vmatpush3.bf16.msra.mxu1 %v18800_v24 }
0x5467   : > { %18821 = vmatprep.subr.bf16.mxu0 %v20179_v25  ;;  %18812 = vmatprep.subr.bf16.mxu1 %v22471_v60 }
0x5469   : > { %18823 = vmatpush3.bf16.msra.mxu0 %v20179_v25 }
0x546a   : > { %17942 = vmatprep.subr.mxu0 %v21389_v11 }
0x546c   : > { %17928 = vmatmul.mubr.msk.f32.vlgmr.msra.gmra.mrb[104].mxu0 %vm661_vm0, %v21622_v50 }
0x546d   : > { %17943 = vmatpush3.msra.mxu0 %v21389_v11 }
0x546e   : > { %17947 = vmatprep.subr.mxu0 %v21398_v43 }
0x552f   : > { %v17893_v44 = vpop.f32.mrb[100].mxu0 }
0x5530   : > { %v11310_v0 = vpop.f32.mrb[101].mxu0  ;;  %v11322_v35 = vsel %vm1090_vm4, %v17893_v44, -inf }
0x5531   : > { %11323 = vmax.xlane.f32.xlu1 %v11322_v35  ;;  %v11319_v46 = vsel %vm1090_vm4, %v11310_v0, -inf }
0x5532   : > { %11320 = vmax.xlane.f32.xlu0 %v11319_v46 }
0x5537   : > { %v17911_v47 = vpop.f32.mrb[102].mxu0 }
0x5538   : > { %v11488_v27 = vpop.f32.mrb[103].mxu0 }
0x5539   : > { %v11489_v35 = vadd.f32 %v21422_v7, %v11488_v27 }
0x553f   : > { %v17929_v55 = vpop.f32.mrb[104].mxu0 }
0x5540   : > { %v11639_v63 = vadd.f32 %v21406_v1, %v17929_v55  ;;  %v11633_v2 = vpop.f32.mrb[105].mxu0 }
0x5541   : > { %v11634_v62 = vadd.f32 %v21406_v1, %v11633_v2 }
0x5543   : > { %v18824_v18 = vpack.c.bf16 %v11639_v63, %v11634_v62 }
0x55be   : > { %v11324_v11 = vpop.xlane.xlu1 %11323 }
0x55bf   : > { %v11326_v10 = vsub.f32 %v17893_v44, %v11324_v11  ;;  %v11321_v26 = vpop.xlane.xlu0 %11320  ;;  %v11494_v11 = vadd.f32 %v21422_v7, %v17911_v47 }
0x55c0   : > { %v11325_v49 = vsub.f32 %v11310_v0, %v11321_v26 }
0x55c1   : > { %v11329_v3 = vmul.f32 1.442695, %v11326_v10 }
0x55c2   : > { %v11327_v45 = vmul.f32 1.442695, %v11325_v49 }
0x55c3   : > { %19333 = vpow2.f32 %v11329_v3 }
0x55c4   : > { %19335 = vpow2.f32 %v11327_v45 }
0x55cd   : > { %v19334_v54 = vpop.eup %19333 }
0x55ce   : > { %v19336_v59 = vpop.eup %19335  ;;  %v11334_v37 = vsel %vm1090_vm4, %v19334_v54, 0.0 }
0x55cf   : > { %11335 = vadd.xlane.f32.xlu1 %v11334_v37  ;;  %v11331_v5 = vsel %vm1090_vm4, %v19336_v59, 0.0 }
0x55d0   : > { %11332 = vadd.xlane.f32.xlu0 %v11331_v5 }
0x565c   : > { %v11336_v22 = vpop.xlane.xlu1 %11335 }
0x565d   : > { %19337 = vrcp.f32 %v11336_v22  ;;  %v11333_v1 = vpop.xlane.xlu0 %11332 }
0x565e   : > { %19339 = vrcp.f32 %v11333_v1 }
0x5667   : > { %v19338_v9 = vpop.eup %19337 }
0x5668   : > { %v19340_v24 = vpop.eup %19339  ;;  %v11340_v0 = vmul.f32 %v19338_v9, %v19334_v54 }
0x5669   : > { %v11338_v44 = vmul.f32 %v19340_v24, %v19336_v59 }
0x566b   : > { %17898 = vmatprep.mubr.msk.f32.mxu1 %vm1090_vm4, %v11338_v44 }
0x566c   : > { %17899 = vmatmul.mubr.msk.f32.vlgmr.msra.gmra.mrb[116].mxu1 %vm1090_vm4, %v11340_v0 }
0x566d   : > { %18815 = vmatpush3.bf16.xpose.msk.msra.mxu1 %vm20153_vm1, %v21629_v4  ;;  %17916 = vmatprep.mubr.msk.f32.mxu1 %vm19713_vm2, %v22472_v31 }
0x5674   : > { %17917 = vmatmul.mubr.msk.f32.vlgmr.msra.gmra.mrb[118].mxu1 %vm661_vm0, %v21428_v34 }
0x5675   : > { %17932 = vmatprep.mubr.msk.f32.mxu1 %vm1008_vm3, %v11489_v35 }
0x573f   : > { %v17900_v46 = vpop.f32.mrb[116].mxu1 }
0x5740   : > { %v11413_v55 = vpop.f32.mrb[117].mxu1 }
0x5747   : > { %v11563_v63 = vpop.f32.mrb[118].mxu1 }
0x5748   : > { %v11564_v2 = vadd.f32 %v21438_v23, %v11563_v63  ;;  %v17918_v62 = vpop.f32.mrb[119].mxu1 }
0x574a   : > { %17930 = vmatprep.subr.mxu1 %v11564_v2 }
0x574b   : > { %17931 = vmatpush3.msra.mxu1 %v11564_v2 }
0x574c   : > { %17933 = vmatmul.mubr.msk.f32.vlgmr.msra.gmra.mrb[120].mxu1 %vm1008_vm3, %v11494_v11  ;;  %18825 = vmatprep.subr.bf16.mxu1 %v18824_v18 }
0x574d   : > { %18827 = vmatpush3.bf16.msra.mxu1 %v18824_v18 }
0x574e   : > { %18829 = vmatprep.subr.bf16.mxu1 %v20277_v15 }
0x581f   : > { %v17934_v27 = vpop.f32.mrb[120].mxu1 }
0x5820   : > { %v11714_v34 = vpop.f32.mrb[121].mxu1  ;;  %v11726_v10 = vsel %vm1090_vm4, %v17934_v27, -inf }
0x5821   : > { %11727 = vmax.xlane.f32.xlu1 %v11726_v10  ;;  %v11723_v26 = vsel %vm1090_vm4, %v11714_v34, -inf }
0x5822   : > { %11724 = vmax.xlane.f32.xlu0 %v11723_v26 }
0x58ae   : > { %v11728_v23 = vpop.xlane.xlu1 %11727 }
0x58af   : > { %v11730_v49 = vsub.f32 %v17934_v27, %v11728_v23  ;;  %v11725_v3 = vpop.xlane.xlu0 %11724 }
0x58b0   : > { %v11729_v7 = vsub.f32 %v11714_v34, %v11725_v3 }
0x58b1   : > { %v11733_v47 = vmul.f32 1.442695, %v11730_v49 }
0x58b2   : > { %v11731_v45 = vmul.f32 1.442695, %v11729_v7 }
0x58b3   : > { %19341 = vpow2.f32 %v11733_v47 }
0x58b4   : > { %19343 = vpow2.f32 %v11731_v45 }
0x58bd   : > { %v19342_v54 = vpop.eup %19341 }
0x58be   : > { %v19344_v18 = vpop.eup %19343  ;;  %v11738_v59 = vsel %vm1090_vm4, %v19342_v54, 0.0 }
0x58bf   : > { %11739 = vadd.xlane.f32.xlu1 %v11738_v59  ;;  %v11735_v37 = vsel %vm1090_vm4, %v19344_v18, 0.0 }
0x58c0   : > { %11736 = vadd.xlane.f32.xlu0 %v11735_v37 }
0x594c   : > { %v11740_v5 = vpop.xlane.xlu1 %11739 }
0x594d   : > { %19345 = vrcp.f32 %v11740_v5  ;;  %v11737_v22 = vpop.xlane.xlu0 %11736 }
0x594e   : > { %19347 = vrcp.f32 %v11737_v22 }
0x5957   : > { %v19346_v1 = vpop.eup %19345 }
0x5958   : > { %v19348_v9 = vpop.eup %19347  ;;  %v11744_v44 = vmul.f32 %v19346_v1, %v19342_v54 }
0x5959   : > { %v11742_v24 = vmul.f32 %v19348_v9, %v19344_v18 }
0x595b   : > { %17939 = vmatprep.mubr.msk.f32.mxu1 %vm1090_vm4, %v11742_v24 }
0x595c   : > { %17940 = vmatmul.mubr.msk.f32.vlgmr.msra.gmra.mrb[122].mxu1 %vm1090_vm4, %v11744_v44 }
0x595d   : > { %18831 = vmatpush3.bf16.msra.mxu1 %v20277_v15  ;;  %17960 = vmatprep.mubr.msk.f32.mxu1 %vm661_vm0, %v21645_v28 }
0x595e   : > { %18833 = vmatprep.subr.bf16.mxu1 %v20286_v38 }
0x5961   : > { %18835 = vmatpush3.bf16.msra.mxu1 %v20286_v38 }
0x5962   : > { %18841 = vmatprep.subr.bf16.mxu1 %v20300_v51 }
0x5964   : > { %17961 = vmatmul.mubr.msk.f32.vlgmr.msra.gmra.mrb[124].mxu1 %vm661_vm0, %v21648_v16 }
0x5965   : > { %18843 = vmatpush3.bf16.msra.mxu1 %v20300_v51  ;;  %17978 = vmatprep.mubr.msk.f32.mxu1 %vm661_vm0, %v21625_v57 }
0x5966   : > { %18845 = vmatprep.subr.bf16.mxu1 %v20310_v53 }
0x5969   : > { %18847 = vmatpush3.bf16.msra.mxu1 %v20310_v53 }
0x596c   : > { %17979 = vmatmul.mubr.msk.f32.vlgmr.msra.gmra.mrb[126].mxu1 %vm661_vm0, %v21622_v50 }
0x5a2f   : > { %v17941_v0 = vpop.f32.mrb[122].mxu1 }
0x5a30   : > { %v11817_v35 = vpop.f32.mrb[123].mxu1 }
0x5a31   : > { %17944 = vmatprep.mubr.msk.f32.mxu0 %vm1008_vm3, %v11817_v35 }
0x5a32   : > { %17945 = vmatmul.mubr.msk.f32.vlgmr.msra.gmra.mrb[106].mxu0 %vm1008_vm3, %v17941_v0 }
0x5a33   : > { %17948 = vmatpush3.msra.mxu0 %v21398_v43  ;;  %17949 = vmatprep.mubr.msk.f32.mxu0 %vm1008_vm3, %v11413_v55 }
0x5a34   : > { %18836 = vmatprep.subr.bf16.mxu0 %v22471_v60 }
0x5a37   : > { %v17962_v63 = vpop.f32.mrb[124].mxu1 }
0x5a38   : > { %v12054_v2 = vpop.f32.mrb[125].mxu1  ;;  %v12060_v23 = vadd.f32 %v21486_v13, %v17962_v63 }
0x5a39   : > { %v12055_v43 = vadd.f32 %v21486_v13, %v12054_v2 }
0x5a3a   : > { %17950 = vmatmul.mubr.msk.f32.vlgmr.msra.gmra.mrb[106].mxu0 %vm1008_vm3, %v17900_v46 }
0x5a3b   : > { %18839 = vmatpush3.bf16.xpose.msk.msra.mxu0 %vm20153_vm1, %v21629_v4  ;;  %17967 = vmatprep.mubr.msk.f32.mxu0 %vm19713_vm2, %v22472_v31 }
0x5a3f   : > { %v17980_v62 = vpop.f32.mrb[126].mxu1 }
0x5a40   : > { %v12205_v11 = vadd.f32 %v21480_v29, %v17980_v62  ;;  %v12199_v27 = vpop.f32.mrb[127].mxu1 }
0x5a41   : > { %v12200_v55 = vadd.f32 %v21480_v29, %v12199_v27 }
0x5a42   : > { %17968 = vmatmul.mubr.msk.f32.vlgmr.msra.gmra.mrb[108].mxu0 %vm661_vm0, %v21493_v58 }
0x5a43   : > { %v18848_v34 = vpack.c.bf16 %v12205_v11, %v12200_v55  ;;  %17983 = vmatprep.mubr.msk.f32.mxu0 %vm1008_vm3, %v12055_v43 }
0x5a45   : > { %18849 = vmatprep.subr.bf16.mxu1 %v18848_v34 }
0x5a46   : > { %18851 = vmatpush3.bf16.msra.mxu1 %v18848_v34 }
0x5a47   : > { %18853 = vmatprep.subr.bf16.mxu1 %v20386_v8 }
0x5b15   : > { %v12129_v46 = vpop.f32.mrb[108].mxu0 }
0x5b16   : > { %v12130_v10 = vadd.f32 %v21502_v20, %v12129_v46  ;;  %v17969_v26 = vpop.f32.mrb[109].mxu0 }
0x5b18   : > { %17981 = vmatprep.subr.mxu0 %v12130_v10 }
0x5b19   : > { %17982 = vmatpush3.msra.mxu0 %v12130_v10 }
0x5b1a   : > { %17984 = vmatmul.mubr.msk.f32.vlgmr.msra.gmra.mrb[110].mxu0 %vm1008_vm3, %v12060_v23  ;;  %17993 = vmatprep.subr.mxu0 %v21510_v56 }
0x5b1b   : > { %17994 = vmatpush3.msra.mxu0 %v21510_v56 }
0x5b1c   : > { %18860 = vmatprep.subr.bf16.mxu0 %v22471_v60 }
0x5bed   : > { %v17985_v29 = vpop.f32.mrb[110].mxu0 }
0x5bee   : > { %v12280_v58 = vpop.f32.mrb[111].mxu0  ;;  %v12292_v49 = vsel %vm1090_vm4, %v17985_v29, -inf }
0x5bef   : > { %12293 = vmax.xlane.f32.xlu1 %v12292_v49  ;;  %v12289_v20 = vsel %vm1090_vm4, %v12280_v58, -inf }
0x5bf0   : > { %12290 = vmax.xlane.f32.xlu0 %v12289_v20 }
0x5c7c   : > { %v12294_v3 = vpop.xlane.xlu1 %12293 }
0x5c7d   : > { %v12296_v13 = vsub.f32 %v17985_v29, %v12294_v3  ;;  %v12291_v7 = vpop.xlane.xlu0 %12290 }
0x5c7e   : > { %v12295_v47 = vsub.f32 %v12280_v58, %v12291_v7 }
0x5c7f   : > { %v12299_v45 = vmul.f32 1.442695, %v12296_v13 }
0x5c80   : > { %v12297_v54 = vmul.f32 1.442695, %v12295_v47 }
0x5c81   : > { %19349 = vpow2.f32 %v12299_v45 }
0x5c82   : > { %19351 = vpow2.f32 %v12297_v54 }
0x5c8b   : > { %v19350_v18 = vpop.eup %19349 }
0x5c8c   : > { %v19352_v56 = vpop.eup %19351  ;;  %v12304_v59 = vsel %vm1090_vm4, %v19350_v18, 0.0 }
0x5c8d   : > { %12305 = vadd.xlane.f32.xlu1 %v12304_v59  ;;  %v12301_v37 = vsel %vm1090_vm4, %v19352_v56, 0.0 }
0x5c8e   : > { %12302 = vadd.xlane.f32.xlu0 %v12301_v37 }
0x5d1a   : > { %v12306_v5 = vpop.xlane.xlu1 %12305 }
0x5d1b   : > { %19353 = vrcp.f32 %v12306_v5  ;;  %v12303_v22 = vpop.xlane.xlu0 %12302 }
0x5d1c   : > { %19355 = vrcp.f32 %v12303_v22 }
0x5d25   : > { %v19354_v1 = vpop.eup %19353 }
0x5d26   : > { %v19356_v9 = vpop.eup %19355  ;;  %v12310_v44 = vmul.f32 %v19354_v1, %v19350_v18  ;;  %v16086_v18 = vld [vmem:[%s19994_s30 + $0x78] sm:$0xff] }
0x5d27   : > { %v12308_v24 = vmul.f32 %v19356_v9, %v19352_v56  ;;  %v16085_v56 = vld [vmem:[%s19994_s30 + $0x70] sm:$0xff]  ;;  %v13002_v59 = vsel %vm661_vm0, %v16086_v18, 0.0 }
0x5d28   : > { %v12999_v37 = vsel %vm661_vm0, %v16085_v56, 0.0 }
0x5d29   : > { %17990 = vmatprep.mubr.msk.f32.mxu1 %vm1090_vm4, %v12308_v24 }
0x5d2a   : > { %17991 = vmatmul.mubr.msk.f32.vlgmr.msra.gmra.mrb[128].mxu1 %vm1090_vm4, %v12310_v44 }
0x5d2b   : > { %18855 = vmatpush3.bf16.msra.mxu1 %v20386_v8  ;;  %18006 = vmatprep.mubr.msk.f32.mxu1 %vm661_vm0, %v21645_v28 }
0x5d2c   : > { %18857 = vmatprep.subr.bf16.mxu1 %v20403_v48 }
0x5d2f   : > { %18859 = vmatpush3.bf16.msra.mxu1 %v20403_v48 }
0x5d30   : > { %18865 = vmatprep.subr.bf16.mxu1 %v20417_v52 }
0x5d32   : > { %18007 = vmatmul.mubr.msk.f32.vlgmr.msra.gmra.mrb[130].mxu1 %vm661_vm0, %v21648_v16 }
0x5d33   : > { %18867 = vmatpush3.bf16.msra.mxu1 %v20417_v52  ;;  %18024 = vmatprep.mubr.msk.f32.mxu1 %vm661_vm0, %v21625_v57 }
0x5d34   : > { %18869 = vmatprep.subr.bf16.mxu1 %v20427_v61 }
0x5d37   : > { %18871 = vmatpush3.bf16.msra.mxu1 %v20427_v61 }
0x5d38   : > { %18877 = vmatprep.subr.bf16.mxu1 %v20038_v30 }
0x5d3a   : > { %18025 = vmatmul.mubr.msk.f32.vlgmr.msra.gmra.mrb[132].mxu1 %vm661_vm0, %v21622_v50 }
0x5d3b   : > { %18879 = vmatpush3.bf16.msra.mxu1 %v20038_v30 }
0x5d3c   : > { %18881 = vmatprep.subr.bf16.mxu1 %v20058_v36 }
0x5d3f   : > { %18883 = vmatpush3.bf16.msra.mxu1 %v20058_v36 }
0x5d40   : > { %18889 = vmatprep.subr.bf16.mxu1 %v20046_v33 }
0x5dfd   : > { %v17992_v28 = vpop.f32.mrb[128].mxu1 }
0x5dfe   : > { %v12383_v16 = vpop.f32.mrb[129].mxu1 }
0x5dff   : > { %17995 = vmatprep.mubr.msk.f32.mxu0 %vm1008_vm3, %v12383_v16 }
0x5e00   : > { %17996 = vmatmul.mubr.msk.f32.vlgmr.msra.gmra.mrb[106].mxu0 %vm1008_vm3, %v17992_v28 }
0x5e01   : > { %18863 = vmatpush3.bf16.xpose.msk.msra.mxu0 %vm20153_vm1, %v21629_v4  ;;  %18013 = vmatprep.mubr.msk.f32.mxu0 %vm19713_vm2, %v22472_v31 }
0x5e05   : > { %v18008_v30 = vpop.f32.mrb[130].mxu1 }
0x5e06   : > { %v12541_v50 = vpop.f32.mrb[131].mxu1  ;;  %v12547_v27 = vadd.f32 %v21551_v6, %v18008_v30 }
0x5e07   : > { %v12542_v57 = vadd.f32 %v21551_v6, %v12541_v50  ;;  %v22494_v50 = vld [vmem:[#allocation36_spill] sm:$0xff] }
0x5e08   : > { %18014 = vmatmul.mubr.msk.f32.vlgmr.msra.gmra.mrb[112].mxu0 %vm661_vm0, %v21557_v41  ;;  %v22493_v41 = vld [vmem:[#allocation30_spill] sm:$0xff] }
0x5e09   : > { %18029 = vmatprep.mubr.msk.f32.mxu0 %vm1008_vm3, %v12542_v57 }
0x5e0d   : > { %v18026_v36 = vpop.f32.mrb[132].mxu1 }
0x5e0e   : > { %v12692_v0 = vadd.f32 %v21565_v17, %v18026_v36  ;;  %v12686_v35 = vpop.f32.mrb[133].mxu1 }
0x5e0f   : > { %v12687_v63 = vadd.f32 %v21565_v17, %v12686_v35  ;;  %v22495_v35 = vld [vmem:[#allocation31_spill] sm:$0xff] }
0x5e11   : > { %v18872_v2 = vpack.c.bf16 %v12692_v0, %v12687_v63 }
0x5edb   : > { %v12616_v4 = vpop.f32.mrb[112].mxu0 }
0x5edc   : > { %v12617_v62 = vadd.f32 %v21572_v12, %v12616_v4  ;;  %v18015_v11 = vpop.f32.mrb[113].mxu0  ;;  %v22496_v4 = vld [vmem:[#allocation35_spill] sm:$0xff] }
0x5ede   : > { %18027 = vmatprep.subr.mxu0 %v12617_v62 }
0x5edf   : > { %18028 = vmatpush3.msra.mxu0 %v12617_v62 }
0x5ee0   : > { %18030 = vmatmul.mubr.msk.f32.vlgmr.msra.gmra.mrb[114].mxu0 %vm1008_vm3, %v12547_v27  ;;  %18873 = vmatprep.subr.bf16.mxu0 %v18872_v2 }
0x5ee1   : > { %18875 = vmatpush3.bf16.msra.mxu0 %v18872_v2 }
0x5ee2   : > { %18039 = vmatprep.subr.mxu0 %v22493_v41 }
0x5fb3   : > { %v18031_v43 = vpop.f32.mrb[114].mxu0 }
0x5fb4   : > { %v12767_v55 = vpop.f32.mrb[115].mxu0  ;;  %v12779_v34 = vsel %vm1090_vm4, %v18031_v43, -inf }
0x5fb5   : > { %12780 = vmax.xlane.f32.xlu1 %v12779_v34  ;;  %v12776_v17 = vsel %vm1090_vm4, %v12767_v55, -inf }
0x5fb6   : > { %12777 = vmax.xlane.f32.xlu0 %v12776_v17 }
0x6042   : > { %v12781_v12 = vpop.xlane.xlu1 %12780 }
0x6043   : > { %v12783_v46 = vsub.f32 %v18031_v43, %v12781_v12  ;;  %v12778_v10 = vpop.xlane.xlu0 %12777 }
0x6044   : > { %v12782_v6 = vsub.f32 %v12767_v55, %v12778_v10 }
0x6045   : > { %v12786_v26 = vmul.f32 1.442695, %v12783_v46 }
0x6046   : > { %v12784_v23 = vmul.f32 1.442695, %v12782_v6 }
0x6047   : > { %19357 = vpow2.f32 %v12786_v26 }
0x6048   : > { %19359 = vpow2.f32 %v12784_v23 }
0x6051   : > { %v19358_v29 = vpop.eup %19357 }
0x6052   : > { %v19360_v58 = vpop.eup %19359  ;;  %v12791_v49 = vsel %vm1090_vm4, %v19358_v29, 0.0 }
0x6053   : > { %12792 = vadd.xlane.f32.xlu1 %v12791_v49  ;;  %v12788_v20 = vsel %vm1090_vm4, %v19360_v58, 0.0 }
0x6054   : > { %12789 = vadd.xlane.f32.xlu0 %v12788_v20 }
0x6057   : > { %13003 = vadd.xlane.f32.xlu1 %v13002_v59  ;;  %v19491_v59 = vld [vmem:[%s22460_s25] ss:$0 sm:$0xff] }
0x6058   : > { %13000 = vadd.xlane.f32.xlu0 %v12999_v37 }
0x60e0   : > { %v12793_v3 = vpop.xlane.xlu1 %12792 }
0x60e1   : > { %19361 = vrcp.f32 %v12793_v3  ;;  %v12790_v13 = vpop.xlane.xlu0 %12789 }
0x60e2   : > { %19363 = vrcp.f32 %v12790_v13 }
0x60e4   : > { %v13004_v1 = vpop.xlane.xlu1 %13003 }
0x60e5   : > { %v13001_v9 = vpop.xlane.xlu0 %13000  ;;  %v13006_v24 = vmul.f32 0.03125, %v13004_v1 }
0x60e6   : > { %v13005_v44 = vmul.f32 0.03125, %v13001_v9 }
0x60e7   : > { %v13008_v28 = vsub.f32 %v16086_v18, %v13006_v24 }
0x60e8   : > { %v13007_v30 = vsub.f32 %v16085_v56, %v13005_v44  ;;  %v19493_v44 = vld [vmem:[%s22373_s7] sm:$0xff] }
0x60e9   : > { %v13010_v2 = vmul.f32 %v13008_v28, %v13008_v28 }
0x60ea   : > { %v13009_v11 = vmul.f32 %v13007_v30, %v13007_v30 }
0x60eb   : > { %v19362_v7 = vpop.eup %19361  ;;  %v13014_v43 = vsel %vm661_vm0, %v13010_v2, 0.0 }
0x60ec   : > { %v19364_v47 = vpop.eup %19363  ;;  %v12797_v54 = vmul.f32 %v19362_v7, %v19358_v29  ;;  %v13011_v55 = vsel %vm661_vm0, %v13009_v11, 0.0 }
0x60ed   : > { %v12795_v45 = vmul.f32 %v19364_v47, %v19360_v58 }
0x60ef   : > { %18036 = vmatprep.mubr.msk.f32.mxu0 %vm1090_vm4, %v12795_v45 }
0x60f0   : > { %18037 = vmatmul.mubr.msk.f32.vlgmr.msra.gmra.mrb[116].mxu0 %vm1090_vm4, %v12797_v54 }
0x60f1   : > { %18040 = vmatpush3.msra.mxu0 %v22493_v41 }
0x60f2   : > { %18884 = vmatprep.subr.bf16.mxu0 %v22471_v60 }
0x61c3   : > { %v18038_v5 = vpop.f32.mrb[116].mxu0 }
0x61c4   : > { %v12870_v22 = vpop.f32.mrb[117].mxu0 }
0x61c5   : > { %18041 = vmatprep.mubr.msk.f32.mxu0 %vm1008_vm3, %v12870_v22  ;;  %v19492_v22 = vld [vmem:[%s22370_s4] ss:$0 sm:$0xff] }
0x61c6   : > { %18042 = vmatmul.mubr.msk.f32.vlgmr.msra.gmra.mrb[106].mxu0 %vm1008_vm3, %v18038_v5 }
0x61c7   : > { %18059 = vmatprep.mubr.msk.f32.mxu0 %vm19713_vm2, %v22472_v31 }
0x6299   : > { %v18043_v16 = vpop.f32.mrb[106].mxu0 }
0x629a   : > { %v12963_v57 = vadd.f32 %v22494_v50, %v18043_v16  ;;  %v12951_v36 = vpop.f32.mrb[107].mxu0 }
0x629b   : > { %v12962_v0 = vadd.f32 %v22494_v50, %v12951_v36 }
0x629c   : > { %v12965_v63 = vadd.f32 %v22495_v35, %v12963_v57 }
0x629d   : > { %v12964_v62 = vadd.f32 %v22496_v4, %v12962_v0  ;;  %v19494_v4 = vld [vmem:[%s22461_s19] ss:$0 sm:$0xff] }
0x629e   : > { %v12972_v27 = vsel %vm661_vm0, %v12965_v63, 0.0 }
0x629f   : > { %12973 = vadd.xlane.f32.xlu1 %v12972_v27  ;;  %v12969_v41 = vsel %vm661_vm0, %v12964_v62, 0.0  ;;  %v19495_v27 = vld [vmem:[%s22463_s17] ss:$0 sm:$0xff] }
0x62a0   : > { %12970 = vadd.xlane.f32.xlu0 %v12969_v41 }
0x62a3   : > { %13015 = vadd.xlane.f32.xlu1 %v13014_v43 }
0x62a4   : > { %13012 = vadd.xlane.f32.xlu0 %v13011_v55 }
0x632c   : > { %v12974_v34 = vpop.xlane.xlu1 %12973 }
0x632d   : > { %v12976_v17 = vmul.f32 0.03125, %v12974_v34  ;;  %v12971_v12 = vpop.xlane.xlu0 %12970  ;;  %v19496_v34 = vld [vmem:[%s22374_s8] sm:$0xff] }
0x632e   : > { %v12975_v46 = vmul.f32 0.03125, %v12971_v12 }
0x632f   : > { %v12978_v10 = vsub.f32 %v12965_v63, %v12976_v17 }
0x6330   : > { %v12977_v6 = vsub.f32 %v12964_v62, %v12975_v46  ;;  %v13016_v26 = vpop.xlane.xlu1 %13015 }
0x6331   : > { %v13018_v23 = vmul.f32 0.03125, %v13016_v26  ;;  %v13013_v29 = vpop.xlane.xlu0 %13012  ;;  %v12980_v58 = vmul.f32 %v12978_v10, %v12978_v10 }
0x6332   : > { %v13017_v49 = vmul.f32 0.03125, %v13013_v29  ;;  %v12979_v20 = vmul.f32 %v12977_v6, %v12977_v6 }
0x6333   : > { %v13020_v3 = vadd.f32 1e-06, %v13018_v23  ;;  %v12984_v13 = vsel %vm661_vm0, %v12980_v58, 0.0  ;;  %v19498_v23 = vld [vmem:[%s22376_s10] ss:$0 sm:$0xff] }
0x6334   : > { %v13019_v7 = vadd.f32 1e-06, %v13017_v49  ;;  %12985 = vadd.xlane.f32.xlu1 %v12984_v13  ;;  %v12981_v47 = vsel %vm661_vm0, %v12979_v20, 0.0 }
0x6335   : > { %19365 = vrsqrt.f32 %v13020_v3  ;;  %12982 = vadd.xlane.f32.xlu0 %v12981_v47 }
0x6336   : > { %19367 = vrsqrt.f32 %v13019_v7 }
0x633f   : > { %v19366_v45 = vpop.eup %19365 }
0x6340   : > { %v19368_v54 = vpop.eup %19367  ;;  %v13024_v18 = vmul.f32 %v19366_v45, %v13008_v28 }
0x6341   : > { %v13023_v56 = vmul.f32 %v19368_v54, %v13007_v30  ;;  %v19501_v54 = vld [vmem:[%s22376_s10 + $0x1] ss:$0 sm:$0xff] }
0x6342   : > { %v13026_v37 = vmul.f32 %v19491_v59, %v13024_v18 }
0x6343   : > { %v13025_v5 = vmul.f32 %v19491_v59, %v13023_v56 }
0x6344   : > { %v21829_v1 = vadd.f32 %v19492_v22, %v13026_v37 }
0x6345   : > { %v21831_v9 = vadd.f32 %v19492_v22, %v13025_v5 }
0x6347   : > { %v21835_v24 = vpack.c.bf16 %v21829_v1, %v21831_v9 }
0x6349   : > { %18887 = vmatpush3.bf16.xpose.msk.msra.mxu0 %vm20153_vm1, %v21835_v24 }
0x6350   : > { %18060 = vmatmul.mubr.msk.f32.vlgmr.msra.gmra.mrb[118].mxu0 %vm661_vm0, %v19493_v44 }
0x63c1   : > { %v12986_v28 = vpop.xlane.xlu1 %12985 }
0x63c2   : > { %v12988_v16 = vmul.f32 0.03125, %v12986_v28  ;;  %v12983_v30 = vpop.xlane.xlu0 %12982 }
0x63c3   : > { %v12987_v50 = vmul.f32 0.03125, %v12983_v30 }
0x63c4   : > { %v12990_v57 = vadd.f32 1e-06, %v12988_v16 }
0x63c5   : > { %v12989_v36 = vadd.f32 1e-06, %v12987_v50 }
0x63c6   : > { %19369 = vrsqrt.f32 %v12990_v57 }
0x63c7   : > { %19371 = vrsqrt.f32 %v12989_v36 }
0x63d0   : > { %v19370_v0 = vpop.eup %19369 }
0x63d1   : > { %v19372_v35 = vpop.eup %19371  ;;  %v21844_v63 = vmul.f32 %v19370_v0, %v12978_v10 }
0x63d2   : > { %v21846_v2 = vmul.f32 %v19372_v35, %v12977_v6 }
0x63d3   : > { %v12996_v62 = vmul.f32 %v19494_v4, %v21844_v63 }
0x63d4   : > { %v12995_v11 = vmul.f32 %v19494_v4, %v21846_v2 }
0x63d5   : > { %v21858_v43 = vadd.f32 %v19495_v27, %v12996_v62 }
0x63d6   : > { %v21856_v41 = vadd.f32 %v19495_v27, %v12995_v11 }
0x63d8   : > { %18052 = vmatprep.mubr.msk.f32.mxu1 %vm661_vm0, %v21856_v41 }
0x63d9   : > { %18053 = vmatmul.mubr.msk.f32.vlgmr.msra.gmra.mrb[134].mxu1 %vm661_vm0, %v21858_v43 }
0x63da   : > { %18891 = vmatpush3.bf16.msra.mxu1 %v20046_v33  ;;  %18070 = vmatprep.mubr.msk.f32.mxu1 %vm661_vm0, %v21831_v9 }
0x63db   : > { %18893 = vmatprep.subr.bf16.mxu1 %v20066_v39 }
0x63de   : > { %18895 = vmatpush3.bf16.msra.mxu1 %v20066_v39  ;;  %v19497_v39 = vld [vmem:[%s22372_s6] ss:$0 sm:$0xff] }
0x63e1   : > { %18071 = vmatmul.mubr.msk.f32.vlgmr.msra.gmra.mrb[136].mxu1 %vm661_vm0, %v21829_v1 }
0x6423   : > { %v13182_v55 = vpop.f32.mrb[118].mxu0 }
0x6424   : > { %v13183_v17 = vadd.f32 %v19496_v34, %v13182_v55  ;;  %v18061_v12 = vpop.f32.mrb[119].mxu0  ;;  %v19502_v34 = vld [vmem:[%s22372_s6 + $0x1] ss:$0 sm:$0xff] }
0x6425   : > { %v19503_v12 = vld [vmem:[%s22373_s7 + $0x8] sm:$0xff] }
0x6426   : > { %18073 = vmatprep.subr.mxu0 %v13183_v17 }
0x6427   : > { %18074 = vmatpush3.msra.mxu0 %v13183_v17 }
0x6428   : > { %18901 = vmatprep.subr.bf16.mxu0 %v20078_v42 }
0x64ac   : > { %v18054_v33 = vpop.f32.mrb[134].mxu1 }
0x64ad   : > { %v13101_v46 = vpop.f32.mrb[135].mxu1  ;;  %v13107_v6 = vadd.f32 %v19497_v39, %v18054_v33 }
0x64ae   : > { %v13102_v10 = vadd.f32 %v19497_v39, %v13101_v46 }
0x64b0   : > { %18075 = vmatprep.mubr.msk.f32.mxu0 %vm1008_vm3, %v13102_v10  ;;  %v19504_v10 = vld [vmem:[%s22374_s8 + $0x8] sm:$0xff] }
0x64b1   : > { %18076 = vmatmul.mubr.msk.f32.vlgmr.msra.gmra.mrb[120].mxu0 %vm1008_vm3, %v13107_v6 }
0x64b2   : > { %18903 = vmatpush3.bf16.msra.mxu0 %v20078_v42  ;;  %18093 = vmatprep.mubr.msk.f32.mxu0 %vm661_vm0, %v21856_v41  ;;  %v19499_v42 = vld [vmem:[%s22377_s11 + $0x8] sm:$0xff] }
0x64b3   : > { %18905 = vmatprep.subr.bf16.mxu0 %v20131_v14 }
0x64b4   : > { %v18072_v26 = vpop.f32.mrb[136].mxu1 }
0x64b5   : > { %v13258_v29 = vadd.f32 %v19498_v23, %v18072_v26  ;;  %v13252_v58 = vpop.f32.mrb[137].mxu1 }
0x64b6   : > { %v13253_v49 = vadd.f32 %v19498_v23, %v13252_v58  ;;  %18907 = vmatpush3.bf16.msra.mxu0 %v20131_v14  ;;  %v21905_v14 = vld [vmem:[%s22377_s11] sm:$0xff] }
0x64b7   : > { %18913 = vmatprep.subr.bf16.mxu0 %v20162_v21 }
0x64b8   : > { %v18896_v20 = vpack.c.bf16 %v13258_v29, %v13253_v49 }
0x64b9   : > { %18094 = vmatmul.mubr.msk.f32.vlgmr.msra.gmra.mrb[122].mxu0 %vm661_vm0, %v21858_v43 }
0x64ba   : > { %18897 = vmatprep.subr.bf16.mxu1 %v18896_v20  ;;  %18915 = vmatpush3.bf16.msra.mxu0 %v20162_v21 }
0x64bb   : > { %18111 = vmatprep.mubr.msk.f32.mxu0 %vm661_vm0, %v21831_v9  ;;  %18899 = vmatpush3.bf16.msra.mxu1 %v18896_v20 }
0x64bc   : > { %18917 = vmatprep.subr.bf16.mxu0 %v20179_v25  ;;  %18908 = vmatprep.subr.bf16.mxu1 %v22471_v60 }
0x64be   : > { %18919 = vmatpush3.bf16.msra.mxu0 %v20179_v25 }
0x64bf   : > { %18126 = vmatprep.subr.mxu0 %v19499_v42 }
0x64c1   : > { %18112 = vmatmul.mubr.msk.f32.vlgmr.msra.gmra.mrb[124].mxu0 %vm661_vm0, %v21829_v1 }
0x64c2   : > { %18127 = vmatpush3.msra.mxu0 %v19499_v42 }
0x64c3   : > { %18131 = vmatprep.subr.mxu0 %v21905_v14 }
0x6584   : > { %v18077_v21 = vpop.f32.mrb[120].mxu0 }
0x6585   : > { %v13333_v3 = vpop.f32.mrb[121].mxu0  ;;  %v13345_v25 = vsel %vm1090_vm4, %v18077_v21, -inf }
0x6586   : > { %13346 = vmax.xlane.f32.xlu1 %v13345_v25  ;;  %v13342_v13 = vsel %vm1090_vm4, %v13333_v3, -inf }
0x6587   : > { %13343 = vmax.xlane.f32.xlu0 %v13342_v13 }
0x658c   : > { %v18095_v7 = vpop.f32.mrb[122].mxu0 }
0x658d   : > { %v13511_v47 = vpop.f32.mrb[123].mxu0  ;;  %v13517_v23 = vadd.f32 %v19502_v34, %v18095_v7 }
0x658e   : > { %v13512_v17 = vadd.f32 %v19502_v34, %v13511_v47  ;;  %v19509_v34 = vld [vmem:[%s22377_s11 + $0x10] sm:$0xff] }
0x6594   : > { %v18113_v45 = vpop.f32.mrb[124].mxu0 }
0x6595   : > { %v13662_v18 = vadd.f32 %v19501_v54, %v18113_v45  ;;  %v13656_v56 = vpop.f32.mrb[125].mxu0 }
0x6596   : > { %v13657_v59 = vadd.f32 %v19501_v54, %v13656_v56 }
0x6598   : > { %v18920_v37 = vpack.c.bf16 %v13662_v18, %v13657_v59 }
0x6613   : > { %v13347_v5 = vpop.xlane.xlu1 %13346 }
0x6614   : > { %v13349_v22 = vsub.f32 %v18077_v21, %v13347_v5  ;;  %v13344_v44 = vpop.xlane.xlu0 %13343 }
0x6615   : > { %v13348_v28 = vsub.f32 %v13333_v3, %v13344_v44 }
0x6616   : > { %v13352_v16 = vmul.f32 1.442695, %v13349_v22 }
0x6617   : > { %v13350_v30 = vmul.f32 1.442695, %v13348_v28 }
0x6618   : > { %19373 = vpow2.f32 %v13352_v16 }
0x6619   : > { %19375 = vpow2.f32 %v13350_v30 }
0x6622   : > { %v19374_v50 = vpop.eup %19373 }
0x6623   : > { %v19376_v57 = vpop.eup %19375  ;;  %v13357_v36 = vsel %vm1090_vm4, %v19374_v50, 0.0 }
0x6624   : > { %13358 = vadd.xlane.f32.xlu1 %v13357_v36  ;;  %v13354_v0 = vsel %vm1090_vm4, %v19376_v57, 0.0 }
0x6625   : > { %13355 = vadd.xlane.f32.xlu0 %v13354_v0  ;;  %v19507_v0 = vld [vmem:[%s22373_s7 + $0x10] sm:$0xff] }
0x66b1   : > { %v13359_v35 = vpop.xlane.xlu1 %13358 }
0x66b2   : > { %19377 = vrcp.f32 %v13359_v35  ;;  %v13356_v4 = vpop.xlane.xlu0 %13355 }
0x66b3   : > { %19379 = vrcp.f32 %v13356_v4 }
0x66bc   : > { %v19378_v62 = vpop.eup %19377 }
0x66bd   : > { %v19380_v11 = vpop.eup %19379  ;;  %v13363_v55 = vmul.f32 %v19378_v62, %v19374_v50  ;;  %v19506_v50 = vld [vmem:[%s22372_s6 + $0x2] ss:$0 sm:$0xff]  ;;  %v19508_v62 = vld [vmem:[%s22374_s8 + $0x10] sm:$0xff] }
0x66be   : > { %v13361_v27 = vmul.f32 %v19380_v11, %v19376_v57 }
0x66c0   : > { %18082 = vmatprep.mubr.msk.f32.mxu1 %vm1090_vm4, %v13361_v27 }
0x66c1   : > { %18083 = vmatmul.mubr.msk.f32.vlgmr.msra.gmra.mrb[138].mxu1 %vm1090_vm4, %v13363_v55 }
0x66c2   : > { %18911 = vmatpush3.bf16.xpose.msk.msra.mxu1 %vm20153_vm1, %v21835_v24  ;;  %18100 = vmatprep.mubr.msk.f32.mxu1 %vm19713_vm2, %v22472_v31 }
0x66c9   : > { %18101 = vmatmul.mubr.msk.f32.vlgmr.msra.gmra.mrb[140].mxu1 %vm661_vm0, %v19503_v12 }
0x66ca   : > { %18116 = vmatprep.mubr.msk.f32.mxu1 %vm1008_vm3, %v13512_v17 }
0x6794   : > { %v21930_v33 = vpop.f32.mrb[138].mxu1 }
0x6795   : > { %v13436_v46 = vpop.f32.mrb[139].mxu1 }
0x679c   : > { %v13586_v39 = vpop.f32.mrb[140].mxu1 }
0x679d   : > { %v13587_v6 = vadd.f32 %v19504_v10, %v13586_v39  ;;  %v18102_v26 = vpop.f32.mrb[141].mxu1 }
0x679f   : > { %18114 = vmatprep.subr.mxu1 %v13587_v6 }
0x67a0   : > { %18115 = vmatpush3.msra.mxu1 %v13587_v6 }
0x67a1   : > { %18117 = vmatmul.mubr.msk.f32.vlgmr.msra.gmra.mrb[142].mxu1 %vm1008_vm3, %v13517_v23  ;;  %18921 = vmatprep.subr.bf16.mxu1 %v18920_v37 }
0x67a2   : > { %18923 = vmatpush3.bf16.msra.mxu1 %v18920_v37 }
0x67a3   : > { %18925 = vmatprep.subr.bf16.mxu1 %v20277_v15 }
0x6874   : > { %v18118_v29 = vpop.f32.mrb[142].mxu1 }
0x6875   : > { %v13737_v58 = vpop.f32.mrb[143].mxu1  ;;  %v13749_v49 = vsel %vm1090_vm4, %v18118_v29, -inf }
0x6876   : > { %13750 = vmax.xlane.f32.xlu1 %v13749_v49  ;;  %v13746_v20 = vsel %vm1090_vm4, %v13737_v58, -inf }
0x6877   : > { %13747 = vmax.xlane.f32.xlu0 %v13746_v20 }
0x6903   : > { %v13751_v42 = vpop.xlane.xlu1 %13750 }
0x6904   : > { %v13753_v21 = vsub.f32 %v18118_v29, %v13751_v42  ;;  %v13748_v3 = vpop.xlane.xlu0 %13747 }
0x6905   : > { %v13752_v25 = vsub.f32 %v13737_v58, %v13748_v3 }
0x6906   : > { %v13756_v13 = vmul.f32 1.442695, %v13753_v21 }
0x6907   : > { %v13754_v7 = vmul.f32 1.442695, %v13752_v25 }
0x6908   : > { %19381 = vpow2.f32 %v13756_v13 }
0x6909   : > { %19383 = vpow2.f32 %v13754_v7 }
0x6912   : > { %v19382_v47 = vpop.eup %19381 }
0x6913   : > { %v19384_v45 = vpop.eup %19383  ;;  %v13761_v54 = vsel %vm1090_vm4, %v19382_v47, 0.0 }
0x6914   : > { %13762 = vadd.xlane.f32.xlu1 %v13761_v54  ;;  %v13758_v18 = vsel %vm1090_vm4, %v19384_v45, 0.0  ;;  %v22005_v54 = vld [vmem:[%s22379_s13] ss:$0 sm:$0xff] }
0x6915   : > { %13759 = vadd.xlane.f32.xlu0 %v13758_v18  ;;  %v15063_v18 = vld [vmem:[#allocation5 + $0x10] sm:$0xff] }
0x69a1   : > { %v13763_v56 = vpop.xlane.xlu1 %13762 }
0x69a2   : > { %19385 = vrcp.f32 %v13763_v56  ;;  %v13760_v59 = vpop.xlane.xlu0 %13759  ;;  %v15064_v56 = vld [vmem:[#allocation5 + $0x18] sm:$0xff] }
0x69a3   : > { %19387 = vrcp.f32 %v13760_v59  ;;  %v22018_v59 = vld [vmem:[%s22498_s3] ss:$0 sm:$0xff]  ;;  %s22508_s3 = sld [smem:[#allocation42_spill]] }
0x69ac   : > { %v19386_v37 = vpop.eup %19385 }
0x69ad   : > { %v19388_v5 = vpop.eup %19387  ;;  %v13767_v44 = vmul.f32 %v19386_v37, %v19382_v47  ;;  %v15061_v47 = vld [vmem:[#allocation5] sm:$0xff] }
0x69ae   : > { %v13765_v22 = vmul.f32 %v19388_v5, %v19384_v45  ;;  %v15062_v45 = vld [vmem:[#allocation5 + $0x8] sm:$0xff] }
0x69af   : > { %v22500_v5 = vld [vmem:[#allocation28_spill] sm:$0xff] }
0x69b0   : > { %18123 = vmatprep.mubr.msk.f32.mxu1 %vm1090_vm4, %v13765_v22  ;;  %v15025_v22 = vmul.f32 %v22005_v54, %v22500_v5 }
0x69b1   : > { %18124 = vmatmul.mubr.msk.f32.vlgmr.msra.gmra.mrb[144].mxu1 %vm1090_vm4, %v13767_v44  ;;  %v22501_v44 = vld [vmem:[#allocation27_spill] sm:$0xff] }
0x69b2   : > { %18927 = vmatpush3.bf16.msra.mxu1 %v20277_v15  ;;  %18144 = vmatprep.mubr.msk.f32.mxu1 %vm661_vm0, %v21856_v41 }
0x69b3   : > { %18929 = vmatprep.subr.bf16.mxu1 %v20286_v38 }
0x69b6   : > { %18931 = vmatpush3.bf16.msra.mxu1 %v20286_v38 }
0x69b7   : > { %18937 = vmatprep.subr.bf16.mxu1 %v20300_v51 }
0x69b9   : > { %18145 = vmatmul.mubr.msk.f32.vlgmr.msra.gmra.mrb[146].mxu1 %vm661_vm0, %v21858_v43 }
0x69ba   : > { %18939 = vmatpush3.bf16.msra.mxu1 %v20300_v51  ;;  %18162 = vmatprep.mubr.msk.f32.mxu1 %vm661_vm0, %v21831_v9 }
0x69bb   : > { %18941 = vmatprep.subr.bf16.mxu1 %v20310_v53 }
0x69be   : > { %18943 = vmatpush3.bf16.msra.mxu1 %v20310_v53 }
0x69c1   : > { %18163 = vmatmul.mubr.msk.f32.vlgmr.msra.gmra.mrb[148].mxu1 %vm661_vm0, %v21829_v1 }
0x6a84   : > { %v18125_v15 = vpop.f32.mrb[144].mxu1 }
0x6a85   : > { %v13840_v28 = vpop.f32.mrb[145].mxu1 }
0x6a86   : > { %18128 = vmatprep.mubr.msk.f32.mxu0 %vm1008_vm3, %v13840_v28  ;;  %v15047_v28 = vadd.f32 %v22018_v59, %v15025_v22 }
0x6a87   : > { %18129 = vmatmul.mubr.msk.f32.vlgmr.msra.gmra.mrb[126].mxu0 %vm1008_vm3, %v18125_v15  ;;  %v15026_v15 = vmul.f32 %v22005_v54, %v22501_v44  ;;  %v19514_v44 = vld [vmem:[%s22377_s11 + $0x18] sm:$0xff] }
0x6a88   : > { %18132 = vmatpush3.msra.mxu0 %v21905_v14  ;;  %18133 = vmatprep.mubr.msk.f32.mxu0 %vm1008_vm3, %v13436_v46  ;;  %v19505_v14 = vld [vmem:[%s22376_s10 + $0x2] ss:$0 sm:$0xff] }
0x6a89   : > { %18932 = vmatprep.subr.bf16.mxu0 %v22471_v60 }
0x6a8c   : > { %v18146_v38 = vpop.f32.mrb[146].mxu1 }
0x6a8d   : > { %v14077_v51 = vpop.f32.mrb[147].mxu1  ;;  %v14083_v55 = vadd.f32 %v19506_v50, %v18146_v38  ;;  %v22502_v38 = vld [vmem:[#allocation26_spill] sm:$0xff] }
0x6a8e   : > { %v14078_v57 = vadd.f32 %v19506_v50, %v14077_v51  ;;  %v15048_v51 = vadd.f32 %v22018_v59, %v15026_v15 }
0x6a8f   : > { %18134 = vmatmul.mubr.msk.f32.vlgmr.msra.gmra.mrb[126].mxu0 %vm1008_vm3, %v21930_v33 }
0x6a90   : > { %18935 = vmatpush3.bf16.xpose.msk.msra.mxu0 %vm20153_vm1, %v21835_v24  ;;  %18151 = vmatprep.mubr.msk.f32.mxu0 %vm19713_vm2, %v22472_v31 }
0x6a94   : > { %v18164_v53 = vpop.f32.mrb[148].mxu1 }
0x6a95   : > { %v14228_v16 = vadd.f32 %v19505_v14, %v18164_v53  ;;  %v14222_v30 = vpop.f32.mrb[149].mxu1  ;;  %v22503_v53 = vld [vmem:[#allocation25_spill] sm:$0xff] }
0x6a96   : > { %v14223_v36 = vadd.f32 %v19505_v14, %v14222_v30  ;;  %v15028_v14 = vmul.f32 %v22005_v54, %v22503_v53  ;;  %v22504_v30 = vld [vmem:[#allocation34_spill] sm:$0xff] }
0x6a97   : > { %18152 = vmatmul.mubr.msk.f32.vlgmr.msra.gmra.mrb[128].mxu0 %vm661_vm0, %v19507_v0  ;;  %v15029_v50 = vmul.f32 %v22005_v54, %v22504_v30 }
0x6a98   : > { %v18944_v35 = vpack.c.bf16 %v14228_v16, %v14223_v36  ;;  %18167 = vmatprep.mubr.msk.f32.mxu0 %vm1008_vm3, %v14078_v57  ;;  %v15050_v57 = vadd.f32 %v22018_v59, %v15028_v14  ;;  %v22505_v36 = vld [vmem:[#allocation33_spill] sm:$0xff] }
0x6a99   : > { %v15030_v0 = vmul.f32 %v22005_v54, %v22505_v36 }
0x6a9a   : > { %18945 = vmatprep.subr.bf16.mxu1 %v18944_v35 }
0x6a9b   : > { %18947 = vmatpush3.bf16.msra.mxu1 %v18944_v35  ;;  %v15051_v35 = vadd.f32 %v22018_v59, %v15029_v50 }
0x6a9c   : > { %18949 = vmatprep.subr.bf16.mxu1 %v20386_v8 }
0x6b6a   : > { %v14152_v4 = vpop.f32.mrb[128].mxu0 }
0x6b6b   : > { %v14153_v11 = vadd.f32 %v19508_v62, %v14152_v4  ;;  %v18153_v27 = vpop.f32.mrb[129].mxu0  ;;  %v22506_v4 = vld [vmem:[#allocation32_spill] sm:$0xff] }
0x6b6c   : > { %v15031_v62 = vmul.f32 %v22005_v54, %v22506_v4  ;;  %v22507_v27 = vld [vmem:[#allocation29_spill] sm:$0xff] }
0x6b6d   : > { %18165 = vmatprep.subr.mxu0 %v14153_v11 }
0x6b6e   : > { %18166 = vmatpush3.msra.mxu0 %v14153_v11  ;;  %v15052_v11 = vadd.f32 %v22018_v59, %v15030_v0 }
0x6b6f   : > { %18168 = vmatmul.mubr.msk.f32.vlgmr.msra.gmra.mrb[130].mxu0 %vm1008_vm3, %v14083_v55  ;;  %18177 = vmatprep.subr.mxu0 %v19509_v34  ;;  %v15032_v55 = vmul.f32 %v22005_v54, %v22507_v27 }
0x6b70   : > { %18178 = vmatpush3.msra.mxu0 %v19509_v34  ;;  %v15053_v34 = vadd.f32 %v22018_v59, %v15031_v62 }
0x6b71   : > { %18956 = vmatprep.subr.bf16.mxu0 %v22471_v60 }
0x6c42   : > { %v18169_v17 = vpop.f32.mrb[130].mxu0 }
0x6c43   : > { %v14303_v12 = vpop.f32.mrb[131].mxu0  ;;  %v14315_v33 = vsel %vm1090_vm4, %v18169_v17, -inf }
0x6c44   : > { %14316 = vmax.xlane.f32.xlu1 %v14315_v33  ;;  %v14312_v46 = vsel %vm1090_vm4, %v14303_v12, -inf  ;;  %v15034_v33 = vmul.f32 %v22005_v54, %v21636_v32 }
0x6c45   : > { %14313 = vmax.xlane.f32.xlu0 %v14312_v46 }
0x6cd1   : > { %v14317_v39 = vpop.xlane.xlu1 %14316 }
0x6cd2   : > { %v14319_v10 = vsub.f32 %v18169_v17, %v14317_v39  ;;  %v14314_v6 = vpop.xlane.xlu0 %14313  ;;  %v15033_v17 = vmul.f32 %v22005_v54, %v21638_v40  ;;  %v15035_v39 = vmul.f32 %v22005_v54, %v21846_v2  ;;  %v15056_v40 = vadd.f32 %v22018_v59, %v15034_v33 }
0x6cd3   : > { %v14318_v26 = vsub.f32 %v14303_v12, %v14314_v6  ;;  %v15054_v12 = vadd.f32 %v22018_v59, %v15032_v55 }
0x6cd4   : > { %v14322_v23 = vmul.f32 1.442695, %v14319_v10  ;;  %v15055_v46 = vadd.f32 %v22018_v59, %v15033_v17  ;;  %v15036_v10 = vmul.f32 %v22005_v54, %v21844_v63  ;;  %v15057_v6 = vadd.f32 %v22018_v59, %v15035_v39  ;;  %v15345_v17 = vld [vmem:[%s22508_s3] sm:$0xff] }
0x6cd5   : > { %v14320_v29 = vmul.f32 1.442695, %v14318_v26 }
0x6cd6   : > { %19389 = vpow2.f32 %v14322_v23  ;;  %v15058_v32 = vadd.f32 %v22018_v59, %v15036_v10 }
0x6cd7   : > { %19391 = vpow2.f32 %v14320_v29  ;;  %v19510_v29 = vld [vmem:[%s22372_s6 + $0x3] ss:$0 sm:$0xff] }
0x6ce0   : > { %v19390_v58 = vpop.eup %19389 }
0x6ce1   : > { %v19392_v49 = vpop.eup %19391  ;;  %v14327_v60 = vsel %vm1090_vm4, %v19390_v58, 0.0 }
0x6ce2   : > { %14328 = vadd.xlane.f32.xlu1 %v14327_v60  ;;  %v14324_v20 = vsel %vm1090_vm4, %v19392_v49, 0.0 }
0x6ce3   : > { %14325 = vadd.xlane.f32.xlu0 %v14324_v20 }
0x6d6f   : > { %v14329_v42 = vpop.xlane.xlu1 %14328 }
0x6d70   : > { %19393 = vrcp.f32 %v14329_v42  ;;  %v14326_v21 = vpop.xlane.xlu0 %14325 }
0x6d71   : > { %19395 = vrcp.f32 %v14326_v21 }
0x6d7a   : > { %v19394_v3 = vpop.eup %19393 }
0x6d7b   : > { %v19396_v25 = vpop.eup %19395  ;;  %v14333_v7 = vmul.f32 %v19394_v3, %v19390_v58 }
0x6d7c   : > { %v14331_v13 = vmul.f32 %v19396_v25, %v19392_v49  ;;  %v19511_v49 = vld [vmem:[%s22373_s7 + $0x18] sm:$0xff] }
0x6d7e   : > { %18174 = vmatprep.mubr.msk.f32.mxu1 %vm1090_vm4, %v14331_v13 }
0x6d7f   : > { %18175 = vmatmul.mubr.msk.f32.vlgmr.msra.gmra.mrb[150].mxu1 %vm1090_vm4, %v14333_v7 }
0x6d80   : > { %18951 = vmatpush3.bf16.msra.mxu1 %v20386_v8  ;;  %18190 = vmatprep.mubr.msk.f32.mxu1 %vm661_vm0, %v21856_v41  ;;  %v18972_v8 = vpack.c.bf16 %v15062_v45, %v15061_v47 }
0x6d81   : > { %18953 = vmatprep.subr.bf16.mxu1 %v20403_v48 }
0x6d84   : > { %18955 = vmatpush3.bf16.msra.mxu1 %v20403_v48  ;;  %v22497_v48 = vld [vmem:[#allocation23_spill] sm:$0xff] }
0x6d85   : > { %18961 = vmatprep.subr.bf16.mxu1 %v20417_v52  ;;  %v15023_v41 = vmul.f32 %v22005_v54, %v22497_v48 }
0x6d87   : > { %18191 = vmatmul.mubr.msk.f32.vlgmr.msra.gmra.mrb[152].mxu1 %vm661_vm0, %v21858_v43  ;;  %v15045_v43 = vadd.f32 %v22018_v59, %v15023_v41 }
0x6d88   : > { %18963 = vmatpush3.bf16.msra.mxu1 %v20417_v52  ;;  %18208 = vmatprep.mubr.msk.f32.mxu1 %vm661_vm0, %v21831_v9  ;;  %v18976_v52 = vpack.c.bf16 %v15064_v56, %v15063_v18  ;;  %v22499_v9 = vld [vmem:[#allocation24_spill] sm:$0xff] }
0x6d89   : > { %18965 = vmatprep.subr.bf16.mxu1 %v20427_v61  ;;  %v15024_v37 = vmul.f32 %v22005_v54, %v22499_v9 }
0x6d8c   : > { %18967 = vmatpush3.bf16.msra.mxu1 %v20427_v61  ;;  %v15046_v61 = vadd.f32 %v22018_v59, %v15024_v37  ;;  %v19513_v37 = vld [vmem:[%s22374_s8 + $0x18] sm:$0xff] }
0x6d8d   : > { %18973 = vmatprep.subr.bf16.mxu1 %v18972_v8 }
0x6d8f   : > { %18209 = vmatmul.mubr.msk.f32.vlgmr.msra.gmra.mrb[154].mxu1 %vm661_vm0, %v21829_v1  ;;  %v15027_v1 = vmul.f32 %v22005_v54, %v22502_v38 }
0x6d90   : > { %18975 = vmatpush3.bf16.msra.mxu1 %v18972_v8  ;;  %18236 = vmatprep.mubr.msk.f32.mxu1 %vm661_vm0, %v15045_v43 }
0x6d91   : > { %18977 = vmatprep.subr.bf16.mxu1 %v18976_v52  ;;  %v15049_v16 = vadd.f32 %v22018_v59, %v15027_v1 }
0x6d94   : > { %18979 = vmatpush3.bf16.msra.mxu1 %v18976_v52 }
0x6d97   : > { %18237 = vmatmul.mubr.msk.f32.vlgmr.msra.gmra.mrb[156].mxu1 %vm661_vm0, %v15046_v61 }
0x6d98   : > { %18239 = vmatprep.mubr.msk.f32.mxu1 %vm661_vm0, %v15047_v28 }
0x6d9b   : > { %18240 = vmatmul.mubr.msk.f32.gmra.mrb[158].mxu1 %vm661_vm0, %v15048_v51 }
0x6d9c   : > { %18242 = vmatprep.mubr.msk.f32.mxu1 %vm661_vm0, %v15049_v16 }
0x6d9f   : > { %18243 = vmatmul.mubr.msk.f32.gmra.mrb[160].mxu1 %vm661_vm0, %v15050_v57 }
0x6da0   : > { %18245 = vmatprep.mubr.msk.f32.mxu1 %vm661_vm0, %v15051_v35 }
0x6da3   : > { %18246 = vmatmul.mubr.msk.f32.gmra.mrb[162].mxu1 %vm661_vm0, %v15052_v11 }
0x6da4   : > { %18248 = vmatprep.mubr.msk.f32.mxu1 %vm661_vm0, %v15053_v34 }
0x6da7   : > { %18249 = vmatmul.mubr.msk.f32.gmra.mrb[164].mxu1 %vm661_vm0, %v15054_v12  ;;  %v15346_v12 = vld [vmem:[%s22508_s3 + $0x8] sm:$0xff] }
0x6da8   : > { %18251 = vmatprep.mubr.msk.f32.mxu1 %vm661_vm0, %v15055_v46  ;;  %v18980_v33 = vpack.c.bf16 %v15346_v12, %v15345_v17  ;;  %v22140_v46 = vld [vmem:[#allocation7] ss:$0 sm:$0xff] }
0x6dab   : > { %18252 = vmatmul.mubr.msk.f32.gmra.mrb[166].mxu1 %vm661_vm0, %v15056_v40 }
0x6dac   : > { %18254 = vmatprep.mubr.msk.f32.mxu1 %vm661_vm0, %v15057_v6 }
0x6daf   : > { %18255 = vmatmul.mubr.msk.f32.gmra.mrb[168].mxu1 %vm661_vm0, %v15058_v32 }
0x6e52   : > { %v18176_v2 = vpop.f32.mrb[150].mxu1 }
0x6e53   : > { %v14406_v26 = vpop.f32.mrb[151].mxu1 }
0x6e54   : > { %18179 = vmatprep.mubr.msk.f32.mxu0 %vm1008_vm3, %v14406_v26 }
0x6e55   : > { %18180 = vmatmul.mubr.msk.f32.vlgmr.msra.gmra.mrb[126].mxu0 %vm1008_vm3, %v18176_v2 }
0x6e56   : > { %18959 = vmatpush3.bf16.xpose.msk.msra.mxu0 %vm20153_vm1, %v21835_v24  ;;  %18197 = vmatprep.mubr.msk.f32.mxu0 %vm19713_vm2, %v22472_v31  ;;  %v19512_v31 = vld [vmem:[%s22376_s10 + $0x3] ss:$0 sm:$0xff] }
0x6e5a   : > { %v18192_v63 = vpop.f32.mrb[152].mxu1 }
0x6e5b   : > { %v14564_v23 = vpop.f32.mrb[153].mxu1  ;;  %v14570_v61 = vadd.f32 %v19510_v29, %v18192_v63 }
0x6e5c   : > { %v14565_v58 = vadd.f32 %v19510_v29, %v14564_v23 }
0x6e5d   : > { %18198 = vmatmul.mubr.msk.f32.vlgmr.msra.gmra.mrb[132].mxu0 %vm661_vm0, %v19511_v49  ;;  %v15348_v49 = vld [vmem:[%s22508_s3 + $0x18] sm:$0xff] }
0x6e5e   : > { %18213 = vmatprep.mubr.msk.f32.mxu0 %vm1008_vm3, %v14565_v58  ;;  %v15347_v58 = vld [vmem:[%s22508_s3 + $0x10] sm:$0xff] }
0x6e62   : > { %v18210_v19 = vpop.f32.mrb[154].mxu1 }
0x6e63   : > { %v14715_v24 = vadd.f32 %v19512_v31, %v18210_v19  ;;  %v14709_v60 = vpop.f32.mrb[155].mxu1 }
0x6e64   : > { %v14710_v20 = vadd.f32 %v19512_v31, %v14709_v60 }
0x6e66   : > { %v18968_v42 = vpack.c.bf16 %v14715_v24, %v14710_v20 }
0x6e6a   : > { %v22095_v21 = vpop.f32.mrb[156].mxu1 }
0x6e6b   : > { %v15186_v3 = vpop.f32.mrb[157].mxu1  ;;  %v15192_v10 = vadd.f32 %v22095_v21, %v22140_v46 }
0x6e6c   : > { %v15187_v39 = vadd.f32 %v22140_v46, %v15186_v3  ;;  %v18984_v3 = vpack.c.bf16 %v15348_v49, %v15347_v58 }
0x6e6d   : > { %v15282_v2 = vmul.f32 0.70710677, %v15192_v10 }
0x6e6e   : > { %v22097_v25 = vpop.f32.mrb[158].mxu1  ;;  %v15281_v40 = vmul.f32 0.70710677, %v15187_v39  ;;  %v15265_v19 = vmul.f32 0.5, %v15187_v39 }
0x6e6f   : > { %v22099_v13 = vpop.f32.mrb[159].mxu1  ;;  %v22149_v26 = vadd.f32 %v22097_v25, %v22140_v46 }
0x6e70   : > { %v15197_v6 = vadd.f32 %v22140_v46, %v22099_v13  ;;  %v15349_v13 = vld [vmem:[%s22508_s3 + $0x20] sm:$0xff] }
0x6e71   : > { %v15284_v31 = vmul.f32 0.70710677, %v22149_v26 }
0x6e72   : > { %v22101_v7 = vpop.f32.mrb[160].mxu1  ;;  %v15283_v63 = vmul.f32 0.70710677, %v15197_v6 }
0x6e73   : > { %v22103_v47 = vpop.f32.mrb[161].mxu1  ;;  %v22164_v24 = vadd.f32 %v22101_v7, %v22140_v46  ;;  %v15350_v7 = vld [vmem:[%s22508_s3 + $0x28] sm:$0xff] }
0x6e74   : > { %v22153_v23 = vadd.f32 %v22140_v46, %v22103_v47 }
0x6e75   : > { %v15286_v47 = vmul.f32 0.70710677, %v22164_v24 }
0x6e76   : > { %v22105_v45 = vpop.f32.mrb[162].mxu1  ;;  %v15285_v20 = vmul.f32 0.70710677, %v22153_v23  ;;  %v15269_v17 = vmul.f32 0.5, %v22153_v23 }
0x6e77   : > { %v22107_v8 = vpop.f32.mrb[163].mxu1 }
0x6e7a   : > { %v22109_v48 = vpop.f32.mrb[164].mxu1 }
0x6e7b   : > { %v22111_v41 = vpop.f32.mrb[165].mxu1 }
0x6e7e   : > { %v22113_v18 = vpop.f32.mrb[166].mxu1 }
0x6e7f   : > { %v22115_v56 = vpop.f32.mrb[167].mxu1 }
0x6e82   : > { %v22117_v52 = vpop.f32.mrb[168].mxu1 }
0x6e83   : > { %v22119_v43 = vpop.f32.mrb[169].mxu1 }
0x6f30   : > { %v14639_v9 = vpop.f32.mrb[132].mxu0 }
0x6f31   : > { %v14640_v5 = vadd.f32 %v19513_v37, %v14639_v9  ;;  %v18199_v22 = vpop.f32.mrb[133].mxu0  ;;  %v22188_v37 = vadd.f32 %v22140_v46, %v22111_v41 }
0x6f32   : > { %v15351_v22 = vld [vmem:[%s22508_s3 + $0x30] sm:$0xff] }
0x6f33   : > { %18211 = vmatprep.subr.mxu0 %v14640_v5 }
0x6f34   : > { %18212 = vmatpush3.msra.mxu0 %v14640_v5  ;;  %v18988_v5 = vpack.c.bf16 %v15350_v7, %v15349_v13 }
0x6f35   : > { %18214 = vmatmul.mubr.msk.f32.vlgmr.msra.gmra.mrb[134].mxu0 %vm1008_vm3, %v14570_v61  ;;  %18969 = vmatprep.subr.bf16.mxu0 %v18968_v42 }
0x6f36   : > { %18971 = vmatpush3.bf16.msra.mxu0 %v18968_v42  ;;  %v22169_v42 = vadd.f32 %v22140_v46, %v22107_v8  ;;  %v22182_v8 = vadd.f32 %v22105_v45, %v22140_v46  ;;  %v15352_v45 = vld [vmem:[%s22508_s3 + $0x38] sm:$0xff] }
0x6f37   : > { %18223 = vmatprep.subr.mxu0 %v19514_v44 }
0x6f38   : > { %v15287_v9 = vmul.f32 0.70710677, %v22169_v42  ;;  %v15288_v61 = vmul.f32 0.70710677, %v22182_v8 }
0x7008   : > { %v18215_v15 = vpop.f32.mrb[134].mxu0 }
0x7009   : > { %v14790_v28 = vpop.f32.mrb[135].mxu0  ;;  %v14802_v38 = vsel %vm1090_vm4, %v18215_v15, -inf }
0x700a   : > { %14803 = vmax.xlane.f32.xlu1 %v14802_v38  ;;  %v14799_v1 = vsel %vm1090_vm4, %v14790_v28, -inf  ;;  %v18992_v38 = vpack.c.bf16 %v15352_v45, %v15351_v22 }
0x700b   : > { %14800 = vmax.xlane.f32.xlu0 %v14799_v1 }
0x7097   : > { %v14804_v51 = vpop.xlane.xlu1 %14803 }
0x7098   : > { %v14806_v53 = vsub.f32 %v18215_v15, %v14804_v51  ;;  %v14801_v14 = vpop.xlane.xlu0 %14800  ;;  %v15289_v15 = vmul.f32 0.70710677, %v22188_v37 }
0x7099   : > { %v14805_v16 = vsub.f32 %v14790_v28, %v14801_v14  ;;  %v22204_v28 = vadd.f32 %v22140_v46, %v22115_v56 }
0x709a   : > { %v14809_v30 = vmul.f32 1.442695, %v14806_v53  ;;  %v22209_v53 = vadd.f32 %v22113_v18, %v22140_v46  ;;  %v15252_v18 = vadd.f32 %v22117_v52, %v22140_v46 }
0x709b   : > { %v14807_v50 = vmul.f32 1.442695, %v14805_v16  ;;  %v15291_v14 = vmul.f32 0.70710677, %v22204_v28  ;;  %v22214_v16 = vadd.f32 %v22140_v46, %v22119_v43  ;;  %v15275_v13 = vmul.f32 0.5, %v22204_v28 }
0x709c   : > { %19397 = vpow2.f32 %v14809_v30  ;;  %v15294_v12 = vmul.f32 0.70710677, %v15252_v18 }
0x709d   : > { %19399 = vpow2.f32 %v14807_v50  ;;  %v15277_v22 = vmul.f32 0.5, %v22214_v16 }
0x70a6   : > { %v19398_v57 = vpop.eup %19397 }
0x70a7   : > { %v19400_v36 = vpop.eup %19399  ;;  %v14814_v0 = vsel %vm1090_vm4, %v19398_v57, 0.0 }
0x70a8   : > { %14815 = vadd.xlane.f32.xlu1 %v14814_v0  ;;  %v14811_v35 = vsel %vm1090_vm4, %v19400_v36, 0.0  ;;  %v15292_v0 = vmul.f32 0.70710677, %v22209_v53 }
0x70a9   : > { %14812 = vadd.xlane.f32.xlu0 %v14811_v35 }
0x7135   : > { %v14816_v4 = vpop.xlane.xlu1 %14815 }
0x7136   : > { %19401 = vrcp.f32 %v14816_v4  ;;  %v14813_v62 = vpop.xlane.xlu0 %14812 }
0x7137   : > { %19403 = vrcp.f32 %v14813_v62  ;;  %v15293_v62 = vmul.f32 0.70710677, %v22214_v16  ;;  %v19517_v16 = vld [vmem:[%s19994_s30 + $0x70] sm:$0xff] }
0x7138   : > { %19405 = verf.f32 %v15281_v40 }
0x7139   : > { %19407 = verf.f32 %v15282_v2  ;;  %v15271_v2 = vmul.f32 0.5, %v22169_v42 }
0x713a   : > { %19409 = verf.f32 %v15283_v63 }
0x713b   : > { %19411 = verf.f32 %v15284_v31  ;;  %v15273_v31 = vmul.f32 0.5, %v22188_v37 }
0x713c   : > { %19413 = verf.f32 %v15285_v20 }
0x713d   : > { %19415 = verf.f32 %v15286_v47 }
0x713e   : > { %19417 = verf.f32 %v15287_v9 }
0x713f   : > { %19419 = verf.f32 %v15288_v61 }
0x7140   : > { %v19402_v11 = vpop.eup %19401  ;;  %19421 = verf.f32 %v15289_v15 }
0x7141   : > { %v19404_v27 = vpop.eup %19403  ;;  %v14820_v34 = vmul.f32 %v19402_v11, %v19398_v57  ;;  %v15266_v57 = vmul.f32 0.5, %v15192_v10 }
0x7142   : > { %v14818_v55 = vmul.f32 %v19404_v27, %v19400_v36  ;;  %v19406_v32 = vpop.eup %19405  ;;  %v15267_v36 = vmul.f32 0.5, %v15197_v6 }
0x7143   : > { %v15313_v29 = vadd.f32 1.0, %v19406_v32  ;;  %v19408_v41 = vpop.eup %19407  ;;  %v15270_v32 = vmul.f32 0.5, %v22164_v24 }
0x7144   : > { %18220 = vmatprep.mubr.msk.f32.mxu0 %vm1090_vm4, %v14818_v55  ;;  %v19410_v1 = vpop.eup %19409 }
0x7145   : > { %18221 = vmatmul.mubr.msk.f32.vlgmr.msra.gmra.mrb[136].mxu0 %vm1090_vm4, %v14820_v34  ;;  %v15329_v25 = vmul.f32 %v15313_v29, %v15265_v19  ;;  %v19412_v56 = vpop.eup %19411  ;;  %v15315_v30 = vadd.f32 1.0, %v19410_v1  ;;  %v15268_v34 = vmul.f32 0.5, %v22149_v26  ;;  %v15272_v19 = vmul.f32 0.5, %v22182_v8 }
0x7146   : > { %18224 = vmatpush3.msra.mxu0 %v19514_v44  ;;  %v22199_v44 = vadd.f32 %v22109_v48, %v22140_v46  ;;  %v15314_v48 = vadd.f32 1.0, %v19408_v41  ;;  %v19414_v50 = vpop.eup %19413  ;;  %v15316_v4 = vadd.f32 1.0, %v19412_v56  ;;  %v15278_v41 = vmul.f32 0.5, %v15252_v18 }
0x7147   : > { %18981 = vmatprep.subr.bf16.mxu0 %v18980_v33  ;;  %v19416_v43 = vpop.eup %19415  ;;  %v15331_v11 = vmul.f32 %v15315_v30, %v15267_v36  ;;  %v15317_v27 = vadd.f32 1.0, %v19414_v50 }
0x7148   : > { %v15290_v51 = vmul.f32 0.70710677, %v22199_v44  ;;  %v15330_v35 = vmul.f32 %v15314_v48, %v15266_v57  ;;  %v19418_v55 = vpop.eup %19417  ;;  %v15332_v52 = vmul.f32 %v15316_v4, %v15268_v34  ;;  %v19516_v48 = vld [vmem:[%s19994_s30 + $0x78] sm:$0xff]  ;;  %v22250_v57 = vld [vmem:[#allocation8] ss:$0 sm:$0xff]  ;;  %s22510_s30 = sld [smem:[#allocation21_spill]] }
0x7149   : > { %v19420_v39 = vpop.eup %19419  ;;  %v15333_v40 = vmul.f32 %v15317_v27, %v15269_v17  ;;  %v15319_v10 = vadd.f32 1.0, %v19418_v55 }
0x714a   : > { %19423 = verf.f32 %v15290_v51  ;;  %v19422_v6 = vpop.eup %19421  ;;  %v15320_v63 = vadd.f32 1.0, %v19420_v39 }
0x714b   : > { %19425 = verf.f32 %v15291_v14  ;;  %v15335_v29 = vmul.f32 %v15319_v10, %v15271_v2  ;;  %v15321_v58 = vadd.f32 1.0, %v19422_v6 }
0x714c   : > { %19427 = verf.f32 %v15292_v0  ;;  %v15336_v24 = vmul.f32 %v15320_v63, %v15272_v19 }
0x714d   : > { %19429 = verf.f32 %v15293_v62  ;;  %v15337_v42 = vmul.f32 %v15321_v58, %v15273_v31 }
0x714e   : > { %19431 = verf.f32 %v15294_v12  ;;  %p22512_p11 = scmp.ne.s32.totalorder %s22510_s30, 0 }
0x7150   : > { %p19632_p13 = pnand %p19631_p8, %p22512_p11 }
0x7152   : > { %p19633_p1 = pneg %p19632_p13 }
0x7154   : > { %v19424_v23 = vpop.eup %19423  ;;  %p19640_p5 = pnand %p19639_p2, %p19633_p1 }
0x7155   : > { %v19426_v49 = vpop.eup %19425 }
0x7156   : > { %v19428_v20 = vpop.eup %19427 }
0x7157   : > { %v15324_v47 = vadd.f32 1.0, %v19428_v20 }
0x7218   : > { %v18222_v60 = vpop.f32.mrb[136].mxu0 }
0x7219   : > { %v14893_v21 = vpop.f32.mrb[137].mxu0 }
0x721a   : > { %18225 = vmatprep.mubr.msk.f32.mxu0 %vm1008_vm3, %v14893_v21  ;;  %v15323_v21 = vadd.f32 1.0, %v19426_v49 }
0x721b   : > { %18226 = vmatmul.mubr.msk.f32.vlgmr.msra.gmra.mrb[126].mxu0 %vm1008_vm3, %v18222_v60  ;;  %v15322_v60 = vadd.f32 1.0, %v19424_v23 }
0x721c   : > { %18983 = vmatpush3.bf16.msra.mxu0 %v18980_v33  ;;  %18276 = vmatprep.mubr.msk.f32.mxu0 %vm15360_vm5, %v15329_v25  ;;  %v15318_v33 = vadd.f32 1.0, %v19416_v43  ;;  %v15274_v25 = vmul.f32 0.5, %v22199_v44  ;;  %v15339_v9 = vmul.f32 %v15323_v21, %v15275_v13 }
0x721d   : > { %18985 = vmatprep.subr.bf16.mxu0 %v18984_v3 }
0x721e   : > { %v15334_v26 = vmul.f32 %v15318_v33, %v15270_v32  ;;  %v15338_v7 = vmul.f32 %v15322_v60, %v15274_v25 }
0x7220   : > { %18987 = vmatpush3.bf16.msra.mxu0 %v18984_v3  ;;  %v19430_v3 = vpop.eup %19429 }
0x7221   : > { %18989 = vmatprep.subr.bf16.mxu0 %v18988_v5  ;;  %v19432_v8 = vpop.eup %19431  ;;  %v15325_v37 = vadd.f32 1.0, %v19430_v3 }
0x7222   : > { %v15326_v61 = vadd.f32 1.0, %v19432_v8 }
0x7223   : > { %v15341_v44 = vmul.f32 %v15325_v37, %v15277_v22 }
0x7224   : > { %18991 = vmatpush3.bf16.msra.mxu0 %v18988_v5  ;;  %v15276_v5 = vmul.f32 0.5, %v22209_v53  ;;  %v15342_v15 = vmul.f32 %v15326_v61, %v15278_v41 }
0x7225   : > { %18993 = vmatprep.subr.bf16.mxu0 %v18992_v38 }
0x7226   : > { %v15340_v45 = vmul.f32 %v15324_v47, %v15276_v5 }
0x7228   : > { %18995 = vmatpush3.bf16.msra.mxu0 %v18992_v38  ;;  %v19515_v38 = vld [vmem:[#allocation2] ss:$0 sm:$0xff] }
0x722b   : > { %18277 = vmatmul.mubr.msk.f32.vlgmr.msra.gmra.mrb[138].mxu0 %vm15360_vm5, %v15330_v35 }
0x722c   : > { %18279 = vmatprep.mubr.msk.f32.mxu0 %vm15360_vm5, %v15331_v11 }
0x722f   : > { %18280 = vmatmul.mubr.msk.f32.gmra.mrb[140].mxu0 %vm15360_vm5, %v15332_v52 }
0x7230   : > { %18282 = vmatprep.mubr.msk.f32.mxu0 %vm15360_vm5, %v15333_v40 }
0x7233   : > { %18283 = vmatmul.mubr.msk.f32.gmra.mrb[142].mxu0 %vm15360_vm5, %v15334_v26 }
0x7234   : > { %18285 = vmatprep.mubr.msk.f32.mxu0 %vm15360_vm5, %v15335_v29 }
0x7237   : > { %18286 = vmatmul.mubr.msk.f32.gmra.mrb[144].mxu0 %vm15360_vm5, %v15336_v24 }
0x7238   : > { %18288 = vmatprep.mubr.msk.f32.mxu0 %vm15360_vm5, %v15337_v42 }
0x723b   : > { %18289 = vmatmul.mubr.msk.f32.gmra.mrb[146].mxu0 %vm15360_vm5, %v15338_v7 }
0x723c   : > { %18291 = vmatprep.mubr.msk.f32.mxu0 %vm15360_vm5, %v15339_v9 }
0x723f   : > { %18292 = vmatmul.mubr.msk.f32.gmra.mrb[148].mxu0 %vm15360_vm5, %v15340_v45 }
0x7240   : > { %18294 = vmatprep.mubr.msk.f32.mxu0 %vm15360_vm5, %v15341_v44 }
0x7243   : > { %18295 = vmatmul.mubr.msk.f32.gmra.mrb[150].mxu0 %vm15360_vm5, %v15342_v15 }
0x72ee   : > { %v18227_v28 = vpop.f32.mrb[126].mxu0 }
0x72ef   : > { %v14986_v1 = vadd.f32 %v19515_v38, %v18227_v28  ;;  %v14974_v51 = vpop.f32.mrb[127].mxu0 }
0x72f0   : > { %v14985_v53 = vadd.f32 %v19515_v38, %v14974_v51 }
0x72f1   : > { %v14988_v14 = vadd.f32 %v19516_v48, %v14986_v1 }
0x72f2   : > { %v14987_v56 = vadd.f32 %v19517_v16, %v14985_v53 }
0x72f3   : > { %v14994_v30 = vsel %vm661_vm0, %v14988_v14, 0.0 }
0x72f4   : > { %14995 = vadd.xlane.f32.xlu1 %v14994_v30  ;;  %v14991_v50 = vsel %vm661_vm0, %v14987_v56, 0.0 }
0x72f5   : > { %14992 = vadd.xlane.f32.xlu0 %v14991_v50 }
0x72fe   : > { %v18278_v36 = vpop.f32.mrb[138].mxu0 }
0x72ff   : > { %v15481_v0 = vadd.f32 %v18278_v36, %v22250_v57  ;;  %v15475_v18 = vpop.f32.mrb[139].mxu0 }
0x7300   : > { %v15476_v35 = vadd.f32 %v22250_v57, %v15475_v18 }
0x7301   : > { %15555 = vst.msk [vmem:[%s22254_s20 + $0x8] sm:$0xff] %vm661_vm0, %v15481_v0 }
0x7302   : > { %15554 = vst.msk [vmem:[%s22254_s20] sm:$0xff] %vm661_vm0, %v15476_v35  ;;  %v18281_v4 = vpop.f32.mrb[140].mxu0 }
0x7303   : > { %v15491_v62 = vadd.f32 %v18281_v4, %v22250_v57  ;;  %v15485_v43 = vpop.f32.mrb[141].mxu0 }
0x7304   : > { %v15486_v11 = vadd.f32 %v22250_v57, %v15485_v43 }
0x7305   : > { %16176 = vst.msk [vmem:[%s22254_s20 + $0x18] sm:$0xff] %vm661_vm0, %v15491_v62 }
0x7306   : > { %16175 = vst.msk [vmem:[%s22254_s20 + $0x10] sm:$0xff] %vm661_vm0, %v15486_v11  ;;  %v18284_v27 = vpop.f32.mrb[142].mxu0 }
0x7307   : > { %v15501_v55 = vadd.f32 %v18284_v27, %v22250_v57  ;;  %v15495_v34 = vpop.f32.mrb[143].mxu0 }
0x7308   : > { %v15496_v17 = vadd.f32 %v22250_v57, %v15495_v34 }
0x7309   : > { %16178 = vst.msk [vmem:[%s22254_s20 + $0x28] sm:$0xff] %vm661_vm0, %v15501_v55 }
0x730a   : > { %16177 = vst.msk [vmem:[%s22254_s20 + $0x20] sm:$0xff] %vm661_vm0, %v15496_v17  ;;  %v18287_v12 = vpop.f32.mrb[144].mxu0 }
0x730b   : > { %v15511_v52 = vadd.f32 %v18287_v12, %v22250_v57  ;;  %v15505_v33 = vpop.f32.mrb[145].mxu0 }
0x730c   : > { %v15506_v39 = vadd.f32 %v22250_v57, %v15505_v33 }
0x730d   : > { %16180 = vst.msk [vmem:[%s22254_s20 + $0x38] sm:$0xff] %vm661_vm0, %v15511_v52 }
0x730e   : > { %16179 = vst.msk [vmem:[%s22254_s20 + $0x30] sm:$0xff] %vm661_vm0, %v15506_v39  ;;  %v18290_v40 = vpop.f32.mrb[146].mxu0 }
0x730f   : > { %v15521_v10 = vadd.f32 %v18290_v40, %v22250_v57  ;;  %v15515_v6 = vpop.f32.mrb[147].mxu0 }
0x7310   : > { %v15516_v32 = vadd.f32 %v22250_v57, %v15515_v6 }
0x7311   : > { %16182 = vst.msk [vmem:[%s22254_s20 + $0x48] sm:$0xff] %vm661_vm0, %v15521_v10 }
0x7312   : > { %16181 = vst.msk [vmem:[%s22254_s20 + $0x40] sm:$0xff] %vm661_vm0, %v15516_v32  ;;  %v18293_v2 = vpop.f32.mrb[148].mxu0 }
0x7313   : > { %v15531_v26 = vadd.f32 %v18293_v2, %v22250_v57  ;;  %v15525_v63 = vpop.f32.mrb[149].mxu0 }
0x7314   : > { %v15526_v23 = vadd.f32 %v22250_v57, %v15525_v63 }
0x7315   : > { %16184 = vst.msk [vmem:[%s22254_s20 + $0x58] sm:$0xff] %vm661_vm0, %v15531_v26 }
0x7316   : > { %16183 = vst.msk [vmem:[%s22254_s20 + $0x50] sm:$0xff] %vm661_vm0, %v15526_v23  ;;  %v18296_v29 = vpop.f32.mrb[150].mxu0 }
0x7317   : > { %v15541_v58 = vadd.f32 %v18296_v29, %v22250_v57  ;;  %v15535_v49 = vpop.f32.mrb[151].mxu0 }
0x7318   : > { %v15536_v19 = vadd.f32 %v22250_v57, %v15535_v49 }
0x7319   : > { %16186 = vst.msk [vmem:[%s22254_s20 + $0x68] sm:$0xff] %vm661_vm0, %v15541_v58 }
0x731a   : > { %16185 = vst.msk [vmem:[%s22254_s20 + $0x60] sm:$0xff] %vm661_vm0, %v15536_v19 }
0x7381   : > { %v14996_v31 = vpop.xlane.xlu1 %14995 }
0x7382   : > { %v14998_v24 = vmul.f32 0.03125, %v14996_v31  ;;  %v14993_v60 = vpop.xlane.xlu0 %14992 }
0x7383   : > { %v14997_v20 = vmul.f32 0.03125, %v14993_v60 }
0x7384   : > { %v15000_v42 = vsub.f32 %v14988_v14, %v14998_v24 }
0x7385   : > { %v14999_v21 = vsub.f32 %v14987_v56, %v14997_v20 }
0x7386   : > { %v15002_v3 = vmul.f32 %v15000_v42, %v15000_v42 }
0x7387   : > { %v15001_v25 = vmul.f32 %v14999_v21, %v14999_v21 }
0x7388   : > { %v15006_v13 = vsel %vm661_vm0, %v15002_v3, 0.0 }
0x7389   : > { %15007 = vadd.xlane.f32.xlu1 %v15006_v13  ;;  %v15003_v7 = vsel %vm661_vm0, %v15001_v25, 0.0 }
0x738a   : > { %15004 = vadd.xlane.f32.xlu0 %v15003_v7 }
0x7416   : > { %v15008_v47 = vpop.xlane.xlu1 %15007 }
0x7417   : > { %v15010_v8 = vmul.f32 0.03125, %v15008_v47  ;;  %v15005_v9 = vpop.xlane.xlu0 %15004 }
0x7418   : > { %v15009_v37 = vmul.f32 0.03125, %v15005_v9 }
0x7419   : > { %v15012_v5 = vadd.f32 1e-06, %v15010_v8 }
0x741a   : > { %v15011_v22 = vadd.f32 1e-06, %v15009_v37 }
0x741b   : > { %19433 = vrsqrt.f32 %v15012_v5 }
0x741c   : > { %19435 = vrsqrt.f32 %v15011_v22 }
0x7425   : > { %v19434_v45 = vpop.eup %19433 }
0x7426   : > { %v19436_v61 = vpop.eup %19435  ;;  %v15016_v44 = vmul.f32 %v19434_v45, %v15000_v42 }
0x7427   : > { %v15015_v41 = vmul.f32 %v19436_v61, %v14999_v21 }
0x7428   : > { %v15038_v15 = vmul.f32 %v22005_v54, %v15016_v44 }
0x7429   : > { %v15037_v28 = vmul.f32 %v22005_v54, %v15015_v41 }
0x742a   : > { %v15060_v1 = vadd.f32 %v22018_v59, %v15038_v15 }
0x742b   : > { %v15059_v38 = vadd.f32 %v22018_v59, %v15037_v28 }
0x742d   : > { %18257 = vmatprep.mubr.msk.f32.mxu1 %vm661_vm0, %v15059_v38 }
0x742e   : > { %18258 = vmatmul.mubr.msk.f32.gmra.mrb[170].mxu1 %vm661_vm0, %v15060_v1 }
0x7501   : > { %v18259_v51 = vpop.f32.mrb[170].mxu1 }
0x7502   : > { %v15262_v53 = vadd.f32 %v18259_v51, %v22140_v46  ;;  %v15256_v48 = vpop.f32.mrb[171].mxu1 }
0x7503   : > { %v15257_v14 = vadd.f32 %v22140_v46, %v15256_v48 }
0x7504   : > { %v15296_v16 = vmul.f32 0.70710677, %v15262_v53  ;;  %v15280_v0 = vmul.f32 0.5, %v15262_v53 }
0x7505   : > { %v15295_v56 = vmul.f32 0.70710677, %v15257_v14  ;;  %v15279_v59 = vmul.f32 0.5, %v15257_v14 }
0x7506   : > { %19437 = verf.f32 %v15296_v16 }
0x7507   : > { %19439 = verf.f32 %v15295_v56 }
0x7510   : > { %v19438_v54 = vpop.eup %19437 }
0x7511   : > { %v19440_v30 = vpop.eup %19439  ;;  %v15328_v50 = vadd.f32 1.0, %v19438_v54 }
0x7512   : > { %v15327_v36 = vadd.f32 1.0, %v19440_v30 }
0x7513   : > { %v15344_v35 = vmul.f32 %v15328_v50, %v15280_v0 }
0x7514   : > { %v15343_v18 = vmul.f32 %v15327_v36, %v15279_v59 }
0x7516   : > { %18297 = vmatprep.mubr.msk.f32.mxu0 %vm15360_vm5, %v15343_v18 }
0x7517   : > { %18298 = vmatmul.mubr.msk.f32.gmra.mrb[152].mxu0 %vm15360_vm5, %v15344_v35 }
0x75ea   : > { %v18299_v46 = vpop.f32.mrb[152].mxu0 }
0x75eb   : > { %v15551_v4 = vadd.f32 %v18299_v46, %v22250_v57  ;;  %v15545_v62 = vpop.f32.mrb[153].mxu0 }
0x75ec   : > { %v15546_v43 = vadd.f32 %v22250_v57, %v15545_v62 }
0x75ed   : > { %16188 = vst.msk [vmem:[%s22254_s20 + $0x78] sm:$0xff] %vm661_vm0, %v15551_v4 }
0x75ee   : > { %16187 = vst.msk [vmem:[%s22254_s20 + $0x70] sm:$0xff] %vm661_vm0, %v15546_v43 }
0x75ef   : > { %19643 = shalt.err (!%p19640_p5)
}
0x75f0   : > { %s19644_s26 = scalar_lea.hbm %s22314_s14, 2048  ;;  %s19648_s29 = scalar_lea.hbm %s22511_s22, 4096 }
0x75f1   : > { %p19645_p0 = scmp.ne.s32.totalorder %s22314_s14, %s19644_s26  ;;  %p19649_p4 = scmp.lt.u32.totalorder %s22314_s14, %s22511_s22 }
0x75f2   : > { %p19650_p12 = scmp.lt.u32.totalorder %s19648_s29, %s19644_s26  ;;  %p19652_p8 = scmp.lt.u32.totalorder %s19644_s26, %s22314_s14 }
0x75f3   : > { %p19646_p10 = pnand %p19645_p0, %p22512_p11 }
0x75f4   : > { %p19651_p7 = por %p19650_p12, %p19649_p4 }
0x75f5   : > { %p19647_p3 = pneg %p19646_p10 }
0x75f6   : > { %p19653_p13 = por %p19652_p8, %p19651_p7 }
0x75f8   : > { %p19654_p1 = pnand %p19653_p13, %p19647_p3 }
0x75fa   : > { %19657 = shalt.err (!%p19654_p1)
}
0x75fb   : > { %s19716_s21 = smov 128   ;;  %s19717_s23 = smov 8  }
0x75fc   : > { %19054 = dma.vmem_to_hbm [thread:$0]  (%p22512_p11), %s22316_s24, 2048, %s22314_s14, %s22325_s1, %s19716_s21, %s19716_s21, %s19717_s23  }
0x75fd PF: > { %s22513_s0 = sld [smem:[#allocation18_spill]]  ;;  %s22514_s28 = sld [smem:[#allocation15_spill]] }
0x75fe   : > { %s22515_s20 = sld [smem:[#allocation22_spill]] }
0x7603   : > { %p19081_p6 = scmp.ge.s32.totalorder %s22513_s0, 2  ;;  %s15606_s27 = sand.u32 1, %s22514_s28  }
0x7604   : > { %p22516_p9 = scmp.ne.s32.totalorder %s22515_s20, 0  ;;  %s15607_s26 = scalar_lea.sflag [#allocation4], %s15606_s27 }
0x7606   : > { %p19070_p2 = pnand %p19081_p6, %p22516_p9 }
0x7608   : > { %19687 = dma.done.wait (!%p19070_p2), %s15607_s26, 2048  }
0x7609   : > { %19689 = vsyncadd (!%p19070_p2), %s15607_s26, 4294965248  ;;  %s22517_s21 = sld [smem:[#allocation19_spill]]  ;;  %s22518_s0 = sld [smem:[#allocation16_spill]] }
0x760a   : > { %s22519_s30 = sld [smem:[#allocation17_spill]]  ;;  %s22520_s20 = sld [smem:[#allocation20_spill]] }
0x760f   : > { %p32_p5 = scmp.ge.s32.totalorder %s22517_s21, 4  }
0x7611   :  { %34 = sbr.rel (!%p32_p5) target bundleno = 14 (0xe), region = 183 }
0x7618   :  { %15612 = vsyncpa [#allocation3], 1 }
0x7619   :  { %15614 = vsyncpa [#allocation3 + $0x1], 1 }
0x761a   :  { %15615 = vsyncpa [#allocation6], 1 }
0x761b   :  { %15616 = vsyncpa [#allocation9], 1 }
0x761c   :  { %15617 = vsyncpa [#allocation4], 1 }
0x761d   :  { %15619 = vsyncpa [#allocation4 + $0x1], 1 }

</bundles_post_ra>
